<compile_context>
chip_gen: v7x
topology: tpu7x:2x2x1
jax: 0.10.0
libtpu: 0.0.40
codegen_flags: <defaults>
</compile_context>

<pallas_src>
import math

import jax
import jax.numpy as jnp
from jax.experimental import pallas as pl
from jax.experimental.pallas import tpu as pltpu

_VMEM = pl.BlockSpec(memory_space=pltpu.MemorySpace.VMEM)


# ----------------------------------------------------------------------------
# In-kernel LSTM helpers (pure jnp on values; fully unrolled over time)
# ----------------------------------------------------------------------------

def _lstm_recur(p_at, T, B, H, w_hh):
    """Run the LSTM recurrence.

    p_at(t): (B, 4H) precomputed input projection (+ fused bias) for step t,
             gate order [i | f | g | o] along the last dim.
    Returns (list of T hidden states (B, H), final hidden (B, H)).
    """
    h = jnp.zeros((B, H), jnp.float32)
    c = jnp.zeros((B, H), jnp.float32)
    hs = []
    for t in range(T):                      # static unroll: T is tiny & known
        gates = p_at(t) + jnp.dot(h, w_hh, preferred_element_type=jnp.float32)
        i = jax.nn.sigmoid(gates[:, 0 * H:1 * H])
        f = jax.nn.sigmoid(gates[:, 1 * H:2 * H])
        g = jnp.tanh(gates[:, 2 * H:3 * H])
        o = jax.nn.sigmoid(gates[:, 3 * H:4 * H])
        c = f * c + i * g
        h = o * jnp.tanh(c)
        hs.append(h)
    return hs, h


def _lstm_layer_seq(x_flat, T, B, w_ih, w_hh, b):
    """LSTM layer over a t-major flattened sequence x_flat: (T*B, I)."""
    H = w_hh.shape[0]
    # Hoisted input projection: one MXU-friendly matmul for the whole sequence.
    p = jnp.dot(x_flat, w_ih, preferred_element_type=jnp.float32) + b   # (T*B, 4H)
    return _lstm_recur(lambda t: p[t * B:(t + 1) * B], T, B, H, w_hh)


def _lstm_layer_const(x_const, T, w_ih, w_hh, b):
    """LSTM layer whose input is the same (B, I) vector at every timestep."""
    H = w_hh.shape[0]
    B = x_const.shape[0]
    p0 = jnp.dot(x_const, w_ih, preferred_element_type=jnp.float32) + b  # (B, 4H)
    return _lstm_recur(lambda t: p0, T, B, H, w_hh)


# ----------------------------------------------------------------------------
# Single fused kernel: both (encoder -> decoder -> folded fc -> MSE) branches
# ----------------------------------------------------------------------------

def _make_fused_kernel(L, Tm, Tf, B, D):
    def _branch(x_src, x_tgt, T_src, T_tgt, enc, dec, w_comb, b_comb,
                h_ref, xhat_ref, loss_ref):
        # ---- encoder stack ----
        seq = x_src                                       # (T_src*B, D)
        h_enc = None
        for l, (w_ih, w_hh, b) in enumerate(enc):
            hs, h_enc = _lstm_layer_seq(seq, T_src, B, w_ih, w_hh, b)
            if l + 1 < len(enc):                          # last layer's seq unused
                seq = jnp.concatenate(hs, axis=0)
        h_ref[...] = h_enc                                # (B, emb)

        # ---- decoder stack (layer 0 has a time-invariant input: h_enc) ----
        hs_dec = None
        for l, (w_ih, w_hh, b) in enumerate(dec):
            if l == 0:
                hs_dec, _ = _lstm_layer_const(h_enc, T_tgt, w_ih, w_hh, b)
            else:
                seq = jnp.concatenate(hs_dec, axis=0)
                hs_dec, _ = _lstm_layer_seq(seq, T_tgt, B, w_ih, w_hh, b)
        y_flat = jnp.concatenate(hs_dec, axis=0)          # (T_tgt*B, H_dec)

        # ---- folded (decoder.fc ∘ out-proj) + fused MSE epilogue ----
        xhat = (jnp.dot(y_flat, w_comb, preferred_element_type=jnp.float32)
                + b_comb)
        xhat_ref[...] = xhat
        d = xhat - x_tgt
        loss_ref[...] = jnp.sum(d * d, axis=(0, 1), keepdims=True) * (1.0 / d.size)

    def kernel(*refs):
        it = iter(refs)
        xm_ref = next(it)             # (Tm*B, D)  t-major flattened meg seq
        xf_ref = next(it)             # (Tf*B, D)  t-major flattened fmri seq
        meg_enc = [(next(it)[...], next(it)[...], next(it)[...]) for _ in range(L)]
        fmri_dec = [(next(it)[...], next(it)[...], next(it)[...]) for _ in range(L)]
        wf_comb = next(it)[...]       # (H_dec, D) folded fmri_decoder.fc @ fmri_out
        bf_comb = next(it)[...]       # (1, D)
        fmri_enc = [(next(it)[...], next(it)[...], next(it)[...]) for _ in range(L)]
        meg_dec = [(next(it)[...], next(it)[...], next(it)[...]) for _ in range(L)]
        wm_comb = next(it)[...]       # (H_dec, D) folded meg_decoder.fc @ meg_out
        bm_comb = next(it)[...]       # (1, D)
        hm_ref = next(it)             # out: (B, emb)
        xf_hat_ref = next(it)         # out: (Tf*B, D)
        loss_f_ref = next(it)         # out: (1, 1)
        hf_ref = next(it)             # out: (B, emb)
        xm_hat_ref = next(it)         # out: (Tm*B, D)
        loss_m_ref = next(it)         # out: (1, 1)

        xm = xm_ref[...]
        xf = xf_ref[...]

        # Branch A: meg_encoder(xm) -> fmri_decoder+fmri_out -> xf_hat, loss_f, hm
        _branch(xm, xf, Tm, Tf, meg_enc, fmri_dec, wf_comb, bf_comb,
                hm_ref, xf_hat_ref, loss_f_ref)
        # Branch B: fmri_encoder(xf) -> meg_decoder+meg_out -> xm_hat, loss_m, hf
        _branch(xf, xm, Tf, Tm, fmri_enc, meg_dec, wm_comb, bm_comb,
                hf_ref, xm_hat_ref, loss_m_ref)

    return kernel


def _fused_call(xm_flat, xf_flat, Tm, Tf, B, D, params):
    meg_enc = params["meg_encoder"]
    fmri_enc = params["fmri_encoder"]
    fmri_dec = params["fmri_decoder"]["lstm"]
    meg_dec = params["meg_decoder"]["lstm"]
    wf_comb, bf_comb = params["fmri_decoder"]["fc_comb"]
    wm_comb, bm_comb = params["meg_decoder"]["fc_comb"]

    L = len(meg_enc)
    H_enc = meg_enc[0][1].shape[0]

    args = [xm_flat, xf_flat]
    for (w_ih, w_hh, b) in list(meg_enc) + list(fmri_dec):
        args += [w_ih, w_hh, b]
    args += [wf_comb, bf_comb]
    for (w_ih, w_hh, b) in list(fmri_enc) + list(meg_dec):
        args += [w_ih, w_hh, b]
    args += [wm_comb, bm_comb]

    out_shape = (
        jax.ShapeDtypeStruct((B, H_enc), jnp.float32),     # hm
        jax.ShapeDtypeStruct((Tf * B, D), jnp.float32),    # xf_hat (t-major flat)
        jax.ShapeDtypeStruct((1, 1), jnp.float32),         # loss_f
        jax.ShapeDtypeStruct((B, H_enc), jnp.float32),     # hf
        jax.ShapeDtypeStruct((Tm * B, D), jnp.float32),    # xm_hat (t-major flat)
        jax.ShapeDtypeStruct((1, 1), jnp.float32),         # loss_m
    )
    kernel = _make_fused_kernel(L, Tm, Tf, B, D)
    return pl.pallas_call(
        kernel,
        out_shape=out_shape,
        in_specs=[_VMEM] * len(args),
        out_specs=tuple([_VMEM] * len(out_shape)),
    )(*args)


# ----------------------------------------------------------------------------
# Parameter initialization (PyTorch-default-style uniform init, f32)
# ----------------------------------------------------------------------------

def _lstm_params(key, in_size, hidden, num_layers):
    """Per layer: fused w_ih (I, 4H), w_hh (H, 4H), bias b_ih+b_hh (1, 4H)."""
    layers = []
    bound = 1.0 / math.sqrt(hidden)
    for l in range(num_layers):
        isz = in_size if l == 0 else hidden
        key, k1, k2, k3, k4 = jax.random.split(key, 5)
        w_ih = jax.random.uniform(k1, (isz, 4 * hidden), jnp.float32, -bound, bound)
        w_hh = jax.random.uniform(k2, (hidden, 4 * hidden), jnp.float32, -bound, bound)
        b = (jax.random.uniform(k3, (1, 4 * hidden), jnp.float32, -bound, bound)
             + jax.random.uniform(k4, (1, 4 * hidden), jnp.float32, -bound, bound))
        layers.append((w_ih, w_hh, b))
    return key, layers


def _linear_params(key, in_size, out_size):
    bound = 1.0 / math.sqrt(in_size)
    key, k1, k2 = jax.random.split(key, 3)
    w = jax.random.uniform(k1, (in_size, out_size), jnp.float32, -bound, bound)
    b = jax.random.uniform(k2, (1, out_size), jnp.float32, -bound, bound)
    return key, (w, b)


def _fold_affine(fc, out):
    """Compose two back-to-back affine maps exactly (f32 fold, no nonlinearity)."""
    (w_fc, b_fc), (w_out, b_out) = fc, out
    w_comb = jnp.dot(w_fc, w_out)
    b_comb = jnp.dot(b_fc, w_out) + b_out
    return w_comb, b_comb


def init_params(key, input_size, embedding_size, num_layers):
    hid_dec = 2 * embedding_size
    params = {}
    key, params["meg_encoder"] = _lstm_params(key, input_size, embedding_size, num_layers)
    key, params["fmri_encoder"] = _lstm_params(key, input_size, embedding_size, num_layers)

    key, dec_f_lstm = _lstm_params(key, embedding_size, hid_dec, num_layers)
    key, dec_f_fc = _linear_params(key, hid_dec, input_size)
    key, dec_m_lstm = _lstm_params(key, embedding_size, hid_dec, num_layers)
    key, dec_m_fc = _linear_params(key, hid_dec, input_size)
    key, fmri_out = _linear_params(key, 2 * embedding_size, input_size)
    key, meg_out = _linear_params(key, 2 * embedding_size, input_size)

    params["fmri_decoder"] = {"lstm": dec_f_lstm,
                              "fc_comb": _fold_affine(dec_f_fc, fmri_out)}
    params["meg_decoder"] = {"lstm": dec_m_lstm,
                             "fc_comb": _fold_affine(dec_m_fc, meg_out)}
    return params


# ----------------------------------------------------------------------------
# Forward pass (LSTMAutoencoder2.forward)
# ----------------------------------------------------------------------------

def forward(params, xm, xf):
    # xm: (B, Tm, D), xf: (B, Tf, D)  -- batch-first, like PyTorch batch_first=True
    B, Tm, D = xm.shape
    Tf = xf.shape[1]

    # t-major flattened (T*B, D) views for the kernel (row index = t*B + b)
    xm_flat = jnp.transpose(xm, (1, 0, 2)).reshape(Tm * B, D)
    xf_flat = jnp.transpose(xf, (1, 0, 2)).reshape(Tf * B, D)

    hm, xf_hat_flat, loss_f, hf, xm_hat_flat, loss_m = _fused_call(
        xm_flat, xf_flat, Tm, Tf, B, D, params)

    # Back to batch-first to match the PyTorch return convention
    xf_hat = jnp.transpose(xf_hat_flat.reshape(Tf, B, D), (1, 0, 2))
    xm_hat = jnp.transpose(xm_hat_flat.reshape(Tm, B, D), (1, 0, 2))

    loss_pn, acc_pn = 0, 0  # forward() never calls proto_loss
    return ([loss_pn, loss_m[0, 0], loss_f[0, 0]], acc_pn,
            [hm, hf], [xm_hat, xf_hat])


# ----------------------------------------------------------------------------
# Main
# ----------------------------------------------------------------------------

if __name__ == "__main__":
    B = 2
    embedding_size = 8
    input_size = 2 * embedding_size   # module constraint (fmri_out/meg_out input dim)
    num_layers = 2
    fmri_seq_len = 6
    meg_seq_len = 8

    root = jax.random.PRNGKey(0)
    kx1, kx2, kp = jax.random.split(root, 3)
    xm = jax.random.normal(kx1, (B, meg_seq_len, input_size), jnp.float32)
    xf = jax.random.normal(kx2, (B, fmri_seq_len, input_size), jnp.float32)

    params = init_params(kp, input_size, embedding_size, num_layers)

    fwd = jax.jit(forward)
    losses, acc_pn, hidden, recons = fwd(params, xm, xf)
    jax.block_until_ready((losses[1], losses[2], hidden[0], hidden[1],
                           recons[0], recons[1]))

    assert recons[0].shape == (B, meg_seq_len, input_size)
    assert recons[1].shape == (B, fmri_seq_len, input_size)
    assert hidden[0].shape == (B, embedding_size)
    assert hidden[1].shape == (B, embedding_size)
    assert bool(jnp.isfinite(losses[1])) and bool(jnp.isfinite(losses[2]))

    print("KERNEL_OK")
</pallas_src>

<mosaic_0001>
module attributes {stable_mosaic.version = 11 : i64} {
  func.func @kernel(%arg0: memref<16x16xf32, #tpu.memory_space<vmem>>, %arg1: memref<12x16xf32, #tpu.memory_space<vmem>>, %arg2: memref<16x32xf32, #tpu.memory_space<vmem>>, %arg3: memref<8x32xf32, #tpu.memory_space<vmem>>, %arg4: memref<1x32xf32, #tpu.memory_space<vmem>>, %arg5: memref<8x32xf32, #tpu.memory_space<vmem>>, %arg6: memref<8x32xf32, #tpu.memory_space<vmem>>, %arg7: memref<1x32xf32, #tpu.memory_space<vmem>>, %arg8: memref<8x64xf32, #tpu.memory_space<vmem>>, %arg9: memref<16x64xf32, #tpu.memory_space<vmem>>, %arg10: memref<1x64xf32, #tpu.memory_space<vmem>>, %arg11: memref<16x64xf32, #tpu.memory_space<vmem>>, %arg12: memref<16x64xf32, #tpu.memory_space<vmem>>, %arg13: memref<1x64xf32, #tpu.memory_space<vmem>>, %arg14: memref<16x16xf32, #tpu.memory_space<vmem>>, %arg15: memref<1x16xf32, #tpu.memory_space<vmem>>, %arg16: memref<16x32xf32, #tpu.memory_space<vmem>>, %arg17: memref<8x32xf32, #tpu.memory_space<vmem>>, %arg18: memref<1x32xf32, #tpu.memory_space<vmem>>, %arg19: memref<8x32xf32, #tpu.memory_space<vmem>>, %arg20: memref<8x32xf32, #tpu.memory_space<vmem>>, %arg21: memref<1x32xf32, #tpu.memory_space<vmem>>, %arg22: memref<8x64xf32, #tpu.memory_space<vmem>>, %arg23: memref<16x64xf32, #tpu.memory_space<vmem>>, %arg24: memref<1x64xf32, #tpu.memory_space<vmem>>, %arg25: memref<16x64xf32, #tpu.memory_space<vmem>>, %arg26: memref<16x64xf32, #tpu.memory_space<vmem>>, %arg27: memref<1x64xf32, #tpu.memory_space<vmem>>, %arg28: memref<16x16xf32, #tpu.memory_space<vmem>>, %arg29: memref<1x16xf32, #tpu.memory_space<vmem>>, %arg30: memref<2x8xf32, #tpu.memory_space<vmem>>, %arg31: memref<12x16xf32, #tpu.memory_space<vmem>>, %arg32: memref<1x1xf32, #tpu.memory_space<vmem>>, %arg33: memref<2x8xf32, #tpu.memory_space<vmem>>, %arg34: memref<16x16xf32, #tpu.memory_space<vmem>>, %arg35: memref<1x1xf32, #tpu.memory_space<vmem>>) attributes {dimension_semantics = [], scalar_prefetch = 0 : i64, scratch_operands = 0 : i64, tpu.core_type = #tpu.core_type<tc>} {
    %c0 = arith.constant 0 : index
    %c0_0 = arith.constant 0 : index
    %0 = vector.load %arg2[%c0, %c0_0] : memref<16x32xf32, #tpu.memory_space<vmem>>, vector<16x32xf32>
    %c0_1 = arith.constant 0 : index
    %c0_2 = arith.constant 0 : index
    %1 = vector.load %arg3[%c0_1, %c0_2] : memref<8x32xf32, #tpu.memory_space<vmem>>, vector<8x32xf32>
    %c0_3 = arith.constant 0 : index
    %c0_4 = arith.constant 0 : index
    %2 = vector.load %arg4[%c0_3, %c0_4] : memref<1x32xf32, #tpu.memory_space<vmem>>, vector<1x32xf32>
    %c0_5 = arith.constant 0 : index
    %c0_6 = arith.constant 0 : index
    %3 = vector.load %arg5[%c0_5, %c0_6] : memref<8x32xf32, #tpu.memory_space<vmem>>, vector<8x32xf32>
    %c0_7 = arith.constant 0 : index
    %c0_8 = arith.constant 0 : index
    %4 = vector.load %arg6[%c0_7, %c0_8] : memref<8x32xf32, #tpu.memory_space<vmem>>, vector<8x32xf32>
    %c0_9 = arith.constant 0 : index
    %c0_10 = arith.constant 0 : index
    %5 = vector.load %arg7[%c0_9, %c0_10] : memref<1x32xf32, #tpu.memory_space<vmem>>, vector<1x32xf32>
    %c0_11 = arith.constant 0 : index
    %c0_12 = arith.constant 0 : index
    %6 = vector.load %arg8[%c0_11, %c0_12] : memref<8x64xf32, #tpu.memory_space<vmem>>, vector<8x64xf32>
    %c0_13 = arith.constant 0 : index
    %c0_14 = arith.constant 0 : index
    %7 = vector.load %arg9[%c0_13, %c0_14] : memref<16x64xf32, #tpu.memory_space<vmem>>, vector<16x64xf32>
    %c0_15 = arith.constant 0 : index
    %c0_16 = arith.constant 0 : index
    %8 = vector.load %arg10[%c0_15, %c0_16] : memref<1x64xf32, #tpu.memory_space<vmem>>, vector<1x64xf32>
    %c0_17 = arith.constant 0 : index
    %c0_18 = arith.constant 0 : index
    %9 = vector.load %arg11[%c0_17, %c0_18] : memref<16x64xf32, #tpu.memory_space<vmem>>, vector<16x64xf32>
    %c0_19 = arith.constant 0 : index
    %c0_20 = arith.constant 0 : index
    %10 = vector.load %arg12[%c0_19, %c0_20] : memref<16x64xf32, #tpu.memory_space<vmem>>, vector<16x64xf32>
    %c0_21 = arith.constant 0 : index
    %c0_22 = arith.constant 0 : index
    %11 = vector.load %arg13[%c0_21, %c0_22] : memref<1x64xf32, #tpu.memory_space<vmem>>, vector<1x64xf32>
    %c0_23 = arith.constant 0 : index
    %c0_24 = arith.constant 0 : index
    %12 = vector.load %arg14[%c0_23, %c0_24] : memref<16x16xf32, #tpu.memory_space<vmem>>, vector<16x16xf32>
    %c0_25 = arith.constant 0 : index
    %c0_26 = arith.constant 0 : index
    %13 = vector.load %arg15[%c0_25, %c0_26] : memref<1x16xf32, #tpu.memory_space<vmem>>, vector<1x16xf32>
    %c0_27 = arith.constant 0 : index
    %c0_28 = arith.constant 0 : index
    %14 = vector.load %arg16[%c0_27, %c0_28] : memref<16x32xf32, #tpu.memory_space<vmem>>, vector<16x32xf32>
    %c0_29 = arith.constant 0 : index
    %c0_30 = arith.constant 0 : index
    %15 = vector.load %arg17[%c0_29, %c0_30] : memref<8x32xf32, #tpu.memory_space<vmem>>, vector<8x32xf32>
    %c0_31 = arith.constant 0 : index
    %c0_32 = arith.constant 0 : index
    %16 = vector.load %arg18[%c0_31, %c0_32] : memref<1x32xf32, #tpu.memory_space<vmem>>, vector<1x32xf32>
    %c0_33 = arith.constant 0 : index
    %c0_34 = arith.constant 0 : index
    %17 = vector.load %arg19[%c0_33, %c0_34] : memref<8x32xf32, #tpu.memory_space<vmem>>, vector<8x32xf32>
    %c0_35 = arith.constant 0 : index
    %c0_36 = arith.constant 0 : index
    %18 = vector.load %arg20[%c0_35, %c0_36] : memref<8x32xf32, #tpu.memory_space<vmem>>, vector<8x32xf32>
    %c0_37 = arith.constant 0 : index
    %c0_38 = arith.constant 0 : index
    %19 = vector.load %arg21[%c0_37, %c0_38] : memref<1x32xf32, #tpu.memory_space<vmem>>, vector<1x32xf32>
    %c0_39 = arith.constant 0 : index
    %c0_40 = arith.constant 0 : index
    %20 = vector.load %arg22[%c0_39, %c0_40] : memref<8x64xf32, #tpu.memory_space<vmem>>, vector<8x64xf32>
    %c0_41 = arith.constant 0 : index
    %c0_42 = arith.constant 0 : index
    %21 = vector.load %arg23[%c0_41, %c0_42] : memref<16x64xf32, #tpu.memory_space<vmem>>, vector<16x64xf32>
    %c0_43 = arith.constant 0 : index
    %c0_44 = arith.constant 0 : index
    %22 = vector.load %arg24[%c0_43, %c0_44] : memref<1x64xf32, #tpu.memory_space<vmem>>, vector<1x64xf32>
    %c0_45 = arith.constant 0 : index
    %c0_46 = arith.constant 0 : index
    %23 = vector.load %arg25[%c0_45, %c0_46] : memref<16x64xf32, #tpu.memory_space<vmem>>, vector<16x64xf32>
    %c0_47 = arith.constant 0 : index
    %c0_48 = arith.constant 0 : index
    %24 = vector.load %arg26[%c0_47, %c0_48] : memref<16x64xf32, #tpu.memory_space<vmem>>, vector<16x64xf32>
    %c0_49 = arith.constant 0 : index
    %c0_50 = arith.constant 0 : index
    %25 = vector.load %arg27[%c0_49, %c0_50] : memref<1x64xf32, #tpu.memory_space<vmem>>, vector<1x64xf32>
    %c0_51 = arith.constant 0 : index
    %c0_52 = arith.constant 0 : index
    %26 = vector.load %arg28[%c0_51, %c0_52] : memref<16x16xf32, #tpu.memory_space<vmem>>, vector<16x16xf32>
    %c0_53 = arith.constant 0 : index
    %c0_54 = arith.constant 0 : index
    %27 = vector.load %arg29[%c0_53, %c0_54] : memref<1x16xf32, #tpu.memory_space<vmem>>, vector<1x16xf32>
    %c0_55 = arith.constant 0 : index
    %c0_56 = arith.constant 0 : index
    %28 = vector.load %arg0[%c0_55, %c0_56] : memref<16x16xf32, #tpu.memory_space<vmem>>, vector<16x16xf32>
    %c0_57 = arith.constant 0 : index
    %c0_58 = arith.constant 0 : index
    %29 = vector.load %arg1[%c0_57, %c0_58] : memref<12x16xf32, #tpu.memory_space<vmem>>, vector<12x16xf32>
    %cst = arith.constant dense<0.000000e+00> : vector<16x32xf32>
    %30 = tpu.matmul %28, %0, %cst {dimension_numbers = #tpu.dot_dimension_numbers<[1], [0], [0], [1], [0, 0, 1, 1], [], []>} : vector<16x16xf32>, vector<16x32xf32>, vector<16x32xf32> -> vector<16x32xf32>
    %31 = vector.broadcast %2 : vector<1x32xf32> to vector<16x32xf32>
    %32 = arith.addf %30, %31 : vector<16x32xf32>
    %cst_59 = arith.constant 0.000000e+00 : f32
    %33 = vector.broadcast %cst_59 : f32 to vector<2x8xf32>
    %cst_60 = arith.constant 0.000000e+00 : f32
    %34 = vector.broadcast %cst_60 : f32 to vector<2x8xf32>
    %35 = vector.extract_strided_slice %32 {offsets = [0, 0], sizes = [2, 32], strides = [1, 1]} : vector<16x32xf32> to vector<2x32xf32>
    %cst_61 = arith.constant dense<0.000000e+00> : vector<2x32xf32>
    %36 = tpu.matmul %33, %1, %cst_61 {dimension_numbers = #tpu.dot_dimension_numbers<[1], [0], [0], [1], [0, 0, 1, 1], [], []>} : vector<2x8xf32>, vector<8x32xf32>, vector<2x32xf32> -> vector<2x32xf32>
    %37 = arith.addf %35, %36 : vector<2x32xf32>
    %38 = vector.extract_strided_slice %37 {offsets = [0, 0], sizes = [2, 8], strides = [1, 1]} : vector<2x32xf32> to vector<2x8xf32>
    %39 = arith.negf %38 : vector<2x8xf32>
    %40 = math.exp %39 : vector<2x8xf32>
    %cst_62 = arith.constant 1.000000e+00 : f32
    %41 = vector.broadcast %cst_62 : f32 to vector<2x8xf32>
    %42 = arith.addf %41, %40 : vector<2x8xf32>
    %43 = arith.divf %41, %42 : vector<2x8xf32>
    %44 = vector.extract_strided_slice %37 {offsets = [0, 8], sizes = [2, 8], strides = [1, 1]} : vector<2x32xf32> to vector<2x8xf32>
    %45 = arith.negf %44 : vector<2x8xf32>
    %46 = math.exp %45 : vector<2x8xf32>
    %cst_63 = arith.constant 1.000000e+00 : f32
    %47 = vector.broadcast %cst_63 : f32 to vector<2x8xf32>
    %48 = arith.addf %47, %46 : vector<2x8xf32>
    %49 = arith.divf %47, %48 : vector<2x8xf32>
    %50 = vector.extract_strided_slice %37 {offsets = [0, 16], sizes = [2, 8], strides = [1, 1]} : vector<2x32xf32> to vector<2x8xf32>
    %51 = math.tanh %50 : vector<2x8xf32>
    %52 = vector.extract_strided_slice %37 {offsets = [0, 24], sizes = [2, 8], strides = [1, 1]} : vector<2x32xf32> to vector<2x8xf32>
    %53 = arith.negf %52 : vector<2x8xf32>
    %54 = math.exp %53 : vector<2x8xf32>
    %cst_64 = arith.constant 1.000000e+00 : f32
    %55 = vector.broadcast %cst_64 : f32 to vector<2x8xf32>
    %56 = arith.addf %55, %54 : vector<2x8xf32>
    %57 = arith.divf %55, %56 : vector<2x8xf32>
    %58 = arith.mulf %49, %34 : vector<2x8xf32>
    %59 = arith.mulf %43, %51 : vector<2x8xf32>
    %60 = arith.addf %58, %59 : vector<2x8xf32>
    %61 = math.tanh %60 : vector<2x8xf32>
    %62 = arith.mulf %57, %61 : vector<2x8xf32>
    %63 = vector.extract_strided_slice %32 {offsets = [2, 0], sizes = [2, 32], strides = [1, 1]} : vector<16x32xf32> to vector<2x32xf32>
    %cst_65 = arith.constant dense<0.000000e+00> : vector<2x32xf32>
    %64 = tpu.matmul %62, %1, %cst_65 {dimension_numbers = #tpu.dot_dimension_numbers<[1], [0], [0], [1], [0, 0, 1, 1], [], []>} : vector<2x8xf32>, vector<8x32xf32>, vector<2x32xf32> -> vector<2x32xf32>
    %65 = arith.addf %63, %64 : vector<2x32xf32>
    %66 = vector.extract_strided_slice %65 {offsets = [0, 0], sizes = [2, 8], strides = [1, 1]} : vector<2x32xf32> to vector<2x8xf32>
    %67 = arith.negf %66 : vector<2x8xf32>
    %68 = math.exp %67 : vector<2x8xf32>
    %cst_66 = arith.constant 1.000000e+00 : f32
    %69 = vector.broadcast %cst_66 : f32 to vector<2x8xf32>
    %70 = arith.addf %69, %68 : vector<2x8xf32>
    %71 = arith.divf %69, %70 : vector<2x8xf32>
    %72 = vector.extract_strided_slice %65 {offsets = [0, 8], sizes = [2, 8], strides = [1, 1]} : vector<2x32xf32> to vector<2x8xf32>
    %73 = arith.negf %72 : vector<2x8xf32>
    %74 = math.exp %73 : vector<2x8xf32>
    %cst_67 = arith.constant 1.000000e+00 : f32
    %75 = vector.broadcast %cst_67 : f32 to vector<2x8xf32>
    %76 = arith.addf %75, %74 : vector<2x8xf32>
    %77 = arith.divf %75, %76 : vector<2x8xf32>
    %78 = vector.extract_strided_slice %65 {offsets = [0, 16], sizes = [2, 8], strides = [1, 1]} : vector<2x32xf32> to vector<2x8xf32>
    %79 = math.tanh %78 : vector<2x8xf32>
    %80 = vector.extract_strided_slice %65 {offsets = [0, 24], sizes = [2, 8], strides = [1, 1]} : vector<2x32xf32> to vector<2x8xf32>
    %81 = arith.negf %80 : vector<2x8xf32>
    %82 = math.exp %81 : vector<2x8xf32>
    %cst_68 = arith.constant 1.000000e+00 : f32
    %83 = vector.broadcast %cst_68 : f32 to vector<2x8xf32>
    %84 = arith.addf %83, %82 : vector<2x8xf32>
    %85 = arith.divf %83, %84 : vector<2x8xf32>
    %86 = arith.mulf %77, %60 : vector<2x8xf32>
    %87 = arith.mulf %71, %79 : vector<2x8xf32>
    %88 = arith.addf %86, %87 : vector<2x8xf32>
    %89 = math.tanh %88 : vector<2x8xf32>
    %90 = arith.mulf %85, %89 : vector<2x8xf32>
    %91 = vector.extract_strided_slice %32 {offsets = [4, 0], sizes = [2, 32], strides = [1, 1]} : vector<16x32xf32> to vector<2x32xf32>
    %cst_69 = arith.constant dense<0.000000e+00> : vector<2x32xf32>
    %92 = tpu.matmul %90, %1, %cst_69 {dimension_numbers = #tpu.dot_dimension_numbers<[1], [0], [0], [1], [0, 0, 1, 1], [], []>} : vector<2x8xf32>, vector<8x32xf32>, vector<2x32xf32> -> vector<2x32xf32>
    %93 = arith.addf %91, %92 : vector<2x32xf32>
    %94 = vector.extract_strided_slice %93 {offsets = [0, 0], sizes = [2, 8], strides = [1, 1]} : vector<2x32xf32> to vector<2x8xf32>
    %95 = arith.negf %94 : vector<2x8xf32>
    %96 = math.exp %95 : vector<2x8xf32>
    %cst_70 = arith.constant 1.000000e+00 : f32
    %97 = vector.broadcast %cst_70 : f32 to vector<2x8xf32>
    %98 = arith.addf %97, %96 : vector<2x8xf32>
    %99 = arith.divf %97, %98 : vector<2x8xf32>
    %100 = vector.extract_strided_slice %93 {offsets = [0, 8], sizes = [2, 8], strides = [1, 1]} : vector<2x32xf32> to vector<2x8xf32>
    %101 = arith.negf %100 : vector<2x8xf32>
    %102 = math.exp %101 : vector<2x8xf32>
    %cst_71 = arith.constant 1.000000e+00 : f32
    %103 = vector.broadcast %cst_71 : f32 to vector<2x8xf32>
    %104 = arith.addf %103, %102 : vector<2x8xf32>
    %105 = arith.divf %103, %104 : vector<2x8xf32>
    %106 = vector.extract_strided_slice %93 {offsets = [0, 16], sizes = [2, 8], strides = [1, 1]} : vector<2x32xf32> to vector<2x8xf32>
    %107 = math.tanh %106 : vector<2x8xf32>
    %108 = vector.extract_strided_slice %93 {offsets = [0, 24], sizes = [2, 8], strides = [1, 1]} : vector<2x32xf32> to vector<2x8xf32>
    %109 = arith.negf %108 : vector<2x8xf32>
    %110 = math.exp %109 : vector<2x8xf32>
    %cst_72 = arith.constant 1.000000e+00 : f32
    %111 = vector.broadcast %cst_72 : f32 to vector<2x8xf32>
    %112 = arith.addf %111, %110 : vector<2x8xf32>
    %113 = arith.divf %111, %112 : vector<2x8xf32>
    %114 = arith.mulf %105, %88 : vector<2x8xf32>
    %115 = arith.mulf %99, %107 : vector<2x8xf32>
    %116 = arith.addf %114, %115 : vector<2x8xf32>
    %117 = math.tanh %116 : vector<2x8xf32>
    %118 = arith.mulf %113, %117 : vector<2x8xf32>
    %119 = vector.extract_strided_slice %32 {offsets = [6, 0], sizes = [2, 32], strides = [1, 1]} : vector<16x32xf32> to vector<2x32xf32>
    %cst_73 = arith.constant dense<0.000000e+00> : vector<2x32xf32>
    %120 = tpu.matmul %118, %1, %cst_73 {dimension_numbers = #tpu.dot_dimension_numbers<[1], [0], [0], [1], [0, 0, 1, 1], [], []>} : vector<2x8xf32>, vector<8x32xf32>, vector<2x32xf32> -> vector<2x32xf32>
    %121 = arith.addf %119, %120 : vector<2x32xf32>
    %122 = vector.extract_strided_slice %121 {offsets = [0, 0], sizes = [2, 8], strides = [1, 1]} : vector<2x32xf32> to vector<2x8xf32>
    %123 = arith.negf %122 : vector<2x8xf32>
    %124 = math.exp %123 : vector<2x8xf32>
    %cst_74 = arith.constant 1.000000e+00 : f32
    %125 = vector.broadcast %cst_74 : f32 to vector<2x8xf32>
    %126 = arith.addf %125, %124 : vector<2x8xf32>
    %127 = arith.divf %125, %126 : vector<2x8xf32>
    %128 = vector.extract_strided_slice %121 {offsets = [0, 8], sizes = [2, 8], strides = [1, 1]} : vector<2x32xf32> to vector<2x8xf32>
    %129 = arith.negf %128 : vector<2x8xf32>
    %130 = math.exp %129 : vector<2x8xf32>
    %cst_75 = arith.constant 1.000000e+00 : f32
    %131 = vector.broadcast %cst_75 : f32 to vector<2x8xf32>
    %132 = arith.addf %131, %130 : vector<2x8xf32>
    %133 = arith.divf %131, %132 : vector<2x8xf32>
    %134 = vector.extract_strided_slice %121 {offsets = [0, 16], sizes = [2, 8], strides = [1, 1]} : vector<2x32xf32> to vector<2x8xf32>
    %135 = math.tanh %134 : vector<2x8xf32>
    %136 = vector.extract_strided_slice %121 {offsets = [0, 24], sizes = [2, 8], strides = [1, 1]} : vector<2x32xf32> to vector<2x8xf32>
    %137 = arith.negf %136 : vector<2x8xf32>
    %138 = math.exp %137 : vector<2x8xf32>
    %cst_76 = arith.constant 1.000000e+00 : f32
    %139 = vector.broadcast %cst_76 : f32 to vector<2x8xf32>
    %140 = arith.addf %139, %138 : vector<2x8xf32>
    %141 = arith.divf %139, %140 : vector<2x8xf32>
    %142 = arith.mulf %133, %116 : vector<2x8xf32>
    %143 = arith.mulf %127, %135 : vector<2x8xf32>
    %144 = arith.addf %142, %143 : vector<2x8xf32>
    %145 = math.tanh %144 : vector<2x8xf32>
    %146 = arith.mulf %141, %145 : vector<2x8xf32>
    %147 = vector.extract_strided_slice %32 {offsets = [8, 0], sizes = [2, 32], strides = [1, 1]} : vector<16x32xf32> to vector<2x32xf32>
    %cst_77 = arith.constant dense<0.000000e+00> : vector<2x32xf32>
    %148 = tpu.matmul %146, %1, %cst_77 {dimension_numbers = #tpu.dot_dimension_numbers<[1], [0], [0], [1], [0, 0, 1, 1], [], []>} : vector<2x8xf32>, vector<8x32xf32>, vector<2x32xf32> -> vector<2x32xf32>
    %149 = arith.addf %147, %148 : vector<2x32xf32>
    %150 = vector.extract_strided_slice %149 {offsets = [0, 0], sizes = [2, 8], strides = [1, 1]} : vector<2x32xf32> to vector<2x8xf32>
    %151 = arith.negf %150 : vector<2x8xf32>
    %152 = math.exp %151 : vector<2x8xf32>
    %cst_78 = arith.constant 1.000000e+00 : f32
    %153 = vector.broadcast %cst_78 : f32 to vector<2x8xf32>
    %154 = arith.addf %153, %152 : vector<2x8xf32>
    %155 = arith.divf %153, %154 : vector<2x8xf32>
    %156 = vector.extract_strided_slice %149 {offsets = [0, 8], sizes = [2, 8], strides = [1, 1]} : vector<2x32xf32> to vector<2x8xf32>
    %157 = arith.negf %156 : vector<2x8xf32>
    %158 = math.exp %157 : vector<2x8xf32>
    %cst_79 = arith.constant 1.000000e+00 : f32
    %159 = vector.broadcast %cst_79 : f32 to vector<2x8xf32>
    %160 = arith.addf %159, %158 : vector<2x8xf32>
    %161 = arith.divf %159, %160 : vector<2x8xf32>
    %162 = vector.extract_strided_slice %149 {offsets = [0, 16], sizes = [2, 8], strides = [1, 1]} : vector<2x32xf32> to vector<2x8xf32>
    %163 = math.tanh %162 : vector<2x8xf32>
    %164 = vector.extract_strided_slice %149 {offsets = [0, 24], sizes = [2, 8], strides = [1, 1]} : vector<2x32xf32> to vector<2x8xf32>
    %165 = arith.negf %164 : vector<2x8xf32>
    %166 = math.exp %165 : vector<2x8xf32>
    %cst_80 = arith.constant 1.000000e+00 : f32
    %167 = vector.broadcast %cst_80 : f32 to vector<2x8xf32>
    %168 = arith.addf %167, %166 : vector<2x8xf32>
    %169 = arith.divf %167, %168 : vector<2x8xf32>
    %170 = arith.mulf %161, %144 : vector<2x8xf32>
    %171 = arith.mulf %155, %163 : vector<2x8xf32>
    %172 = arith.addf %170, %171 : vector<2x8xf32>
    %173 = math.tanh %172 : vector<2x8xf32>
    %174 = arith.mulf %169, %173 : vector<2x8xf32>
    %175 = vector.extract_strided_slice %32 {offsets = [10, 0], sizes = [2, 32], strides = [1, 1]} : vector<16x32xf32> to vector<2x32xf32>
    %cst_81 = arith.constant dense<0.000000e+00> : vector<2x32xf32>
    %176 = tpu.matmul %174, %1, %cst_81 {dimension_numbers = #tpu.dot_dimension_numbers<[1], [0], [0], [1], [0, 0, 1, 1], [], []>} : vector<2x8xf32>, vector<8x32xf32>, vector<2x32xf32> -> vector<2x32xf32>
    %177 = arith.addf %175, %176 : vector<2x32xf32>
    %178 = vector.extract_strided_slice %177 {offsets = [0, 0], sizes = [2, 8], strides = [1, 1]} : vector<2x32xf32> to vector<2x8xf32>
    %179 = arith.negf %178 : vector<2x8xf32>
    %180 = math.exp %179 : vector<2x8xf32>
    %cst_82 = arith.constant 1.000000e+00 : f32
    %181 = vector.broadcast %cst_82 : f32 to vector<2x8xf32>
    %182 = arith.addf %181, %180 : vector<2x8xf32>
    %183 = arith.divf %181, %182 : vector<2x8xf32>
    %184 = vector.extract_strided_slice %177 {offsets = [0, 8], sizes = [2, 8], strides = [1, 1]} : vector<2x32xf32> to vector<2x8xf32>
    %185 = arith.negf %184 : vector<2x8xf32>
    %186 = math.exp %185 : vector<2x8xf32>
    %cst_83 = arith.constant 1.000000e+00 : f32
    %187 = vector.broadcast %cst_83 : f32 to vector<2x8xf32>
    %188 = arith.addf %187, %186 : vector<2x8xf32>
    %189 = arith.divf %187, %188 : vector<2x8xf32>
    %190 = vector.extract_strided_slice %177 {offsets = [0, 16], sizes = [2, 8], strides = [1, 1]} : vector<2x32xf32> to vector<2x8xf32>
    %191 = math.tanh %190 : vector<2x8xf32>
    %192 = vector.extract_strided_slice %177 {offsets = [0, 24], sizes = [2, 8], strides = [1, 1]} : vector<2x32xf32> to vector<2x8xf32>
    %193 = arith.negf %192 : vector<2x8xf32>
    %194 = math.exp %193 : vector<2x8xf32>
    %cst_84 = arith.constant 1.000000e+00 : f32
    %195 = vector.broadcast %cst_84 : f32 to vector<2x8xf32>
    %196 = arith.addf %195, %194 : vector<2x8xf32>
    %197 = arith.divf %195, %196 : vector<2x8xf32>
    %198 = arith.mulf %189, %172 : vector<2x8xf32>
    %199 = arith.mulf %183, %191 : vector<2x8xf32>
    %200 = arith.addf %198, %199 : vector<2x8xf32>
    %201 = math.tanh %200 : vector<2x8xf32>
    %202 = arith.mulf %197, %201 : vector<2x8xf32>
    %203 = vector.extract_strided_slice %32 {offsets = [12, 0], sizes = [2, 32], strides = [1, 1]} : vector<16x32xf32> to vector<2x32xf32>
    %cst_85 = arith.constant dense<0.000000e+00> : vector<2x32xf32>
    %204 = tpu.matmul %202, %1, %cst_85 {dimension_numbers = #tpu.dot_dimension_numbers<[1], [0], [0], [1], [0, 0, 1, 1], [], []>} : vector<2x8xf32>, vector<8x32xf32>, vector<2x32xf32> -> vector<2x32xf32>
    %205 = arith.addf %203, %204 : vector<2x32xf32>
    %206 = vector.extract_strided_slice %205 {offsets = [0, 0], sizes = [2, 8], strides = [1, 1]} : vector<2x32xf32> to vector<2x8xf32>
    %207 = arith.negf %206 : vector<2x8xf32>
    %208 = math.exp %207 : vector<2x8xf32>
    %cst_86 = arith.constant 1.000000e+00 : f32
    %209 = vector.broadcast %cst_86 : f32 to vector<2x8xf32>
    %210 = arith.addf %209, %208 : vector<2x8xf32>
    %211 = arith.divf %209, %210 : vector<2x8xf32>
    %212 = vector.extract_strided_slice %205 {offsets = [0, 8], sizes = [2, 8], strides = [1, 1]} : vector<2x32xf32> to vector<2x8xf32>
    %213 = arith.negf %212 : vector<2x8xf32>
    %214 = math.exp %213 : vector<2x8xf32>
    %cst_87 = arith.constant 1.000000e+00 : f32
    %215 = vector.broadcast %cst_87 : f32 to vector<2x8xf32>
    %216 = arith.addf %215, %214 : vector<2x8xf32>
    %217 = arith.divf %215, %216 : vector<2x8xf32>
    %218 = vector.extract_strided_slice %205 {offsets = [0, 16], sizes = [2, 8], strides = [1, 1]} : vector<2x32xf32> to vector<2x8xf32>
    %219 = math.tanh %218 : vector<2x8xf32>
    %220 = vector.extract_strided_slice %205 {offsets = [0, 24], sizes = [2, 8], strides = [1, 1]} : vector<2x32xf32> to vector<2x8xf32>
    %221 = arith.negf %220 : vector<2x8xf32>
    %222 = math.exp %221 : vector<2x8xf32>
    %cst_88 = arith.constant 1.000000e+00 : f32
    %223 = vector.broadcast %cst_88 : f32 to vector<2x8xf32>
    %224 = arith.addf %223, %222 : vector<2x8xf32>
    %225 = arith.divf %223, %224 : vector<2x8xf32>
    %226 = arith.mulf %217, %200 : vector<2x8xf32>
    %227 = arith.mulf %211, %219 : vector<2x8xf32>
    %228 = arith.addf %226, %227 : vector<2x8xf32>
    %229 = math.tanh %228 : vector<2x8xf32>
    %230 = arith.mulf %225, %229 : vector<2x8xf32>
    %231 = vector.extract_strided_slice %32 {offsets = [14, 0], sizes = [2, 32], strides = [1, 1]} : vector<16x32xf32> to vector<2x32xf32>
    %cst_89 = arith.constant dense<0.000000e+00> : vector<2x32xf32>
    %232 = tpu.matmul %230, %1, %cst_89 {dimension_numbers = #tpu.dot_dimension_numbers<[1], [0], [0], [1], [0, 0, 1, 1], [], []>} : vector<2x8xf32>, vector<8x32xf32>, vector<2x32xf32> -> vector<2x32xf32>
    %233 = arith.addf %231, %232 : vector<2x32xf32>
    %234 = vector.extract_strided_slice %233 {offsets = [0, 0], sizes = [2, 8], strides = [1, 1]} : vector<2x32xf32> to vector<2x8xf32>
    %235 = arith.negf %234 : vector<2x8xf32>
    %236 = math.exp %235 : vector<2x8xf32>
    %cst_90 = arith.constant 1.000000e+00 : f32
    %237 = vector.broadcast %cst_90 : f32 to vector<2x8xf32>
    %238 = arith.addf %237, %236 : vector<2x8xf32>
    %239 = arith.divf %237, %238 : vector<2x8xf32>
    %240 = vector.extract_strided_slice %233 {offsets = [0, 8], sizes = [2, 8], strides = [1, 1]} : vector<2x32xf32> to vector<2x8xf32>
    %241 = arith.negf %240 : vector<2x8xf32>
    %242 = math.exp %241 : vector<2x8xf32>
    %cst_91 = arith.constant 1.000000e+00 : f32
    %243 = vector.broadcast %cst_91 : f32 to vector<2x8xf32>
    %244 = arith.addf %243, %242 : vector<2x8xf32>
    %245 = arith.divf %243, %244 : vector<2x8xf32>
    %246 = vector.extract_strided_slice %233 {offsets = [0, 16], sizes = [2, 8], strides = [1, 1]} : vector<2x32xf32> to vector<2x8xf32>
    %247 = math.tanh %246 : vector<2x8xf32>
    %248 = vector.extract_strided_slice %233 {offsets = [0, 24], sizes = [2, 8], strides = [1, 1]} : vector<2x32xf32> to vector<2x8xf32>
    %249 = arith.negf %248 : vector<2x8xf32>
    %250 = math.exp %249 : vector<2x8xf32>
    %cst_92 = arith.constant 1.000000e+00 : f32
    %251 = vector.broadcast %cst_92 : f32 to vector<2x8xf32>
    %252 = arith.addf %251, %250 : vector<2x8xf32>
    %253 = arith.divf %251, %252 : vector<2x8xf32>
    %254 = arith.mulf %245, %228 : vector<2x8xf32>
    %255 = arith.mulf %239, %247 : vector<2x8xf32>
    %256 = arith.addf %254, %255 : vector<2x8xf32>
    %257 = math.tanh %256 : vector<2x8xf32>
    %258 = arith.mulf %253, %257 : vector<2x8xf32>
    %259 = tpu.concatenate %62, %90, %118, %146, %174, %202, %230, %258 in 0 : vector<2x8xf32>, vector<2x8xf32>, vector<2x8xf32>, vector<2x8xf32>, vector<2x8xf32>, vector<2x8xf32>, vector<2x8xf32>, vector<2x8xf32> -> vector<16x8xf32>
    %cst_93 = arith.constant dense<0.000000e+00> : vector<16x32xf32>
    %260 = tpu.matmul %259, %3, %cst_93 {dimension_numbers = #tpu.dot_dimension_numbers<[1], [0], [0], [1], [0, 0, 1, 1], [], []>} : vector<16x8xf32>, vector<8x32xf32>, vector<16x32xf32> -> vector<16x32xf32>
    %261 = vector.broadcast %5 : vector<1x32xf32> to vector<16x32xf32>
    %262 = arith.addf %260, %261 : vector<16x32xf32>
    %cst_94 = arith.constant 0.000000e+00 : f32
    %263 = vector.broadcast %cst_94 : f32 to vector<2x8xf32>
    %cst_95 = arith.constant 0.000000e+00 : f32
    %264 = vector.broadcast %cst_95 : f32 to vector<2x8xf32>
    %265 = vector.extract_strided_slice %262 {offsets = [0, 0], sizes = [2, 32], strides = [1, 1]} : vector<16x32xf32> to vector<2x32xf32>
    %cst_96 = arith.constant dense<0.000000e+00> : vector<2x32xf32>
    %266 = tpu.matmul %263, %4, %cst_96 {dimension_numbers = #tpu.dot_dimension_numbers<[1], [0], [0], [1], [0, 0, 1, 1], [], []>} : vector<2x8xf32>, vector<8x32xf32>, vector<2x32xf32> -> vector<2x32xf32>
    %267 = arith.addf %265, %266 : vector<2x32xf32>
    %268 = vector.extract_strided_slice %267 {offsets = [0, 0], sizes = [2, 8], strides = [1, 1]} : vector<2x32xf32> to vector<2x8xf32>
    %269 = arith.negf %268 : vector<2x8xf32>
    %270 = math.exp %269 : vector<2x8xf32>
    %cst_97 = arith.constant 1.000000e+00 : f32
    %271 = vector.broadcast %cst_97 : f32 to vector<2x8xf32>
    %272 = arith.addf %271, %270 : vector<2x8xf32>
    %273 = arith.divf %271, %272 : vector<2x8xf32>
    %274 = vector.extract_strided_slice %267 {offsets = [0, 8], sizes = [2, 8], strides = [1, 1]} : vector<2x32xf32> to vector<2x8xf32>
    %275 = arith.negf %274 : vector<2x8xf32>
    %276 = math.exp %275 : vector<2x8xf32>
    %cst_98 = arith.constant 1.000000e+00 : f32
    %277 = vector.broadcast %cst_98 : f32 to vector<2x8xf32>
    %278 = arith.addf %277, %276 : vector<2x8xf32>
    %279 = arith.divf %277, %278 : vector<2x8xf32>
    %280 = vector.extract_strided_slice %267 {offsets = [0, 16], sizes = [2, 8], strides = [1, 1]} : vector<2x32xf32> to vector<2x8xf32>
    %281 = math.tanh %280 : vector<2x8xf32>
    %282 = vector.extract_strided_slice %267 {offsets = [0, 24], sizes = [2, 8], strides = [1, 1]} : vector<2x32xf32> to vector<2x8xf32>
    %283 = arith.negf %282 : vector<2x8xf32>
    %284 = math.exp %283 : vector<2x8xf32>
    %cst_99 = arith.constant 1.000000e+00 : f32
    %285 = vector.broadcast %cst_99 : f32 to vector<2x8xf32>
    %286 = arith.addf %285, %284 : vector<2x8xf32>
    %287 = arith.divf %285, %286 : vector<2x8xf32>
    %288 = arith.mulf %279, %264 : vector<2x8xf32>
    %289 = arith.mulf %273, %281 : vector<2x8xf32>
    %290 = arith.addf %288, %289 : vector<2x8xf32>
    %291 = math.tanh %290 : vector<2x8xf32>
    %292 = arith.mulf %287, %291 : vector<2x8xf32>
    %293 = vector.extract_strided_slice %262 {offsets = [2, 0], sizes = [2, 32], strides = [1, 1]} : vector<16x32xf32> to vector<2x32xf32>
    %cst_100 = arith.constant dense<0.000000e+00> : vector<2x32xf32>
    %294 = tpu.matmul %292, %4, %cst_100 {dimension_numbers = #tpu.dot_dimension_numbers<[1], [0], [0], [1], [0, 0, 1, 1], [], []>} : vector<2x8xf32>, vector<8x32xf32>, vector<2x32xf32> -> vector<2x32xf32>
    %295 = arith.addf %293, %294 : vector<2x32xf32>
    %296 = vector.extract_strided_slice %295 {offsets = [0, 0], sizes = [2, 8], strides = [1, 1]} : vector<2x32xf32> to vector<2x8xf32>
    %297 = arith.negf %296 : vector<2x8xf32>
    %298 = math.exp %297 : vector<2x8xf32>
    %cst_101 = arith.constant 1.000000e+00 : f32
    %299 = vector.broadcast %cst_101 : f32 to vector<2x8xf32>
    %300 = arith.addf %299, %298 : vector<2x8xf32>
    %301 = arith.divf %299, %300 : vector<2x8xf32>
    %302 = vector.extract_strided_slice %295 {offsets = [0, 8], sizes = [2, 8], strides = [1, 1]} : vector<2x32xf32> to vector<2x8xf32>
    %303 = arith.negf %302 : vector<2x8xf32>
    %304 = math.exp %303 : vector<2x8xf32>
    %cst_102 = arith.constant 1.000000e+00 : f32
    %305 = vector.broadcast %cst_102 : f32 to vector<2x8xf32>
    %306 = arith.addf %305, %304 : vector<2x8xf32>
    %307 = arith.divf %305, %306 : vector<2x8xf32>
    %308 = vector.extract_strided_slice %295 {offsets = [0, 16], sizes = [2, 8], strides = [1, 1]} : vector<2x32xf32> to vector<2x8xf32>
    %309 = math.tanh %308 : vector<2x8xf32>
    %310 = vector.extract_strided_slice %295 {offsets = [0, 24], sizes = [2, 8], strides = [1, 1]} : vector<2x32xf32> to vector<2x8xf32>
    %311 = arith.negf %310 : vector<2x8xf32>
    %312 = math.exp %311 : vector<2x8xf32>
    %cst_103 = arith.constant 1.000000e+00 : f32
    %313 = vector.broadcast %cst_103 : f32 to vector<2x8xf32>
    %314 = arith.addf %313, %312 : vector<2x8xf32>
    %315 = arith.divf %313, %314 : vector<2x8xf32>
    %316 = arith.mulf %307, %290 : vector<2x8xf32>
    %317 = arith.mulf %301, %309 : vector<2x8xf32>
    %318 = arith.addf %316, %317 : vector<2x8xf32>
    %319 = math.tanh %318 : vector<2x8xf32>
    %320 = arith.mulf %315, %319 : vector<2x8xf32>
    %321 = vector.extract_strided_slice %262 {offsets = [4, 0], sizes = [2, 32], strides = [1, 1]} : vector<16x32xf32> to vector<2x32xf32>
    %cst_104 = arith.constant dense<0.000000e+00> : vector<2x32xf32>
    %322 = tpu.matmul %320, %4, %cst_104 {dimension_numbers = #tpu.dot_dimension_numbers<[1], [0], [0], [1], [0, 0, 1, 1], [], []>} : vector<2x8xf32>, vector<8x32xf32>, vector<2x32xf32> -> vector<2x32xf32>
    %323 = arith.addf %321, %322 : vector<2x32xf32>
    %324 = vector.extract_strided_slice %323 {offsets = [0, 0], sizes = [2, 8], strides = [1, 1]} : vector<2x32xf32> to vector<2x8xf32>
    %325 = arith.negf %324 : vector<2x8xf32>
    %326 = math.exp %325 : vector<2x8xf32>
    %cst_105 = arith.constant 1.000000e+00 : f32
    %327 = vector.broadcast %cst_105 : f32 to vector<2x8xf32>
    %328 = arith.addf %327, %326 : vector<2x8xf32>
    %329 = arith.divf %327, %328 : vector<2x8xf32>
    %330 = vector.extract_strided_slice %323 {offsets = [0, 8], sizes = [2, 8], strides = [1, 1]} : vector<2x32xf32> to vector<2x8xf32>
    %331 = arith.negf %330 : vector<2x8xf32>
    %332 = math.exp %331 : vector<2x8xf32>
    %cst_106 = arith.constant 1.000000e+00 : f32
    %333 = vector.broadcast %cst_106 : f32 to vector<2x8xf32>
    %334 = arith.addf %333, %332 : vector<2x8xf32>
    %335 = arith.divf %333, %334 : vector<2x8xf32>
    %336 = vector.extract_strided_slice %323 {offsets = [0, 16], sizes = [2, 8], strides = [1, 1]} : vector<2x32xf32> to vector<2x8xf32>
    %337 = math.tanh %336 : vector<2x8xf32>
    %338 = vector.extract_strided_slice %323 {offsets = [0, 24], sizes = [2, 8], strides = [1, 1]} : vector<2x32xf32> to vector<2x8xf32>
    %339 = arith.negf %338 : vector<2x8xf32>
    %340 = math.exp %339 : vector<2x8xf32>
    %cst_107 = arith.constant 1.000000e+00 : f32
    %341 = vector.broadcast %cst_107 : f32 to vector<2x8xf32>
    %342 = arith.addf %341, %340 : vector<2x8xf32>
    %343 = arith.divf %341, %342 : vector<2x8xf32>
    %344 = arith.mulf %335, %318 : vector<2x8xf32>
    %345 = arith.mulf %329, %337 : vector<2x8xf32>
    %346 = arith.addf %344, %345 : vector<2x8xf32>
    %347 = math.tanh %346 : vector<2x8xf32>
    %348 = arith.mulf %343, %347 : vector<2x8xf32>
    %349 = vector.extract_strided_slice %262 {offsets = [6, 0], sizes = [2, 32], strides = [1, 1]} : vector<16x32xf32> to vector<2x32xf32>
    %cst_108 = arith.constant dense<0.000000e+00> : vector<2x32xf32>
    %350 = tpu.matmul %348, %4, %cst_108 {dimension_numbers = #tpu.dot_dimension_numbers<[1], [0], [0], [1], [0, 0, 1, 1], [], []>} : vector<2x8xf32>, vector<8x32xf32>, vector<2x32xf32> -> vector<2x32xf32>
    %351 = arith.addf %349, %350 : vector<2x32xf32>
    %352 = vector.extract_strided_slice %351 {offsets = [0, 0], sizes = [2, 8], strides = [1, 1]} : vector<2x32xf32> to vector<2x8xf32>
    %353 = arith.negf %352 : vector<2x8xf32>
    %354 = math.exp %353 : vector<2x8xf32>
    %cst_109 = arith.constant 1.000000e+00 : f32
    %355 = vector.broadcast %cst_109 : f32 to vector<2x8xf32>
    %356 = arith.addf %355, %354 : vector<2x8xf32>
    %357 = arith.divf %355, %356 : vector<2x8xf32>
    %358 = vector.extract_strided_slice %351 {offsets = [0, 8], sizes = [2, 8], strides = [1, 1]} : vector<2x32xf32> to vector<2x8xf32>
    %359 = arith.negf %358 : vector<2x8xf32>
    %360 = math.exp %359 : vector<2x8xf32>
    %cst_110 = arith.constant 1.000000e+00 : f32
    %361 = vector.broadcast %cst_110 : f32 to vector<2x8xf32>
    %362 = arith.addf %361, %360 : vector<2x8xf32>
    %363 = arith.divf %361, %362 : vector<2x8xf32>
    %364 = vector.extract_strided_slice %351 {offsets = [0, 16], sizes = [2, 8], strides = [1, 1]} : vector<2x32xf32> to vector<2x8xf32>
    %365 = math.tanh %364 : vector<2x8xf32>
    %366 = vector.extract_strided_slice %351 {offsets = [0, 24], sizes = [2, 8], strides = [1, 1]} : vector<2x32xf32> to vector<2x8xf32>
    %367 = arith.negf %366 : vector<2x8xf32>
    %368 = math.exp %367 : vector<2x8xf32>
    %cst_111 = arith.constant 1.000000e+00 : f32
    %369 = vector.broadcast %cst_111 : f32 to vector<2x8xf32>
    %370 = arith.addf %369, %368 : vector<2x8xf32>
    %371 = arith.divf %369, %370 : vector<2x8xf32>
    %372 = arith.mulf %363, %346 : vector<2x8xf32>
    %373 = arith.mulf %357, %365 : vector<2x8xf32>
    %374 = arith.addf %372, %373 : vector<2x8xf32>
    %375 = math.tanh %374 : vector<2x8xf32>
    %376 = arith.mulf %371, %375 : vector<2x8xf32>
    %377 = vector.extract_strided_slice %262 {offsets = [8, 0], sizes = [2, 32], strides = [1, 1]} : vector<16x32xf32> to vector<2x32xf32>
    %cst_112 = arith.constant dense<0.000000e+00> : vector<2x32xf32>
    %378 = tpu.matmul %376, %4, %cst_112 {dimension_numbers = #tpu.dot_dimension_numbers<[1], [0], [0], [1], [0, 0, 1, 1], [], []>} : vector<2x8xf32>, vector<8x32xf32>, vector<2x32xf32> -> vector<2x32xf32>
    %379 = arith.addf %377, %378 : vector<2x32xf32>
    %380 = vector.extract_strided_slice %379 {offsets = [0, 0], sizes = [2, 8], strides = [1, 1]} : vector<2x32xf32> to vector<2x8xf32>
    %381 = arith.negf %380 : vector<2x8xf32>
    %382 = math.exp %381 : vector<2x8xf32>
    %cst_113 = arith.constant 1.000000e+00 : f32
    %383 = vector.broadcast %cst_113 : f32 to vector<2x8xf32>
    %384 = arith.addf %383, %382 : vector<2x8xf32>
    %385 = arith.divf %383, %384 : vector<2x8xf32>
    %386 = vector.extract_strided_slice %379 {offsets = [0, 8], sizes = [2, 8], strides = [1, 1]} : vector<2x32xf32> to vector<2x8xf32>
    %387 = arith.negf %386 : vector<2x8xf32>
    %388 = math.exp %387 : vector<2x8xf32>
    %cst_114 = arith.constant 1.000000e+00 : f32
    %389 = vector.broadcast %cst_114 : f32 to vector<2x8xf32>
    %390 = arith.addf %389, %388 : vector<2x8xf32>
    %391 = arith.divf %389, %390 : vector<2x8xf32>
    %392 = vector.extract_strided_slice %379 {offsets = [0, 16], sizes = [2, 8], strides = [1, 1]} : vector<2x32xf32> to vector<2x8xf32>
    %393 = math.tanh %392 : vector<2x8xf32>
    %394 = vector.extract_strided_slice %379 {offsets = [0, 24], sizes = [2, 8], strides = [1, 1]} : vector<2x32xf32> to vector<2x8xf32>
    %395 = arith.negf %394 : vector<2x8xf32>
    %396 = math.exp %395 : vector<2x8xf32>
    %cst_115 = arith.constant 1.000000e+00 : f32
    %397 = vector.broadcast %cst_115 : f32 to vector<2x8xf32>
    %398 = arith.addf %397, %396 : vector<2x8xf32>
    %399 = arith.divf %397, %398 : vector<2x8xf32>
    %400 = arith.mulf %391, %374 : vector<2x8xf32>
    %401 = arith.mulf %385, %393 : vector<2x8xf32>
    %402 = arith.addf %400, %401 : vector<2x8xf32>
    %403 = math.tanh %402 : vector<2x8xf32>
    %404 = arith.mulf %399, %403 : vector<2x8xf32>
    %405 = vector.extract_strided_slice %262 {offsets = [10, 0], sizes = [2, 32], strides = [1, 1]} : vector<16x32xf32> to vector<2x32xf32>
    %cst_116 = arith.constant dense<0.000000e+00> : vector<2x32xf32>
    %406 = tpu.matmul %404, %4, %cst_116 {dimension_numbers = #tpu.dot_dimension_numbers<[1], [0], [0], [1], [0, 0, 1, 1], [], []>} : vector<2x8xf32>, vector<8x32xf32>, vector<2x32xf32> -> vector<2x32xf32>
    %407 = arith.addf %405, %406 : vector<2x32xf32>
    %408 = vector.extract_strided_slice %407 {offsets = [0, 0], sizes = [2, 8], strides = [1, 1]} : vector<2x32xf32> to vector<2x8xf32>
    %409 = arith.negf %408 : vector<2x8xf32>
    %410 = math.exp %409 : vector<2x8xf32>
    %cst_117 = arith.constant 1.000000e+00 : f32
    %411 = vector.broadcast %cst_117 : f32 to vector<2x8xf32>
    %412 = arith.addf %411, %410 : vector<2x8xf32>
    %413 = arith.divf %411, %412 : vector<2x8xf32>
    %414 = vector.extract_strided_slice %407 {offsets = [0, 8], sizes = [2, 8], strides = [1, 1]} : vector<2x32xf32> to vector<2x8xf32>
    %415 = arith.negf %414 : vector<2x8xf32>
    %416 = math.exp %415 : vector<2x8xf32>
    %cst_118 = arith.constant 1.000000e+00 : f32
    %417 = vector.broadcast %cst_118 : f32 to vector<2x8xf32>
    %418 = arith.addf %417, %416 : vector<2x8xf32>
    %419 = arith.divf %417, %418 : vector<2x8xf32>
    %420 = vector.extract_strided_slice %407 {offsets = [0, 16], sizes = [2, 8], strides = [1, 1]} : vector<2x32xf32> to vector<2x8xf32>
    %421 = math.tanh %420 : vector<2x8xf32>
    %422 = vector.extract_strided_slice %407 {offsets = [0, 24], sizes = [2, 8], strides = [1, 1]} : vector<2x32xf32> to vector<2x8xf32>
    %423 = arith.negf %422 : vector<2x8xf32>
    %424 = math.exp %423 : vector<2x8xf32>
    %cst_119 = arith.constant 1.000000e+00 : f32
    %425 = vector.broadcast %cst_119 : f32 to vector<2x8xf32>
    %426 = arith.addf %425, %424 : vector<2x8xf32>
    %427 = arith.divf %425, %426 : vector<2x8xf32>
    %428 = arith.mulf %419, %402 : vector<2x8xf32>
    %429 = arith.mulf %413, %421 : vector<2x8xf32>
    %430 = arith.addf %428, %429 : vector<2x8xf32>
    %431 = math.tanh %430 : vector<2x8xf32>
    %432 = arith.mulf %427, %431 : vector<2x8xf32>
    %433 = vector.extract_strided_slice %262 {offsets = [12, 0], sizes = [2, 32], strides = [1, 1]} : vector<16x32xf32> to vector<2x32xf32>
    %cst_120 = arith.constant dense<0.000000e+00> : vector<2x32xf32>
    %434 = tpu.matmul %432, %4, %cst_120 {dimension_numbers = #tpu.dot_dimension_numbers<[1], [0], [0], [1], [0, 0, 1, 1], [], []>} : vector<2x8xf32>, vector<8x32xf32>, vector<2x32xf32> -> vector<2x32xf32>
    %435 = arith.addf %433, %434 : vector<2x32xf32>
    %436 = vector.extract_strided_slice %435 {offsets = [0, 0], sizes = [2, 8], strides = [1, 1]} : vector<2x32xf32> to vector<2x8xf32>
    %437 = arith.negf %436 : vector<2x8xf32>
    %438 = math.exp %437 : vector<2x8xf32>
    %cst_121 = arith.constant 1.000000e+00 : f32
    %439 = vector.broadcast %cst_121 : f32 to vector<2x8xf32>
    %440 = arith.addf %439, %438 : vector<2x8xf32>
    %441 = arith.divf %439, %440 : vector<2x8xf32>
    %442 = vector.extract_strided_slice %435 {offsets = [0, 8], sizes = [2, 8], strides = [1, 1]} : vector<2x32xf32> to vector<2x8xf32>
    %443 = arith.negf %442 : vector<2x8xf32>
    %444 = math.exp %443 : vector<2x8xf32>
    %cst_122 = arith.constant 1.000000e+00 : f32
    %445 = vector.broadcast %cst_122 : f32 to vector<2x8xf32>
    %446 = arith.addf %445, %444 : vector<2x8xf32>
    %447 = arith.divf %445, %446 : vector<2x8xf32>
    %448 = vector.extract_strided_slice %435 {offsets = [0, 16], sizes = [2, 8], strides = [1, 1]} : vector<2x32xf32> to vector<2x8xf32>
    %449 = math.tanh %448 : vector<2x8xf32>
    %450 = vector.extract_strided_slice %435 {offsets = [0, 24], sizes = [2, 8], strides = [1, 1]} : vector<2x32xf32> to vector<2x8xf32>
    %451 = arith.negf %450 : vector<2x8xf32>
    %452 = math.exp %451 : vector<2x8xf32>
    %cst_123 = arith.constant 1.000000e+00 : f32
    %453 = vector.broadcast %cst_123 : f32 to vector<2x8xf32>
    %454 = arith.addf %453, %452 : vector<2x8xf32>
    %455 = arith.divf %453, %454 : vector<2x8xf32>
    %456 = arith.mulf %447, %430 : vector<2x8xf32>
    %457 = arith.mulf %441, %449 : vector<2x8xf32>
    %458 = arith.addf %456, %457 : vector<2x8xf32>
    %459 = math.tanh %458 : vector<2x8xf32>
    %460 = arith.mulf %455, %459 : vector<2x8xf32>
    %461 = vector.extract_strided_slice %262 {offsets = [14, 0], sizes = [2, 32], strides = [1, 1]} : vector<16x32xf32> to vector<2x32xf32>
    %cst_124 = arith.constant dense<0.000000e+00> : vector<2x32xf32>
    %462 = tpu.matmul %460, %4, %cst_124 {dimension_numbers = #tpu.dot_dimension_numbers<[1], [0], [0], [1], [0, 0, 1, 1], [], []>} : vector<2x8xf32>, vector<8x32xf32>, vector<2x32xf32> -> vector<2x32xf32>
    %463 = arith.addf %461, %462 : vector<2x32xf32>
    %464 = vector.extract_strided_slice %463 {offsets = [0, 0], sizes = [2, 8], strides = [1, 1]} : vector<2x32xf32> to vector<2x8xf32>
    %465 = arith.negf %464 : vector<2x8xf32>
    %466 = math.exp %465 : vector<2x8xf32>
    %cst_125 = arith.constant 1.000000e+00 : f32
    %467 = vector.broadcast %cst_125 : f32 to vector<2x8xf32>
    %468 = arith.addf %467, %466 : vector<2x8xf32>
    %469 = arith.divf %467, %468 : vector<2x8xf32>
    %470 = vector.extract_strided_slice %463 {offsets = [0, 8], sizes = [2, 8], strides = [1, 1]} : vector<2x32xf32> to vector<2x8xf32>
    %471 = arith.negf %470 : vector<2x8xf32>
    %472 = math.exp %471 : vector<2x8xf32>
    %cst_126 = arith.constant 1.000000e+00 : f32
    %473 = vector.broadcast %cst_126 : f32 to vector<2x8xf32>
    %474 = arith.addf %473, %472 : vector<2x8xf32>
    %475 = arith.divf %473, %474 : vector<2x8xf32>
    %476 = vector.extract_strided_slice %463 {offsets = [0, 16], sizes = [2, 8], strides = [1, 1]} : vector<2x32xf32> to vector<2x8xf32>
    %477 = math.tanh %476 : vector<2x8xf32>
    %478 = vector.extract_strided_slice %463 {offsets = [0, 24], sizes = [2, 8], strides = [1, 1]} : vector<2x32xf32> to vector<2x8xf32>
    %479 = arith.negf %478 : vector<2x8xf32>
    %480 = math.exp %479 : vector<2x8xf32>
    %cst_127 = arith.constant 1.000000e+00 : f32
    %481 = vector.broadcast %cst_127 : f32 to vector<2x8xf32>
    %482 = arith.addf %481, %480 : vector<2x8xf32>
    %483 = arith.divf %481, %482 : vector<2x8xf32>
    %484 = arith.mulf %475, %458 : vector<2x8xf32>
    %485 = arith.mulf %469, %477 : vector<2x8xf32>
    %486 = arith.addf %484, %485 : vector<2x8xf32>
    %487 = math.tanh %486 : vector<2x8xf32>
    %488 = arith.mulf %483, %487 : vector<2x8xf32>
    %c0_128 = arith.constant 0 : index
    %c0_129 = arith.constant 0 : index
    %489 = vector.load %arg30[%c0_128, %c0_129] : memref<2x8xf32, #tpu.memory_space<vmem>>, vector<2x8xf32>
    tpu.vector_store %arg30[%c0_128, %c0_129], %488 {strides = array<i32>} : memref<2x8xf32, #tpu.memory_space<vmem>>, vector<2x8xf32>,
    %cst_130 = arith.constant dense<0.000000e+00> : vector<2x64xf32>
    %490 = tpu.matmul %488, %6, %cst_130 {dimension_numbers = #tpu.dot_dimension_numbers<[1], [0], [0], [1], [0, 0, 1, 1], [], []>} : vector<2x8xf32>, vector<8x64xf32>, vector<2x64xf32> -> vector<2x64xf32>
    %491 = vector.broadcast %8 : vector<1x64xf32> to vector<2x64xf32>
    %492 = arith.addf %490, %491 : vector<2x64xf32>
    %cst_131 = arith.constant 0.000000e+00 : f32
    %493 = vector.broadcast %cst_131 : f32 to vector<2x16xf32>
    %cst_132 = arith.constant 0.000000e+00 : f32
    %494 = vector.broadcast %cst_132 : f32 to vector<2x16xf32>
    %cst_133 = arith.constant dense<0.000000e+00> : vector<2x64xf32>
    %495 = tpu.matmul %493, %7, %cst_133 {dimension_numbers = #tpu.dot_dimension_numbers<[1], [0], [0], [1], [0, 0, 1, 1], [], []>} : vector<2x16xf32>, vector<16x64xf32>, vector<2x64xf32> -> vector<2x64xf32>
    %496 = arith.addf %492, %495 : vector<2x64xf32>
    %497 = vector.extract_strided_slice %496 {offsets = [0, 0], sizes = [2, 16], strides = [1, 1]} : vector<2x64xf32> to vector<2x16xf32>
    %498 = arith.negf %497 : vector<2x16xf32>
    %499 = math.exp %498 : vector<2x16xf32>
    %cst_134 = arith.constant 1.000000e+00 : f32
    %500 = vector.broadcast %cst_134 : f32 to vector<2x16xf32>
    %501 = arith.addf %500, %499 : vector<2x16xf32>
    %502 = arith.divf %500, %501 : vector<2x16xf32>
    %503 = vector.extract_strided_slice %496 {offsets = [0, 16], sizes = [2, 16], strides = [1, 1]} : vector<2x64xf32> to vector<2x16xf32>
    %504 = arith.negf %503 : vector<2x16xf32>
    %505 = math.exp %504 : vector<2x16xf32>
    %cst_135 = arith.constant 1.000000e+00 : f32
    %506 = vector.broadcast %cst_135 : f32 to vector<2x16xf32>
    %507 = arith.addf %506, %505 : vector<2x16xf32>
    %508 = arith.divf %506, %507 : vector<2x16xf32>
    %509 = vector.extract_strided_slice %496 {offsets = [0, 32], sizes = [2, 16], strides = [1, 1]} : vector<2x64xf32> to vector<2x16xf32>
    %510 = math.tanh %509 : vector<2x16xf32>
    %511 = vector.extract_strided_slice %496 {offsets = [0, 48], sizes = [2, 16], strides = [1, 1]} : vector<2x64xf32> to vector<2x16xf32>
    %512 = arith.negf %511 : vector<2x16xf32>
    %513 = math.exp %512 : vector<2x16xf32>
    %cst_136 = arith.constant 1.000000e+00 : f32
    %514 = vector.broadcast %cst_136 : f32 to vector<2x16xf32>
    %515 = arith.addf %514, %513 : vector<2x16xf32>
    %516 = arith.divf %514, %515 : vector<2x16xf32>
    %517 = arith.mulf %508, %494 : vector<2x16xf32>
    %518 = arith.mulf %502, %510 : vector<2x16xf32>
    %519 = arith.addf %517, %518 : vector<2x16xf32>
    %520 = math.tanh %519 : vector<2x16xf32>
    %521 = arith.mulf %516, %520 : vector<2x16xf32>
    %cst_137 = arith.constant dense<0.000000e+00> : vector<2x64xf32>
    %522 = tpu.matmul %521, %7, %cst_137 {dimension_numbers = #tpu.dot_dimension_numbers<[1], [0], [0], [1], [0, 0, 1, 1], [], []>} : vector<2x16xf32>, vector<16x64xf32>, vector<2x64xf32> -> vector<2x64xf32>
    %523 = arith.addf %492, %522 : vector<2x64xf32>
    %524 = vector.extract_strided_slice %523 {offsets = [0, 0], sizes = [2, 16], strides = [1, 1]} : vector<2x64xf32> to vector<2x16xf32>
    %525 = arith.negf %524 : vector<2x16xf32>
    %526 = math.exp %525 : vector<2x16xf32>
    %cst_138 = arith.constant 1.000000e+00 : f32
    %527 = vector.broadcast %cst_138 : f32 to vector<2x16xf32>
    %528 = arith.addf %527, %526 : vector<2x16xf32>
    %529 = arith.divf %527, %528 : vector<2x16xf32>
    %530 = vector.extract_strided_slice %523 {offsets = [0, 16], sizes = [2, 16], strides = [1, 1]} : vector<2x64xf32> to vector<2x16xf32>
    %531 = arith.negf %530 : vector<2x16xf32>
    %532 = math.exp %531 : vector<2x16xf32>
    %cst_139 = arith.constant 1.000000e+00 : f32
    %533 = vector.broadcast %cst_139 : f32 to vector<2x16xf32>
    %534 = arith.addf %533, %532 : vector<2x16xf32>
    %535 = arith.divf %533, %534 : vector<2x16xf32>
    %536 = vector.extract_strided_slice %523 {offsets = [0, 32], sizes = [2, 16], strides = [1, 1]} : vector<2x64xf32> to vector<2x16xf32>
    %537 = math.tanh %536 : vector<2x16xf32>
    %538 = vector.extract_strided_slice %523 {offsets = [0, 48], sizes = [2, 16], strides = [1, 1]} : vector<2x64xf32> to vector<2x16xf32>
    %539 = arith.negf %538 : vector<2x16xf32>
    %540 = math.exp %539 : vector<2x16xf32>
    %cst_140 = arith.constant 1.000000e+00 : f32
    %541 = vector.broadcast %cst_140 : f32 to vector<2x16xf32>
    %542 = arith.addf %541, %540 : vector<2x16xf32>
    %543 = arith.divf %541, %542 : vector<2x16xf32>
    %544 = arith.mulf %535, %519 : vector<2x16xf32>
    %545 = arith.mulf %529, %537 : vector<2x16xf32>
    %546 = arith.addf %544, %545 : vector<2x16xf32>
    %547 = math.tanh %546 : vector<2x16xf32>
    %548 = arith.mulf %543, %547 : vector<2x16xf32>
    %cst_141 = arith.constant dense<0.000000e+00> : vector<2x64xf32>
    %549 = tpu.matmul %548, %7, %cst_141 {dimension_numbers = #tpu.dot_dimension_numbers<[1], [0], [0], [1], [0, 0, 1, 1], [], []>} : vector<2x16xf32>, vector<16x64xf32>, vector<2x64xf32> -> vector<2x64xf32>
    %550 = arith.addf %492, %549 : vector<2x64xf32>
    %551 = vector.extract_strided_slice %550 {offsets = [0, 0], sizes = [2, 16], strides = [1, 1]} : vector<2x64xf32> to vector<2x16xf32>
    %552 = arith.negf %551 : vector<2x16xf32>
    %553 = math.exp %552 : vector<2x16xf32>
    %cst_142 = arith.constant 1.000000e+00 : f32
    %554 = vector.broadcast %cst_142 : f32 to vector<2x16xf32>
    %555 = arith.addf %554, %553 : vector<2x16xf32>
    %556 = arith.divf %554, %555 : vector<2x16xf32>
    %557 = vector.extract_strided_slice %550 {offsets = [0, 16], sizes = [2, 16], strides = [1, 1]} : vector<2x64xf32> to vector<2x16xf32>
    %558 = arith.negf %557 : vector<2x16xf32>
    %559 = math.exp %558 : vector<2x16xf32>
    %cst_143 = arith.constant 1.000000e+00 : f32
    %560 = vector.broadcast %cst_143 : f32 to vector<2x16xf32>
    %561 = arith.addf %560, %559 : vector<2x16xf32>
    %562 = arith.divf %560, %561 : vector<2x16xf32>
    %563 = vector.extract_strided_slice %550 {offsets = [0, 32], sizes = [2, 16], strides = [1, 1]} : vector<2x64xf32> to vector<2x16xf32>
    %564 = math.tanh %563 : vector<2x16xf32>
    %565 = vector.extract_strided_slice %550 {offsets = [0, 48], sizes = [2, 16], strides = [1, 1]} : vector<2x64xf32> to vector<2x16xf32>
    %566 = arith.negf %565 : vector<2x16xf32>
    %567 = math.exp %566 : vector<2x16xf32>
    %cst_144 = arith.constant 1.000000e+00 : f32
    %568 = vector.broadcast %cst_144 : f32 to vector<2x16xf32>
    %569 = arith.addf %568, %567 : vector<2x16xf32>
    %570 = arith.divf %568, %569 : vector<2x16xf32>
    %571 = arith.mulf %562, %546 : vector<2x16xf32>
    %572 = arith.mulf %556, %564 : vector<2x16xf32>
    %573 = arith.addf %571, %572 : vector<2x16xf32>
    %574 = math.tanh %573 : vector<2x16xf32>
    %575 = arith.mulf %570, %574 : vector<2x16xf32>
    %cst_145 = arith.constant dense<0.000000e+00> : vector<2x64xf32>
    %576 = tpu.matmul %575, %7, %cst_145 {dimension_numbers = #tpu.dot_dimension_numbers<[1], [0], [0], [1], [0, 0, 1, 1], [], []>} : vector<2x16xf32>, vector<16x64xf32>, vector<2x64xf32> -> vector<2x64xf32>
    %577 = arith.addf %492, %576 : vector<2x64xf32>
    %578 = vector.extract_strided_slice %577 {offsets = [0, 0], sizes = [2, 16], strides = [1, 1]} : vector<2x64xf32> to vector<2x16xf32>
    %579 = arith.negf %578 : vector<2x16xf32>
    %580 = math.exp %579 : vector<2x16xf32>
    %cst_146 = arith.constant 1.000000e+00 : f32
    %581 = vector.broadcast %cst_146 : f32 to vector<2x16xf32>
    %582 = arith.addf %581, %580 : vector<2x16xf32>
    %583 = arith.divf %581, %582 : vector<2x16xf32>
    %584 = vector.extract_strided_slice %577 {offsets = [0, 16], sizes = [2, 16], strides = [1, 1]} : vector<2x64xf32> to vector<2x16xf32>
    %585 = arith.negf %584 : vector<2x16xf32>
    %586 = math.exp %585 : vector<2x16xf32>
    %cst_147 = arith.constant 1.000000e+00 : f32
    %587 = vector.broadcast %cst_147 : f32 to vector<2x16xf32>
    %588 = arith.addf %587, %586 : vector<2x16xf32>
    %589 = arith.divf %587, %588 : vector<2x16xf32>
    %590 = vector.extract_strided_slice %577 {offsets = [0, 32], sizes = [2, 16], strides = [1, 1]} : vector<2x64xf32> to vector<2x16xf32>
    %591 = math.tanh %590 : vector<2x16xf32>
    %592 = vector.extract_strided_slice %577 {offsets = [0, 48], sizes = [2, 16], strides = [1, 1]} : vector<2x64xf32> to vector<2x16xf32>
    %593 = arith.negf %592 : vector<2x16xf32>
    %594 = math.exp %593 : vector<2x16xf32>
    %cst_148 = arith.constant 1.000000e+00 : f32
    %595 = vector.broadcast %cst_148 : f32 to vector<2x16xf32>
    %596 = arith.addf %595, %594 : vector<2x16xf32>
    %597 = arith.divf %595, %596 : vector<2x16xf32>
    %598 = arith.mulf %589, %573 : vector<2x16xf32>
    %599 = arith.mulf %583, %591 : vector<2x16xf32>
    %600 = arith.addf %598, %599 : vector<2x16xf32>
    %601 = math.tanh %600 : vector<2x16xf32>
    %602 = arith.mulf %597, %601 : vector<2x16xf32>
    %cst_149 = arith.constant dense<0.000000e+00> : vector<2x64xf32>
    %603 = tpu.matmul %602, %7, %cst_149 {dimension_numbers = #tpu.dot_dimension_numbers<[1], [0], [0], [1], [0, 0, 1, 1], [], []>} : vector<2x16xf32>, vector<16x64xf32>, vector<2x64xf32> -> vector<2x64xf32>
    %604 = arith.addf %492, %603 : vector<2x64xf32>
    %605 = vector.extract_strided_slice %604 {offsets = [0, 0], sizes = [2, 16], strides = [1, 1]} : vector<2x64xf32> to vector<2x16xf32>
    %606 = arith.negf %605 : vector<2x16xf32>
    %607 = math.exp %606 : vector<2x16xf32>
    %cst_150 = arith.constant 1.000000e+00 : f32
    %608 = vector.broadcast %cst_150 : f32 to vector<2x16xf32>
    %609 = arith.addf %608, %607 : vector<2x16xf32>
    %610 = arith.divf %608, %609 : vector<2x16xf32>
    %611 = vector.extract_strided_slice %604 {offsets = [0, 16], sizes = [2, 16], strides = [1, 1]} : vector<2x64xf32> to vector<2x16xf32>
    %612 = arith.negf %611 : vector<2x16xf32>
    %613 = math.exp %612 : vector<2x16xf32>
    %cst_151 = arith.constant 1.000000e+00 : f32
    %614 = vector.broadcast %cst_151 : f32 to vector<2x16xf32>
    %615 = arith.addf %614, %613 : vector<2x16xf32>
    %616 = arith.divf %614, %615 : vector<2x16xf32>
    %617 = vector.extract_strided_slice %604 {offsets = [0, 32], sizes = [2, 16], strides = [1, 1]} : vector<2x64xf32> to vector<2x16xf32>
    %618 = math.tanh %617 : vector<2x16xf32>
    %619 = vector.extract_strided_slice %604 {offsets = [0, 48], sizes = [2, 16], strides = [1, 1]} : vector<2x64xf32> to vector<2x16xf32>
    %620 = arith.negf %619 : vector<2x16xf32>
    %621 = math.exp %620 : vector<2x16xf32>
    %cst_152 = arith.constant 1.000000e+00 : f32
    %622 = vector.broadcast %cst_152 : f32 to vector<2x16xf32>
    %623 = arith.addf %622, %621 : vector<2x16xf32>
    %624 = arith.divf %622, %623 : vector<2x16xf32>
    %625 = arith.mulf %616, %600 : vector<2x16xf32>
    %626 = arith.mulf %610, %618 : vector<2x16xf32>
    %627 = arith.addf %625, %626 : vector<2x16xf32>
    %628 = math.tanh %627 : vector<2x16xf32>
    %629 = arith.mulf %624, %628 : vector<2x16xf32>
    %cst_153 = arith.constant dense<0.000000e+00> : vector<2x64xf32>
    %630 = tpu.matmul %629, %7, %cst_153 {dimension_numbers = #tpu.dot_dimension_numbers<[1], [0], [0], [1], [0, 0, 1, 1], [], []>} : vector<2x16xf32>, vector<16x64xf32>, vector<2x64xf32> -> vector<2x64xf32>
    %631 = arith.addf %492, %630 : vector<2x64xf32>
    %632 = vector.extract_strided_slice %631 {offsets = [0, 0], sizes = [2, 16], strides = [1, 1]} : vector<2x64xf32> to vector<2x16xf32>
    %633 = arith.negf %632 : vector<2x16xf32>
    %634 = math.exp %633 : vector<2x16xf32>
    %cst_154 = arith.constant 1.000000e+00 : f32
    %635 = vector.broadcast %cst_154 : f32 to vector<2x16xf32>
    %636 = arith.addf %635, %634 : vector<2x16xf32>
    %637 = arith.divf %635, %636 : vector<2x16xf32>
    %638 = vector.extract_strided_slice %631 {offsets = [0, 16], sizes = [2, 16], strides = [1, 1]} : vector<2x64xf32> to vector<2x16xf32>
    %639 = arith.negf %638 : vector<2x16xf32>
    %640 = math.exp %639 : vector<2x16xf32>
    %cst_155 = arith.constant 1.000000e+00 : f32
    %641 = vector.broadcast %cst_155 : f32 to vector<2x16xf32>
    %642 = arith.addf %641, %640 : vector<2x16xf32>
    %643 = arith.divf %641, %642 : vector<2x16xf32>
    %644 = vector.extract_strided_slice %631 {offsets = [0, 32], sizes = [2, 16], strides = [1, 1]} : vector<2x64xf32> to vector<2x16xf32>
    %645 = math.tanh %644 : vector<2x16xf32>
    %646 = vector.extract_strided_slice %631 {offsets = [0, 48], sizes = [2, 16], strides = [1, 1]} : vector<2x64xf32> to vector<2x16xf32>
    %647 = arith.negf %646 : vector<2x16xf32>
    %648 = math.exp %647 : vector<2x16xf32>
    %cst_156 = arith.constant 1.000000e+00 : f32
    %649 = vector.broadcast %cst_156 : f32 to vector<2x16xf32>
    %650 = arith.addf %649, %648 : vector<2x16xf32>
    %651 = arith.divf %649, %650 : vector<2x16xf32>
    %652 = arith.mulf %643, %627 : vector<2x16xf32>
    %653 = arith.mulf %637, %645 : vector<2x16xf32>
    %654 = arith.addf %652, %653 : vector<2x16xf32>
    %655 = math.tanh %654 : vector<2x16xf32>
    %656 = arith.mulf %651, %655 : vector<2x16xf32>
    %657 = tpu.concatenate %521, %548, %575, %602, %629, %656 in 0 : vector<2x16xf32>, vector<2x16xf32>, vector<2x16xf32>, vector<2x16xf32>, vector<2x16xf32>, vector<2x16xf32> -> vector<12x16xf32>
    %cst_157 = arith.constant dense<0.000000e+00> : vector<12x64xf32>
    %658 = tpu.matmul %657, %9, %cst_157 {dimension_numbers = #tpu.dot_dimension_numbers<[1], [0], [0], [1], [0, 0, 1, 1], [], []>} : vector<12x16xf32>, vector<16x64xf32>, vector<12x64xf32> -> vector<12x64xf32>
    %659 = vector.broadcast %11 : vector<1x64xf32> to vector<12x64xf32>
    %660 = arith.addf %658, %659 : vector<12x64xf32>
    %cst_158 = arith.constant 0.000000e+00 : f32
    %661 = vector.broadcast %cst_158 : f32 to vector<2x16xf32>
    %cst_159 = arith.constant 0.000000e+00 : f32
    %662 = vector.broadcast %cst_159 : f32 to vector<2x16xf32>
    %663 = vector.extract_strided_slice %660 {offsets = [0, 0], sizes = [2, 64], strides = [1, 1]} : vector<12x64xf32> to vector<2x64xf32>
    %cst_160 = arith.constant dense<0.000000e+00> : vector<2x64xf32>
    %664 = tpu.matmul %661, %10, %cst_160 {dimension_numbers = #tpu.dot_dimension_numbers<[1], [0], [0], [1], [0, 0, 1, 1], [], []>} : vector<2x16xf32>, vector<16x64xf32>, vector<2x64xf32> -> vector<2x64xf32>
    %665 = arith.addf %663, %664 : vector<2x64xf32>
    %666 = vector.extract_strided_slice %665 {offsets = [0, 0], sizes = [2, 16], strides = [1, 1]} : vector<2x64xf32> to vector<2x16xf32>
    %667 = arith.negf %666 : vector<2x16xf32>
    %668 = math.exp %667 : vector<2x16xf32>
    %cst_161 = arith.constant 1.000000e+00 : f32
    %669 = vector.broadcast %cst_161 : f32 to vector<2x16xf32>
    %670 = arith.addf %669, %668 : vector<2x16xf32>
    %671 = arith.divf %669, %670 : vector<2x16xf32>
    %672 = vector.extract_strided_slice %665 {offsets = [0, 16], sizes = [2, 16], strides = [1, 1]} : vector<2x64xf32> to vector<2x16xf32>
    %673 = arith.negf %672 : vector<2x16xf32>
    %674 = math.exp %673 : vector<2x16xf32>
    %cst_162 = arith.constant 1.000000e+00 : f32
    %675 = vector.broadcast %cst_162 : f32 to vector<2x16xf32>
    %676 = arith.addf %675, %674 : vector<2x16xf32>
    %677 = arith.divf %675, %676 : vector<2x16xf32>
    %678 = vector.extract_strided_slice %665 {offsets = [0, 32], sizes = [2, 16], strides = [1, 1]} : vector<2x64xf32> to vector<2x16xf32>
    %679 = math.tanh %678 : vector<2x16xf32>
    %680 = vector.extract_strided_slice %665 {offsets = [0, 48], sizes = [2, 16], strides = [1, 1]} : vector<2x64xf32> to vector<2x16xf32>
    %681 = arith.negf %680 : vector<2x16xf32>
    %682 = math.exp %681 : vector<2x16xf32>
    %cst_163 = arith.constant 1.000000e+00 : f32
    %683 = vector.broadcast %cst_163 : f32 to vector<2x16xf32>
    %684 = arith.addf %683, %682 : vector<2x16xf32>
    %685 = arith.divf %683, %684 : vector<2x16xf32>
    %686 = arith.mulf %677, %662 : vector<2x16xf32>
    %687 = arith.mulf %671, %679 : vector<2x16xf32>
    %688 = arith.addf %686, %687 : vector<2x16xf32>
    %689 = math.tanh %688 : vector<2x16xf32>
    %690 = arith.mulf %685, %689 : vector<2x16xf32>
    %691 = vector.extract_strided_slice %660 {offsets = [2, 0], sizes = [2, 64], strides = [1, 1]} : vector<12x64xf32> to vector<2x64xf32>
    %cst_164 = arith.constant dense<0.000000e+00> : vector<2x64xf32>
    %692 = tpu.matmul %690, %10, %cst_164 {dimension_numbers = #tpu.dot_dimension_numbers<[1], [0], [0], [1], [0, 0, 1, 1], [], []>} : vector<2x16xf32>, vector<16x64xf32>, vector<2x64xf32> -> vector<2x64xf32>
    %693 = arith.addf %691, %692 : vector<2x64xf32>
    %694 = vector.extract_strided_slice %693 {offsets = [0, 0], sizes = [2, 16], strides = [1, 1]} : vector<2x64xf32> to vector<2x16xf32>
    %695 = arith.negf %694 : vector<2x16xf32>
    %696 = math.exp %695 : vector<2x16xf32>
    %cst_165 = arith.constant 1.000000e+00 : f32
    %697 = vector.broadcast %cst_165 : f32 to vector<2x16xf32>
    %698 = arith.addf %697, %696 : vector<2x16xf32>
    %699 = arith.divf %697, %698 : vector<2x16xf32>
    %700 = vector.extract_strided_slice %693 {offsets = [0, 16], sizes = [2, 16], strides = [1, 1]} : vector<2x64xf32> to vector<2x16xf32>
    %701 = arith.negf %700 : vector<2x16xf32>
    %702 = math.exp %701 : vector<2x16xf32>
    %cst_166 = arith.constant 1.000000e+00 : f32
    %703 = vector.broadcast %cst_166 : f32 to vector<2x16xf32>
    %704 = arith.addf %703, %702 : vector<2x16xf32>
    %705 = arith.divf %703, %704 : vector<2x16xf32>
    %706 = vector.extract_strided_slice %693 {offsets = [0, 32], sizes = [2, 16], strides = [1, 1]} : vector<2x64xf32> to vector<2x16xf32>
    %707 = math.tanh %706 : vector<2x16xf32>
    %708 = vector.extract_strided_slice %693 {offsets = [0, 48], sizes = [2, 16], strides = [1, 1]} : vector<2x64xf32> to vector<2x16xf32>
    %709 = arith.negf %708 : vector<2x16xf32>
    %710 = math.exp %709 : vector<2x16xf32>
    %cst_167 = arith.constant 1.000000e+00 : f32
    %711 = vector.broadcast %cst_167 : f32 to vector<2x16xf32>
    %712 = arith.addf %711, %710 : vector<2x16xf32>
    %713 = arith.divf %711, %712 : vector<2x16xf32>
    %714 = arith.mulf %705, %688 : vector<2x16xf32>
    %715 = arith.mulf %699, %707 : vector<2x16xf32>
    %716 = arith.addf %714, %715 : vector<2x16xf32>
    %717 = math.tanh %716 : vector<2x16xf32>
    %718 = arith.mulf %713, %717 : vector<2x16xf32>
    %719 = vector.extract_strided_slice %660 {offsets = [4, 0], sizes = [2, 64], strides = [1, 1]} : vector<12x64xf32> to vector<2x64xf32>
    %cst_168 = arith.constant dense<0.000000e+00> : vector<2x64xf32>
    %720 = tpu.matmul %718, %10, %cst_168 {dimension_numbers = #tpu.dot_dimension_numbers<[1], [0], [0], [1], [0, 0, 1, 1], [], []>} : vector<2x16xf32>, vector<16x64xf32>, vector<2x64xf32> -> vector<2x64xf32>
    %721 = arith.addf %719, %720 : vector<2x64xf32>
    %722 = vector.extract_strided_slice %721 {offsets = [0, 0], sizes = [2, 16], strides = [1, 1]} : vector<2x64xf32> to vector<2x16xf32>
    %723 = arith.negf %722 : vector<2x16xf32>
    %724 = math.exp %723 : vector<2x16xf32>
    %cst_169 = arith.constant 1.000000e+00 : f32
    %725 = vector.broadcast %cst_169 : f32 to vector<2x16xf32>
    %726 = arith.addf %725, %724 : vector<2x16xf32>
    %727 = arith.divf %725, %726 : vector<2x16xf32>
    %728 = vector.extract_strided_slice %721 {offsets = [0, 16], sizes = [2, 16], strides = [1, 1]} : vector<2x64xf32> to vector<2x16xf32>
    %729 = arith.negf %728 : vector<2x16xf32>
    %730 = math.exp %729 : vector<2x16xf32>
    %cst_170 = arith.constant 1.000000e+00 : f32
    %731 = vector.broadcast %cst_170 : f32 to vector<2x16xf32>
    %732 = arith.addf %731, %730 : vector<2x16xf32>
    %733 = arith.divf %731, %732 : vector<2x16xf32>
    %734 = vector.extract_strided_slice %721 {offsets = [0, 32], sizes = [2, 16], strides = [1, 1]} : vector<2x64xf32> to vector<2x16xf32>
    %735 = math.tanh %734 : vector<2x16xf32>
    %736 = vector.extract_strided_slice %721 {offsets = [0, 48], sizes = [2, 16], strides = [1, 1]} : vector<2x64xf32> to vector<2x16xf32>
    %737 = arith.negf %736 : vector<2x16xf32>
    %738 = math.exp %737 : vector<2x16xf32>
    %cst_171 = arith.constant 1.000000e+00 : f32
    %739 = vector.broadcast %cst_171 : f32 to vector<2x16xf32>
    %740 = arith.addf %739, %738 : vector<2x16xf32>
    %741 = arith.divf %739, %740 : vector<2x16xf32>
    %742 = arith.mulf %733, %716 : vector<2x16xf32>
    %743 = arith.mulf %727, %735 : vector<2x16xf32>
    %744 = arith.addf %742, %743 : vector<2x16xf32>
    %745 = math.tanh %744 : vector<2x16xf32>
    %746 = arith.mulf %741, %745 : vector<2x16xf32>
    %747 = vector.extract_strided_slice %660 {offsets = [6, 0], sizes = [2, 64], strides = [1, 1]} : vector<12x64xf32> to vector<2x64xf32>
    %cst_172 = arith.constant dense<0.000000e+00> : vector<2x64xf32>
    %748 = tpu.matmul %746, %10, %cst_172 {dimension_numbers = #tpu.dot_dimension_numbers<[1], [0], [0], [1], [0, 0, 1, 1], [], []>} : vector<2x16xf32>, vector<16x64xf32>, vector<2x64xf32> -> vector<2x64xf32>
    %749 = arith.addf %747, %748 : vector<2x64xf32>
    %750 = vector.extract_strided_slice %749 {offsets = [0, 0], sizes = [2, 16], strides = [1, 1]} : vector<2x64xf32> to vector<2x16xf32>
    %751 = arith.negf %750 : vector<2x16xf32>
    %752 = math.exp %751 : vector<2x16xf32>
    %cst_173 = arith.constant 1.000000e+00 : f32
    %753 = vector.broadcast %cst_173 : f32 to vector<2x16xf32>
    %754 = arith.addf %753, %752 : vector<2x16xf32>
    %755 = arith.divf %753, %754 : vector<2x16xf32>
    %756 = vector.extract_strided_slice %749 {offsets = [0, 16], sizes = [2, 16], strides = [1, 1]} : vector<2x64xf32> to vector<2x16xf32>
    %757 = arith.negf %756 : vector<2x16xf32>
    %758 = math.exp %757 : vector<2x16xf32>
    %cst_174 = arith.constant 1.000000e+00 : f32
    %759 = vector.broadcast %cst_174 : f32 to vector<2x16xf32>
    %760 = arith.addf %759, %758 : vector<2x16xf32>
    %761 = arith.divf %759, %760 : vector<2x16xf32>
    %762 = vector.extract_strided_slice %749 {offsets = [0, 32], sizes = [2, 16], strides = [1, 1]} : vector<2x64xf32> to vector<2x16xf32>
    %763 = math.tanh %762 : vector<2x16xf32>
    %764 = vector.extract_strided_slice %749 {offsets = [0, 48], sizes = [2, 16], strides = [1, 1]} : vector<2x64xf32> to vector<2x16xf32>
    %765 = arith.negf %764 : vector<2x16xf32>
    %766 = math.exp %765 : vector<2x16xf32>
    %cst_175 = arith.constant 1.000000e+00 : f32
    %767 = vector.broadcast %cst_175 : f32 to vector<2x16xf32>
    %768 = arith.addf %767, %766 : vector<2x16xf32>
    %769 = arith.divf %767, %768 : vector<2x16xf32>
    %770 = arith.mulf %761, %744 : vector<2x16xf32>
    %771 = arith.mulf %755, %763 : vector<2x16xf32>
    %772 = arith.addf %770, %771 : vector<2x16xf32>
    %773 = math.tanh %772 : vector<2x16xf32>
    %774 = arith.mulf %769, %773 : vector<2x16xf32>
    %775 = vector.extract_strided_slice %660 {offsets = [8, 0], sizes = [2, 64], strides = [1, 1]} : vector<12x64xf32> to vector<2x64xf32>
    %cst_176 = arith.constant dense<0.000000e+00> : vector<2x64xf32>
    %776 = tpu.matmul %774, %10, %cst_176 {dimension_numbers = #tpu.dot_dimension_numbers<[1], [0], [0], [1], [0, 0, 1, 1], [], []>} : vector<2x16xf32>, vector<16x64xf32>, vector<2x64xf32> -> vector<2x64xf32>
    %777 = arith.addf %775, %776 : vector<2x64xf32>
    %778 = vector.extract_strided_slice %777 {offsets = [0, 0], sizes = [2, 16], strides = [1, 1]} : vector<2x64xf32> to vector<2x16xf32>
    %779 = arith.negf %778 : vector<2x16xf32>
    %780 = math.exp %779 : vector<2x16xf32>
    %cst_177 = arith.constant 1.000000e+00 : f32
    %781 = vector.broadcast %cst_177 : f32 to vector<2x16xf32>
    %782 = arith.addf %781, %780 : vector<2x16xf32>
    %783 = arith.divf %781, %782 : vector<2x16xf32>
    %784 = vector.extract_strided_slice %777 {offsets = [0, 16], sizes = [2, 16], strides = [1, 1]} : vector<2x64xf32> to vector<2x16xf32>
    %785 = arith.negf %784 : vector<2x16xf32>
    %786 = math.exp %785 : vector<2x16xf32>
    %cst_178 = arith.constant 1.000000e+00 : f32
    %787 = vector.broadcast %cst_178 : f32 to vector<2x16xf32>
    %788 = arith.addf %787, %786 : vector<2x16xf32>
    %789 = arith.divf %787, %788 : vector<2x16xf32>
    %790 = vector.extract_strided_slice %777 {offsets = [0, 32], sizes = [2, 16], strides = [1, 1]} : vector<2x64xf32> to vector<2x16xf32>
    %791 = math.tanh %790 : vector<2x16xf32>
    %792 = vector.extract_strided_slice %777 {offsets = [0, 48], sizes = [2, 16], strides = [1, 1]} : vector<2x64xf32> to vector<2x16xf32>
    %793 = arith.negf %792 : vector<2x16xf32>
    %794 = math.exp %793 : vector<2x16xf32>
    %cst_179 = arith.constant 1.000000e+00 : f32
    %795 = vector.broadcast %cst_179 : f32 to vector<2x16xf32>
    %796 = arith.addf %795, %794 : vector<2x16xf32>
    %797 = arith.divf %795, %796 : vector<2x16xf32>
    %798 = arith.mulf %789, %772 : vector<2x16xf32>
    %799 = arith.mulf %783, %791 : vector<2x16xf32>
    %800 = arith.addf %798, %799 : vector<2x16xf32>
    %801 = math.tanh %800 : vector<2x16xf32>
    %802 = arith.mulf %797, %801 : vector<2x16xf32>
    %803 = vector.extract_strided_slice %660 {offsets = [10, 0], sizes = [2, 64], strides = [1, 1]} : vector<12x64xf32> to vector<2x64xf32>
    %cst_180 = arith.constant dense<0.000000e+00> : vector<2x64xf32>
    %804 = tpu.matmul %802, %10, %cst_180 {dimension_numbers = #tpu.dot_dimension_numbers<[1], [0], [0], [1], [0, 0, 1, 1], [], []>} : vector<2x16xf32>, vector<16x64xf32>, vector<2x64xf32> -> vector<2x64xf32>
    %805 = arith.addf %803, %804 : vector<2x64xf32>
    %806 = vector.extract_strided_slice %805 {offsets = [0, 0], sizes = [2, 16], strides = [1, 1]} : vector<2x64xf32> to vector<2x16xf32>
    %807 = arith.negf %806 : vector<2x16xf32>
    %808 = math.exp %807 : vector<2x16xf32>
    %cst_181 = arith.constant 1.000000e+00 : f32
    %809 = vector.broadcast %cst_181 : f32 to vector<2x16xf32>
    %810 = arith.addf %809, %808 : vector<2x16xf32>
    %811 = arith.divf %809, %810 : vector<2x16xf32>
    %812 = vector.extract_strided_slice %805 {offsets = [0, 16], sizes = [2, 16], strides = [1, 1]} : vector<2x64xf32> to vector<2x16xf32>
    %813 = arith.negf %812 : vector<2x16xf32>
    %814 = math.exp %813 : vector<2x16xf32>
    %cst_182 = arith.constant 1.000000e+00 : f32
    %815 = vector.broadcast %cst_182 : f32 to vector<2x16xf32>
    %816 = arith.addf %815, %814 : vector<2x16xf32>
    %817 = arith.divf %815, %816 : vector<2x16xf32>
    %818 = vector.extract_strided_slice %805 {offsets = [0, 32], sizes = [2, 16], strides = [1, 1]} : vector<2x64xf32> to vector<2x16xf32>
    %819 = math.tanh %818 : vector<2x16xf32>
    %820 = vector.extract_strided_slice %805 {offsets = [0, 48], sizes = [2, 16], strides = [1, 1]} : vector<2x64xf32> to vector<2x16xf32>
    %821 = arith.negf %820 : vector<2x16xf32>
    %822 = math.exp %821 : vector<2x16xf32>
    %cst_183 = arith.constant 1.000000e+00 : f32
    %823 = vector.broadcast %cst_183 : f32 to vector<2x16xf32>
    %824 = arith.addf %823, %822 : vector<2x16xf32>
    %825 = arith.divf %823, %824 : vector<2x16xf32>
    %826 = arith.mulf %817, %800 : vector<2x16xf32>
    %827 = arith.mulf %811, %819 : vector<2x16xf32>
    %828 = arith.addf %826, %827 : vector<2x16xf32>
    %829 = math.tanh %828 : vector<2x16xf32>
    %830 = arith.mulf %825, %829 : vector<2x16xf32>
    %831 = tpu.concatenate %690, %718, %746, %774, %802, %830 in 0 : vector<2x16xf32>, vector<2x16xf32>, vector<2x16xf32>, vector<2x16xf32>, vector<2x16xf32>, vector<2x16xf32> -> vector<12x16xf32>
    %cst_184 = arith.constant dense<0.000000e+00> : vector<12x16xf32>
    %832 = tpu.matmul %831, %12, %cst_184 {dimension_numbers = #tpu.dot_dimension_numbers<[1], [0], [0], [1], [0, 0, 1, 1], [], []>} : vector<12x16xf32>, vector<16x16xf32>, vector<12x16xf32> -> vector<12x16xf32>
    %833 = vector.broadcast %13 : vector<1x16xf32> to vector<12x16xf32>
    %834 = arith.addf %832, %833 : vector<12x16xf32>
    %c0_185 = arith.constant 0 : index
    %c0_186 = arith.constant 0 : index
    %835 = vector.load %arg31[%c0_185, %c0_186] : memref<12x16xf32, #tpu.memory_space<vmem>>, vector<12x16xf32>
    tpu.vector_store %arg31[%c0_185, %c0_186], %834 {strides = array<i32>} : memref<12x16xf32, #tpu.memory_space<vmem>>, vector<12x16xf32>,
    %836 = arith.subf %834, %29 : vector<12x16xf32>
    %837 = arith.mulf %836, %836 : vector<12x16xf32>
    %838 = vector.shape_cast %837 : vector<12x16xf32> to vector<1x12x16xf32>
    %cst_187 = arith.constant dense<0.000000e+00> : vector<1xf32>
    %839 = vector.multi_reduction <add>, %838, %cst_187 [1, 2] : vector<1x12x16xf32> to vector<1xf32>
    %840 = vector.shape_cast %839 : vector<1xf32> to vector<1x1x1xf32>
    %841 = vector.extract %840[0, 0, 0] : f32 from vector<1x1x1xf32>
    %842 = vector.broadcast %841 : f32 to vector<1x1xf32>
    %cst_188 = arith.constant 0.00520833349 : f32
    %843 = vector.broadcast %cst_188 : f32 to vector<1x1xf32>
    %844 = arith.mulf %842, %843 : vector<1x1xf32>
    %c0_189 = arith.constant 0 : index
    %c0_190 = arith.constant 0 : index
    %845 = vector.load %arg32[%c0_189, %c0_190] : memref<1x1xf32, #tpu.memory_space<vmem>>, vector<1x1xf32>
    tpu.vector_store %arg32[%c0_189, %c0_190], %844 {strides = array<i32>} : memref<1x1xf32, #tpu.memory_space<vmem>>, vector<1x1xf32>,
    %cst_191 = arith.constant dense<0.000000e+00> : vector<12x32xf32>
    %846 = tpu.matmul %29, %14, %cst_191 {dimension_numbers = #tpu.dot_dimension_numbers<[1], [0], [0], [1], [0, 0, 1, 1], [], []>} : vector<12x16xf32>, vector<16x32xf32>, vector<12x32xf32> -> vector<12x32xf32>
    %847 = vector.broadcast %16 : vector<1x32xf32> to vector<12x32xf32>
    %848 = arith.addf %846, %847 : vector<12x32xf32>
    %cst_192 = arith.constant 0.000000e+00 : f32
    %849 = vector.broadcast %cst_192 : f32 to vector<2x8xf32>
    %cst_193 = arith.constant 0.000000e+00 : f32
    %850 = vector.broadcast %cst_193 : f32 to vector<2x8xf32>
    %851 = vector.extract_strided_slice %848 {offsets = [0, 0], sizes = [2, 32], strides = [1, 1]} : vector<12x32xf32> to vector<2x32xf32>
    %cst_194 = arith.constant dense<0.000000e+00> : vector<2x32xf32>
    %852 = tpu.matmul %849, %15, %cst_194 {dimension_numbers = #tpu.dot_dimension_numbers<[1], [0], [0], [1], [0, 0, 1, 1], [], []>} : vector<2x8xf32>, vector<8x32xf32>, vector<2x32xf32> -> vector<2x32xf32>
    %853 = arith.addf %851, %852 : vector<2x32xf32>
    %854 = vector.extract_strided_slice %853 {offsets = [0, 0], sizes = [2, 8], strides = [1, 1]} : vector<2x32xf32> to vector<2x8xf32>
    %855 = arith.negf %854 : vector<2x8xf32>
    %856 = math.exp %855 : vector<2x8xf32>
    %cst_195 = arith.constant 1.000000e+00 : f32
    %857 = vector.broadcast %cst_195 : f32 to vector<2x8xf32>
    %858 = arith.addf %857, %856 : vector<2x8xf32>
    %859 = arith.divf %857, %858 : vector<2x8xf32>
    %860 = vector.extract_strided_slice %853 {offsets = [0, 8], sizes = [2, 8], strides = [1, 1]} : vector<2x32xf32> to vector<2x8xf32>
    %861 = arith.negf %860 : vector<2x8xf32>
    %862 = math.exp %861 : vector<2x8xf32>
    %cst_196 = arith.constant 1.000000e+00 : f32
    %863 = vector.broadcast %cst_196 : f32 to vector<2x8xf32>
    %864 = arith.addf %863, %862 : vector<2x8xf32>
    %865 = arith.divf %863, %864 : vector<2x8xf32>
    %866 = vector.extract_strided_slice %853 {offsets = [0, 16], sizes = [2, 8], strides = [1, 1]} : vector<2x32xf32> to vector<2x8xf32>
    %867 = math.tanh %866 : vector<2x8xf32>
    %868 = vector.extract_strided_slice %853 {offsets = [0, 24], sizes = [2, 8], strides = [1, 1]} : vector<2x32xf32> to vector<2x8xf32>
    %869 = arith.negf %868 : vector<2x8xf32>
    %870 = math.exp %869 : vector<2x8xf32>
    %cst_197 = arith.constant 1.000000e+00 : f32
    %871 = vector.broadcast %cst_197 : f32 to vector<2x8xf32>
    %872 = arith.addf %871, %870 : vector<2x8xf32>
    %873 = arith.divf %871, %872 : vector<2x8xf32>
    %874 = arith.mulf %865, %850 : vector<2x8xf32>
    %875 = arith.mulf %859, %867 : vector<2x8xf32>
    %876 = arith.addf %874, %875 : vector<2x8xf32>
    %877 = math.tanh %876 : vector<2x8xf32>
    %878 = arith.mulf %873, %877 : vector<2x8xf32>
    %879 = vector.extract_strided_slice %848 {offsets = [2, 0], sizes = [2, 32], strides = [1, 1]} : vector<12x32xf32> to vector<2x32xf32>
    %cst_198 = arith.constant dense<0.000000e+00> : vector<2x32xf32>
    %880 = tpu.matmul %878, %15, %cst_198 {dimension_numbers = #tpu.dot_dimension_numbers<[1], [0], [0], [1], [0, 0, 1, 1], [], []>} : vector<2x8xf32>, vector<8x32xf32>, vector<2x32xf32> -> vector<2x32xf32>
    %881 = arith.addf %879, %880 : vector<2x32xf32>
    %882 = vector.extract_strided_slice %881 {offsets = [0, 0], sizes = [2, 8], strides = [1, 1]} : vector<2x32xf32> to vector<2x8xf32>
    %883 = arith.negf %882 : vector<2x8xf32>
    %884 = math.exp %883 : vector<2x8xf32>
    %cst_199 = arith.constant 1.000000e+00 : f32
    %885 = vector.broadcast %cst_199 : f32 to vector<2x8xf32>
    %886 = arith.addf %885, %884 : vector<2x8xf32>
    %887 = arith.divf %885, %886 : vector<2x8xf32>
    %888 = vector.extract_strided_slice %881 {offsets = [0, 8], sizes = [2, 8], strides = [1, 1]} : vector<2x32xf32> to vector<2x8xf32>
    %889 = arith.negf %888 : vector<2x8xf32>
    %890 = math.exp %889 : vector<2x8xf32>
    %cst_200 = arith.constant 1.000000e+00 : f32
    %891 = vector.broadcast %cst_200 : f32 to vector<2x8xf32>
    %892 = arith.addf %891, %890 : vector<2x8xf32>
    %893 = arith.divf %891, %892 : vector<2x8xf32>
    %894 = vector.extract_strided_slice %881 {offsets = [0, 16], sizes = [2, 8], strides = [1, 1]} : vector<2x32xf32> to vector<2x8xf32>
    %895 = math.tanh %894 : vector<2x8xf32>
    %896 = vector.extract_strided_slice %881 {offsets = [0, 24], sizes = [2, 8], strides = [1, 1]} : vector<2x32xf32> to vector<2x8xf32>
    %897 = arith.negf %896 : vector<2x8xf32>
    %898 = math.exp %897 : vector<2x8xf32>
    %cst_201 = arith.constant 1.000000e+00 : f32
    %899 = vector.broadcast %cst_201 : f32 to vector<2x8xf32>
    %900 = arith.addf %899, %898 : vector<2x8xf32>
    %901 = arith.divf %899, %900 : vector<2x8xf32>
    %902 = arith.mulf %893, %876 : vector<2x8xf32>
    %903 = arith.mulf %887, %895 : vector<2x8xf32>
    %904 = arith.addf %902, %903 : vector<2x8xf32>
    %905 = math.tanh %904 : vector<2x8xf32>
    %906 = arith.mulf %901, %905 : vector<2x8xf32>
    %907 = vector.extract_strided_slice %848 {offsets = [4, 0], sizes = [2, 32], strides = [1, 1]} : vector<12x32xf32> to vector<2x32xf32>
    %cst_202 = arith.constant dense<0.000000e+00> : vector<2x32xf32>
    %908 = tpu.matmul %906, %15, %cst_202 {dimension_numbers = #tpu.dot_dimension_numbers<[1], [0], [0], [1], [0, 0, 1, 1], [], []>} : vector<2x8xf32>, vector<8x32xf32>, vector<2x32xf32> -> vector<2x32xf32>
    %909 = arith.addf %907, %908 : vector<2x32xf32>
    %910 = vector.extract_strided_slice %909 {offsets = [0, 0], sizes = [2, 8], strides = [1, 1]} : vector<2x32xf32> to vector<2x8xf32>
    %911 = arith.negf %910 : vector<2x8xf32>
    %912 = math.exp %911 : vector<2x8xf32>
    %cst_203 = arith.constant 1.000000e+00 : f32
    %913 = vector.broadcast %cst_203 : f32 to vector<2x8xf32>
    %914 = arith.addf %913, %912 : vector<2x8xf32>
    %915 = arith.divf %913, %914 : vector<2x8xf32>
    %916 = vector.extract_strided_slice %909 {offsets = [0, 8], sizes = [2, 8], strides = [1, 1]} : vector<2x32xf32> to vector<2x8xf32>
    %917 = arith.negf %916 : vector<2x8xf32>
    %918 = math.exp %917 : vector<2x8xf32>
    %cst_204 = arith.constant 1.000000e+00 : f32
    %919 = vector.broadcast %cst_204 : f32 to vector<2x8xf32>
    %920 = arith.addf %919, %918 : vector<2x8xf32>
    %921 = arith.divf %919, %920 : vector<2x8xf32>
    %922 = vector.extract_strided_slice %909 {offsets = [0, 16], sizes = [2, 8], strides = [1, 1]} : vector<2x32xf32> to vector<2x8xf32>
    %923 = math.tanh %922 : vector<2x8xf32>
    %924 = vector.extract_strided_slice %909 {offsets = [0, 24], sizes = [2, 8], strides = [1, 1]} : vector<2x32xf32> to vector<2x8xf32>
    %925 = arith.negf %924 : vector<2x8xf32>
    %926 = math.exp %925 : vector<2x8xf32>
    %cst_205 = arith.constant 1.000000e+00 : f32
    %927 = vector.broadcast %cst_205 : f32 to vector<2x8xf32>
    %928 = arith.addf %927, %926 : vector<2x8xf32>
    %929 = arith.divf %927, %928 : vector<2x8xf32>
    %930 = arith.mulf %921, %904 : vector<2x8xf32>
    %931 = arith.mulf %915, %923 : vector<2x8xf32>
    %932 = arith.addf %930, %931 : vector<2x8xf32>
    %933 = math.tanh %932 : vector<2x8xf32>
    %934 = arith.mulf %929, %933 : vector<2x8xf32>
    %935 = vector.extract_strided_slice %848 {offsets = [6, 0], sizes = [2, 32], strides = [1, 1]} : vector<12x32xf32> to vector<2x32xf32>
    %cst_206 = arith.constant dense<0.000000e+00> : vector<2x32xf32>
    %936 = tpu.matmul %934, %15, %cst_206 {dimension_numbers = #tpu.dot_dimension_numbers<[1], [0], [0], [1], [0, 0, 1, 1], [], []>} : vector<2x8xf32>, vector<8x32xf32>, vector<2x32xf32> -> vector<2x32xf32>
    %937 = arith.addf %935, %936 : vector<2x32xf32>
    %938 = vector.extract_strided_slice %937 {offsets = [0, 0], sizes = [2, 8], strides = [1, 1]} : vector<2x32xf32> to vector<2x8xf32>
    %939 = arith.negf %938 : vector<2x8xf32>
    %940 = math.exp %939 : vector<2x8xf32>
    %cst_207 = arith.constant 1.000000e+00 : f32
    %941 = vector.broadcast %cst_207 : f32 to vector<2x8xf32>
    %942 = arith.addf %941, %940 : vector<2x8xf32>
    %943 = arith.divf %941, %942 : vector<2x8xf32>
    %944 = vector.extract_strided_slice %937 {offsets = [0, 8], sizes = [2, 8], strides = [1, 1]} : vector<2x32xf32> to vector<2x8xf32>
    %945 = arith.negf %944 : vector<2x8xf32>
    %946 = math.exp %945 : vector<2x8xf32>
    %cst_208 = arith.constant 1.000000e+00 : f32
    %947 = vector.broadcast %cst_208 : f32 to vector<2x8xf32>
    %948 = arith.addf %947, %946 : vector<2x8xf32>
    %949 = arith.divf %947, %948 : vector<2x8xf32>
    %950 = vector.extract_strided_slice %937 {offsets = [0, 16], sizes = [2, 8], strides = [1, 1]} : vector<2x32xf32> to vector<2x8xf32>
    %951 = math.tanh %950 : vector<2x8xf32>
    %952 = vector.extract_strided_slice %937 {offsets = [0, 24], sizes = [2, 8], strides = [1, 1]} : vector<2x32xf32> to vector<2x8xf32>
    %953 = arith.negf %952 : vector<2x8xf32>
    %954 = math.exp %953 : vector<2x8xf32>
    %cst_209 = arith.constant 1.000000e+00 : f32
    %955 = vector.broadcast %cst_209 : f32 to vector<2x8xf32>
    %956 = arith.addf %955, %954 : vector<2x8xf32>
    %957 = arith.divf %955, %956 : vector<2x8xf32>
    %958 = arith.mulf %949, %932 : vector<2x8xf32>
    %959 = arith.mulf %943, %951 : vector<2x8xf32>
    %960 = arith.addf %958, %959 : vector<2x8xf32>
    %961 = math.tanh %960 : vector<2x8xf32>
    %962 = arith.mulf %957, %961 : vector<2x8xf32>
    %963 = vector.extract_strided_slice %848 {offsets = [8, 0], sizes = [2, 32], strides = [1, 1]} : vector<12x32xf32> to vector<2x32xf32>
    %cst_210 = arith.constant dense<0.000000e+00> : vector<2x32xf32>
    %964 = tpu.matmul %962, %15, %cst_210 {dimension_numbers = #tpu.dot_dimension_numbers<[1], [0], [0], [1], [0, 0, 1, 1], [], []>} : vector<2x8xf32>, vector<8x32xf32>, vector<2x32xf32> -> vector<2x32xf32>
    %965 = arith.addf %963, %964 : vector<2x32xf32>
    %966 = vector.extract_strided_slice %965 {offsets = [0, 0], sizes = [2, 8], strides = [1, 1]} : vector<2x32xf32> to vector<2x8xf32>
    %967 = arith.negf %966 : vector<2x8xf32>
    %968 = math.exp %967 : vector<2x8xf32>
    %cst_211 = arith.constant 1.000000e+00 : f32
    %969 = vector.broadcast %cst_211 : f32 to vector<2x8xf32>
    %970 = arith.addf %969, %968 : vector<2x8xf32>
    %971 = arith.divf %969, %970 : vector<2x8xf32>
    %972 = vector.extract_strided_slice %965 {offsets = [0, 8], sizes = [2, 8], strides = [1, 1]} : vector<2x32xf32> to vector<2x8xf32>
    %973 = arith.negf %972 : vector<2x8xf32>
    %974 = math.exp %973 : vector<2x8xf32>
    %cst_212 = arith.constant 1.000000e+00 : f32
    %975 = vector.broadcast %cst_212 : f32 to vector<2x8xf32>
    %976 = arith.addf %975, %974 : vector<2x8xf32>
    %977 = arith.divf %975, %976 : vector<2x8xf32>
    %978 = vector.extract_strided_slice %965 {offsets = [0, 16], sizes = [2, 8], strides = [1, 1]} : vector<2x32xf32> to vector<2x8xf32>
    %979 = math.tanh %978 : vector<2x8xf32>
    %980 = vector.extract_strided_slice %965 {offsets = [0, 24], sizes = [2, 8], strides = [1, 1]} : vector<2x32xf32> to vector<2x8xf32>
    %981 = arith.negf %980 : vector<2x8xf32>
    %982 = math.exp %981 : vector<2x8xf32>
    %cst_213 = arith.constant 1.000000e+00 : f32
    %983 = vector.broadcast %cst_213 : f32 to vector<2x8xf32>
    %984 = arith.addf %983, %982 : vector<2x8xf32>
    %985 = arith.divf %983, %984 : vector<2x8xf32>
    %986 = arith.mulf %977, %960 : vector<2x8xf32>
    %987 = arith.mulf %971, %979 : vector<2x8xf32>
    %988 = arith.addf %986, %987 : vector<2x8xf32>
    %989 = math.tanh %988 : vector<2x8xf32>
    %990 = arith.mulf %985, %989 : vector<2x8xf32>
    %991 = vector.extract_strided_slice %848 {offsets = [10, 0], sizes = [2, 32], strides = [1, 1]} : vector<12x32xf32> to vector<2x32xf32>
    %cst_214 = arith.constant dense<0.000000e+00> : vector<2x32xf32>
    %992 = tpu.matmul %990, %15, %cst_214 {dimension_numbers = #tpu.dot_dimension_numbers<[1], [0], [0], [1], [0, 0, 1, 1], [], []>} : vector<2x8xf32>, vector<8x32xf32>, vector<2x32xf32> -> vector<2x32xf32>
    %993 = arith.addf %991, %992 : vector<2x32xf32>
    %994 = vector.extract_strided_slice %993 {offsets = [0, 0], sizes = [2, 8], strides = [1, 1]} : vector<2x32xf32> to vector<2x8xf32>
    %995 = arith.negf %994 : vector<2x8xf32>
    %996 = math.exp %995 : vector<2x8xf32>
    %cst_215 = arith.constant 1.000000e+00 : f32
    %997 = vector.broadcast %cst_215 : f32 to vector<2x8xf32>
    %998 = arith.addf %997, %996 : vector<2x8xf32>
    %999 = arith.divf %997, %998 : vector<2x8xf32>
    %1000 = vector.extract_strided_slice %993 {offsets = [0, 8], sizes = [2, 8], strides = [1, 1]} : vector<2x32xf32> to vector<2x8xf32>
    %1001 = arith.negf %1000 : vector<2x8xf32>
    %1002 = math.exp %1001 : vector<2x8xf32>
    %cst_216 = arith.constant 1.000000e+00 : f32
    %1003 = vector.broadcast %cst_216 : f32 to vector<2x8xf32>
    %1004 = arith.addf %1003, %1002 : vector<2x8xf32>
    %1005 = arith.divf %1003, %1004 : vector<2x8xf32>
    %1006 = vector.extract_strided_slice %993 {offsets = [0, 16], sizes = [2, 8], strides = [1, 1]} : vector<2x32xf32> to vector<2x8xf32>
    %1007 = math.tanh %1006 : vector<2x8xf32>
    %1008 = vector.extract_strided_slice %993 {offsets = [0, 24], sizes = [2, 8], strides = [1, 1]} : vector<2x32xf32> to vector<2x8xf32>
    %1009 = arith.negf %1008 : vector<2x8xf32>
    %1010 = math.exp %1009 : vector<2x8xf32>
    %cst_217 = arith.constant 1.000000e+00 : f32
    %1011 = vector.broadcast %cst_217 : f32 to vector<2x8xf32>
    %1012 = arith.addf %1011, %1010 : vector<2x8xf32>
    %1013 = arith.divf %1011, %1012 : vector<2x8xf32>
    %1014 = arith.mulf %1005, %988 : vector<2x8xf32>
    %1015 = arith.mulf %999, %1007 : vector<2x8xf32>
    %1016 = arith.addf %1014, %1015 : vector<2x8xf32>
    %1017 = math.tanh %1016 : vector<2x8xf32>
    %1018 = arith.mulf %1013, %1017 : vector<2x8xf32>
    %1019 = tpu.concatenate %878, %906, %934, %962, %990, %1018 in 0 : vector<2x8xf32>, vector<2x8xf32>, vector<2x8xf32>, vector<2x8xf32>, vector<2x8xf32>, vector<2x8xf32> -> vector<12x8xf32>
    %cst_218 = arith.constant dense<0.000000e+00> : vector<12x32xf32>
    %1020 = tpu.matmul %1019, %17, %cst_218 {dimension_numbers = #tpu.dot_dimension_numbers<[1], [0], [0], [1], [0, 0, 1, 1], [], []>} : vector<12x8xf32>, vector<8x32xf32>, vector<12x32xf32> -> vector<12x32xf32>
    %1021 = vector.broadcast %19 : vector<1x32xf32> to vector<12x32xf32>
    %1022 = arith.addf %1020, %1021 : vector<12x32xf32>
    %cst_219 = arith.constant 0.000000e+00 : f32
    %1023 = vector.broadcast %cst_219 : f32 to vector<2x8xf32>
    %cst_220 = arith.constant 0.000000e+00 : f32
    %1024 = vector.broadcast %cst_220 : f32 to vector<2x8xf32>
    %1025 = vector.extract_strided_slice %1022 {offsets = [0, 0], sizes = [2, 32], strides = [1, 1]} : vector<12x32xf32> to vector<2x32xf32>
    %cst_221 = arith.constant dense<0.000000e+00> : vector<2x32xf32>
    %1026 = tpu.matmul %1023, %18, %cst_221 {dimension_numbers = #tpu.dot_dimension_numbers<[1], [0], [0], [1], [0, 0, 1, 1], [], []>} : vector<2x8xf32>, vector<8x32xf32>, vector<2x32xf32> -> vector<2x32xf32>
    %1027 = arith.addf %1025, %1026 : vector<2x32xf32>
    %1028 = vector.extract_strided_slice %1027 {offsets = [0, 0], sizes = [2, 8], strides = [1, 1]} : vector<2x32xf32> to vector<2x8xf32>
    %1029 = arith.negf %1028 : vector<2x8xf32>
    %1030 = math.exp %1029 : vector<2x8xf32>
    %cst_222 = arith.constant 1.000000e+00 : f32
    %1031 = vector.broadcast %cst_222 : f32 to vector<2x8xf32>
    %1032 = arith.addf %1031, %1030 : vector<2x8xf32>
    %1033 = arith.divf %1031, %1032 : vector<2x8xf32>
    %1034 = vector.extract_strided_slice %1027 {offsets = [0, 8], sizes = [2, 8], strides = [1, 1]} : vector<2x32xf32> to vector<2x8xf32>
    %1035 = arith.negf %1034 : vector<2x8xf32>
    %1036 = math.exp %1035 : vector<2x8xf32>
    %cst_223 = arith.constant 1.000000e+00 : f32
    %1037 = vector.broadcast %cst_223 : f32 to vector<2x8xf32>
    %1038 = arith.addf %1037, %1036 : vector<2x8xf32>
    %1039 = arith.divf %1037, %1038 : vector<2x8xf32>
    %1040 = vector.extract_strided_slice %1027 {offsets = [0, 16], sizes = [2, 8], strides = [1, 1]} : vector<2x32xf32> to vector<2x8xf32>
    %1041 = math.tanh %1040 : vector<2x8xf32>
    %1042 = vector.extract_strided_slice %1027 {offsets = [0, 24], sizes = [2, 8], strides = [1, 1]} : vector<2x32xf32> to vector<2x8xf32>
    %1043 = arith.negf %1042 : vector<2x8xf32>
    %1044 = math.exp %1043 : vector<2x8xf32>
    %cst_224 = arith.constant 1.000000e+00 : f32
    %1045 = vector.broadcast %cst_224 : f32 to vector<2x8xf32>
    %1046 = arith.addf %1045, %1044 : vector<2x8xf32>
    %1047 = arith.divf %1045, %1046 : vector<2x8xf32>
    %1048 = arith.mulf %1039, %1024 : vector<2x8xf32>
    %1049 = arith.mulf %1033, %1041 : vector<2x8xf32>
    %1050 = arith.addf %1048, %1049 : vector<2x8xf32>
    %1051 = math.tanh %1050 : vector<2x8xf32>
    %1052 = arith.mulf %1047, %1051 : vector<2x8xf32>
    %1053 = vector.extract_strided_slice %1022 {offsets = [2, 0], sizes = [2, 32], strides = [1, 1]} : vector<12x32xf32> to vector<2x32xf32>
    %cst_225 = arith.constant dense<0.000000e+00> : vector<2x32xf32>
    %1054 = tpu.matmul %1052, %18, %cst_225 {dimension_numbers = #tpu.dot_dimension_numbers<[1], [0], [0], [1], [0, 0, 1, 1], [], []>} : vector<2x8xf32>, vector<8x32xf32>, vector<2x32xf32> -> vector<2x32xf32>
    %1055 = arith.addf %1053, %1054 : vector<2x32xf32>
    %1056 = vector.extract_strided_slice %1055 {offsets = [0, 0], sizes = [2, 8], strides = [1, 1]} : vector<2x32xf32> to vector<2x8xf32>
    %1057 = arith.negf %1056 : vector<2x8xf32>
    %1058 = math.exp %1057 : vector<2x8xf32>
    %cst_226 = arith.constant 1.000000e+00 : f32
    %1059 = vector.broadcast %cst_226 : f32 to vector<2x8xf32>
    %1060 = arith.addf %1059, %1058 : vector<2x8xf32>
    %1061 = arith.divf %1059, %1060 : vector<2x8xf32>
    %1062 = vector.extract_strided_slice %1055 {offsets = [0, 8], sizes = [2, 8], strides = [1, 1]} : vector<2x32xf32> to vector<2x8xf32>
    %1063 = arith.negf %1062 : vector<2x8xf32>
    %1064 = math.exp %1063 : vector<2x8xf32>
    %cst_227 = arith.constant 1.000000e+00 : f32
    %1065 = vector.broadcast %cst_227 : f32 to vector<2x8xf32>
    %1066 = arith.addf %1065, %1064 : vector<2x8xf32>
    %1067 = arith.divf %1065, %1066 : vector<2x8xf32>
    %1068 = vector.extract_strided_slice %1055 {offsets = [0, 16], sizes = [2, 8], strides = [1, 1]} : vector<2x32xf32> to vector<2x8xf32>
    %1069 = math.tanh %1068 : vector<2x8xf32>
    %1070 = vector.extract_strided_slice %1055 {offsets = [0, 24], sizes = [2, 8], strides = [1, 1]} : vector<2x32xf32> to vector<2x8xf32>
    %1071 = arith.negf %1070 : vector<2x8xf32>
    %1072 = math.exp %1071 : vector<2x8xf32>
    %cst_228 = arith.constant 1.000000e+00 : f32
    %1073 = vector.broadcast %cst_228 : f32 to vector<2x8xf32>
    %1074 = arith.addf %1073, %1072 : vector<2x8xf32>
    %1075 = arith.divf %1073, %1074 : vector<2x8xf32>
    %1076 = arith.mulf %1067, %1050 : vector<2x8xf32>
    %1077 = arith.mulf %1061, %1069 : vector<2x8xf32>
    %1078 = arith.addf %1076, %1077 : vector<2x8xf32>
    %1079 = math.tanh %1078 : vector<2x8xf32>
    %1080 = arith.mulf %1075, %1079 : vector<2x8xf32>
    %1081 = vector.extract_strided_slice %1022 {offsets = [4, 0], sizes = [2, 32], strides = [1, 1]} : vector<12x32xf32> to vector<2x32xf32>
    %cst_229 = arith.constant dense<0.000000e+00> : vector<2x32xf32>
    %1082 = tpu.matmul %1080, %18, %cst_229 {dimension_numbers = #tpu.dot_dimension_numbers<[1], [0], [0], [1], [0, 0, 1, 1], [], []>} : vector<2x8xf32>, vector<8x32xf32>, vector<2x32xf32> -> vector<2x32xf32>
    %1083 = arith.addf %1081, %1082 : vector<2x32xf32>
    %1084 = vector.extract_strided_slice %1083 {offsets = [0, 0], sizes = [2, 8], strides = [1, 1]} : vector<2x32xf32> to vector<2x8xf32>
    %1085 = arith.negf %1084 : vector<2x8xf32>
    %1086 = math.exp %1085 : vector<2x8xf32>
    %cst_230 = arith.constant 1.000000e+00 : f32
    %1087 = vector.broadcast %cst_230 : f32 to vector<2x8xf32>
    %1088 = arith.addf %1087, %1086 : vector<2x8xf32>
    %1089 = arith.divf %1087, %1088 : vector<2x8xf32>
    %1090 = vector.extract_strided_slice %1083 {offsets = [0, 8], sizes = [2, 8], strides = [1, 1]} : vector<2x32xf32> to vector<2x8xf32>
    %1091 = arith.negf %1090 : vector<2x8xf32>
    %1092 = math.exp %1091 : vector<2x8xf32>
    %cst_231 = arith.constant 1.000000e+00 : f32
    %1093 = vector.broadcast %cst_231 : f32 to vector<2x8xf32>
    %1094 = arith.addf %1093, %1092 : vector<2x8xf32>
    %1095 = arith.divf %1093, %1094 : vector<2x8xf32>
    %1096 = vector.extract_strided_slice %1083 {offsets = [0, 16], sizes = [2, 8], strides = [1, 1]} : vector<2x32xf32> to vector<2x8xf32>
    %1097 = math.tanh %1096 : vector<2x8xf32>
    %1098 = vector.extract_strided_slice %1083 {offsets = [0, 24], sizes = [2, 8], strides = [1, 1]} : vector<2x32xf32> to vector<2x8xf32>
    %1099 = arith.negf %1098 : vector<2x8xf32>
    %1100 = math.exp %1099 : vector<2x8xf32>
    %cst_232 = arith.constant 1.000000e+00 : f32
    %1101 = vector.broadcast %cst_232 : f32 to vector<2x8xf32>
    %1102 = arith.addf %1101, %1100 : vector<2x8xf32>
    %1103 = arith.divf %1101, %1102 : vector<2x8xf32>
    %1104 = arith.mulf %1095, %1078 : vector<2x8xf32>
    %1105 = arith.mulf %1089, %1097 : vector<2x8xf32>
    %1106 = arith.addf %1104, %1105 : vector<2x8xf32>
    %1107 = math.tanh %1106 : vector<2x8xf32>
    %1108 = arith.mulf %1103, %1107 : vector<2x8xf32>
    %1109 = vector.extract_strided_slice %1022 {offsets = [6, 0], sizes = [2, 32], strides = [1, 1]} : vector<12x32xf32> to vector<2x32xf32>
    %cst_233 = arith.constant dense<0.000000e+00> : vector<2x32xf32>
    %1110 = tpu.matmul %1108, %18, %cst_233 {dimension_numbers = #tpu.dot_dimension_numbers<[1], [0], [0], [1], [0, 0, 1, 1], [], []>} : vector<2x8xf32>, vector<8x32xf32>, vector<2x32xf32> -> vector<2x32xf32>
    %1111 = arith.addf %1109, %1110 : vector<2x32xf32>
    %1112 = vector.extract_strided_slice %1111 {offsets = [0, 0], sizes = [2, 8], strides = [1, 1]} : vector<2x32xf32> to vector<2x8xf32>
    %1113 = arith.negf %1112 : vector<2x8xf32>
    %1114 = math.exp %1113 : vector<2x8xf32>
    %cst_234 = arith.constant 1.000000e+00 : f32
    %1115 = vector.broadcast %cst_234 : f32 to vector<2x8xf32>
    %1116 = arith.addf %1115, %1114 : vector<2x8xf32>
    %1117 = arith.divf %1115, %1116 : vector<2x8xf32>
    %1118 = vector.extract_strided_slice %1111 {offsets = [0, 8], sizes = [2, 8], strides = [1, 1]} : vector<2x32xf32> to vector<2x8xf32>
    %1119 = arith.negf %1118 : vector<2x8xf32>
    %1120 = math.exp %1119 : vector<2x8xf32>
    %cst_235 = arith.constant 1.000000e+00 : f32
    %1121 = vector.broadcast %cst_235 : f32 to vector<2x8xf32>
    %1122 = arith.addf %1121, %1120 : vector<2x8xf32>
    %1123 = arith.divf %1121, %1122 : vector<2x8xf32>
    %1124 = vector.extract_strided_slice %1111 {offsets = [0, 16], sizes = [2, 8], strides = [1, 1]} : vector<2x32xf32> to vector<2x8xf32>
    %1125 = math.tanh %1124 : vector<2x8xf32>
    %1126 = vector.extract_strided_slice %1111 {offsets = [0, 24], sizes = [2, 8], strides = [1, 1]} : vector<2x32xf32> to vector<2x8xf32>
    %1127 = arith.negf %1126 : vector<2x8xf32>
    %1128 = math.exp %1127 : vector<2x8xf32>
    %cst_236 = arith.constant 1.000000e+00 : f32
    %1129 = vector.broadcast %cst_236 : f32 to vector<2x8xf32>
    %1130 = arith.addf %1129, %1128 : vector<2x8xf32>
    %1131 = arith.divf %1129, %1130 : vector<2x8xf32>
    %1132 = arith.mulf %1123, %1106 : vector<2x8xf32>
    %1133 = arith.mulf %1117, %1125 : vector<2x8xf32>
    %1134 = arith.addf %1132, %1133 : vector<2x8xf32>
    %1135 = math.tanh %1134 : vector<2x8xf32>
    %1136 = arith.mulf %1131, %1135 : vector<2x8xf32>
    %1137 = vector.extract_strided_slice %1022 {offsets = [8, 0], sizes = [2, 32], strides = [1, 1]} : vector<12x32xf32> to vector<2x32xf32>
    %cst_237 = arith.constant dense<0.000000e+00> : vector<2x32xf32>
    %1138 = tpu.matmul %1136, %18, %cst_237 {dimension_numbers = #tpu.dot_dimension_numbers<[1], [0], [0], [1], [0, 0, 1, 1], [], []>} : vector<2x8xf32>, vector<8x32xf32>, vector<2x32xf32> -> vector<2x32xf32>
    %1139 = arith.addf %1137, %1138 : vector<2x32xf32>
    %1140 = vector.extract_strided_slice %1139 {offsets = [0, 0], sizes = [2, 8], strides = [1, 1]} : vector<2x32xf32> to vector<2x8xf32>
    %1141 = arith.negf %1140 : vector<2x8xf32>
    %1142 = math.exp %1141 : vector<2x8xf32>
    %cst_238 = arith.constant 1.000000e+00 : f32
    %1143 = vector.broadcast %cst_238 : f32 to vector<2x8xf32>
    %1144 = arith.addf %1143, %1142 : vector<2x8xf32>
    %1145 = arith.divf %1143, %1144 : vector<2x8xf32>
    %1146 = vector.extract_strided_slice %1139 {offsets = [0, 8], sizes = [2, 8], strides = [1, 1]} : vector<2x32xf32> to vector<2x8xf32>
    %1147 = arith.negf %1146 : vector<2x8xf32>
    %1148 = math.exp %1147 : vector<2x8xf32>
    %cst_239 = arith.constant 1.000000e+00 : f32
    %1149 = vector.broadcast %cst_239 : f32 to vector<2x8xf32>
    %1150 = arith.addf %1149, %1148 : vector<2x8xf32>
    %1151 = arith.divf %1149, %1150 : vector<2x8xf32>
    %1152 = vector.extract_strided_slice %1139 {offsets = [0, 16], sizes = [2, 8], strides = [1, 1]} : vector<2x32xf32> to vector<2x8xf32>
    %1153 = math.tanh %1152 : vector<2x8xf32>
    %1154 = vector.extract_strided_slice %1139 {offsets = [0, 24], sizes = [2, 8], strides = [1, 1]} : vector<2x32xf32> to vector<2x8xf32>
    %1155 = arith.negf %1154 : vector<2x8xf32>
    %1156 = math.exp %1155 : vector<2x8xf32>
    %cst_240 = arith.constant 1.000000e+00 : f32
    %1157 = vector.broadcast %cst_240 : f32 to vector<2x8xf32>
    %1158 = arith.addf %1157, %1156 : vector<2x8xf32>
    %1159 = arith.divf %1157, %1158 : vector<2x8xf32>
    %1160 = arith.mulf %1151, %1134 : vector<2x8xf32>
    %1161 = arith.mulf %1145, %1153 : vector<2x8xf32>
    %1162 = arith.addf %1160, %1161 : vector<2x8xf32>
    %1163 = math.tanh %1162 : vector<2x8xf32>
    %1164 = arith.mulf %1159, %1163 : vector<2x8xf32>
    %1165 = vector.extract_strided_slice %1022 {offsets = [10, 0], sizes = [2, 32], strides = [1, 1]} : vector<12x32xf32> to vector<2x32xf32>
    %cst_241 = arith.constant dense<0.000000e+00> : vector<2x32xf32>
    %1166 = tpu.matmul %1164, %18, %cst_241 {dimension_numbers = #tpu.dot_dimension_numbers<[1], [0], [0], [1], [0, 0, 1, 1], [], []>} : vector<2x8xf32>, vector<8x32xf32>, vector<2x32xf32> -> vector<2x32xf32>
    %1167 = arith.addf %1165, %1166 : vector<2x32xf32>
    %1168 = vector.extract_strided_slice %1167 {offsets = [0, 0], sizes = [2, 8], strides = [1, 1]} : vector<2x32xf32> to vector<2x8xf32>
    %1169 = arith.negf %1168 : vector<2x8xf32>
    %1170 = math.exp %1169 : vector<2x8xf32>
    %cst_242 = arith.constant 1.000000e+00 : f32
    %1171 = vector.broadcast %cst_242 : f32 to vector<2x8xf32>
    %1172 = arith.addf %1171, %1170 : vector<2x8xf32>
    %1173 = arith.divf %1171, %1172 : vector<2x8xf32>
    %1174 = vector.extract_strided_slice %1167 {offsets = [0, 8], sizes = [2, 8], strides = [1, 1]} : vector<2x32xf32> to vector<2x8xf32>
    %1175 = arith.negf %1174 : vector<2x8xf32>
    %1176 = math.exp %1175 : vector<2x8xf32>
    %cst_243 = arith.constant 1.000000e+00 : f32
    %1177 = vector.broadcast %cst_243 : f32 to vector<2x8xf32>
    %1178 = arith.addf %1177, %1176 : vector<2x8xf32>
    %1179 = arith.divf %1177, %1178 : vector<2x8xf32>
    %1180 = vector.extract_strided_slice %1167 {offsets = [0, 16], sizes = [2, 8], strides = [1, 1]} : vector<2x32xf32> to vector<2x8xf32>
    %1181 = math.tanh %1180 : vector<2x8xf32>
    %1182 = vector.extract_strided_slice %1167 {offsets = [0, 24], sizes = [2, 8], strides = [1, 1]} : vector<2x32xf32> to vector<2x8xf32>
    %1183 = arith.negf %1182 : vector<2x8xf32>
    %1184 = math.exp %1183 : vector<2x8xf32>
    %cst_244 = arith.constant 1.000000e+00 : f32
    %1185 = vector.broadcast %cst_244 : f32 to vector<2x8xf32>
    %1186 = arith.addf %1185, %1184 : vector<2x8xf32>
    %1187 = arith.divf %1185, %1186 : vector<2x8xf32>
    %1188 = arith.mulf %1179, %1162 : vector<2x8xf32>
    %1189 = arith.mulf %1173, %1181 : vector<2x8xf32>
    %1190 = arith.addf %1188, %1189 : vector<2x8xf32>
    %1191 = math.tanh %1190 : vector<2x8xf32>
    %1192 = arith.mulf %1187, %1191 : vector<2x8xf32>
    %c0_245 = arith.constant 0 : index
    %c0_246 = arith.constant 0 : index
    %1193 = vector.load %arg33[%c0_245, %c0_246] : memref<2x8xf32, #tpu.memory_space<vmem>>, vector<2x8xf32>
    tpu.vector_store %arg33[%c0_245, %c0_246], %1192 {strides = array<i32>} : memref<2x8xf32, #tpu.memory_space<vmem>>, vector<2x8xf32>,
    %cst_247 = arith.constant dense<0.000000e+00> : vector<2x64xf32>
    %1194 = tpu.matmul %1192, %20, %cst_247 {dimension_numbers = #tpu.dot_dimension_numbers<[1], [0], [0], [1], [0, 0, 1, 1], [], []>} : vector<2x8xf32>, vector<8x64xf32>, vector<2x64xf32> -> vector<2x64xf32>
    %1195 = vector.broadcast %22 : vector<1x64xf32> to vector<2x64xf32>
    %1196 = arith.addf %1194, %1195 : vector<2x64xf32>
    %cst_248 = arith.constant 0.000000e+00 : f32
    %1197 = vector.broadcast %cst_248 : f32 to vector<2x16xf32>
    %cst_249 = arith.constant 0.000000e+00 : f32
    %1198 = vector.broadcast %cst_249 : f32 to vector<2x16xf32>
    %cst_250 = arith.constant dense<0.000000e+00> : vector<2x64xf32>
    %1199 = tpu.matmul %1197, %21, %cst_250 {dimension_numbers = #tpu.dot_dimension_numbers<[1], [0], [0], [1], [0, 0, 1, 1], [], []>} : vector<2x16xf32>, vector<16x64xf32>, vector<2x64xf32> -> vector<2x64xf32>
    %1200 = arith.addf %1196, %1199 : vector<2x64xf32>
    %1201 = vector.extract_strided_slice %1200 {offsets = [0, 0], sizes = [2, 16], strides = [1, 1]} : vector<2x64xf32> to vector<2x16xf32>
    %1202 = arith.negf %1201 : vector<2x16xf32>
    %1203 = math.exp %1202 : vector<2x16xf32>
    %cst_251 = arith.constant 1.000000e+00 : f32
    %1204 = vector.broadcast %cst_251 : f32 to vector<2x16xf32>
    %1205 = arith.addf %1204, %1203 : vector<2x16xf32>
    %1206 = arith.divf %1204, %1205 : vector<2x16xf32>
    %1207 = vector.extract_strided_slice %1200 {offsets = [0, 16], sizes = [2, 16], strides = [1, 1]} : vector<2x64xf32> to vector<2x16xf32>
    %1208 = arith.negf %1207 : vector<2x16xf32>
    %1209 = math.exp %1208 : vector<2x16xf32>
    %cst_252 = arith.constant 1.000000e+00 : f32
    %1210 = vector.broadcast %cst_252 : f32 to vector<2x16xf32>
    %1211 = arith.addf %1210, %1209 : vector<2x16xf32>
    %1212 = arith.divf %1210, %1211 : vector<2x16xf32>
    %1213 = vector.extract_strided_slice %1200 {offsets = [0, 32], sizes = [2, 16], strides = [1, 1]} : vector<2x64xf32> to vector<2x16xf32>
    %1214 = math.tanh %1213 : vector<2x16xf32>
    %1215 = vector.extract_strided_slice %1200 {offsets = [0, 48], sizes = [2, 16], strides = [1, 1]} : vector<2x64xf32> to vector<2x16xf32>
    %1216 = arith.negf %1215 : vector<2x16xf32>
    %1217 = math.exp %1216 : vector<2x16xf32>
    %cst_253 = arith.constant 1.000000e+00 : f32
    %1218 = vector.broadcast %cst_253 : f32 to vector<2x16xf32>
    %1219 = arith.addf %1218, %1217 : vector<2x16xf32>
    %1220 = arith.divf %1218, %1219 : vector<2x16xf32>
    %1221 = arith.mulf %1212, %1198 : vector<2x16xf32>
    %1222 = arith.mulf %1206, %1214 : vector<2x16xf32>
    %1223 = arith.addf %1221, %1222 : vector<2x16xf32>
    %1224 = math.tanh %1223 : vector<2x16xf32>
    %1225 = arith.mulf %1220, %1224 : vector<2x16xf32>
    %cst_254 = arith.constant dense<0.000000e+00> : vector<2x64xf32>
    %1226 = tpu.matmul %1225, %21, %cst_254 {dimension_numbers = #tpu.dot_dimension_numbers<[1], [0], [0], [1], [0, 0, 1, 1], [], []>} : vector<2x16xf32>, vector<16x64xf32>, vector<2x64xf32> -> vector<2x64xf32>
    %1227 = arith.addf %1196, %1226 : vector<2x64xf32>
    %1228 = vector.extract_strided_slice %1227 {offsets = [0, 0], sizes = [2, 16], strides = [1, 1]} : vector<2x64xf32> to vector<2x16xf32>
    %1229 = arith.negf %1228 : vector<2x16xf32>
    %1230 = math.exp %1229 : vector<2x16xf32>
    %cst_255 = arith.constant 1.000000e+00 : f32
    %1231 = vector.broadcast %cst_255 : f32 to vector<2x16xf32>
    %1232 = arith.addf %1231, %1230 : vector<2x16xf32>
    %1233 = arith.divf %1231, %1232 : vector<2x16xf32>
    %1234 = vector.extract_strided_slice %1227 {offsets = [0, 16], sizes = [2, 16], strides = [1, 1]} : vector<2x64xf32> to vector<2x16xf32>
    %1235 = arith.negf %1234 : vector<2x16xf32>
    %1236 = math.exp %1235 : vector<2x16xf32>
    %cst_256 = arith.constant 1.000000e+00 : f32
    %1237 = vector.broadcast %cst_256 : f32 to vector<2x16xf32>
    %1238 = arith.addf %1237, %1236 : vector<2x16xf32>
    %1239 = arith.divf %1237, %1238 : vector<2x16xf32>
    %1240 = vector.extract_strided_slice %1227 {offsets = [0, 32], sizes = [2, 16], strides = [1, 1]} : vector<2x64xf32> to vector<2x16xf32>
    %1241 = math.tanh %1240 : vector<2x16xf32>
    %1242 = vector.extract_strided_slice %1227 {offsets = [0, 48], sizes = [2, 16], strides = [1, 1]} : vector<2x64xf32> to vector<2x16xf32>
    %1243 = arith.negf %1242 : vector<2x16xf32>
    %1244 = math.exp %1243 : vector<2x16xf32>
    %cst_257 = arith.constant 1.000000e+00 : f32
    %1245 = vector.broadcast %cst_257 : f32 to vector<2x16xf32>
    %1246 = arith.addf %1245, %1244 : vector<2x16xf32>
    %1247 = arith.divf %1245, %1246 : vector<2x16xf32>
    %1248 = arith.mulf %1239, %1223 : vector<2x16xf32>
    %1249 = arith.mulf %1233, %1241 : vector<2x16xf32>
    %1250 = arith.addf %1248, %1249 : vector<2x16xf32>
    %1251 = math.tanh %1250 : vector<2x16xf32>
    %1252 = arith.mulf %1247, %1251 : vector<2x16xf32>
    %cst_258 = arith.constant dense<0.000000e+00> : vector<2x64xf32>
    %1253 = tpu.matmul %1252, %21, %cst_258 {dimension_numbers = #tpu.dot_dimension_numbers<[1], [0], [0], [1], [0, 0, 1, 1], [], []>} : vector<2x16xf32>, vector<16x64xf32>, vector<2x64xf32> -> vector<2x64xf32>
    %1254 = arith.addf %1196, %1253 : vector<2x64xf32>
    %1255 = vector.extract_strided_slice %1254 {offsets = [0, 0], sizes = [2, 16], strides = [1, 1]} : vector<2x64xf32> to vector<2x16xf32>
    %1256 = arith.negf %1255 : vector<2x16xf32>
    %1257 = math.exp %1256 : vector<2x16xf32>
    %cst_259 = arith.constant 1.000000e+00 : f32
    %1258 = vector.broadcast %cst_259 : f32 to vector<2x16xf32>
    %1259 = arith.addf %1258, %1257 : vector<2x16xf32>
    %1260 = arith.divf %1258, %1259 : vector<2x16xf32>
    %1261 = vector.extract_strided_slice %1254 {offsets = [0, 16], sizes = [2, 16], strides = [1, 1]} : vector<2x64xf32> to vector<2x16xf32>
    %1262 = arith.negf %1261 : vector<2x16xf32>
    %1263 = math.exp %1262 : vector<2x16xf32>
    %cst_260 = arith.constant 1.000000e+00 : f32
    %1264 = vector.broadcast %cst_260 : f32 to vector<2x16xf32>
    %1265 = arith.addf %1264, %1263 : vector<2x16xf32>
    %1266 = arith.divf %1264, %1265 : vector<2x16xf32>
    %1267 = vector.extract_strided_slice %1254 {offsets = [0, 32], sizes = [2, 16], strides = [1, 1]} : vector<2x64xf32> to vector<2x16xf32>
    %1268 = math.tanh %1267 : vector<2x16xf32>
    %1269 = vector.extract_strided_slice %1254 {offsets = [0, 48], sizes = [2, 16], strides = [1, 1]} : vector<2x64xf32> to vector<2x16xf32>
    %1270 = arith.negf %1269 : vector<2x16xf32>
    %1271 = math.exp %1270 : vector<2x16xf32>
    %cst_261 = arith.constant 1.000000e+00 : f32
    %1272 = vector.broadcast %cst_261 : f32 to vector<2x16xf32>
    %1273 = arith.addf %1272, %1271 : vector<2x16xf32>
    %1274 = arith.divf %1272, %1273 : vector<2x16xf32>
    %1275 = arith.mulf %1266, %1250 : vector<2x16xf32>
    %1276 = arith.mulf %1260, %1268 : vector<2x16xf32>
    %1277 = arith.addf %1275, %1276 : vector<2x16xf32>
    %1278 = math.tanh %1277 : vector<2x16xf32>
    %1279 = arith.mulf %1274, %1278 : vector<2x16xf32>
    %cst_262 = arith.constant dense<0.000000e+00> : vector<2x64xf32>
    %1280 = tpu.matmul %1279, %21, %cst_262 {dimension_numbers = #tpu.dot_dimension_numbers<[1], [0], [0], [1], [0, 0, 1, 1], [], []>} : vector<2x16xf32>, vector<16x64xf32>, vector<2x64xf32> -> vector<2x64xf32>
    %1281 = arith.addf %1196, %1280 : vector<2x64xf32>
    %1282 = vector.extract_strided_slice %1281 {offsets = [0, 0], sizes = [2, 16], strides = [1, 1]} : vector<2x64xf32> to vector<2x16xf32>
    %1283 = arith.negf %1282 : vector<2x16xf32>
    %1284 = math.exp %1283 : vector<2x16xf32>
    %cst_263 = arith.constant 1.000000e+00 : f32
    %1285 = vector.broadcast %cst_263 : f32 to vector<2x16xf32>
    %1286 = arith.addf %1285, %1284 : vector<2x16xf32>
    %1287 = arith.divf %1285, %1286 : vector<2x16xf32>
    %1288 = vector.extract_strided_slice %1281 {offsets = [0, 16], sizes = [2, 16], strides = [1, 1]} : vector<2x64xf32> to vector<2x16xf32>
    %1289 = arith.negf %1288 : vector<2x16xf32>
    %1290 = math.exp %1289 : vector<2x16xf32>
    %cst_264 = arith.constant 1.000000e+00 : f32
    %1291 = vector.broadcast %cst_264 : f32 to vector<2x16xf32>
    %1292 = arith.addf %1291, %1290 : vector<2x16xf32>
    %1293 = arith.divf %1291, %1292 : vector<2x16xf32>
    %1294 = vector.extract_strided_slice %1281 {offsets = [0, 32], sizes = [2, 16], strides = [1, 1]} : vector<2x64xf32> to vector<2x16xf32>
    %1295 = math.tanh %1294 : vector<2x16xf32>
    %1296 = vector.extract_strided_slice %1281 {offsets = [0, 48], sizes = [2, 16], strides = [1, 1]} : vector<2x64xf32> to vector<2x16xf32>
    %1297 = arith.negf %1296 : vector<2x16xf32>
    %1298 = math.exp %1297 : vector<2x16xf32>
    %cst_265 = arith.constant 1.000000e+00 : f32
    %1299 = vector.broadcast %cst_265 : f32 to vector<2x16xf32>
    %1300 = arith.addf %1299, %1298 : vector<2x16xf32>
    %1301 = arith.divf %1299, %1300 : vector<2x16xf32>
    %1302 = arith.mulf %1293, %1277 : vector<2x16xf32>
    %1303 = arith.mulf %1287, %1295 : vector<2x16xf32>
    %1304 = arith.addf %1302, %1303 : vector<2x16xf32>
    %1305 = math.tanh %1304 : vector<2x16xf32>
    %1306 = arith.mulf %1301, %1305 : vector<2x16xf32>
    %cst_266 = arith.constant dense<0.000000e+00> : vector<2x64xf32>
    %1307 = tpu.matmul %1306, %21, %cst_266 {dimension_numbers = #tpu.dot_dimension_numbers<[1], [0], [0], [1], [0, 0, 1, 1], [], []>} : vector<2x16xf32>, vector<16x64xf32>, vector<2x64xf32> -> vector<2x64xf32>
    %1308 = arith.addf %1196, %1307 : vector<2x64xf32>
    %1309 = vector.extract_strided_slice %1308 {offsets = [0, 0], sizes = [2, 16], strides = [1, 1]} : vector<2x64xf32> to vector<2x16xf32>
    %1310 = arith.negf %1309 : vector<2x16xf32>
    %1311 = math.exp %1310 : vector<2x16xf32>
    %cst_267 = arith.constant 1.000000e+00 : f32
    %1312 = vector.broadcast %cst_267 : f32 to vector<2x16xf32>
    %1313 = arith.addf %1312, %1311 : vector<2x16xf32>
    %1314 = arith.divf %1312, %1313 : vector<2x16xf32>
    %1315 = vector.extract_strided_slice %1308 {offsets = [0, 16], sizes = [2, 16], strides = [1, 1]} : vector<2x64xf32> to vector<2x16xf32>
    %1316 = arith.negf %1315 : vector<2x16xf32>
    %1317 = math.exp %1316 : vector<2x16xf32>
    %cst_268 = arith.constant 1.000000e+00 : f32
    %1318 = vector.broadcast %cst_268 : f32 to vector<2x16xf32>
    %1319 = arith.addf %1318, %1317 : vector<2x16xf32>
    %1320 = arith.divf %1318, %1319 : vector<2x16xf32>
    %1321 = vector.extract_strided_slice %1308 {offsets = [0, 32], sizes = [2, 16], strides = [1, 1]} : vector<2x64xf32> to vector<2x16xf32>
    %1322 = math.tanh %1321 : vector<2x16xf32>
    %1323 = vector.extract_strided_slice %1308 {offsets = [0, 48], sizes = [2, 16], strides = [1, 1]} : vector<2x64xf32> to vector<2x16xf32>
    %1324 = arith.negf %1323 : vector<2x16xf32>
    %1325 = math.exp %1324 : vector<2x16xf32>
    %cst_269 = arith.constant 1.000000e+00 : f32
    %1326 = vector.broadcast %cst_269 : f32 to vector<2x16xf32>
    %1327 = arith.addf %1326, %1325 : vector<2x16xf32>
    %1328 = arith.divf %1326, %1327 : vector<2x16xf32>
    %1329 = arith.mulf %1320, %1304 : vector<2x16xf32>
    %1330 = arith.mulf %1314, %1322 : vector<2x16xf32>
    %1331 = arith.addf %1329, %1330 : vector<2x16xf32>
    %1332 = math.tanh %1331 : vector<2x16xf32>
    %1333 = arith.mulf %1328, %1332 : vector<2x16xf32>
    %cst_270 = arith.constant dense<0.000000e+00> : vector<2x64xf32>
    %1334 = tpu.matmul %1333, %21, %cst_270 {dimension_numbers = #tpu.dot_dimension_numbers<[1], [0], [0], [1], [0, 0, 1, 1], [], []>} : vector<2x16xf32>, vector<16x64xf32>, vector<2x64xf32> -> vector<2x64xf32>
    %1335 = arith.addf %1196, %1334 : vector<2x64xf32>
    %1336 = vector.extract_strided_slice %1335 {offsets = [0, 0], sizes = [2, 16], strides = [1, 1]} : vector<2x64xf32> to vector<2x16xf32>
    %1337 = arith.negf %1336 : vector<2x16xf32>
    %1338 = math.exp %1337 : vector<2x16xf32>
    %cst_271 = arith.constant 1.000000e+00 : f32
    %1339 = vector.broadcast %cst_271 : f32 to vector<2x16xf32>
    %1340 = arith.addf %1339, %1338 : vector<2x16xf32>
    %1341 = arith.divf %1339, %1340 : vector<2x16xf32>
    %1342 = vector.extract_strided_slice %1335 {offsets = [0, 16], sizes = [2, 16], strides = [1, 1]} : vector<2x64xf32> to vector<2x16xf32>
    %1343 = arith.negf %1342 : vector<2x16xf32>
    %1344 = math.exp %1343 : vector<2x16xf32>
    %cst_272 = arith.constant 1.000000e+00 : f32
    %1345 = vector.broadcast %cst_272 : f32 to vector<2x16xf32>
    %1346 = arith.addf %1345, %1344 : vector<2x16xf32>
    %1347 = arith.divf %1345, %1346 : vector<2x16xf32>
    %1348 = vector.extract_strided_slice %1335 {offsets = [0, 32], sizes = [2, 16], strides = [1, 1]} : vector<2x64xf32> to vector<2x16xf32>
    %1349 = math.tanh %1348 : vector<2x16xf32>
    %1350 = vector.extract_strided_slice %1335 {offsets = [0, 48], sizes = [2, 16], strides = [1, 1]} : vector<2x64xf32> to vector<2x16xf32>
    %1351 = arith.negf %1350 : vector<2x16xf32>
    %1352 = math.exp %1351 : vector<2x16xf32>
    %cst_273 = arith.constant 1.000000e+00 : f32
    %1353 = vector.broadcast %cst_273 : f32 to vector<2x16xf32>
    %1354 = arith.addf %1353, %1352 : vector<2x16xf32>
    %1355 = arith.divf %1353, %1354 : vector<2x16xf32>
    %1356 = arith.mulf %1347, %1331 : vector<2x16xf32>
    %1357 = arith.mulf %1341, %1349 : vector<2x16xf32>
    %1358 = arith.addf %1356, %1357 : vector<2x16xf32>
    %1359 = math.tanh %1358 : vector<2x16xf32>
    %1360 = arith.mulf %1355, %1359 : vector<2x16xf32>
    %cst_274 = arith.constant dense<0.000000e+00> : vector<2x64xf32>
    %1361 = tpu.matmul %1360, %21, %cst_274 {dimension_numbers = #tpu.dot_dimension_numbers<[1], [0], [0], [1], [0, 0, 1, 1], [], []>} : vector<2x16xf32>, vector<16x64xf32>, vector<2x64xf32> -> vector<2x64xf32>
    %1362 = arith.addf %1196, %1361 : vector<2x64xf32>
    %1363 = vector.extract_strided_slice %1362 {offsets = [0, 0], sizes = [2, 16], strides = [1, 1]} : vector<2x64xf32> to vector<2x16xf32>
    %1364 = arith.negf %1363 : vector<2x16xf32>
    %1365 = math.exp %1364 : vector<2x16xf32>
    %cst_275 = arith.constant 1.000000e+00 : f32
    %1366 = vector.broadcast %cst_275 : f32 to vector<2x16xf32>
    %1367 = arith.addf %1366, %1365 : vector<2x16xf32>
    %1368 = arith.divf %1366, %1367 : vector<2x16xf32>
    %1369 = vector.extract_strided_slice %1362 {offsets = [0, 16], sizes = [2, 16], strides = [1, 1]} : vector<2x64xf32> to vector<2x16xf32>
    %1370 = arith.negf %1369 : vector<2x16xf32>
    %1371 = math.exp %1370 : vector<2x16xf32>
    %cst_276 = arith.constant 1.000000e+00 : f32
    %1372 = vector.broadcast %cst_276 : f32 to vector<2x16xf32>
    %1373 = arith.addf %1372, %1371 : vector<2x16xf32>
    %1374 = arith.divf %1372, %1373 : vector<2x16xf32>
    %1375 = vector.extract_strided_slice %1362 {offsets = [0, 32], sizes = [2, 16], strides = [1, 1]} : vector<2x64xf32> to vector<2x16xf32>
    %1376 = math.tanh %1375 : vector<2x16xf32>
    %1377 = vector.extract_strided_slice %1362 {offsets = [0, 48], sizes = [2, 16], strides = [1, 1]} : vector<2x64xf32> to vector<2x16xf32>
    %1378 = arith.negf %1377 : vector<2x16xf32>
    %1379 = math.exp %1378 : vector<2x16xf32>
    %cst_277 = arith.constant 1.000000e+00 : f32
    %1380 = vector.broadcast %cst_277 : f32 to vector<2x16xf32>
    %1381 = arith.addf %1380, %1379 : vector<2x16xf32>
    %1382 = arith.divf %1380, %1381 : vector<2x16xf32>
    %1383 = arith.mulf %1374, %1358 : vector<2x16xf32>
    %1384 = arith.mulf %1368, %1376 : vector<2x16xf32>
    %1385 = arith.addf %1383, %1384 : vector<2x16xf32>
    %1386 = math.tanh %1385 : vector<2x16xf32>
    %1387 = arith.mulf %1382, %1386 : vector<2x16xf32>
    %cst_278 = arith.constant dense<0.000000e+00> : vector<2x64xf32>
    %1388 = tpu.matmul %1387, %21, %cst_278 {dimension_numbers = #tpu.dot_dimension_numbers<[1], [0], [0], [1], [0, 0, 1, 1], [], []>} : vector<2x16xf32>, vector<16x64xf32>, vector<2x64xf32> -> vector<2x64xf32>
    %1389 = arith.addf %1196, %1388 : vector<2x64xf32>
    %1390 = vector.extract_strided_slice %1389 {offsets = [0, 0], sizes = [2, 16], strides = [1, 1]} : vector<2x64xf32> to vector<2x16xf32>
    %1391 = arith.negf %1390 : vector<2x16xf32>
    %1392 = math.exp %1391 : vector<2x16xf32>
    %cst_279 = arith.constant 1.000000e+00 : f32
    %1393 = vector.broadcast %cst_279 : f32 to vector<2x16xf32>
    %1394 = arith.addf %1393, %1392 : vector<2x16xf32>
    %1395 = arith.divf %1393, %1394 : vector<2x16xf32>
    %1396 = vector.extract_strided_slice %1389 {offsets = [0, 16], sizes = [2, 16], strides = [1, 1]} : vector<2x64xf32> to vector<2x16xf32>
    %1397 = arith.negf %1396 : vector<2x16xf32>
    %1398 = math.exp %1397 : vector<2x16xf32>
    %cst_280 = arith.constant 1.000000e+00 : f32
    %1399 = vector.broadcast %cst_280 : f32 to vector<2x16xf32>
    %1400 = arith.addf %1399, %1398 : vector<2x16xf32>
    %1401 = arith.divf %1399, %1400 : vector<2x16xf32>
    %1402 = vector.extract_strided_slice %1389 {offsets = [0, 32], sizes = [2, 16], strides = [1, 1]} : vector<2x64xf32> to vector<2x16xf32>
    %1403 = math.tanh %1402 : vector<2x16xf32>
    %1404 = vector.extract_strided_slice %1389 {offsets = [0, 48], sizes = [2, 16], strides = [1, 1]} : vector<2x64xf32> to vector<2x16xf32>
    %1405 = arith.negf %1404 : vector<2x16xf32>
    %1406 = math.exp %1405 : vector<2x16xf32>
    %cst_281 = arith.constant 1.000000e+00 : f32
    %1407 = vector.broadcast %cst_281 : f32 to vector<2x16xf32>
    %1408 = arith.addf %1407, %1406 : vector<2x16xf32>
    %1409 = arith.divf %1407, %1408 : vector<2x16xf32>
    %1410 = arith.mulf %1401, %1385 : vector<2x16xf32>
    %1411 = arith.mulf %1395, %1403 : vector<2x16xf32>
    %1412 = arith.addf %1410, %1411 : vector<2x16xf32>
    %1413 = math.tanh %1412 : vector<2x16xf32>
    %1414 = arith.mulf %1409, %1413 : vector<2x16xf32>
    %1415 = tpu.concatenate %1225, %1252, %1279, %1306, %1333, %1360, %1387, %1414 in 0 : vector<2x16xf32>, vector<2x16xf32>, vector<2x16xf32>, vector<2x16xf32>, vector<2x16xf32>, vector<2x16xf32>, vector<2x16xf32>, vector<2x16xf32> -> vector<16x16xf32>
    %cst_282 = arith.constant dense<0.000000e+00> : vector<16x64xf32>
    %1416 = tpu.matmul %1415, %23, %cst_282 {dimension_numbers = #tpu.dot_dimension_numbers<[1], [0], [0], [1], [0, 0, 1, 1], [], []>} : vector<16x16xf32>, vector<16x64xf32>, vector<16x64xf32> -> vector<16x64xf32>
    %1417 = vector.broadcast %25 : vector<1x64xf32> to vector<16x64xf32>
    %1418 = arith.addf %1416, %1417 : vector<16x64xf32>
    %cst_283 = arith.constant 0.000000e+00 : f32
    %1419 = vector.broadcast %cst_283 : f32 to vector<2x16xf32>
    %cst_284 = arith.constant 0.000000e+00 : f32
    %1420 = vector.broadcast %cst_284 : f32 to vector<2x16xf32>
    %1421 = vector.extract_strided_slice %1418 {offsets = [0, 0], sizes = [2, 64], strides = [1, 1]} : vector<16x64xf32> to vector<2x64xf32>
    %cst_285 = arith.constant dense<0.000000e+00> : vector<2x64xf32>
    %1422 = tpu.matmul %1419, %24, %cst_285 {dimension_numbers = #tpu.dot_dimension_numbers<[1], [0], [0], [1], [0, 0, 1, 1], [], []>} : vector<2x16xf32>, vector<16x64xf32>, vector<2x64xf32> -> vector<2x64xf32>
    %1423 = arith.addf %1421, %1422 : vector<2x64xf32>
    %1424 = vector.extract_strided_slice %1423 {offsets = [0, 0], sizes = [2, 16], strides = [1, 1]} : vector<2x64xf32> to vector<2x16xf32>
    %1425 = arith.negf %1424 : vector<2x16xf32>
    %1426 = math.exp %1425 : vector<2x16xf32>
    %cst_286 = arith.constant 1.000000e+00 : f32
    %1427 = vector.broadcast %cst_286 : f32 to vector<2x16xf32>
    %1428 = arith.addf %1427, %1426 : vector<2x16xf32>
    %1429 = arith.divf %1427, %1428 : vector<2x16xf32>
    %1430 = vector.extract_strided_slice %1423 {offsets = [0, 16], sizes = [2, 16], strides = [1, 1]} : vector<2x64xf32> to vector<2x16xf32>
    %1431 = arith.negf %1430 : vector<2x16xf32>
    %1432 = math.exp %1431 : vector<2x16xf32>
    %cst_287 = arith.constant 1.000000e+00 : f32
    %1433 = vector.broadcast %cst_287 : f32 to vector<2x16xf32>
    %1434 = arith.addf %1433, %1432 : vector<2x16xf32>
    %1435 = arith.divf %1433, %1434 : vector<2x16xf32>
    %1436 = vector.extract_strided_slice %1423 {offsets = [0, 32], sizes = [2, 16], strides = [1, 1]} : vector<2x64xf32> to vector<2x16xf32>
    %1437 = math.tanh %1436 : vector<2x16xf32>
    %1438 = vector.extract_strided_slice %1423 {offsets = [0, 48], sizes = [2, 16], strides = [1, 1]} : vector<2x64xf32> to vector<2x16xf32>
    %1439 = arith.negf %1438 : vector<2x16xf32>
    %1440 = math.exp %1439 : vector<2x16xf32>
    %cst_288 = arith.constant 1.000000e+00 : f32
    %1441 = vector.broadcast %cst_288 : f32 to vector<2x16xf32>
    %1442 = arith.addf %1441, %1440 : vector<2x16xf32>
    %1443 = arith.divf %1441, %1442 : vector<2x16xf32>
    %1444 = arith.mulf %1435, %1420 : vector<2x16xf32>
    %1445 = arith.mulf %1429, %1437 : vector<2x16xf32>
    %1446 = arith.addf %1444, %1445 : vector<2x16xf32>
    %1447 = math.tanh %1446 : vector<2x16xf32>
    %1448 = arith.mulf %1443, %1447 : vector<2x16xf32>
    %1449 = vector.extract_strided_slice %1418 {offsets = [2, 0], sizes = [2, 64], strides = [1, 1]} : vector<16x64xf32> to vector<2x64xf32>
    %cst_289 = arith.constant dense<0.000000e+00> : vector<2x64xf32>
    %1450 = tpu.matmul %1448, %24, %cst_289 {dimension_numbers = #tpu.dot_dimension_numbers<[1], [0], [0], [1], [0, 0, 1, 1], [], []>} : vector<2x16xf32>, vector<16x64xf32>, vector<2x64xf32> -> vector<2x64xf32>
    %1451 = arith.addf %1449, %1450 : vector<2x64xf32>
    %1452 = vector.extract_strided_slice %1451 {offsets = [0, 0], sizes = [2, 16], strides = [1, 1]} : vector<2x64xf32> to vector<2x16xf32>
    %1453 = arith.negf %1452 : vector<2x16xf32>
    %1454 = math.exp %1453 : vector<2x16xf32>
    %cst_290 = arith.constant 1.000000e+00 : f32
    %1455 = vector.broadcast %cst_290 : f32 to vector<2x16xf32>
    %1456 = arith.addf %1455, %1454 : vector<2x16xf32>
    %1457 = arith.divf %1455, %1456 : vector<2x16xf32>
    %1458 = vector.extract_strided_slice %1451 {offsets = [0, 16], sizes = [2, 16], strides = [1, 1]} : vector<2x64xf32> to vector<2x16xf32>
    %1459 = arith.negf %1458 : vector<2x16xf32>
    %1460 = math.exp %1459 : vector<2x16xf32>
    %cst_291 = arith.constant 1.000000e+00 : f32
    %1461 = vector.broadcast %cst_291 : f32 to vector<2x16xf32>
    %1462 = arith.addf %1461, %1460 : vector<2x16xf32>
    %1463 = arith.divf %1461, %1462 : vector<2x16xf32>
    %1464 = vector.extract_strided_slice %1451 {offsets = [0, 32], sizes = [2, 16], strides = [1, 1]} : vector<2x64xf32> to vector<2x16xf32>
    %1465 = math.tanh %1464 : vector<2x16xf32>
    %1466 = vector.extract_strided_slice %1451 {offsets = [0, 48], sizes = [2, 16], strides = [1, 1]} : vector<2x64xf32> to vector<2x16xf32>
    %1467 = arith.negf %1466 : vector<2x16xf32>
    %1468 = math.exp %1467 : vector<2x16xf32>
    %cst_292 = arith.constant 1.000000e+00 : f32
    %1469 = vector.broadcast %cst_292 : f32 to vector<2x16xf32>
    %1470 = arith.addf %1469, %1468 : vector<2x16xf32>
    %1471 = arith.divf %1469, %1470 : vector<2x16xf32>
    %1472 = arith.mulf %1463, %1446 : vector<2x16xf32>
    %1473 = arith.mulf %1457, %1465 : vector<2x16xf32>
    %1474 = arith.addf %1472, %1473 : vector<2x16xf32>
    %1475 = math.tanh %1474 : vector<2x16xf32>
    %1476 = arith.mulf %1471, %1475 : vector<2x16xf32>
    %1477 = vector.extract_strided_slice %1418 {offsets = [4, 0], sizes = [2, 64], strides = [1, 1]} : vector<16x64xf32> to vector<2x64xf32>
    %cst_293 = arith.constant dense<0.000000e+00> : vector<2x64xf32>
    %1478 = tpu.matmul %1476, %24, %cst_293 {dimension_numbers = #tpu.dot_dimension_numbers<[1], [0], [0], [1], [0, 0, 1, 1], [], []>} : vector<2x16xf32>, vector<16x64xf32>, vector<2x64xf32> -> vector<2x64xf32>
    %1479 = arith.addf %1477, %1478 : vector<2x64xf32>
    %1480 = vector.extract_strided_slice %1479 {offsets = [0, 0], sizes = [2, 16], strides = [1, 1]} : vector<2x64xf32> to vector<2x16xf32>
    %1481 = arith.negf %1480 : vector<2x16xf32>
    %1482 = math.exp %1481 : vector<2x16xf32>
    %cst_294 = arith.constant 1.000000e+00 : f32
    %1483 = vector.broadcast %cst_294 : f32 to vector<2x16xf32>
    %1484 = arith.addf %1483, %1482 : vector<2x16xf32>
    %1485 = arith.divf %1483, %1484 : vector<2x16xf32>
    %1486 = vector.extract_strided_slice %1479 {offsets = [0, 16], sizes = [2, 16], strides = [1, 1]} : vector<2x64xf32> to vector<2x16xf32>
    %1487 = arith.negf %1486 : vector<2x16xf32>
    %1488 = math.exp %1487 : vector<2x16xf32>
    %cst_295 = arith.constant 1.000000e+00 : f32
    %1489 = vector.broadcast %cst_295 : f32 to vector<2x16xf32>
    %1490 = arith.addf %1489, %1488 : vector<2x16xf32>
    %1491 = arith.divf %1489, %1490 : vector<2x16xf32>
    %1492 = vector.extract_strided_slice %1479 {offsets = [0, 32], sizes = [2, 16], strides = [1, 1]} : vector<2x64xf32> to vector<2x16xf32>
    %1493 = math.tanh %1492 : vector<2x16xf32>
    %1494 = vector.extract_strided_slice %1479 {offsets = [0, 48], sizes = [2, 16], strides = [1, 1]} : vector<2x64xf32> to vector<2x16xf32>
    %1495 = arith.negf %1494 : vector<2x16xf32>
    %1496 = math.exp %1495 : vector<2x16xf32>
    %cst_296 = arith.constant 1.000000e+00 : f32
    %1497 = vector.broadcast %cst_296 : f32 to vector<2x16xf32>
    %1498 = arith.addf %1497, %1496 : vector<2x16xf32>
    %1499 = arith.divf %1497, %1498 : vector<2x16xf32>
    %1500 = arith.mulf %1491, %1474 : vector<2x16xf32>
    %1501 = arith.mulf %1485, %1493 : vector<2x16xf32>
    %1502 = arith.addf %1500, %1501 : vector<2x16xf32>
    %1503 = math.tanh %1502 : vector<2x16xf32>
    %1504 = arith.mulf %1499, %1503 : vector<2x16xf32>
    %1505 = vector.extract_strided_slice %1418 {offsets = [6, 0], sizes = [2, 64], strides = [1, 1]} : vector<16x64xf32> to vector<2x64xf32>
    %cst_297 = arith.constant dense<0.000000e+00> : vector<2x64xf32>
    %1506 = tpu.matmul %1504, %24, %cst_297 {dimension_numbers = #tpu.dot_dimension_numbers<[1], [0], [0], [1], [0, 0, 1, 1], [], []>} : vector<2x16xf32>, vector<16x64xf32>, vector<2x64xf32> -> vector<2x64xf32>
    %1507 = arith.addf %1505, %1506 : vector<2x64xf32>
    %1508 = vector.extract_strided_slice %1507 {offsets = [0, 0], sizes = [2, 16], strides = [1, 1]} : vector<2x64xf32> to vector<2x16xf32>
    %1509 = arith.negf %1508 : vector<2x16xf32>
    %1510 = math.exp %1509 : vector<2x16xf32>
    %cst_298 = arith.constant 1.000000e+00 : f32
    %1511 = vector.broadcast %cst_298 : f32 to vector<2x16xf32>
    %1512 = arith.addf %1511, %1510 : vector<2x16xf32>
    %1513 = arith.divf %1511, %1512 : vector<2x16xf32>
    %1514 = vector.extract_strided_slice %1507 {offsets = [0, 16], sizes = [2, 16], strides = [1, 1]} : vector<2x64xf32> to vector<2x16xf32>
    %1515 = arith.negf %1514 : vector<2x16xf32>
    %1516 = math.exp %1515 : vector<2x16xf32>
    %cst_299 = arith.constant 1.000000e+00 : f32
    %1517 = vector.broadcast %cst_299 : f32 to vector<2x16xf32>
    %1518 = arith.addf %1517, %1516 : vector<2x16xf32>
    %1519 = arith.divf %1517, %1518 : vector<2x16xf32>
    %1520 = vector.extract_strided_slice %1507 {offsets = [0, 32], sizes = [2, 16], strides = [1, 1]} : vector<2x64xf32> to vector<2x16xf32>
    %1521 = math.tanh %1520 : vector<2x16xf32>
    %1522 = vector.extract_strided_slice %1507 {offsets = [0, 48], sizes = [2, 16], strides = [1, 1]} : vector<2x64xf32> to vector<2x16xf32>
    %1523 = arith.negf %1522 : vector<2x16xf32>
    %1524 = math.exp %1523 : vector<2x16xf32>
    %cst_300 = arith.constant 1.000000e+00 : f32
    %1525 = vector.broadcast %cst_300 : f32 to vector<2x16xf32>
    %1526 = arith.addf %1525, %1524 : vector<2x16xf32>
    %1527 = arith.divf %1525, %1526 : vector<2x16xf32>
    %1528 = arith.mulf %1519, %1502 : vector<2x16xf32>
    %1529 = arith.mulf %1513, %1521 : vector<2x16xf32>
    %1530 = arith.addf %1528, %1529 : vector<2x16xf32>
    %1531 = math.tanh %1530 : vector<2x16xf32>
    %1532 = arith.mulf %1527, %1531 : vector<2x16xf32>
    %1533 = vector.extract_strided_slice %1418 {offsets = [8, 0], sizes = [2, 64], strides = [1, 1]} : vector<16x64xf32> to vector<2x64xf32>
    %cst_301 = arith.constant dense<0.000000e+00> : vector<2x64xf32>
    %1534 = tpu.matmul %1532, %24, %cst_301 {dimension_numbers = #tpu.dot_dimension_numbers<[1], [0], [0], [1], [0, 0, 1, 1], [], []>} : vector<2x16xf32>, vector<16x64xf32>, vector<2x64xf32> -> vector<2x64xf32>
    %1535 = arith.addf %1533, %1534 : vector<2x64xf32>
    %1536 = vector.extract_strided_slice %1535 {offsets = [0, 0], sizes = [2, 16], strides = [1, 1]} : vector<2x64xf32> to vector<2x16xf32>
    %1537 = arith.negf %1536 : vector<2x16xf32>
    %1538 = math.exp %1537 : vector<2x16xf32>
    %cst_302 = arith.constant 1.000000e+00 : f32
    %1539 = vector.broadcast %cst_302 : f32 to vector<2x16xf32>
    %1540 = arith.addf %1539, %1538 : vector<2x16xf32>
    %1541 = arith.divf %1539, %1540 : vector<2x16xf32>
    %1542 = vector.extract_strided_slice %1535 {offsets = [0, 16], sizes = [2, 16], strides = [1, 1]} : vector<2x64xf32> to vector<2x16xf32>
    %1543 = arith.negf %1542 : vector<2x16xf32>
    %1544 = math.exp %1543 : vector<2x16xf32>
    %cst_303 = arith.constant 1.000000e+00 : f32
    %1545 = vector.broadcast %cst_303 : f32 to vector<2x16xf32>
    %1546 = arith.addf %1545, %1544 : vector<2x16xf32>
    %1547 = arith.divf %1545, %1546 : vector<2x16xf32>
    %1548 = vector.extract_strided_slice %1535 {offsets = [0, 32], sizes = [2, 16], strides = [1, 1]} : vector<2x64xf32> to vector<2x16xf32>
    %1549 = math.tanh %1548 : vector<2x16xf32>
    %1550 = vector.extract_strided_slice %1535 {offsets = [0, 48], sizes = [2, 16], strides = [1, 1]} : vector<2x64xf32> to vector<2x16xf32>
    %1551 = arith.negf %1550 : vector<2x16xf32>
    %1552 = math.exp %1551 : vector<2x16xf32>
    %cst_304 = arith.constant 1.000000e+00 : f32
    %1553 = vector.broadcast %cst_304 : f32 to vector<2x16xf32>
    %1554 = arith.addf %1553, %1552 : vector<2x16xf32>
    %1555 = arith.divf %1553, %1554 : vector<2x16xf32>
    %1556 = arith.mulf %1547, %1530 : vector<2x16xf32>
    %1557 = arith.mulf %1541, %1549 : vector<2x16xf32>
    %1558 = arith.addf %1556, %1557 : vector<2x16xf32>
    %1559 = math.tanh %1558 : vector<2x16xf32>
    %1560 = arith.mulf %1555, %1559 : vector<2x16xf32>
    %1561 = vector.extract_strided_slice %1418 {offsets = [10, 0], sizes = [2, 64], strides = [1, 1]} : vector<16x64xf32> to vector<2x64xf32>
    %cst_305 = arith.constant dense<0.000000e+00> : vector<2x64xf32>
    %1562 = tpu.matmul %1560, %24, %cst_305 {dimension_numbers = #tpu.dot_dimension_numbers<[1], [0], [0], [1], [0, 0, 1, 1], [], []>} : vector<2x16xf32>, vector<16x64xf32>, vector<2x64xf32> -> vector<2x64xf32>
    %1563 = arith.addf %1561, %1562 : vector<2x64xf32>
    %1564 = vector.extract_strided_slice %1563 {offsets = [0, 0], sizes = [2, 16], strides = [1, 1]} : vector<2x64xf32> to vector<2x16xf32>
    %1565 = arith.negf %1564 : vector<2x16xf32>
    %1566 = math.exp %1565 : vector<2x16xf32>
    %cst_306 = arith.constant 1.000000e+00 : f32
    %1567 = vector.broadcast %cst_306 : f32 to vector<2x16xf32>
    %1568 = arith.addf %1567, %1566 : vector<2x16xf32>
    %1569 = arith.divf %1567, %1568 : vector<2x16xf32>
    %1570 = vector.extract_strided_slice %1563 {offsets = [0, 16], sizes = [2, 16], strides = [1, 1]} : vector<2x64xf32> to vector<2x16xf32>
    %1571 = arith.negf %1570 : vector<2x16xf32>
    %1572 = math.exp %1571 : vector<2x16xf32>
    %cst_307 = arith.constant 1.000000e+00 : f32
    %1573 = vector.broadcast %cst_307 : f32 to vector<2x16xf32>
    %1574 = arith.addf %1573, %1572 : vector<2x16xf32>
    %1575 = arith.divf %1573, %1574 : vector<2x16xf32>
    %1576 = vector.extract_strided_slice %1563 {offsets = [0, 32], sizes = [2, 16], strides = [1, 1]} : vector<2x64xf32> to vector<2x16xf32>
    %1577 = math.tanh %1576 : vector<2x16xf32>
    %1578 = vector.extract_strided_slice %1563 {offsets = [0, 48], sizes = [2, 16], strides = [1, 1]} : vector<2x64xf32> to vector<2x16xf32>
    %1579 = arith.negf %1578 : vector<2x16xf32>
    %1580 = math.exp %1579 : vector<2x16xf32>
    %cst_308 = arith.constant 1.000000e+00 : f32
    %1581 = vector.broadcast %cst_308 : f32 to vector<2x16xf32>
    %1582 = arith.addf %1581, %1580 : vector<2x16xf32>
    %1583 = arith.divf %1581, %1582 : vector<2x16xf32>
    %1584 = arith.mulf %1575, %1558 : vector<2x16xf32>
    %1585 = arith.mulf %1569, %1577 : vector<2x16xf32>
    %1586 = arith.addf %1584, %1585 : vector<2x16xf32>
    %1587 = math.tanh %1586 : vector<2x16xf32>
    %1588 = arith.mulf %1583, %1587 : vector<2x16xf32>
    %1589 = vector.extract_strided_slice %1418 {offsets = [12, 0], sizes = [2, 64], strides = [1, 1]} : vector<16x64xf32> to vector<2x64xf32>
    %cst_309 = arith.constant dense<0.000000e+00> : vector<2x64xf32>
    %1590 = tpu.matmul %1588, %24, %cst_309 {dimension_numbers = #tpu.dot_dimension_numbers<[1], [0], [0], [1], [0, 0, 1, 1], [], []>} : vector<2x16xf32>, vector<16x64xf32>, vector<2x64xf32> -> vector<2x64xf32>
    %1591 = arith.addf %1589, %1590 : vector<2x64xf32>
    %1592 = vector.extract_strided_slice %1591 {offsets = [0, 0], sizes = [2, 16], strides = [1, 1]} : vector<2x64xf32> to vector<2x16xf32>
    %1593 = arith.negf %1592 : vector<2x16xf32>
    %1594 = math.exp %1593 : vector<2x16xf32>
    %cst_310 = arith.constant 1.000000e+00 : f32
    %1595 = vector.broadcast %cst_310 : f32 to vector<2x16xf32>
    %1596 = arith.addf %1595, %1594 : vector<2x16xf32>
    %1597 = arith.divf %1595, %1596 : vector<2x16xf32>
    %1598 = vector.extract_strided_slice %1591 {offsets = [0, 16], sizes = [2, 16], strides = [1, 1]} : vector<2x64xf32> to vector<2x16xf32>
    %1599 = arith.negf %1598 : vector<2x16xf32>
    %1600 = math.exp %1599 : vector<2x16xf32>
    %cst_311 = arith.constant 1.000000e+00 : f32
    %1601 = vector.broadcast %cst_311 : f32 to vector<2x16xf32>
    %1602 = arith.addf %1601, %1600 : vector<2x16xf32>
    %1603 = arith.divf %1601, %1602 : vector<2x16xf32>
    %1604 = vector.extract_strided_slice %1591 {offsets = [0, 32], sizes = [2, 16], strides = [1, 1]} : vector<2x64xf32> to vector<2x16xf32>
    %1605 = math.tanh %1604 : vector<2x16xf32>
    %1606 = vector.extract_strided_slice %1591 {offsets = [0, 48], sizes = [2, 16], strides = [1, 1]} : vector<2x64xf32> to vector<2x16xf32>
    %1607 = arith.negf %1606 : vector<2x16xf32>
    %1608 = math.exp %1607 : vector<2x16xf32>
    %cst_312 = arith.constant 1.000000e+00 : f32
    %1609 = vector.broadcast %cst_312 : f32 to vector<2x16xf32>
    %1610 = arith.addf %1609, %1608 : vector<2x16xf32>
    %1611 = arith.divf %1609, %1610 : vector<2x16xf32>
    %1612 = arith.mulf %1603, %1586 : vector<2x16xf32>
    %1613 = arith.mulf %1597, %1605 : vector<2x16xf32>
    %1614 = arith.addf %1612, %1613 : vector<2x16xf32>
    %1615 = math.tanh %1614 : vector<2x16xf32>
    %1616 = arith.mulf %1611, %1615 : vector<2x16xf32>
    %1617 = vector.extract_strided_slice %1418 {offsets = [14, 0], sizes = [2, 64], strides = [1, 1]} : vector<16x64xf32> to vector<2x64xf32>
    %cst_313 = arith.constant dense<0.000000e+00> : vector<2x64xf32>
    %1618 = tpu.matmul %1616, %24, %cst_313 {dimension_numbers = #tpu.dot_dimension_numbers<[1], [0], [0], [1], [0, 0, 1, 1], [], []>} : vector<2x16xf32>, vector<16x64xf32>, vector<2x64xf32> -> vector<2x64xf32>
    %1619 = arith.addf %1617, %1618 : vector<2x64xf32>
    %1620 = vector.extract_strided_slice %1619 {offsets = [0, 0], sizes = [2, 16], strides = [1, 1]} : vector<2x64xf32> to vector<2x16xf32>
    %1621 = arith.negf %1620 : vector<2x16xf32>
    %1622 = math.exp %1621 : vector<2x16xf32>
    %cst_314 = arith.constant 1.000000e+00 : f32
    %1623 = vector.broadcast %cst_314 : f32 to vector<2x16xf32>
    %1624 = arith.addf %1623, %1622 : vector<2x16xf32>
    %1625 = arith.divf %1623, %1624 : vector<2x16xf32>
    %1626 = vector.extract_strided_slice %1619 {offsets = [0, 16], sizes = [2, 16], strides = [1, 1]} : vector<2x64xf32> to vector<2x16xf32>
    %1627 = arith.negf %1626 : vector<2x16xf32>
    %1628 = math.exp %1627 : vector<2x16xf32>
    %cst_315 = arith.constant 1.000000e+00 : f32
    %1629 = vector.broadcast %cst_315 : f32 to vector<2x16xf32>
    %1630 = arith.addf %1629, %1628 : vector<2x16xf32>
    %1631 = arith.divf %1629, %1630 : vector<2x16xf32>
    %1632 = vector.extract_strided_slice %1619 {offsets = [0, 32], sizes = [2, 16], strides = [1, 1]} : vector<2x64xf32> to vector<2x16xf32>
    %1633 = math.tanh %1632 : vector<2x16xf32>
    %1634 = vector.extract_strided_slice %1619 {offsets = [0, 48], sizes = [2, 16], strides = [1, 1]} : vector<2x64xf32> to vector<2x16xf32>
    %1635 = arith.negf %1634 : vector<2x16xf32>
    %1636 = math.exp %1635 : vector<2x16xf32>
    %cst_316 = arith.constant 1.000000e+00 : f32
    %1637 = vector.broadcast %cst_316 : f32 to vector<2x16xf32>
    %1638 = arith.addf %1637, %1636 : vector<2x16xf32>
    %1639 = arith.divf %1637, %1638 : vector<2x16xf32>
    %1640 = arith.mulf %1631, %1614 : vector<2x16xf32>
    %1641 = arith.mulf %1625, %1633 : vector<2x16xf32>
    %1642 = arith.addf %1640, %1641 : vector<2x16xf32>
    %1643 = math.tanh %1642 : vector<2x16xf32>
    %1644 = arith.mulf %1639, %1643 : vector<2x16xf32>
    %1645 = tpu.concatenate %1448, %1476, %1504, %1532, %1560, %1588, %1616, %1644 in 0 : vector<2x16xf32>, vector<2x16xf32>, vector<2x16xf32>, vector<2x16xf32>, vector<2x16xf32>, vector<2x16xf32>, vector<2x16xf32>, vector<2x16xf32> -> vector<16x16xf32>
    %cst_317 = arith.constant dense<0.000000e+00> : vector<16x16xf32>
    %1646 = tpu.matmul %1645, %26, %cst_317 {dimension_numbers = #tpu.dot_dimension_numbers<[1], [0], [0], [1], [0, 0, 1, 1], [], []>} : vector<16x16xf32>, vector<16x16xf32>, vector<16x16xf32> -> vector<16x16xf32>
    %1647 = vector.broadcast %27 : vector<1x16xf32> to vector<16x16xf32>
    %1648 = arith.addf %1646, %1647 : vector<16x16xf32>
    %c0_318 = arith.constant 0 : index
    %c0_319 = arith.constant 0 : index
    %1649 = vector.load %arg34[%c0_318, %c0_319] : memref<16x16xf32, #tpu.memory_space<vmem>>, vector<16x16xf32>
    tpu.vector_store %arg34[%c0_318, %c0_319], %1648 {strides = array<i32>} : memref<16x16xf32, #tpu.memory_space<vmem>>, vector<16x16xf32>,
    %1650 = arith.subf %1648, %28 : vector<16x16xf32>
    %1651 = arith.mulf %1650, %1650 : vector<16x16xf32>
    %1652 = vector.shape_cast %1651 : vector<16x16xf32> to vector<1x16x16xf32>
    %cst_320 = arith.constant dense<0.000000e+00> : vector<1xf32>
    %1653 = vector.multi_reduction <add>, %1652, %cst_320 [1, 2] : vector<1x16x16xf32> to vector<1xf32>
    %1654 = vector.shape_cast %1653 : vector<1xf32> to vector<1x1x1xf32>
    %1655 = vector.extract %1654[0, 0, 0] : f32 from vector<1x1x1xf32>
    %1656 = vector.broadcast %1655 : f32 to vector<1x1xf32>
    %cst_321 = arith.constant 3.906250e-03 : f32
    %1657 = vector.broadcast %cst_321 : f32 to vector<1x1xf32>
    %1658 = arith.mulf %1656, %1657 : vector<1x1xf32>
    %c0_322 = arith.constant 0 : index
    %c0_323 = arith.constant 0 : index
    %1659 = vector.load %arg35[%c0_322, %c0_323] : memref<1x1xf32, #tpu.memory_space<vmem>>, vector<1x1xf32>
    tpu.vector_store %arg35[%c0_322, %c0_323], %1658 {strides = array<i32>} : memref<1x1xf32, #tpu.memory_space<vmem>>, vector<1x1xf32>,
    return
  }
}

</mosaic_0001>

<bundles_post_ra>
// kernel: forward.1
= control target key start
LH: loop header
LB: loop body
LE: loop exit
PB: predicated region body
PF: predicated region fallthrough
CT: control target
= control target key end

     0   :  { %s9092_s6 = smov 1   ;;  %s9093_s10 = smov 2   ;;  %s10197_s0 = inlined_call_operand.smem [shape: u32[36], index: -1, kind: input, shape index: {}] }
   0x1   :  { %s9167_s5 = sld [smem:[%s10197_s0]]   ;;  %s9094_s14 = smov 3  }
   0x2   :  { %s9172_s9 = sld [smem:[%s10197_s0 + %s9092_s6]]   ;;  %s9095_s18 = smov 4  }
   0x3   :  { %s9177_s13 = sld [smem:[%s10197_s0 + %s9093_s10]]   ;;  %s9096_s22 = smov 5  }
   0x4   :  { %s9182_s17 = sld [smem:[%s10197_s0 + %s9094_s14]]   ;;  %s9097_s26 = smov 6  }
   0x5   :  { %s9187_s21 = sld [smem:[%s10197_s0 + %s9095_s18]]   ;;  %s9098_s30 = smov 7  }
   0x6   :  { %s9192_s25 = sld [smem:[%s10197_s0 + %s9096_s22]]   ;;  %s9099_s4 = smov 8  }
   0x7   :  { %10212 = sst [smem:[#allocation47_spill]] %s9167_s5  ;;  %s9100_s10 = smov 9  }
   0x8   :  { %10213 = sst [smem:[#allocation48_spill]] %s9172_s9  ;;  %s9101_s15 = smov 10  }
   0x9   :  { %10214 = sst [smem:[#allocation49_spill]] %s9177_s13  ;;  %s9102_s20 = smov 11  }
   0xa   :  { %s9197_s29 = sld [smem:[%s10197_s0 + %s9097_s26]]   ;;  %s9103_s26 = smov 12  }
   0xb   :  { %s9202_s3 = sld [smem:[%s10197_s0 + %s9098_s30]]   ;;  %s9104_s1 = smov 13  }
   0xc   :  { %s9207_s8 = sld [smem:[%s10197_s0 + %s9099_s4]]   ;;  %s9105_s7 = smov 14  }
   0xd   :  { %s9212_s14 = sld [smem:[%s10197_s0 + %s9100_s10]]   ;;  %s9107_s22 = smov 16  }
   0xe   :  { %s9217_s19 = sld [smem:[%s10197_s0 + %s9101_s15]]   ;;  %s9106_s15 = smov 15  }
   0xf   :  { %s9222_s24 = sld [smem:[%s10197_s0 + %s9102_s20]]   ;;  %s9108_s28 = smov 17  }
  0x10   :  { %s9227_s30 = sld [smem:[%s10197_s0 + %s9103_s26]]  }
  0x11   :  { %s9232_s6 = sld [smem:[%s10197_s0 + %s9104_s1]]  }
  0x12   :  { %10215 = sst [smem:[#allocation50_spill]] %s9207_s8 }
  0x13   :  { %10216 = sst [smem:[#allocation51_spill]] %s9212_s14 }
  0x14   :  { %10217 = sst [smem:[#allocation52_spill]] %s9217_s19 }
  0x15   :  { %10218 = sst [smem:[#allocation53_spill]] %s9222_s24 }
  0x16   :  { %10219 = sst [smem:[#allocation54_spill]] %s9227_s30 }
  0x17   :  { %10220 = sst [smem:[#allocation55_spill]] %s9232_s6 }
  0x18   :  { %s9237_s12 = sld [smem:[%s10197_s0 + %s9105_s7]]   ;;  %s9109_s7 = smov 18  }
  0x19   :  { %s9242_s20 = sld [smem:[%s10197_s0 + %s9106_s15]]   ;;  %s9110_s15 = smov 19  }
  0x1a   :  { %s9247_s27 = sld [smem:[%s10197_s0 + %s9107_s22]]   ;;  %s9111_s22 = smov 20  }
  0x1b   :  { %s9252_s4 = sld [smem:[%s10197_s0 + %s9108_s28]]   ;;  %s9112_s28 = smov 21  }
  0x1c   :  { %s9257_s9 = sld [smem:[%s10197_s0 + %s9109_s7]]   ;;  %s9113_s7 = smov 22  }
  0x1d   :  { %s9277_s6 = sld [smem:[%s10197_s0 + %s9113_s7]]   ;;  %s9117_s7 = smov 26  }
  0x1e   :  { %10221 = sst [smem:[#allocation56_spill]] %s9237_s12 }
  0x1f   :  { %10222 = sst [smem:[#allocation57_spill]] %s9242_s20 }
  0x20   :  { %10223 = sst [smem:[#allocation58_spill]] %s9247_s27 }
  0x21   :  { %s9262_s20 = sld [smem:[%s10197_s0 + %s9110_s15]]   ;;  %s9114_s15 = smov 23  }
  0x22   :  { %s9267_s27 = sld [smem:[%s10197_s0 + %s9111_s22]]   ;;  %s9115_s22 = smov 24  }
  0x23   :  { %s9272_s12 = sld [smem:[%s10197_s0 + %s9112_s28]]   ;;  %s9116_s28 = smov 25  }
  0x24   :  { %s9282_s30 = sld [smem:[%s10197_s0 + %s9114_s15]]   ;;  %s9118_s15 = smov 27  }
  0x25   :  { %s9287_s24 = sld [smem:[%s10197_s0 + %s9115_s22]]   ;;  %s9119_s22 = smov 28  }
  0x26   :  { %s9292_s19 = sld [smem:[%s10197_s0 + %s9116_s28]]   ;;  %s9120_s28 = smov 29  }
  0x27   :  { %s9297_s14 = sld [smem:[%s10197_s0 + %s9117_s7]]   ;;  %s9121_s7 = smov 30  }
  0x28   :  { %s9302_s8 = sld [smem:[%s10197_s0 + %s9118_s15]]   ;;  %s9122_s15 = smov 31  }
  0x29   :  { %s9307_s5 = sld [smem:[%s10197_s0 + %s9119_s22]]   ;;  %s9123_s22 = smov 32  }
  0x2a   :  { %s9312_s13 = sld [smem:[%s10197_s0 + %s9120_s28]]   ;;  %s9124_s28 = smov 33  }
  0x2b   :  { %10224 = sst [smem:[#allocation59_spill]] %s9287_s24 }
  0x2c   :  { %s9322_s24 = sld [smem:[%s10197_s0 + %s9122_s15]]   ;;  %s9126_s15 = smov 35  }
  0x2d   :  { %10225 = sst [smem:[#allocation60_spill]] %s9297_s14 }
  0x2e   :  { %s9317_s14 = sld [smem:[%s10197_s0 + %s9121_s7]]   ;;  %s9125_s7 = smov 34  }
  0x2f   :  { %10226 = sst [smem:[#allocation61_spill]] %s9307_s5 }
  0x30   :  { %10227 = sst [smem:[#allocation62_spill]] %s9312_s13 }
  0x31   :  { %s9327_s5 = sld [smem:[%s10197_s0 + %s9123_s22]]  }
  0x32   :  { %10229 = sst [smem:[#allocation64_spill]] %s9322_s24 }
  0x33   :  { %s9332_s13 = sld [smem:[%s10197_s0 + %s9124_s28]]  }
  0x34   :  { %10228 = sst [smem:[#allocation63_spill]] %s9317_s14 }
  0x35   :  { %s9337_s14 = sld [smem:[%s10197_s0 + %s9125_s7]]  }
  0x36   :  { %s9342_s24 = sld [smem:[%s10197_s0 + %s9126_s15]]  }
  0x37   :  { %77 = vsyncpa [#allocation3], 0 }
  0x38   :  { %78 = vsyncpa [#allocation6], 0 }
  0x39   :  { %79 = vsyncpa [#allocation9], 0 }
  0x3a   :  { %80 = vsyncpa [#allocation12], 0 }
  0x3b   :  { %81 = vsyncpa [#allocation15], 0 }
  0x3c   :  { %82 = vsyncpa [#allocation18], 0 }
  0x3d   :  { %83 = vsyncpa [#allocation21], 0 }
  0x3e   :  { %84 = vsyncpa [#allocation24], 0 }
  0x3f   :  { %85 = vsyncpa [#allocation27], 0 }
  0x40   :  { %86 = vsyncpa [#allocation4], 0 }
  0x41   :  { %87 = vsyncpa [#allocation31], 0 }
  0x42   :  { %88 = vsyncpa [#allocation34], 0  ;;  %s9127_s22 = smov [#allocation5]   ;;  %s9128_s26 = smov [#allocation8]  }
  0x43   :  { %s111_s23 = sshll.u32 %s9127_s22, 4  ;;  %s131_s0 = sshll.u32 %s9128_s26, 4  ;;  %s112_s23 = int_to_ptr.vmem [resolvable:$true] %s111_s23  ;;  %s132_s0 = int_to_ptr.vmem [resolvable:$true] %s131_s0 }
  0x44   :  { %s8606_s28 = scalar_lea.hbm %s9187_s21, 16 }
  0x45   :  { %p8607_p0 = scmp.ne.s32.totalorder %s9187_s21, %s8606_s28  ;;  %p8610_p1 = scmp.lt.u32.totalorder %s8606_s28, %s9187_s21 }
  0x47   :  { %p8612_p2 = pnand %p8610_p1, %p8607_p0 }
  0x49   :  { %8615 = shalt.err (!%p8612_p2)
}
  0x4a   :  { %s8616_s1 = scalar_lea.vmem %s112_s23, 16  ;;  %s8620_s2 = scalar_lea.vmem %s112_s23, 32 }
  0x4b   :  { %p8617_p3 = scmp.ne.s32.totalorder %s112_s23, %s8616_s1  ;;  %p8621_p4 = scmp.lt.s32.totalorder %s112_s23, %s112_s23 }
  0x4c   :  { %p8622_p5 = scmp.lt.s32.totalorder %s8620_s2, %s8616_s1 }
  0x4e   :  { %p8623_p6 = por %p8622_p5, %p8621_p4 }
  0x50   :  { %p8624_p7 = pnand %p8623_p6, %p8617_p3 }
  0x52   :  { %8627 = shalt.err (!%p8624_p7)
}
  0x53   :  { %114 = dma.hbm_to_vmem [thread:$0]  %s9187_s21, 16, %s112_s23, [#allocation6]  }
  0x54   :  { %s8628_s7 = scalar_lea.hbm %s9197_s29, 128 }
  0x55   :  { %p8629_p8 = scmp.ne.s32.totalorder %s9197_s29, %s8628_s7  ;;  %p8632_p9 = scmp.lt.u32.totalorder %s8628_s7, %s9197_s29 }
  0x57   :  { %p8634_p10 = pnand %p8632_p9, %p8629_p8 }
  0x59   :  { %8637 = shalt.err (!%p8634_p10)
}
  0x5a   :  { %s8638_s10 = scalar_lea.vmem %s132_s0, 128  ;;  %p8643_p12 = scmp.lt.s32.totalorder %s132_s0, %s132_s0 }
  0x5b   :  { %p8639_p11 = scmp.ne.s32.totalorder %s132_s0, %s8638_s10  ;;  %p8644_p13 = scmp.lt.s32.totalorder %s8638_s10, %s8638_s10 }
  0x5d   :  { %p8645_p0 = por %p8644_p13, %p8643_p12 }
  0x5f   :  { %p8646_p1 = pnand %p8645_p0, %p8639_p11 }
  0x61   :  { %8649 = shalt.err (!%p8646_p1)
}
  0x62   :  { %134 = dma.hbm_to_vmem [thread:$0]  %s9197_s29, 128, %s132_s0, [#allocation9]  }
  0x63   :  { %s9129_s11 = smov [#allocation11]   ;;  %s9130_s21 = smov [#allocation14]  }
  0x64   :  { %s169_s15 = sshll.u32 %s9129_s11, 4  ;;  %s189_s16 = sshll.u32 %s9130_s21, 4  ;;  %s170_s15 = int_to_ptr.vmem [resolvable:$true] %s169_s15  ;;  %s190_s16 = int_to_ptr.vmem [resolvable:$true] %s189_s16 }
  0x65   :  { %s8650_s18 = scalar_lea.hbm %s9252_s4, 128 }
  0x66   :  { %p8651_p2 = scmp.ne.s32.totalorder %s9252_s4, %s8650_s18  ;;  %p8654_p3 = scmp.lt.u32.totalorder %s8650_s18, %s9252_s4 }
  0x68   :  { %p8656_p4 = pnand %p8654_p3, %p8651_p2 }
  0x6a   :  { %8659 = shalt.err (!%p8656_p4)
}
  0x6b   :  { %s8660_s22 = scalar_lea.vmem %s170_s15, 128  ;;  %p8665_p6 = scmp.lt.s32.totalorder %s170_s15, %s170_s15 }
  0x6c   :  { %p8661_p5 = scmp.ne.s32.totalorder %s170_s15, %s8660_s22  ;;  %p8666_p7 = scmp.lt.s32.totalorder %s8660_s22, %s8660_s22 }
  0x6e   :  { %p8667_p8 = por %p8666_p7, %p8665_p6 }
  0x70   :  { %p8668_p9 = pnand %p8667_p8, %p8661_p5 }
  0x72   :  { %8671 = shalt.err (!%p8668_p9)
}
  0x73   :  { %172 = dma.hbm_to_vmem [thread:$0]  %s9252_s4, 128, %s170_s15, [#allocation12]  }
  0x74   :  { %s8672_s29 = scalar_lea.hbm %s9262_s20, 128 }
  0x75   :  { %p8673_p10 = scmp.ne.s32.totalorder %s9262_s20, %s8672_s29  ;;  %p8676_p11 = scmp.lt.u32.totalorder %s8672_s29, %s9262_s20 }
  0x77   :  { %p8678_p12 = pnand %p8676_p11, %p8673_p10 }
  0x79   :  { %8681 = shalt.err (!%p8678_p12)
}
  0x7a   :  { %s8682_s23 = scalar_lea.vmem %s190_s16, 128  ;;  %p8687_p0 = scmp.lt.s32.totalorder %s190_s16, %s190_s16 }
  0x7b   :  { %p8683_p13 = scmp.ne.s32.totalorder %s190_s16, %s8682_s23  ;;  %p8688_p1 = scmp.lt.s32.totalorder %s8682_s23, %s8682_s23 }
  0x7d   :  { %p8689_p2 = por %p8688_p1, %p8687_p0 }
  0x7f   :  { %p8690_p3 = pnand %p8689_p2, %p8683_p13 }
  0x81   :  { %8693 = shalt.err (!%p8690_p3)
}
  0x82   :  { %192 = dma.hbm_to_vmem [thread:$0]  %s9262_s20, 128, %s190_s16, [#allocation15]  }
  0x83   :  { %s9131_s26 = smov [#allocation17]   ;;  %s9132_s4 = smov [#allocation20]  }
  0x84   :  { %s209_s0 = sshll.u32 %s9131_s26, 4  ;;  %s228_s28 = sshll.u32 %s9132_s4, 4  ;;  %s210_s0 = int_to_ptr.vmem [resolvable:$true] %s209_s0  ;;  %s9360_s28 = int_to_ptr.vmem [resolvable:$true] %s228_s28 }
  0x85   :  { %s8694_s1 = scalar_lea.hbm %s9272_s12, 16 }
  0x86   :  { %p8695_p4 = scmp.ne.s32.totalorder %s9272_s12, %s8694_s1  ;;  %p8698_p5 = scmp.lt.u32.totalorder %s8694_s1, %s9272_s12 }
  0x88   :  { %p8700_p6 = pnand %p8698_p5, %p8695_p4 }
  0x8a   :  { %8703 = shalt.err (!%p8700_p6)
}
  0x8b   :  { %s8704_s2 = scalar_lea.vmem %s210_s0, 16  ;;  %s8708_s7 = scalar_lea.vmem %s210_s0, 32 }
  0x8c   :  { %p8705_p7 = scmp.ne.s32.totalorder %s210_s0, %s8704_s2  ;;  %p8709_p8 = scmp.lt.s32.totalorder %s210_s0, %s210_s0 }
  0x8d   :  { %p8710_p9 = scmp.lt.s32.totalorder %s8708_s7, %s8704_s2 }
  0x8f   :  { %p8711_p10 = por %p8710_p9, %p8709_p8 }
  0x91   :  { %p8712_p11 = pnand %p8711_p10, %p8705_p7 }
  0x93   :  { %8715 = shalt.err (!%p8712_p11)
}
  0x94   :  { %212 = dma.hbm_to_vmem [thread:$0]  %s9272_s12, 16, %s210_s0, [#allocation18]  }
  0x95   :  { %s8716_s20 = scalar_lea.hbm %s9282_s30, 256 }
  0x96   :  { %p8717_p12 = scmp.ne.s32.totalorder %s9282_s30, %s8716_s20  ;;  %p8720_p13 = scmp.lt.u32.totalorder %s8716_s20, %s9282_s30 }
  0x98   :  { %p8722_p0 = pnand %p8720_p13, %p8717_p12 }
  0x9a   :  { %8725 = shalt.err (!%p8722_p0)
}
  0x9b   :  { %s8726_s10 = scalar_lea.vmem %s9360_s28, 256  ;;  %p8731_p2 = scmp.lt.s32.totalorder %s9360_s28, %s9360_s28 }
  0x9c   :  { %p8727_p1 = scmp.ne.s32.totalorder %s9360_s28, %s8726_s10  ;;  %p8732_p3 = scmp.lt.s32.totalorder %s8726_s10, %s8726_s10 }
  0x9e   :  { %p8733_p4 = por %p8732_p3, %p8731_p2 }
  0xa0   :  { %p8734_p5 = pnand %p8733_p4, %p8727_p1 }
  0xa2   :  { %8737 = shalt.err (!%p8734_p5)
}
  0xa3   :  { %s9133_s11 = smov 128   ;;  %s9134_s12 = smov 8  }
  0xa4   :  { %234 = dma.hbm_to_vmem [thread:$0]  %s9282_s30, 256, %s9360_s28, [#allocation21], %s9133_s11, %s9133_s11, %s9134_s12  }
  0xa5   :  { %s9135_s15 = smov [#allocation23]   ;;  %s9136_s16 = smov [#allocation26]  }
  0xa6   :  { %s250_s21 = sshll.u32 %s9135_s15, 4  ;;  %s275_s18 = sshll.u32 %s9136_s16, 4  ;;  %s251_s21 = int_to_ptr.vmem [resolvable:$true] %s250_s21  ;;  %s276_s18 = int_to_ptr.vmem [resolvable:$true] %s275_s18 }
  0xa7   :  { %s8738_s22 = scalar_lea.hbm %s9292_s19, 256 }
  0xa8   :  { %p8739_p6 = scmp.ne.s32.totalorder %s9292_s19, %s8738_s22  ;;  %p8742_p7 = scmp.lt.u32.totalorder %s8738_s22, %s9292_s19 }
  0xaa   :  { %p8744_p8 = pnand %p8742_p7, %p8739_p6 }
  0xac   :  { %8747 = shalt.err (!%p8744_p8)
}
  0xad   :  { %s8748_s29 = scalar_lea.vmem %s251_s21, 256  ;;  %p8753_p10 = scmp.lt.s32.totalorder %s251_s21, %s251_s21 }
  0xae   :  { %p8749_p9 = scmp.ne.s32.totalorder %s251_s21, %s8748_s29  ;;  %p8754_p11 = scmp.lt.s32.totalorder %s8748_s29, %s8748_s29 }
  0xb0   :  { %p8755_p12 = por %p8754_p11, %p8753_p10 }
  0xb2   :  { %p8756_p13 = pnand %p8755_p12, %p8749_p9 }
  0xb4   :  { %8759 = shalt.err (!%p8756_p13)
}
  0xb5   :  { %256 = dma.hbm_to_vmem [thread:$0]  %s9292_s19, 256, %s251_s21, [#allocation24], %s9133_s11, %s9133_s11, %s9134_s12  }
  0xb6   :  { %s8760_s30 = scalar_lea.hbm %s9302_s8, 16 }
  0xb7   :  { %p8761_p0 = scmp.ne.s32.totalorder %s9302_s8, %s8760_s30  ;;  %p8764_p1 = scmp.lt.u32.totalorder %s8760_s30, %s9302_s8 }
  0xb9   :  { %p8766_p2 = pnand %p8764_p1, %p8761_p0 }
  0xbb   :  { %8769 = shalt.err (!%p8766_p2)
}
  0xbc   :  { %s8770_s23 = scalar_lea.vmem %s276_s18, 16  ;;  %s8774_s26 = scalar_lea.vmem %s276_s18, 32 }
  0xbd   :  { %p8771_p3 = scmp.ne.s32.totalorder %s276_s18, %s8770_s23  ;;  %p8775_p4 = scmp.lt.s32.totalorder %s276_s18, %s276_s18 }
  0xbe   :  { %p8776_p5 = scmp.lt.s32.totalorder %s8774_s26, %s8770_s23 }
  0xc0   :  { %p8777_p6 = por %p8776_p5, %p8775_p4 }
  0xc2   :  { %p8778_p7 = pnand %p8777_p6, %p8771_p3 }
  0xc4   :  { %8781 = shalt.err (!%p8778_p7)
}
  0xc5   :  { %278 = dma.hbm_to_vmem [thread:$0]  %s9302_s8, 16, %s276_s18, [#allocation27]  }
  0xc6   :  { %s9137_s0 = smov [#allocation2]   ;;  %s9138_s4 = smov [#allocation7]  }
  0xc7   :  { %s101_s19 = sshll.u32 %s9137_s0, 4  ;;  %s121_s28 = sshll.u32 %s9138_s4, 4  ;;  %s102_s19 = int_to_ptr.vmem [resolvable:$true] %s101_s19  ;;  %s122_s28 = int_to_ptr.vmem [resolvable:$true] %s121_s28 }
  0xc8   :  { %s8782_s1 = scalar_lea.hbm %s9182_s17, 128 }
  0xc9   :  { %p8783_p8 = scmp.ne.s32.totalorder %s9182_s17, %s8782_s1  ;;  %p8786_p9 = scmp.lt.u32.totalorder %s8782_s1, %s9182_s17 }
  0xcb   :  { %p8788_p10 = pnand %p8786_p9, %p8783_p8 }
  0xcd   :  { %8791 = shalt.err (!%p8788_p10)
}
  0xce   :  { %s8792_s2 = scalar_lea.vmem %s102_s19, 128  ;;  %p8797_p12 = scmp.lt.s32.totalorder %s102_s19, %s102_s19 }
  0xcf   :  { %p8793_p11 = scmp.ne.s32.totalorder %s102_s19, %s8792_s2  ;;  %p8798_p13 = scmp.lt.s32.totalorder %s8792_s2, %s8792_s2 }
  0xd1   :  { %p8799_p0 = por %p8798_p13, %p8797_p12 }
  0xd3   :  { %p8800_p1 = pnand %p8799_p0, %p8793_p11 }
  0xd5   :  { %8803 = shalt.err (!%p8800_p1)
}
  0xd6   :  { %104 = dma.hbm_to_vmem [thread:$0]  %s9182_s17, 128, %s102_s19, [#allocation3]  }
  0xd7   :  { %s8804_s8 = scalar_lea.hbm %s9192_s25, 128 }
  0xd8   :  { %p8805_p2 = scmp.ne.s32.totalorder %s9192_s25, %s8804_s8  ;;  %p8808_p3 = scmp.lt.u32.totalorder %s8804_s8, %s9192_s25 }
  0xda   :  { %p8810_p4 = pnand %p8808_p3, %p8805_p2 }
  0xdc   :  { %8813 = shalt.err (!%p8810_p4)
}
  0xdd   :  { %s8814_s7 = scalar_lea.vmem %s122_s28, 128  ;;  %p8819_p6 = scmp.lt.s32.totalorder %s122_s28, %s122_s28 }
  0xde   :  { %p8815_p5 = scmp.ne.s32.totalorder %s122_s28, %s8814_s7  ;;  %p8820_p7 = scmp.lt.s32.totalorder %s8814_s7, %s8814_s7 }
  0xe0   :  { %p8821_p8 = por %p8820_p7, %p8819_p6 }
  0xe2   :  { %p8822_p9 = pnand %p8821_p8, %p8815_p5 }
  0xe4   :  { %8825 = shalt.err (!%p8822_p9)
}
  0xe5   :  { %124 = dma.hbm_to_vmem [thread:$0]  %s9192_s25, 128, %s122_s28, [#allocation6]  }
  0xe6   :  { %s9139_s20 = smov [#allocation10]   ;;  %s9140_s17 = smov [#allocation13]  }
  0xe7   :  { %s141_s10 = sshll.u32 %s9139_s20, 4  ;;  %s179_s15 = sshll.u32 %s9140_s17, 4  ;;  %s142_s10 = int_to_ptr.vmem [resolvable:$true] %s141_s10  ;;  %s180_s15 = int_to_ptr.vmem [resolvable:$true] %s179_s15 }
  0xe8   :  { %s8826_s21 = scalar_lea.hbm %s9202_s3, 16 }
  0xe9   :  { %p8827_p10 = scmp.ne.s32.totalorder %s9202_s3, %s8826_s21  ;;  %p8830_p11 = scmp.lt.u32.totalorder %s8826_s21, %s9202_s3 }
  0xeb   :  { %p8832_p12 = pnand %p8830_p11, %p8827_p10 }
  0xed   :  { %8835 = shalt.err (!%p8832_p12)
}
  0xee   :  { %s8836_s16 = scalar_lea.vmem %s142_s10, 16  ;;  %s8840_s18 = scalar_lea.vmem %s142_s10, 32 }
  0xef   :  { %p8837_p13 = scmp.ne.s32.totalorder %s142_s10, %s8836_s16  ;;  %p8841_p0 = scmp.lt.s32.totalorder %s142_s10, %s142_s10 }
  0xf0   :  { %p8842_p1 = scmp.lt.s32.totalorder %s8840_s18, %s8836_s16 }
  0xf2   :  { %p8843_p2 = por %p8842_p1, %p8841_p0 }
  0xf4   :  { %p8844_p3 = pnand %p8843_p2, %p8837_p13 }
  0xf6   :  { %8847 = shalt.err (!%p8844_p3)
}
  0xf7   :  { %144 = dma.hbm_to_vmem [thread:$0]  %s9202_s3, 16, %s142_s10, [#allocation9]  }
  0xf8   :  { %s8848_s25 = scalar_lea.hbm %s9257_s9, 16 }
  0xf9   :  { %p8849_p4 = scmp.ne.s32.totalorder %s9257_s9, %s8848_s25  ;;  %p8852_p5 = scmp.lt.u32.totalorder %s8848_s25, %s9257_s9 }
  0xfb   :  { %p8854_p6 = pnand %p8852_p5, %p8849_p4 }
  0xfd   :  { %8857 = shalt.err (!%p8854_p6)
}
  0xfe   :  { %s8858_s22 = scalar_lea.vmem %s180_s15, 16  ;;  %s8862_s29 = scalar_lea.vmem %s180_s15, 32 }
  0xff   :  { %p8859_p7 = scmp.ne.s32.totalorder %s180_s15, %s8858_s22  ;;  %p8863_p8 = scmp.lt.s32.totalorder %s180_s15, %s180_s15 }
 0x100   :  { %p8864_p9 = scmp.lt.s32.totalorder %s8862_s29, %s8858_s22 }
 0x102   :  { %p8865_p10 = por %p8864_p9, %p8863_p8 }
 0x104   :  { %p8866_p11 = pnand %p8865_p10, %p8859_p7 }
 0x106   :  { %8869 = shalt.err (!%p8866_p11)
}
 0x107   :  { %182 = dma.hbm_to_vmem [thread:$0]  %s9257_s9, 16, %s180_s15, [#allocation12]  }
 0x108   :  { %s9141_s30 = smov [#allocation16]   ;;  %s9142_s23 = smov [#allocation19]  }
 0x109   :  { %s199_s3 = sshll.u32 %s9141_s30, 4  ;;  %s219_s26 = sshll.u32 %s9142_s23, 4  ;;  %s200_s3 = int_to_ptr.vmem [resolvable:$true] %s199_s3  ;;  %s220_s26 = int_to_ptr.vmem [resolvable:$true] %s219_s26 }
 0x10a   :  { %s8870_s0 = scalar_lea.hbm %s9267_s27, 128 }
 0x10b   :  { %p8871_p12 = scmp.ne.s32.totalorder %s9267_s27, %s8870_s0  ;;  %p8874_p13 = scmp.lt.u32.totalorder %s8870_s0, %s9267_s27 }
 0x10d   :  { %p8876_p0 = pnand %p8874_p13, %p8871_p12 }
 0x10f   :  { %8879 = shalt.err (!%p8876_p0)
}
 0x110   :  { %s8880_s19 = scalar_lea.vmem %s200_s3, 128  ;;  %p8885_p2 = scmp.lt.s32.totalorder %s200_s3, %s200_s3 }
 0x111   :  { %p8881_p1 = scmp.ne.s32.totalorder %s200_s3, %s8880_s19  ;;  %p8886_p3 = scmp.lt.s32.totalorder %s8880_s19, %s8880_s19 }
 0x113   :  { %p8887_p4 = por %p8886_p3, %p8885_p2 }
 0x115   :  { %p8888_p5 = pnand %p8887_p4, %p8881_p1 }
 0x117   :  { %8891 = shalt.err (!%p8888_p5)
}
 0x118   :  { %202 = dma.hbm_to_vmem [thread:$0]  %s9267_s27, 128, %s200_s3, [#allocation15]  }
 0x119   :  { %s8892_s9 = scalar_lea.hbm %s9277_s6, 128 }
 0x11a   :  { %p8893_p6 = scmp.ne.s32.totalorder %s9277_s6, %s8892_s9  ;;  %p8896_p7 = scmp.lt.u32.totalorder %s8892_s9, %s9277_s6 }
 0x11c   :  { %p8898_p8 = pnand %p8896_p7, %p8893_p6 }
 0x11e   :  { %8901 = shalt.err (!%p8898_p8)
}
 0x11f   :  { %s8902_s4 = scalar_lea.vmem %s220_s26, 128  ;;  %p8907_p10 = scmp.lt.s32.totalorder %s220_s26, %s220_s26 }
 0x120   :  { %p8903_p9 = scmp.ne.s32.totalorder %s220_s26, %s8902_s4  ;;  %p8908_p11 = scmp.lt.s32.totalorder %s8902_s4, %s8902_s4 }
 0x122   :  { %p8909_p12 = por %p8908_p11, %p8907_p10 }
 0x124   :  { %p8910_p13 = pnand %p8909_p12, %p8903_p9 }
 0x126   :  { %8913 = shalt.err (!%p8910_p13)
}
 0x127   :  { %s10230_s28 = sld [smem:[#allocation59_spill]]  ;;  %s9143_s1 = smov [#allocation22]  }
 0x128   :  { %222 = dma.hbm_to_vmem [thread:$0]  %s9277_s6, 128, %s220_s26, [#allocation18]  }
 0x129   :  { %s241_s2 = sshll.u32 %s9143_s1, 4  ;;  %s9144_s27 = smov [#allocation25]   ;;  %s242_s2 = int_to_ptr.vmem [resolvable:$true] %s241_s2 }
 0x12a   :  { %s262_s8 = sshll.u32 %s9144_s27, 4  ;;  %s9413_s8 = int_to_ptr.vmem [resolvable:$true] %s262_s8 }
 0x12d   :  { %s8914_s7 = scalar_lea.hbm %s10230_s28, 16 }
 0x12e   :  { %p8915_p0 = scmp.ne.s32.totalorder %s10230_s28, %s8914_s7  ;;  %p8918_p1 = scmp.lt.u32.totalorder %s8914_s7, %s10230_s28 }
 0x130   :  { %p8920_p2 = pnand %p8918_p1, %p8915_p0 }
 0x132   :  { %8923 = shalt.err (!%p8920_p2)
}
 0x133   :  { %s8924_s20 = scalar_lea.vmem %s242_s2, 16  ;;  %s8928_s10 = scalar_lea.vmem %s242_s2, 32 }
 0x134   :  { %p8925_p3 = scmp.ne.s32.totalorder %s242_s2, %s8924_s20  ;;  %p8929_p4 = scmp.lt.s32.totalorder %s242_s2, %s242_s2 }
 0x135   :  { %p8930_p5 = scmp.lt.s32.totalorder %s8928_s10, %s8924_s20 }
 0x137   :  { %p8931_p6 = por %p8930_p5, %p8929_p4 }
 0x139   :  { %p8932_p7 = pnand %p8931_p6, %p8925_p3 }
 0x13b   :  { %8935 = shalt.err (!%p8932_p7)
}
 0x13c   :  { %s10231_s6 = sld [smem:[#allocation60_spill]] }
 0x13d   :  { %244 = dma.hbm_to_vmem [thread:$0]  %s10230_s28, 16, %s242_s2, [#allocation21]  }
 0x142   :  { %s8936_s17 = scalar_lea.hbm %s10231_s6, 256 }
 0x143   :  { %p8937_p8 = scmp.ne.s32.totalorder %s10231_s6, %s8936_s17  ;;  %p8940_p9 = scmp.lt.u32.totalorder %s8936_s17, %s10231_s6 }
 0x145   :  { %p8942_p10 = pnand %p8940_p9, %p8937_p8 }
 0x147   :  { %8945 = shalt.err (!%p8942_p10)
}
 0x148   :  { %s8946_s15 = scalar_lea.vmem %s9413_s8, 256  ;;  %p8951_p12 = scmp.lt.s32.totalorder %s9413_s8, %s9413_s8 }
 0x149   :  { %p8947_p11 = scmp.ne.s32.totalorder %s9413_s8, %s8946_s15  ;;  %p8952_p13 = scmp.lt.s32.totalorder %s8946_s15, %s8946_s15 }
 0x14b   :  { %p8953_p0 = por %p8952_p13, %p8951_p12 }
 0x14d   :  { %p8954_p1 = pnand %p8953_p0, %p8947_p11 }
 0x14f   :  { %8957 = shalt.err (!%p8954_p1)
}
 0x150   :  { %s10232_s21 = sld [smem:[#allocation62_spill]]  ;;  %s9145_s16 = smov [#allocation28]  }
 0x151   :  { %268 = dma.hbm_to_vmem [thread:$0]  %s10231_s6, 256, %s9413_s8, [#allocation24], %s9133_s11, %s9133_s11, %s9134_s12  }
 0x152   :  { %s287_s18 = sshll.u32 %s9145_s16, 4  ;;  %s288_s18 = int_to_ptr.vmem [resolvable:$true] %s287_s18 }
 0x156   :  { %s8958_s25 = scalar_lea.hbm %s10232_s21, 16 }
 0x157   :  { %p8959_p2 = scmp.ne.s32.totalorder %s10232_s21, %s8958_s25  ;;  %p8962_p3 = scmp.lt.u32.totalorder %s8958_s25, %s10232_s21 }
 0x159   :  { %p8964_p4 = pnand %p8962_p3, %p8959_p2 }
 0x15b   :  { %8967 = shalt.err (!%p8964_p4)
}
 0x15c   :  { %s8968_s22 = scalar_lea.vmem %s288_s18, 16  ;;  %s8972_s29 = scalar_lea.vmem %s288_s18, 32 }
 0x15d   :  { %p8969_p5 = scmp.ne.s32.totalorder %s288_s18, %s8968_s22  ;;  %p8973_p6 = scmp.lt.s32.totalorder %s288_s18, %s288_s18 }
 0x15e   :  { %p8974_p7 = scmp.lt.s32.totalorder %s8972_s29, %s8968_s22 }
 0x160   :  { %p8975_p8 = por %p8974_p7, %p8973_p6 }
 0x162   :  { %p8976_p9 = pnand %p8975_p8, %p8969_p5 }
 0x164   :  { %8979 = shalt.err (!%p8976_p9)
}
 0x165   :  { %290 = dma.hbm_to_vmem [thread:$0]  %s10232_s21, 16, %s288_s18, [#allocation27]  }
 0x166   :  { %9068 = dma.done.wait [#allocation3], 128  }
 0x167   :  { %9069 = vsyncadd [#allocation3], 4294967168 }
 0x168   :  { %9070 = dma.done.wait [#allocation6], 144  }
 0x169   :  { %9071 = vsyncadd [#allocation6], 4294967152 }
 0x16a   :  { %9072 = dma.done.wait [#allocation9], 144  }
 0x16b   :  { %9073 = vsyncadd [#allocation9], 4294967152 }
 0x16c   :  { %9074 = dma.done.wait [#allocation12], 144  }
 0x16d   :  { %9075 = vsyncadd [#allocation12], 4294967152 }
 0x16e   :  { %9076 = dma.done.wait [#allocation15], 256  }
 0x16f   :  { %9077 = vsyncadd [#allocation15], 4294967040 }
 0x170   :  { %9078 = dma.done.wait [#allocation18], 144  }
 0x171   :  { %9079 = vsyncadd [#allocation18], 4294967152 }
 0x172   :  { %9080 = dma.done.wait [#allocation21], 272  }
 0x173   :  { %9081 = vsyncadd [#allocation21], 4294967024 }
 0x174   :  { %9082 = dma.done.wait [#allocation24], 512  }
 0x175   :  { %9083 = vsyncadd [#allocation24], 4294966784 }
 0x176   :  { %9084 = dma.done.wait [#allocation27], 32  }
 0x177   :  { %9085 = vsyncadd [#allocation27], 4294967264  ;;  %s10233_s11 = sld [smem:[#allocation49_spill]]  ;;  %s10234_s30 = sld [smem:[#allocation47_spill]]  ;;  %v9146_v0 = vmov 0.0   ;;  %vm9147_vm0 = vmmov 0  }
 0x178   :  { %7586 = vmatprep.subr.mxu1 %v9146_v0  ;;  %7588 = vmatprep.mubr.msk.f32.mxu1 %vm9147_vm0, %v9146_v0  ;;  %vm390_vm1 = vcmask 130048   ;;  %v9442_v5 = vld [vmem:[#allocation2] sm:$0xff]  ;;  %v7273_v9 = vld [vmem:[#allocation5] ss:$0 sm:$0xff]  ;;  %s9148_s3 = smov 112   ;;  %s9149_s23 = smov 16  }
 0x179   :  { %7587 = vmatpush3.msra.mxu1 %v9442_v5  ;;  %s9150_s26 = smov 104   ;;  %vm472_vm2 = vcmask 64512   ;;  %vm1315_vm3 = vcmask 1041408   ;;  %vm1317_vm4 = vcmask 1043456   ;;  %vm1319_vm5 = vcmask 1045504   ;;  %s10235_s0 = sld [smem:[#allocation50_spill]] }
 0x17a   :  { %7589 = vmatmul.mubr.f32.vlgmr.msra.gmra.mrb[0].mxu1 %v9146_v0  ;;  %7591 = vmatprep.subr.mxu1 %v9146_v0  ;;  %s10236_s19 = sld [smem:[#allocation51_spill]]  ;;  %s10237_s9 = sld [smem:[#allocation52_spill]]  ;;  %vm3763_vm6 = vcmask 125952   ;;  %vm2258_vm7 = vcmask 64518   ;;  %vm3783_vm8 = vcmask 0  }
 0x17b   :  { %7592 = vmatpush3.msra.mxu1 %v9442_v5  ;;  %7593 = vmatprep.mubr.msk.f32.mxu1 %vm9147_vm0, %v9146_v0  ;;  %s9152_s4 = smov 96   ;;  %s9153_s28 = smov 32  }
 0x17c   :  { %7601 = vmatprep.subr.mxu1 %v9146_v0  ;;  %s9154_s1 = smov 80   ;;  %s10238_s2 = sld [smem:[#allocation53_spill]] }
 0x17d   :  { %v342_v1 = vld [vmem:[%s10233_s11] sm:$0xff]  ;;  %v343_v2 = vld [vmem:[%s10233_s11 + $0x8] sm:$0xff]  ;;  %s10239_s27 = sld [smem:[#allocation54_spill]]  ;;  %s10240_s8 = sld [smem:[#allocation55_spill]] }
 0x17e   :  { %v380_v3 = vld [vmem:[%s10234_s30] sm:$0xff]  ;;  %v7977_v4 = vpack.c.bf16 %v343_v2, %v342_v1  ;;  %v381_v6 = vld [vmem:[%s10234_s30 + $0x8] sm:$0xff]  ;;  %s10241_s7 = sld [smem:[#allocation56_spill]]  ;;  %s10242_s20 = sld [smem:[#allocation58_spill]] }
 0x17f   :  { %7583 = vmatprep.mubr.msk.f32.mxu0 %vm390_vm1, %v380_v3  ;;  %s10243_s10 = sld [smem:[#allocation48_spill]]  ;;  %s10244_s6 = sld [smem:[#allocation57_spill]] }
 0x180   :  { %7978 = vmatprep.subr.bf16.mxu0 %v7977_v4  ;;  %s10245_s17 = sld [smem:[#allocation64_spill]]  ;;  %s9155_s21 = smov [#allocation30]  }
 0x181   :  { %7980 = vmatpush3.bf16.msra.mxu0 %v7977_v4  ;;  %s7184_s16 = sshll.u32 %s9155_s21, 4  ;;  %s9156_s18 = smov [#allocation29]   ;;  %s7185_s16 = int_to_ptr.vmem [resolvable:$true] %s7184_s16 }
 0x182   :  { %7596 = vmatprep.subr.mxu0 %v9146_v0  ;;  %s7172_s25 = sshll.u32 %s9156_s18, 4  ;;  %s8980_s22 = scalar_lea.vmem %s7185_s16, 16  ;;  %s7173_s25 = int_to_ptr.vmem [resolvable:$true] %s7172_s25 }
 0x183   :  { %p8981_p10 = scmp.ne.s32.totalorder %s7185_s16, %s8980_s22  ;;  %p8985_p11 = scmp.lt.s32.totalorder %s7185_s16, %s7185_s16 }
 0x184   :  { %7584 = vmatmul.mubr.msk.f32.vlgmr.msra.gmra.mrb[0].mxu0 %vm390_vm1, %v381_v6 }
 0x185   :  { %7597 = vmatpush3.msra.mxu0 %v9442_v5  ;;  %7598 = vmatprep.mubr.msk.f32.mxu0 %vm9147_vm0, %v9146_v0 }
 0x186   :  { %7606 = vmatprep.subr.mxu0 %v9146_v0 }
 0x24d   :  { %v542_v7 = vpop.f32.mrb[0].mxu1 }
 0x24e   :  { %v7590_v8 = vpop.f32.mrb[1].mxu1 }
 0x257   :  { %v7585_v10 = vpop.f32.mrb[0].mxu0 }
 0x258   :  { %v9458_v11 = vadd.f32 %v7585_v10, %v7273_v9  ;;  %v463_v12 = vpop.f32.mrb[1].mxu0 }
 0x259   :  { %v9460_v13 = vadd.f32 %v7273_v9, %v463_v12 }
 0x25b   :  { %v546_v14 = vadd.f32 %v542_v7, %v9460_v13 }
 0x25d   :  { %8156 = vtanh.f32 %v546_v14  ;;  %v7276_v16 = vmul.f32 -1.442695, %v546_v14 }
 0x25f   :  { %8158 = vpow2.f32 %v7276_v16 }
 0x267   :  { %v8157_v15 = vpop.eup %8156 }
 0x268   :  { %556 = vrot.lane.b32.xlu0 %v8157_v15, %s9148_s3 }
 0x269   :  { %v8159_v17 = vpop.eup %8158 }
 0x26a   :  { %v550_v18 = vadd.f32 1.0, %v8159_v17 }
 0x26c   :  { %8160 = vrcp.f32 %v550_v18 }
 0x276   :  { %v8161_v19 = vpop.eup %8160 }
 0x277   :  { %v554_v22 = vmul.f32 0.0, %v8161_v19 }
 0x2da   :  { %v557_v20 = vpop.permute.xlu0 %556 }
 0x2db   :  { %v559_v21 = vmul.f32 %v8161_v19, %v557_v20 }
 0x2dd   :  { %561 = vrot.lane.b32.xlu0 %v559_v21, %s9134_s12 }
 0x34f   :  { %v562_v23 = vpop.permute.xlu0 %561 }
 0x350   :  { %v564_v24 = vadd.f32 %v562_v23, %v554_v22 }
 0x352   :  { %8162 = vtanh.f32 %v564_v24  ;;  %v658_v40 = vrot.slane %v564_v24, 6 }
 0x35c   :  { %v8163_v25 = vpop.eup %8162 }
 0x35d   :  { %567 = vrot.lane.b32.xlu1 %v8163_v25, %s9149_s23 }
 0x3cf   :  { %v568_v26 = vpop.permute.xlu1 %567 }
 0x3d0   :  { %v9466_v27 = vmul.f32 %v8161_v19, %v568_v26 }
 0x3d2   :  { %572 = vrot.lane.b32.xlu1 %v9466_v27, %s9150_s26 }
 0x444   :  { %v573_v28 = vpop.permute.xlu1 %572 }
 0x445   :  { %7594 = vmatmul.mubr.msk.f32.vlgmr.msra.gmra.mrb[2].mxu1 %vm472_vm2, %v573_v28 }
 0x446   :  { %7602 = vmatpush3.msra.mxu1 %v9442_v5  ;;  %7603 = vmatprep.mubr.msk.f32.mxu1 %vm9147_vm0, %v9146_v0 }
 0x447   :  { %7611 = vmatprep.subr.mxu1 %v9146_v0 }
 0x518   :  { %v642_v29 = vpop.f32.mrb[2].mxu1 }
 0x519   :  { %v647_v30 = vrot.slane %v642_v29, 6  ;;  %v7595_v31 = vpop.f32.mrb[3].mxu1 }
 0x51b   :  { %v649_v32 = vadd.f32 %v647_v30, %v9460_v13 }
 0x51d   :  { %8164 = vtanh.f32 %v649_v32  ;;  %v7278_v34 = vmul.f32 -1.442695, %v649_v32 }
 0x51f   :  { %8166 = vpow2.f32 %v7278_v34 }
 0x527   :  { %v8165_v33 = vpop.eup %8164 }
 0x528   :  { %662 = vrot.lane.b32.xlu0 %v8165_v33, %s9148_s3 }
 0x529   :  { %v8167_v35 = vpop.eup %8166 }
 0x52a   :  { %v653_v36 = vadd.f32 1.0, %v8167_v35 }
 0x52c   :  { %8168 = vrcp.f32 %v653_v36 }
 0x536   :  { %v8169_v37 = vpop.eup %8168 }
 0x537   :  { %v660_v41 = vmul.f32 %v8169_v37, %v658_v40 }
 0x59a   :  { %v663_v38 = vpop.permute.xlu0 %662 }
 0x59b   :  { %v665_v39 = vmul.f32 %v8169_v37, %v663_v38 }
 0x59d   :  { %667 = vrot.lane.b32.xlu1 %v665_v39, %s9134_s12 }
 0x60f   :  { %v668_v42 = vpop.permute.xlu1 %667 }
 0x610   :  { %v670_v43 = vadd.f32 %v668_v42, %v660_v41 }
 0x612   :  { %8170 = vtanh.f32 %v670_v43  ;;  %v765_v60 = vrot.slane %v670_v43, 6 }
 0x61c   :  { %v8171_v44 = vpop.eup %8170 }
 0x61d   :  { %673 = vrot.lane.b32.xlu0 %v8171_v44, %s9149_s23 }
 0x68f   :  { %v674_v45 = vpop.permute.xlu0 %673 }
 0x690   :  { %v676_v46 = vmul.f32 %v8169_v37, %v674_v45 }
 0x692   :  { %v678_v47 = vrot.slane %v676_v46, 2  ;;  %v1316_v4 = vsel %vm1315_vm3, %v9466_v27, %v676_v46 }
 0x694   :  { %679 = vrot.lane.b32.xlu1 %v678_v47, %s9150_s26 }
 0x706   :  { %v680_v48 = vpop.permute.xlu1 %679 }
 0x707   :  { %7599 = vmatmul.mubr.msk.f32.vlgmr.msra.gmra.mrb[2].mxu0 %vm472_vm2, %v680_v48 }
 0x708   :  { %7607 = vmatpush3.msra.mxu0 %v9442_v5  ;;  %7608 = vmatprep.mubr.msk.f32.mxu0 %vm9147_vm0, %v9146_v0 }
 0x709   :  { %7616 = vmatprep.subr.mxu0 %v9146_v0 }
 0x7da   :  { %v749_v49 = vpop.f32.mrb[2].mxu0 }
 0x7db   :  { %v754_v50 = vrot.slane %v749_v49, 4  ;;  %v7600_v51 = vpop.f32.mrb[3].mxu0 }
 0x7dd   :  { %v756_v52 = vadd.f32 %v754_v50, %v9460_v13 }
 0x7df   :  { %8172 = vtanh.f32 %v756_v52  ;;  %v7280_v54 = vmul.f32 -1.442695, %v756_v52 }
 0x7e1   :  { %8174 = vpow2.f32 %v7280_v54 }
 0x7e9   :  { %v8173_v53 = vpop.eup %8172 }
 0x7ea   :  { %769 = vrot.lane.b32.xlu0 %v8173_v53, %s9148_s3 }
 0x7eb   :  { %v8175_v55 = vpop.eup %8174 }
 0x7ec   :  { %v760_v56 = vadd.f32 1.0, %v8175_v55 }
 0x7ee   :  { %8176 = vrcp.f32 %v760_v56 }
 0x7f8   :  { %v8177_v57 = vpop.eup %8176 }
 0x7f9   :  { %v767_v61 = vmul.f32 %v8177_v57, %v765_v60 }
 0x85c   :  { %v770_v58 = vpop.permute.xlu0 %769 }
 0x85d   :  { %v772_v59 = vmul.f32 %v8177_v57, %v770_v58 }
 0x85f   :  { %774 = vrot.lane.b32.xlu1 %v772_v59, %s9134_s12 }
 0x8d1   :  { %v775_v62 = vpop.permute.xlu1 %774 }
 0x8d2   :  { %v777_v63 = vadd.f32 %v775_v62, %v767_v61 }
 0x8d4   :  { %8178 = vtanh.f32 %v777_v63  ;;  %v872_v22 = vrot.slane %v777_v63, 6 }
 0x8de   :  { %v8179_v1 = vpop.eup %8178 }
 0x8df   :  { %780 = vrot.lane.b32.xlu0 %v8179_v1, %s9149_s23 }
 0x951   :  { %v781_v2 = vpop.permute.xlu0 %780 }
 0x952   :  { %v783_v3 = vmul.f32 %v8177_v57, %v781_v2 }
 0x954   :  { %v785_v6 = vrot.slane %v783_v3, 4  ;;  %v1318_v7 = vsel %vm1317_vm4, %v1316_v4, %v783_v3 }
 0x956   :  { %786 = vrot.lane.b32.xlu1 %v785_v6, %s9150_s26 }
 0x9c8   :  { %v787_v8 = vpop.permute.xlu1 %786 }
 0x9c9   :  { %7604 = vmatmul.mubr.msk.f32.vlgmr.msra.gmra.mrb[4].mxu1 %vm472_vm2, %v787_v8 }
 0x9ca   :  { %7612 = vmatpush3.msra.mxu1 %v9442_v5  ;;  %7613 = vmatprep.mubr.msk.f32.mxu1 %vm9147_vm0, %v9146_v0 }
 0x9cb   :  { %7621 = vmatprep.subr.mxu1 %v9146_v0 }
 0xa9c   :  { %v856_v9 = vpop.f32.mrb[4].mxu1 }
 0xa9d   :  { %v861_v10 = vrot.slane %v856_v9, 2  ;;  %v7605_v12 = vpop.f32.mrb[5].mxu1 }
 0xa9f   :  { %v863_v14 = vadd.f32 %v861_v10, %v9460_v13 }
 0xaa1   :  { %8180 = vtanh.f32 %v863_v14  ;;  %v7282_v16 = vmul.f32 -1.442695, %v863_v14 }
 0xaa3   :  { %8182 = vpow2.f32 %v7282_v16 }
 0xaab   :  { %v8181_v15 = vpop.eup %8180 }
 0xaac   :  { %876 = vrot.lane.b32.xlu0 %v8181_v15, %s9148_s3 }
 0xaad   :  { %v8183_v17 = vpop.eup %8182 }
 0xaae   :  { %v867_v18 = vadd.f32 1.0, %v8183_v17 }
 0xab0   :  { %8184 = vrcp.f32 %v867_v18 }
 0xaba   :  { %v8185_v19 = vpop.eup %8184 }
 0xabb   :  { %v874_v23 = vmul.f32 %v8185_v19, %v872_v22 }
 0xb1e   :  { %v877_v20 = vpop.permute.xlu0 %876 }
 0xb1f   :  { %v879_v21 = vmul.f32 %v8185_v19, %v877_v20 }
 0xb21   :  { %881 = vrot.lane.b32.xlu1 %v879_v21, %s9134_s12 }
 0xb93   :  { %v882_v24 = vpop.permute.xlu1 %881 }
 0xb94   :  { %v884_v25 = vadd.f32 %v882_v24, %v874_v23 }
 0xb96   :  { %8186 = vtanh.f32 %v884_v25  ;;  %v976_v41 = vrot.slane %v884_v25, 6 }
 0xba0   :  { %v8187_v13 = vpop.eup %8186 }
 0xba1   :  { %887 = vrot.lane.b32.xlu0 %v8187_v13, %s9149_s23 }
 0xc13   :  { %v888_v26 = vpop.permute.xlu0 %887 }
 0xc14   :  { %v890_v27 = vmul.f32 %v8185_v19, %v888_v26 }
 0xc16   :  { %v892_v28 = vrot.slane %v890_v27, 6  ;;  %v9503_v29 = vsel %vm1319_vm5, %v1318_v7, %v890_v27 }
 0xc18   :  { %893 = vrot.lane.b32.xlu1 %v892_v28, %s9150_s26 }
 0xc8a   :  { %v894_v30 = vpop.permute.xlu1 %893 }
 0xc8b   :  { %7609 = vmatmul.mubr.msk.f32.vlgmr.msra.gmra.mrb[4].mxu0 %vm472_vm2, %v894_v30 }
 0xc8c   :  { %7617 = vmatpush3.msra.mxu0 %v9442_v5  ;;  %7618 = vmatprep.mubr.msk.f32.mxu0 %vm9147_vm0, %v9146_v0 }
 0xd5e   :  { %v963_v31 = vpop.f32.mrb[4].mxu0 }
 0xd5f   :  { %v967_v32 = vadd.f32 %v963_v31, %v9458_v11  ;;  %v7610_v33 = vpop.f32.mrb[5].mxu0 }
 0xd61   :  { %8188 = vtanh.f32 %v967_v32  ;;  %v7284_v35 = vmul.f32 -1.442695, %v967_v32 }
 0xd63   :  { %8190 = vpow2.f32 %v7284_v35 }
 0xd6b   :  { %v8189_v34 = vpop.eup %8188 }
 0xd6c   :  { %980 = vrot.lane.b32.xlu0 %v8189_v34, %s9148_s3 }
 0xd6d   :  { %v8191_v36 = vpop.eup %8190 }
 0xd6e   :  { %v971_v37 = vadd.f32 1.0, %v8191_v36 }
 0xd70   :  { %8192 = vrcp.f32 %v971_v37 }
 0xd7a   :  { %v8193_v38 = vpop.eup %8192 }
 0xd7b   :  { %v978_v42 = vmul.f32 %v8193_v38, %v976_v41 }
 0xdde   :  { %v981_v39 = vpop.permute.xlu0 %980 }
 0xddf   :  { %v983_v40 = vmul.f32 %v8193_v38, %v981_v39 }
 0xde1   :  { %985 = vrot.lane.b32.xlu1 %v983_v40, %s9134_s12 }
 0xe53   :  { %v986_v43 = vpop.permute.xlu1 %985 }
 0xe54   :  { %v988_v44 = vadd.f32 %v986_v43, %v978_v42 }
 0xe56   :  { %8194 = vtanh.f32 %v988_v44  ;;  %v1082_v59 = vrot.slane %v988_v44, 6 }
 0xe60   :  { %v8195_v45 = vpop.eup %8194 }
 0xe61   :  { %991 = vrot.lane.b32.xlu0 %v8195_v45, %s9149_s23  ;;  %v346_v45 = vld [vmem:[#allocation7] sm:$0xff] }
 0xe62   :  { %7626 = vmatprep.subr.mxu0 %v346_v45 }
 0xed3   :  { %v992_v46 = vpop.permute.xlu0 %991 }
 0xed4   :  { %v994_v47 = vmul.f32 %v8193_v38, %v992_v46  ;;  %v9541_v46 = vld [vmem:[#allocation8] sm:$0xff] }
 0xed6   :  { %996 = vrot.lane.b32.xlu1 %v994_v47, %s9150_s26 }
 0xf48   :  { %v997_v48 = vpop.permute.xlu1 %996 }
 0xf49   :  { %7614 = vmatmul.mubr.msk.f32.vlgmr.msra.gmra.mrb[6].mxu1 %vm472_vm2, %v997_v48 }
 0xf4a   :  { %7622 = vmatpush3.msra.mxu1 %v9442_v5  ;;  %7623 = vmatprep.mubr.msk.f32.mxu1 %vm9147_vm0, %v9146_v0 }
 0xf4b   :  { %7631 = vmatprep.subr.mxu1 %v9146_v0 }
0x101c   :  { %v1066_v49 = vpop.f32.mrb[6].mxu1 }
0x101d   :  { %v1071_v50 = vrot.slane %v1066_v49, 6  ;;  %v7615_v51 = vpop.f32.mrb[7].mxu1 }
0x101f   :  { %v1073_v52 = vadd.f32 %v1071_v50, %v9458_v11 }
0x1021   :  { %8196 = vtanh.f32 %v1073_v52  ;;  %v7286_v54 = vmul.f32 -1.442695, %v1073_v52 }
0x1023   :  { %8198 = vpow2.f32 %v7286_v54 }
0x102b   :  { %v8197_v53 = vpop.eup %8196 }
0x102c   :  { %1086 = vrot.lane.b32.xlu0 %v8197_v53, %s9148_s3  ;;  %v7291_v53 = vld [vmem:[#allocation10] ss:$0 sm:$0xff] }
0x102d   :  { %v8199_v55 = vpop.eup %8198 }
0x102e   :  { %v1077_v56 = vadd.f32 1.0, %v8199_v55 }
0x1030   :  { %8200 = vrcp.f32 %v1077_v56 }
0x103a   :  { %v8201_v5 = vpop.eup %8200 }
0x103b   :  { %v1084_v60 = vmul.f32 %v8201_v5, %v1082_v59 }
0x109e   :  { %v1087_v57 = vpop.permute.xlu0 %1086 }
0x109f   :  { %v1089_v58 = vmul.f32 %v8201_v5, %v1087_v57 }
0x10a1   :  { %1091 = vrot.lane.b32.xlu1 %v1089_v58, %s9134_s12 }
0x1113   :  { %v1092_v61 = vpop.permute.xlu1 %1091 }
0x1114   :  { %v1094_v62 = vadd.f32 %v1092_v61, %v1084_v60 }
0x1116   :  { %8202 = vtanh.f32 %v1094_v62  ;;  %v1189_v19 = vrot.slane %v1094_v62, 6 }
0x1120   :  { %v8203_v63 = vpop.eup %8202 }
0x1121   :  { %1097 = vrot.lane.b32.xlu0 %v8203_v63, %s9149_s23 }
0x1193   :  { %v1098_v1 = vpop.permute.xlu0 %1097 }
0x1194   :  { %v1100_v2 = vmul.f32 %v8201_v5, %v1098_v1 }
0x1196   :  { %v1102_v3 = vrot.slane %v1100_v2, 2  ;;  %v1321_v13 = vsel %vm1315_vm3, %v994_v47, %v1100_v2 }
0x1198   :  { %1103 = vrot.lane.b32.xlu1 %v1102_v3, %s9150_s26 }
0x120a   :  { %v1104_v4 = vpop.permute.xlu1 %1103 }
0x120b   :  { %7619 = vmatmul.mubr.msk.f32.vlgmr.msra.gmra.mrb[6].mxu0 %vm472_vm2, %v1104_v4 }
0x120c   :  { %7627 = vmatpush3.msra.mxu0 %v346_v45 }
0x120d   :  { %7636 = vmatprep.subr.mxu0 %v9146_v0 }
0x12de   :  { %v1173_v6 = vpop.f32.mrb[6].mxu0 }
0x12df   :  { %v1178_v7 = vrot.slane %v1173_v6, 4  ;;  %v7620_v8 = vpop.f32.mrb[7].mxu0 }
0x12e1   :  { %v1180_v9 = vadd.f32 %v1178_v7, %v9458_v11 }
0x12e3   :  { %8204 = vtanh.f32 %v1180_v9  ;;  %v7288_v12 = vmul.f32 -1.442695, %v1180_v9 }
0x12e5   :  { %8206 = vpow2.f32 %v7288_v12 }
0x12ed   :  { %v8205_v10 = vpop.eup %8204 }
0x12ee   :  { %1193 = vrot.lane.b32.xlu0 %v8205_v10, %s9148_s3 }
0x12ef   :  { %v8207_v14 = vpop.eup %8206 }
0x12f0   :  { %v1184_v15 = vadd.f32 1.0, %v8207_v14 }
0x12f2   :  { %8208 = vrcp.f32 %v1184_v15 }
0x12fc   :  { %v8209_v16 = vpop.eup %8208 }
0x12fd   :  { %v1191_v20 = vmul.f32 %v8209_v16, %v1189_v19 }
0x1360   :  { %v1194_v17 = vpop.permute.xlu0 %1193 }
0x1361   :  { %v1196_v18 = vmul.f32 %v8209_v16, %v1194_v17 }
0x1363   :  { %1198 = vrot.lane.b32.xlu1 %v1196_v18, %s9134_s12 }
0x13d5   :  { %v1199_v21 = vpop.permute.xlu1 %1198 }
0x13d6   :  { %v1201_v22 = vadd.f32 %v1199_v21, %v1191_v20 }
0x13d8   :  { %8210 = vtanh.f32 %v1201_v22  ;;  %v1296_v41 = vrot.slane %v1201_v22, 6 }
0x13e2   :  { %v8211_v23 = vpop.eup %8210 }
0x13e3   :  { %1204 = vrot.lane.b32.xlu0 %v8211_v23, %s9149_s23 }
0x1455   :  { %v1205_v24 = vpop.permute.xlu0 %1204 }
0x1456   :  { %v1207_v25 = vmul.f32 %v8209_v16, %v1205_v24 }
0x1458   :  { %v1209_v26 = vrot.slane %v1207_v25, 4  ;;  %v1322_v27 = vsel %vm1317_vm4, %v1321_v13, %v1207_v25 }
0x145a   :  { %1210 = vrot.lane.b32.xlu1 %v1209_v26, %s9150_s26 }
0x14cc   :  { %v1211_v28 = vpop.permute.xlu1 %1210 }
0x14cd   :  { %7624 = vmatmul.mubr.msk.f32.vlgmr.msra.gmra.mrb[8].mxu1 %vm472_vm2, %v1211_v28 }
0x14ce   :  { %7633 = vmatprep.mubr.msk.f32.mxu1 %vm9147_vm0, %v9146_v0  ;;  %7632 = vmatpush3.msra.mxu1 %v9541_v46 }
0x14cf   :  { %7641 = vmatprep.subr.mxu1 %v9146_v0 }
0x14d1   :  { %7634 = vmatmul.mubr.f32.vlgmr.msra.gmra.mrb[10].mxu1 %v9146_v0 }
0x14d2   :  { %7643 = vmatprep.mubr.msk.f32.mxu1 %vm9147_vm0, %v9146_v0  ;;  %7642 = vmatpush3.msra.mxu1 %v9541_v46 }
0x14d3   :  { %7651 = vmatprep.subr.mxu1 %v9146_v0 }
0x15a0   :  { %v1280_v30 = vpop.f32.mrb[8].mxu1 }
0x15a1   :  { %v1285_v31 = vrot.slane %v1280_v30, 2  ;;  %v7625_v32 = vpop.f32.mrb[9].mxu1 }
0x15a3   :  { %v1287_v33 = vadd.f32 %v1285_v31, %v9458_v11 }
0x15a4   :  { %v1481_v51 = vpop.f32.mrb[10].mxu1 }
0x15a5   :  { %8212 = vtanh.f32 %v1287_v33  ;;  %v7290_v35 = vmul.f32 -1.442695, %v1287_v33  ;;  %v7635_v52 = vpop.f32.mrb[11].mxu1 }
0x15a7   :  { %8214 = vpow2.f32 %v7290_v35 }
0x15af   :  { %v8213_v34 = vpop.eup %8212 }
0x15b0   :  { %1300 = vrot.lane.b32.xlu0 %v8213_v34, %s9148_s3 }
0x15b1   :  { %v8215_v36 = vpop.eup %8214 }
0x15b2   :  { %v1291_v37 = vadd.f32 1.0, %v8215_v36 }
0x15b4   :  { %8216 = vrcp.f32 %v1291_v37 }
0x15be   :  { %v8217_v38 = vpop.eup %8216 }
0x15bf   :  { %v1298_v42 = vmul.f32 %v8217_v38, %v1296_v41 }
0x1622   :  { %v1301_v39 = vpop.permute.xlu0 %1300 }
0x1623   :  { %v1303_v40 = vmul.f32 %v8217_v38, %v1301_v39 }
0x1625   :  { %1305 = vrot.lane.b32.xlu1 %v1303_v40, %s9134_s12 }
0x1629   :  { %1332 = vrot.lane.b32.xlu1 %v9503_v29, %s9150_s26 }
0x1697   :  { %v1306_v11 = vpop.permute.xlu1 %1305 }
0x1698   :  { %v1308_v43 = vadd.f32 %v1306_v11, %v1298_v42 }
0x169a   :  { %8218 = vtanh.f32 %v1308_v43 }
0x169b   :  { %v1333_v44 = vpop.permute.xlu1 %1332 }
0x169c   :  { %7628 = vmatprep.mubr.msk.f32.mxu0 %vm472_vm2, %v1333_v44 }
0x16a4   :  { %v8219_v29 = vpop.eup %8218 }
0x16a5   :  { %1311 = vrot.lane.b32.xlu0 %v8219_v29, %s9149_s23 }
0x1717   :  { %v1312_v47 = vpop.permute.xlu0 %1311 }
0x1718   :  { %v1314_v48 = vmul.f32 %v8217_v38, %v1312_v47 }
0x171a   :  { %v1323_v49 = vsel %vm1319_vm5, %v1322_v27, %v1314_v48 }
0x171b   :  { %1334 = vrot.lane.b32.xlu0 %v1323_v49, %s9150_s26 }
0x178d   :  { %v1335_v50 = vpop.permute.xlu0 %1334 }
0x178e   :  { %7629 = vmatmul.mubr.msk.f32.vlgmr.msra.gmra.mrb[8].mxu0 %vm472_vm2, %v1335_v50 }
0x178f   :  { %7637 = vmatpush3.msra.mxu0 %v9541_v46  ;;  %7638 = vmatprep.mubr.msk.f32.mxu0 %vm9147_vm0, %v9146_v0 }
0x1790   :  { %7646 = vmatprep.subr.mxu0 %v9146_v0 }
0x1861   :  { %v7630_v54 = vpop.f32.mrb[8].mxu0 }
0x1862   :  { %v9560_v55 = vadd.f32 %v7630_v54, %v7291_v53  ;;  %v1406_v56 = vpop.f32.mrb[9].mxu0 }
0x1863   :  { %v9562_v5 = vadd.f32 %v7291_v53, %v1406_v56 }
0x1865   :  { %v1485_v57 = vadd.f32 %v1481_v51, %v9562_v5 }
0x1867   :  { %8220 = vtanh.f32 %v1485_v57  ;;  %v7294_v59 = vmul.f32 -1.442695, %v1485_v57 }
0x1869   :  { %8222 = vpow2.f32 %v7294_v59 }
0x1871   :  { %v8221_v58 = vpop.eup %8220 }
0x1872   :  { %1495 = vrot.lane.b32.xlu1 %v8221_v58, %s9148_s3 }
0x1873   :  { %v8223_v60 = vpop.eup %8222 }
0x1874   :  { %v1489_v61 = vadd.f32 1.0, %v8223_v60 }
0x1876   :  { %8224 = vrcp.f32 %v1489_v61 }
0x1880   :  { %v8225_v62 = vpop.eup %8224 }
0x1881   :  { %v1493_v2 = vmul.f32 0.0, %v8225_v62 }
0x18e4   :  { %v1496_v63 = vpop.permute.xlu1 %1495 }
0x18e5   :  { %v1498_v1 = vmul.f32 %v8225_v62, %v1496_v63 }
0x18e7   :  { %1500 = vrot.lane.b32.xlu0 %v1498_v1, %s9134_s12 }
0x1959   :  { %v1501_v3 = vpop.permute.xlu0 %1500 }
0x195a   :  { %v1503_v4 = vadd.f32 %v1501_v3, %v1493_v2 }
0x195c   :  { %8226 = vtanh.f32 %v1503_v4  ;;  %v1597_v23 = vrot.slane %v1503_v4, 6 }
0x1966   :  { %v8227_v6 = vpop.eup %8226 }
0x1967   :  { %1506 = vrot.lane.b32.xlu1 %v8227_v6, %s9149_s23 }
0x19d9   :  { %v1507_v7 = vpop.permute.xlu1 %1506 }
0x19da   :  { %v1509_v8 = vmul.f32 %v8225_v62, %v1507_v7 }
0x19dc   :  { %1511 = vrot.lane.b32.xlu0 %v1509_v8, %s9150_s26 }
0x1a4e   :  { %v1512_v9 = vpop.permute.xlu0 %1511 }
0x1a4f   :  { %7639 = vmatmul.mubr.msk.f32.vlgmr.msra.gmra.mrb[10].mxu0 %vm472_vm2, %v1512_v9 }
0x1a50   :  { %7647 = vmatpush3.msra.mxu0 %v9541_v46  ;;  %7648 = vmatprep.mubr.msk.f32.mxu0 %vm9147_vm0, %v9146_v0 }
0x1a51   :  { %7656 = vmatprep.subr.mxu0 %v9146_v0 }
0x1b22   :  { %v1581_v10 = vpop.f32.mrb[10].mxu0 }
0x1b23   :  { %v1586_v12 = vrot.slane %v1581_v10, 6  ;;  %v7640_v14 = vpop.f32.mrb[11].mxu0 }
0x1b25   :  { %v1588_v15 = vadd.f32 %v1586_v12, %v9562_v5 }
0x1b27   :  { %8228 = vtanh.f32 %v1588_v15  ;;  %v7296_v17 = vmul.f32 -1.442695, %v1588_v15 }
0x1b29   :  { %8230 = vpow2.f32 %v7296_v17 }
0x1b31   :  { %v8229_v16 = vpop.eup %8228 }
0x1b32   :  { %1601 = vrot.lane.b32.xlu1 %v8229_v16, %s9148_s3 }
0x1b33   :  { %v8231_v18 = vpop.eup %8230 }
0x1b34   :  { %v1592_v19 = vadd.f32 1.0, %v8231_v18 }
0x1b36   :  { %8232 = vrcp.f32 %v1592_v19 }
0x1b40   :  { %v8233_v20 = vpop.eup %8232 }
0x1b41   :  { %v1599_v24 = vmul.f32 %v8233_v20, %v1597_v23 }
0x1ba4   :  { %v1602_v21 = vpop.permute.xlu1 %1601 }
0x1ba5   :  { %v1604_v22 = vmul.f32 %v8233_v20, %v1602_v21 }
0x1ba7   :  { %1606 = vrot.lane.b32.xlu0 %v1604_v22, %s9134_s12 }
0x1c19   :  { %v1607_v25 = vpop.permute.xlu0 %1606 }
0x1c1a   :  { %v1609_v13 = vadd.f32 %v1607_v25, %v1599_v24 }
0x1c1c   :  { %8234 = vtanh.f32 %v1609_v13  ;;  %v1704_v11 = vrot.slane %v1609_v13, 6 }
0x1c26   :  { %v8235_v26 = vpop.eup %8234 }
0x1c27   :  { %1612 = vrot.lane.b32.xlu1 %v8235_v26, %s9149_s23 }
0x1c99   :  { %v1613_v27 = vpop.permute.xlu1 %1612 }
0x1c9a   :  { %v1615_v28 = vmul.f32 %v8233_v20, %v1613_v27 }
0x1c9c   :  { %v1617_v30 = vrot.slane %v1615_v28, 2 }
0x1c9e   :  { %1618 = vrot.lane.b32.xlu0 %v1617_v30, %s9150_s26 }
0x1d10   :  { %v1619_v31 = vpop.permute.xlu0 %1618 }
0x1d11   :  { %7644 = vmatmul.mubr.msk.f32.vlgmr.msra.gmra.mrb[12].mxu1 %vm472_vm2, %v1619_v31 }
0x1d12   :  { %7652 = vmatpush3.msra.mxu1 %v9541_v46  ;;  %7653 = vmatprep.mubr.msk.f32.mxu1 %vm9147_vm0, %v9146_v0 }
0x1d13   :  { %7661 = vmatprep.subr.mxu1 %v9146_v0 }
0x1de4   :  { %v1688_v32 = vpop.f32.mrb[12].mxu1 }
0x1de5   :  { %v1693_v33 = vrot.slane %v1688_v32, 4  ;;  %v7645_v34 = vpop.f32.mrb[13].mxu1 }
0x1de7   :  { %v1695_v35 = vadd.f32 %v1693_v33, %v9562_v5 }
0x1de9   :  { %8236 = vtanh.f32 %v1695_v35  ;;  %v7298_v37 = vmul.f32 -1.442695, %v1695_v35 }
0x1deb   :  { %8238 = vpow2.f32 %v7298_v37 }
0x1df3   :  { %v8237_v36 = vpop.eup %8236 }
0x1df4   :  { %1708 = vrot.lane.b32.xlu1 %v8237_v36, %s9148_s3 }
0x1df5   :  { %v8239_v38 = vpop.eup %8238 }
0x1df6   :  { %v1699_v39 = vadd.f32 1.0, %v8239_v38 }
0x1df8   :  { %8240 = vrcp.f32 %v1699_v39 }
0x1e02   :  { %v8241_v40 = vpop.eup %8240 }
0x1e03   :  { %v1706_v43 = vmul.f32 %v8241_v40, %v1704_v11 }
0x1e66   :  { %v1709_v41 = vpop.permute.xlu1 %1708 }
0x1e67   :  { %v1711_v42 = vmul.f32 %v8241_v40, %v1709_v41 }
0x1e69   :  { %1713 = vrot.lane.b32.xlu0 %v1711_v42, %s9134_s12 }
0x1edb   :  { %v1714_v44 = vpop.permute.xlu0 %1713 }
0x1edc   :  { %v1716_v45 = vadd.f32 %v1714_v44, %v1706_v43 }
0x1ede   :  { %8242 = vtanh.f32 %v1716_v45  ;;  %v1811_v63 = vrot.slane %v1716_v45, 6 }
0x1ee8   :  { %v8243_v29 = vpop.eup %8242 }
0x1ee9   :  { %1719 = vrot.lane.b32.xlu1 %v8243_v29, %s9149_s23 }
0x1f5b   :  { %v1720_v47 = vpop.permute.xlu1 %1719 }
0x1f5c   :  { %v1722_v48 = vmul.f32 %v8241_v40, %v1720_v47 }
0x1f5e   :  { %v1724_v49 = vrot.slane %v1722_v48, 4 }
0x1f60   :  { %1725 = vrot.lane.b32.xlu0 %v1724_v49, %s9150_s26 }
0x1fd2   :  { %v1726_v50 = vpop.permute.xlu0 %1725 }
0x1fd3   :  { %7649 = vmatmul.mubr.msk.f32.vlgmr.msra.gmra.mrb[12].mxu0 %vm472_vm2, %v1726_v50 }
0x1fd4   :  { %7657 = vmatpush3.msra.mxu0 %v9541_v46  ;;  %7658 = vmatprep.mubr.msk.f32.mxu0 %vm9147_vm0, %v9146_v0 }
0x1fd5   :  { %7666 = vmatprep.subr.mxu0 %v9146_v0 }
0x20a6   :  { %v1795_v51 = vpop.f32.mrb[12].mxu0 }
0x20a7   :  { %v1800_v52 = vrot.slane %v1795_v51, 2  ;;  %v7650_v53 = vpop.f32.mrb[13].mxu0 }
0x20a9   :  { %v1802_v54 = vadd.f32 %v1800_v52, %v9562_v5 }
0x20ab   :  { %8244 = vtanh.f32 %v1802_v54  ;;  %v7300_v57 = vmul.f32 -1.442695, %v1802_v54 }
0x20ad   :  { %8246 = vpow2.f32 %v7300_v57 }
0x20b5   :  { %v8245_v56 = vpop.eup %8244 }
0x20b6   :  { %1815 = vrot.lane.b32.xlu1 %v8245_v56, %s9148_s3 }
0x20b7   :  { %v8247_v58 = vpop.eup %8246 }
0x20b8   :  { %v1806_v59 = vadd.f32 1.0, %v8247_v58 }
0x20ba   :  { %8248 = vrcp.f32 %v1806_v59 }
0x20c4   :  { %v8249_v60 = vpop.eup %8248 }
0x20c5   :  { %v1813_v1 = vmul.f32 %v8249_v60, %v1811_v63 }
0x2128   :  { %v1816_v61 = vpop.permute.xlu1 %1815 }
0x2129   :  { %v1818_v62 = vmul.f32 %v8249_v60, %v1816_v61 }
0x212b   :  { %1820 = vrot.lane.b32.xlu0 %v1818_v62, %s9134_s12 }
0x219d   :  { %v1821_v2 = vpop.permute.xlu0 %1820 }
0x219e   :  { %v1823_v3 = vadd.f32 %v1821_v2, %v1813_v1 }
0x21a0   :  { %8250 = vtanh.f32 %v1823_v3  ;;  %v1915_v21 = vrot.slane %v1823_v3, 6 }
0x21aa   :  { %v8251_v5 = vpop.eup %8250 }
0x21ab   :  { %1826 = vrot.lane.b32.xlu1 %v8251_v5, %s9149_s23 }
0x221d   :  { %v1827_v4 = vpop.permute.xlu1 %1826 }
0x221e   :  { %v1829_v6 = vmul.f32 %v8249_v60, %v1827_v4 }
0x2220   :  { %v1831_v7 = vrot.slane %v1829_v6, 6 }
0x2222   :  { %1832 = vrot.lane.b32.xlu0 %v1831_v7, %s9150_s26 }
0x2294   :  { %v1833_v8 = vpop.permute.xlu0 %1832 }
0x2295   :  { %7654 = vmatmul.mubr.msk.f32.vlgmr.msra.gmra.mrb[14].mxu1 %vm472_vm2, %v1833_v8 }
0x2296   :  { %7662 = vmatpush3.msra.mxu1 %v9541_v46  ;;  %7663 = vmatprep.mubr.msk.f32.mxu1 %vm9147_vm0, %v9146_v0 }
0x2297   :  { %7671 = vmatprep.subr.mxu1 %v9146_v0 }
0x2368   :  { %v1902_v9 = vpop.f32.mrb[14].mxu1 }
0x2369   :  { %v1906_v10 = vadd.f32 %v1902_v9, %v9560_v55  ;;  %v7655_v12 = vpop.f32.mrb[15].mxu1 }
0x236b   :  { %8252 = vtanh.f32 %v1906_v10  ;;  %v7302_v15 = vmul.f32 -1.442695, %v1906_v10 }
0x236d   :  { %8254 = vpow2.f32 %v7302_v15 }
0x2375   :  { %v8253_v14 = vpop.eup %8252 }
0x2376   :  { %1919 = vrot.lane.b32.xlu1 %v8253_v14, %s9148_s3 }
0x2377   :  { %v8255_v16 = vpop.eup %8254 }
0x2378   :  { %v1910_v17 = vadd.f32 1.0, %v8255_v16 }
0x237a   :  { %8256 = vrcp.f32 %v1910_v17 }
0x2384   :  { %v8257_v18 = vpop.eup %8256 }
0x2385   :  { %v1917_v22 = vmul.f32 %v8257_v18, %v1915_v21  ;;  %v349_v21 = vld [vmem:[%s10235_s0] sm:$0xff] }
0x23e8   :  { %v1920_v19 = vpop.permute.xlu1 %1919 }
0x23e9   :  { %v1922_v20 = vmul.f32 %v8257_v18, %v1920_v19 }
0x23eb   :  { %1924 = vrot.lane.b32.xlu0 %v1922_v20, %s9134_s12 }
0x245d   :  { %v1925_v23 = vpop.permute.xlu0 %1924 }
0x245e   :  { %v1927_v24 = vadd.f32 %v1925_v23, %v1917_v22  ;;  %v350_v22 = vld [vmem:[%s10236_s19] sm:$0xff]  ;;  %v351_v23 = vld [vmem:[%s10236_s19 + $0x8] sm:$0xff] }
0x2460   :  { %8258 = vtanh.f32 %v1927_v24  ;;  %v2021_v39 = vrot.slane %v1927_v24, 6  ;;  %v9151_v24 = vmov 0.0|0.0  }
0x246a   :  { %v8259_v25 = vpop.eup %8258 }
0x246b   :  { %1930 = vrot.lane.b32.xlu1 %v8259_v25, %s9149_s23  ;;  %v9636_v25 = vpack.c.bf16 %v351_v23, %v350_v22 }
0x24dd   :  { %v1931_v13 = vpop.permute.xlu1 %1930 }
0x24de   :  { %v1933_v26 = vmul.f32 %v8257_v18, %v1931_v13 }
0x24e0   :  { %1935 = vrot.lane.b32.xlu0 %v1933_v26, %s9150_s26 }
0x2552   :  { %v1936_v27 = vpop.permute.xlu0 %1935 }
0x2553   :  { %7659 = vmatmul.mubr.msk.f32.vlgmr.msra.gmra.mrb[14].mxu0 %vm472_vm2, %v1936_v27 }
0x2554   :  { %7667 = vmatpush3.msra.mxu0 %v9541_v46  ;;  %7668 = vmatprep.mubr.msk.f32.mxu0 %vm9147_vm0, %v9146_v0 }
0x2555   :  { %7981 = vmatprep.subr.bf16.mxu0 %v9151_v24 }
0x2626   :  { %v2005_v28 = vpop.f32.mrb[14].mxu0 }
0x2627   :  { %v2010_v30 = vrot.slane %v2005_v28, 6  ;;  %v7660_v31 = vpop.f32.mrb[15].mxu0 }
0x2629   :  { %v2012_v32 = vadd.f32 %v2010_v30, %v9560_v55 }
0x262b   :  { %8260 = vtanh.f32 %v2012_v32  ;;  %v7304_v34 = vmul.f32 -1.442695, %v2012_v32 }
0x262d   :  { %8262 = vpow2.f32 %v7304_v34 }
0x2635   :  { %v8261_v33 = vpop.eup %8260 }
0x2636   :  { %2025 = vrot.lane.b32.xlu1 %v8261_v33, %s9148_s3  ;;  %v7309_v33 = vld [vmem:[%s10237_s9] ss:$0 sm:$0xff] }
0x2637   :  { %v8263_v35 = vpop.eup %8262 }
0x2638   :  { %v2016_v36 = vadd.f32 1.0, %v8263_v35 }
0x263a   :  { %8264 = vrcp.f32 %v2016_v36 }
0x2644   :  { %v8265_v37 = vpop.eup %8264 }
0x2645   :  { %v2023_v40 = vmul.f32 %v8265_v37, %v2021_v39 }
0x26a8   :  { %v2026_v38 = vpop.permute.xlu1 %2025 }
0x26a9   :  { %v2028_v46 = vmul.f32 %v8265_v37, %v2026_v38 }
0x26ab   :  { %2030 = vrot.lane.b32.xlu0 %v2028_v46, %s9134_s12 }
0x271d   :  { %v2031_v41 = vpop.permute.xlu0 %2030 }
0x271e   :  { %v2033_v42 = vadd.f32 %v2031_v41, %v2023_v40 }
0x2720   :  { %8266 = vtanh.f32 %v2033_v42  ;;  %v2128_v59 = vrot.slane %v2033_v42, 6 }
0x272a   :  { %v8267_v11 = vpop.eup %8266 }
0x272b   :  { %2036 = vrot.lane.b32.xlu1 %v8267_v11, %s9149_s23 }
0x279d   :  { %v2037_v43 = vpop.permute.xlu1 %2036 }
0x279e   :  { %v2039_v44 = vmul.f32 %v8265_v37, %v2037_v43 }
0x27a0   :  { %v2041_v45 = vrot.slane %v2039_v44, 2 }
0x27a2   :  { %2042 = vrot.lane.b32.xlu0 %v2041_v45, %s9150_s26 }
0x2814   :  { %v2043_v29 = vpop.permute.xlu0 %2042 }
0x2815   :  { %7664 = vmatmul.mubr.msk.f32.vlgmr.msra.gmra.mrb[16].mxu1 %vm472_vm2, %v2043_v29 }
0x2816   :  { %7673 = vmatprep.mubr.msk.f32.mxu1 %vm9147_vm0, %v9146_v0  ;;  %7672 = vmatpush3.msra.mxu1 %v349_v21 }
0x2817   :  { %7984 = vmatprep.subr.bf16.mxu1 %v9151_v24 }
0x28e8   :  { %v2112_v47 = vpop.f32.mrb[16].mxu1 }
0x28e9   :  { %v2117_v48 = vrot.slane %v2112_v47, 4  ;;  %v7665_v49 = vpop.f32.mrb[17].mxu1 }
0x28eb   :  { %v2119_v50 = vadd.f32 %v2117_v48, %v9560_v55 }
0x28ed   :  { %8268 = vtanh.f32 %v2119_v50  ;;  %v7306_v52 = vmul.f32 -1.442695, %v2119_v50 }
0x28ef   :  { %8270 = vpow2.f32 %v7306_v52 }
0x28f7   :  { %v8269_v51 = vpop.eup %8268 }
0x28f8   :  { %2132 = vrot.lane.b32.xlu1 %v8269_v51, %s9148_s3 }
0x28f9   :  { %v8271_v53 = vpop.eup %8270 }
0x28fa   :  { %v2123_v54 = vadd.f32 1.0, %v8271_v53 }
0x28fc   :  { %8272 = vrcp.f32 %v2123_v54 }
0x2906   :  { %v8273_v56 = vpop.eup %8272 }
0x2907   :  { %v2130_v60 = vmul.f32 %v8273_v56, %v2128_v59 }
0x296a   :  { %v2133_v57 = vpop.permute.xlu1 %2132 }
0x296b   :  { %v2135_v58 = vmul.f32 %v8273_v56, %v2133_v57 }
0x296d   :  { %2137 = vrot.lane.b32.xlu0 %v2135_v58, %s9134_s12 }
0x29df   :  { %v2138_v61 = vpop.permute.xlu0 %2137 }
0x29e0   :  { %v2140_v62 = vadd.f32 %v2138_v61, %v2130_v60 }
0x29e2   :  { %8274 = vtanh.f32 %v2140_v62  ;;  %v2235_v18 = vrot.slane %v2140_v62, 6 }
0x29ec   :  { %v8275_v63 = vpop.eup %8274 }
0x29ed   :  { %2143 = vrot.lane.b32.xlu1 %v8275_v63, %s9149_s23 }
0x2a5f   :  { %v2144_v1 = vpop.permute.xlu1 %2143 }
0x2a60   :  { %v2146_v2 = vmul.f32 %v8273_v56, %v2144_v1 }
0x2a62   :  { %v2148_v3 = vrot.slane %v2146_v2, 4 }
0x2a64   :  { %2149 = vrot.lane.b32.xlu0 %v2148_v3, %s9150_s26 }
0x2ad6   :  { %v2150_v5 = vpop.permute.xlu0 %2149 }
0x2ad7   :  { %7669 = vmatmul.mubr.msk.f32.vlgmr.msra.gmra.mrb[16].mxu0 %vm472_vm2, %v2150_v5 }
0x2ad8   :  { %7680 = vmatprep.mubr.msk.f32.mxu0 %vm9147_vm0, %v9146_v0  ;;  %7983 = vmatpush3.bf16.msra.mxu0 %v9636_v25 }
0x2ad9   :  { %7987 = vmatprep.subr.bf16.mxu0 %v9151_v24 }
0x2adb   :  { %7681 = vmatmul.mubr.f32.vlgmr.msra.gmra.mrb[18].mxu0 %v9146_v0 }
0x2adc   :  { %7989 = vmatpush3.bf16.msra.mxu0 %v9636_v25  ;;  %7694 = vmatprep.mubr.msk.f32.mxu0 %vm9147_vm0, %v9146_v0 }
0x2add   :  { %7993 = vmatprep.subr.bf16.mxu0 %v9151_v24 }
0x2baa   :  { %v2219_v4 = vpop.f32.mrb[16].mxu0 }
0x2bab   :  { %v2224_v6 = vrot.slane %v2219_v4, 2  ;;  %v7670_v7 = vpop.f32.mrb[17].mxu0 }
0x2bad   :  { %v2226_v8 = vadd.f32 %v2224_v6, %v9560_v55 }
0x2bae   :  { %v2409_v31 = vpop.f32.mrb[18].mxu0 }
0x2baf   :  { %8276 = vtanh.f32 %v2226_v8  ;;  %v7308_v10 = vmul.f32 -1.442695, %v2226_v8  ;;  %v7682_v32 = vpop.f32.mrb[19].mxu0 }
0x2bb1   :  { %8278 = vpow2.f32 %v7308_v10 }
0x2bb9   :  { %v8277_v9 = vpop.eup %8276 }
0x2bba   :  { %2239 = vrot.lane.b32.xlu1 %v8277_v9, %s9148_s3 }
0x2bbb   :  { %v8279_v12 = vpop.eup %8278 }
0x2bbc   :  { %v2230_v14 = vadd.f32 1.0, %v8279_v12 }
0x2bbe   :  { %8280 = vrcp.f32 %v2230_v14 }
0x2bc8   :  { %v8281_v15 = vpop.eup %8280 }
0x2bc9   :  { %v2237_v19 = vmul.f32 %v8281_v15, %v2235_v18 }
0x2c2c   :  { %v2240_v16 = vpop.permute.xlu1 %2239 }
0x2c2d   :  { %v2242_v17 = vmul.f32 %v8281_v15, %v2240_v16 }
0x2c2f   :  { %2244 = vrot.lane.b32.xlu0 %v2242_v17, %s9134_s12 }
0x2ca1   :  { %v2245_v55 = vpop.permute.xlu0 %2244 }
0x2ca2   :  { %v2247_v20 = vadd.f32 %v2245_v55, %v2237_v19 }
0x2ca4   :  { %8282 = vtanh.f32 %v2247_v20 }
0x2cae   :  { %v8283_v13 = vpop.eup %8282 }
0x2caf   :  { %2250 = vrot.lane.b32.xlu1 %v8283_v13, %s9149_s23 }
0x2d21   :  { %v2251_v26 = vpop.permute.xlu1 %2250 }
0x2d22   :  { %v9647_v27 = vmul.f32 %v8281_v15, %v2251_v26 }
0x2d24   :  { %v2266_v28 = vrot.slane %v9647_v27, 6 }
0x2d26   :  { %2267 = vrot.lane.b32.xlu0 %v2266_v28, %s9150_s26 }
0x2d98   :  { %v2268_v30 = vpop.permute.xlu0 %2267 }
0x2d99   :  { %7674 = vmatmul.mubr.msk.f32.vlgmr.msra.gmra.mrb[18].mxu1 %vm472_vm2, %v2268_v30 }
0x2d9a   :  { %7986 = vmatpush3.bf16.msra.mxu1 %v9636_v25  ;;  %7687 = vmatprep.mubr.msk.f32.mxu1 %vm9147_vm0, %v9146_v0 }
0x2d9b   :  { %7990 = vmatprep.subr.bf16.mxu1 %v9151_v24 }
0x2e6c   :  { %v2337_v34 = vpop.f32.mrb[18].mxu1 }
0x2e6d   :  { %v9657_v35 = vadd.f32 %v7309_v33, %v2337_v34  ;;  %v7675_v36 = vpop.f32.mrb[19].mxu1 }
0x2e6f   :  { %v2413_v37 = vadd.f32 %v2409_v31, %v9657_v35 }
0x2e71   :  { %8284 = vtanh.f32 %v2413_v37  ;;  %v7311_v46 = vmul.f32 -1.442695, %v2413_v37 }
0x2e73   :  { %8286 = vpow2.f32 %v7311_v46 }
0x2e7b   :  { %v8285_v38 = vpop.eup %8284 }
0x2e7c   :  { %2423 = vrot.lane.b32.xlu1 %v8285_v38, %s9152_s4 }
0x2e7d   :  { %v8287_v39 = vpop.eup %8286 }
0x2e7e   :  { %v2417_v40 = vadd.f32 1.0, %v8287_v39 }
0x2e80   :  { %8288 = vrcp.f32 %v2417_v40 }
0x2e8a   :  { %v8289_v41 = vpop.eup %8288 }
0x2e8b   :  { %v2421_v43 = vmul.f32 0.0, %v8289_v41 }
0x2eee   :  { %v2424_v42 = vpop.permute.xlu1 %2423 }
0x2eef   :  { %v2426_v11 = vmul.f32 %v8289_v41, %v2424_v42 }
0x2ef1   :  { %2428 = vrot.lane.b32.xlu0 %v2426_v11, %s9149_s23 }
0x2f63   :  { %v2429_v44 = vpop.permute.xlu0 %2428 }
0x2f64   :  { %v2431_v45 = vadd.f32 %v2429_v44, %v2421_v43 }
0x2f66   :  { %8290 = vtanh.f32 %v2431_v45 }
0x2f70   :  { %v8291_v29 = vpop.eup %8290 }
0x2f71   :  { %2434 = vrot.lane.b32.xlu1 %v8291_v29, %s9153_s28 }
0x2fe3   :  { %v2435_v47 = vpop.permute.xlu1 %2434 }
0x2fe4   :  { %v9663_v48 = vmul.f32 %v8289_v41, %v2435_v47 }
0x2fe6   :  { %2439 = vrot.lane.b32.xlu0 %v9663_v48, %s9154_s1 }
0x3058   :  { %v2440_v49 = vpop.permute.xlu0 %2439 }
0x3059   :  { %7688 = vmatmul.mubr.msk.f32.vlgmr.msra.gmra.mrb[20].mxu1 %vm390_vm1, %v2440_v49 }
0x305a   :  { %7992 = vmatpush3.bf16.msra.mxu1 %v9636_v25  ;;  %7701 = vmatprep.mubr.msk.f32.mxu1 %vm9147_vm0, %v9146_v0 }
0x305b   :  { %7996 = vmatprep.subr.bf16.mxu1 %v9151_v24 }
0x312c   :  { %v2509_v50 = vpop.f32.mrb[20].mxu1 }
0x312d   :  { %v2513_v51 = vadd.f32 %v2509_v50, %v9657_v35  ;;  %v7689_v52 = vpop.f32.mrb[21].mxu1 }
0x312f   :  { %8292 = vtanh.f32 %v2513_v51  ;;  %v7313_v54 = vmul.f32 -1.442695, %v2513_v51 }
0x3131   :  { %8294 = vpow2.f32 %v7313_v54 }
0x3139   :  { %v8293_v53 = vpop.eup %8292 }
0x313a   :  { %2523 = vrot.lane.b32.xlu1 %v8293_v53, %s9152_s4 }
0x313b   :  { %v8295_v56 = vpop.eup %8294 }
0x313c   :  { %v2517_v57 = vadd.f32 1.0, %v8295_v56 }
0x313e   :  { %8296 = vrcp.f32 %v2517_v57 }
0x3148   :  { %v8297_v58 = vpop.eup %8296 }
0x3149   :  { %v2521_v61 = vmul.f32 %v8297_v58, %v2431_v45 }
0x31ac   :  { %v2524_v59 = vpop.permute.xlu1 %2523 }
0x31ad   :  { %v2526_v60 = vmul.f32 %v8297_v58, %v2524_v59 }
0x31af   :  { %2528 = vrot.lane.b32.xlu0 %v2526_v60, %s9149_s23 }
0x3221   :  { %v2529_v62 = vpop.permute.xlu0 %2528 }
0x3222   :  { %v2531_v63 = vadd.f32 %v2529_v62, %v2521_v61 }
0x3224   :  { %8298 = vtanh.f32 %v2531_v63 }
0x322e   :  { %v8299_v1 = vpop.eup %8298 }
0x322f   :  { %2534 = vrot.lane.b32.xlu1 %v8299_v1, %s9153_s28 }
0x32a1   :  { %v2535_v2 = vpop.permute.xlu1 %2534 }
0x32a2   :  { %v2537_v3 = vmul.f32 %v8297_v58, %v2535_v2 }
0x32a4   :  { %2539 = vrot.lane.b32.xlu0 %v2537_v3, %s9154_s1  ;;  %v2938_v20 = vrot.slane %v2537_v3, 6 }
0x32a6   :  { %v2947_v13 = vsel %vm1315_vm3, %v9663_v48, %v2938_v20  ;;  %v356_v20 = vld [vmem:[%s10239_s27 + $0x8] sm:$0xff] }
0x3316   :  { %v2540_v5 = vpop.permute.xlu0 %2539 }
0x3317   :  { %7695 = vmatmul.mubr.msk.f32.vlgmr.msra.gmra.mrb[20].mxu0 %vm390_vm1, %v2540_v5 }
0x3318   :  { %7995 = vmatpush3.bf16.msra.mxu0 %v9636_v25  ;;  %7708 = vmatprep.mubr.msk.f32.mxu0 %vm9147_vm0, %v9146_v0 }
0x33ea   :  { %v2609_v4 = vpop.f32.mrb[20].mxu0 }
0x33eb   :  { %v2613_v6 = vadd.f32 %v2609_v4, %v9657_v35  ;;  %v7696_v7 = vpop.f32.mrb[21].mxu0 }
0x33ed   :  { %8300 = vtanh.f32 %v2613_v6  ;;  %v7315_v9 = vmul.f32 -1.442695, %v2613_v6 }
0x33ef   :  { %8302 = vpow2.f32 %v7315_v9 }
0x33f7   :  { %v8301_v8 = vpop.eup %8300 }
0x33f8   :  { %2623 = vrot.lane.b32.xlu1 %v8301_v8, %s9152_s4 }
0x33f9   :  { %v8303_v10 = vpop.eup %8302 }
0x33fa   :  { %v2617_v12 = vadd.f32 1.0, %v8303_v10 }
0x33fc   :  { %8304 = vrcp.f32 %v2617_v12 }
0x3406   :  { %v8305_v14 = vpop.eup %8304 }
0x3407   :  { %v2621_v17 = vmul.f32 %v8305_v14, %v2531_v63 }
0x346a   :  { %v2624_v15 = vpop.permute.xlu1 %2623 }
0x346b   :  { %v2626_v16 = vmul.f32 %v8305_v14, %v2624_v15 }
0x346d   :  { %2628 = vrot.lane.b32.xlu0 %v2626_v16, %s9149_s23 }
0x34df   :  { %v2629_v18 = vpop.permute.xlu0 %2628 }
0x34e0   :  { %v2631_v19 = vadd.f32 %v2629_v18, %v2621_v17  ;;  %v353_v17 = vld [vmem:[%s10238_s2] sm:$0xff]  ;;  %v354_v18 = vld [vmem:[%s10238_s2 + $0x8] sm:$0xff] }
0x34e2   :  { %8306 = vtanh.f32 %v2631_v19 }
0x34ec   :  { %v8307_v55 = vpop.eup %8306 }
0x34ed   :  { %2634 = vrot.lane.b32.xlu1 %v8307_v55, %s9153_s28  ;;  %v7999_v55 = vpack.c.bf16 %v354_v18, %v353_v17 }
0x34ef   :  { %8000 = vmatprep.subr.bf16.mxu0 %v7999_v55 }
0x355f   :  { %v2635_v21 = vpop.permute.xlu1 %2634 }
0x3560   :  { %v2637_v22 = vmul.f32 %v8305_v14, %v2635_v21 }
0x3562   :  { %v2940_v23 = vrot.slane %v2637_v22, 4  ;;  %2639 = vrot.lane.b32.xlu0 %v2637_v22, %s9154_s1 }
0x3564   :  { %v2948_v26 = vsel %vm1317_vm4, %v2947_v13, %v2940_v23 }
0x35d4   :  { %v2640_v28 = vpop.permute.xlu0 %2639 }
0x35d5   :  { %7702 = vmatmul.mubr.msk.f32.vlgmr.msra.gmra.mrb[22].mxu1 %vm390_vm1, %v2640_v28 }
0x35d6   :  { %7998 = vmatpush3.bf16.msra.mxu1 %v9636_v25  ;;  %7715 = vmatprep.mubr.msk.f32.mxu1 %vm9147_vm0, %v9146_v0 }
0x35d7   :  { %8003 = vmatprep.subr.bf16.mxu1 %v9151_v24 }
0x36a8   :  { %v2709_v30 = vpop.f32.mrb[22].mxu1 }
0x36a9   :  { %v2713_v31 = vadd.f32 %v2709_v30, %v9657_v35  ;;  %v7703_v32 = vpop.f32.mrb[23].mxu1 }
0x36ab   :  { %8308 = vtanh.f32 %v2713_v31  ;;  %v7317_v34 = vmul.f32 -1.442695, %v2713_v31 }
0x36ad   :  { %8310 = vpow2.f32 %v7317_v34 }
0x36b5   :  { %v8309_v33 = vpop.eup %8308 }
0x36b6   :  { %2723 = vrot.lane.b32.xlu1 %v8309_v33, %s9152_s4  ;;  %v7322_v33 = vld [vmem:[%s10240_s8] ss:$0 sm:$0xff] }
0x36b7   :  { %v8311_v36 = vpop.eup %8310 }
0x36b8   :  { %v2717_v37 = vadd.f32 1.0, %v8311_v36 }
0x36ba   :  { %8312 = vrcp.f32 %v2717_v37 }
0x36c4   :  { %v8313_v38 = vpop.eup %8312 }
0x36c5   :  { %v2721_v39 = vmul.f32 %v8313_v38, %v2631_v19  ;;  %v355_v19 = vld [vmem:[%s10239_s27] sm:$0xff] }
0x36c6   :  { %v9718_v21 = vpack.c.bf16 %v356_v20, %v355_v19 }
0x3728   :  { %v2724_v25 = vpop.permute.xlu1 %2723 }
0x3729   :  { %v2726_v46 = vmul.f32 %v8313_v38, %v2724_v25 }
0x372b   :  { %2728 = vrot.lane.b32.xlu0 %v2726_v46, %s9149_s23 }
0x379d   :  { %v2729_v40 = vpop.permute.xlu0 %2728 }
0x379e   :  { %v2731_v41 = vadd.f32 %v2729_v40, %v2721_v39 }
0x37a0   :  { %8314 = vtanh.f32 %v2731_v41 }
0x37aa   :  { %v8315_v42 = vpop.eup %8314 }
0x37ab   :  { %2734 = vrot.lane.b32.xlu1 %v8315_v42, %s9153_s28 }
0x381d   :  { %v2735_v11 = vpop.permute.xlu1 %2734 }
0x381e   :  { %v2737_v43 = vmul.f32 %v8313_v38, %v2735_v11 }
0x3820   :  { %v2942_v44 = vrot.slane %v2737_v43, 2  ;;  %2739 = vrot.lane.b32.xlu0 %v2737_v43, %s9154_s1 }
0x3822   :  { %v2949_v45 = vsel %vm1319_vm5, %v2948_v26, %v2942_v44 }
0x3892   :  { %v2740_v29 = vpop.permute.xlu0 %2739 }
0x3893   :  { %7709 = vmatmul.mubr.msk.f32.vlgmr.msra.gmra.mrb[22].mxu0 %vm390_vm1, %v2740_v29 }
0x3894   :  { %8002 = vmatpush3.bf16.msra.mxu0 %v7999_v55 }
0x3895   :  { %8006 = vmatprep.subr.bf16.mxu0 %v9151_v24 }
0x3966   :  { %v2809_v47 = vpop.f32.mrb[22].mxu0 }
0x3967   :  { %v2813_v48 = vadd.f32 %v2809_v47, %v9657_v35  ;;  %v7710_v49 = vpop.f32.mrb[23].mxu0 }
0x3969   :  { %8316 = vtanh.f32 %v2813_v48  ;;  %v7319_v51 = vmul.f32 -1.442695, %v2813_v48 }
0x396b   :  { %8318 = vpow2.f32 %v7319_v51 }
0x3973   :  { %v8317_v50 = vpop.eup %8316 }
0x3974   :  { %2823 = vrot.lane.b32.xlu1 %v8317_v50, %s9152_s4 }
0x3975   :  { %v8319_v52 = vpop.eup %8318 }
0x3976   :  { %v2817_v53 = vadd.f32 1.0, %v8319_v52 }
0x3978   :  { %8320 = vrcp.f32 %v2817_v53 }
0x3982   :  { %v8321_v54 = vpop.eup %8320 }
0x3983   :  { %v2821_v58 = vmul.f32 %v8321_v54, %v2731_v41 }
0x39e6   :  { %v2824_v56 = vpop.permute.xlu1 %2823 }
0x39e7   :  { %v2826_v57 = vmul.f32 %v8321_v54, %v2824_v56 }
0x39e9   :  { %2828 = vrot.lane.b32.xlu0 %v2826_v57, %s9149_s23 }
0x3a5b   :  { %v2829_v59 = vpop.permute.xlu0 %2828 }
0x3a5c   :  { %v2831_v60 = vadd.f32 %v2829_v59, %v2821_v58 }
0x3a5e   :  { %8322 = vtanh.f32 %v2831_v60 }
0x3a68   :  { %v8323_v61 = vpop.eup %8322 }
0x3a69   :  { %2834 = vrot.lane.b32.xlu1 %v8323_v61, %s9153_s28 }
0x3adb   :  { %v2835_v62 = vpop.permute.xlu1 %2834 }
0x3adc   :  { %v2837_v63 = vmul.f32 %v8321_v54, %v2835_v62 }
0x3ade   :  { %2839 = vrot.lane.b32.xlu0 %v2837_v63, %s9154_s1 }
0x3b50   :  { %v2840_v1 = vpop.permute.xlu0 %2839 }
0x3b51   :  { %7716 = vmatmul.mubr.msk.f32.vlgmr.msra.gmra.mrb[24].mxu1 %vm390_vm1, %v2840_v1 }
0x3b52   :  { %7729 = vmatprep.mubr.msk.f32.mxu1 %vm9147_vm0, %v9146_v0  ;;  %8005 = vmatpush3.bf16.msra.mxu1 %v9718_v21 }
0x3b53   :  { %8009 = vmatprep.subr.bf16.mxu1 %v9151_v24 }
0x3b55   :  { %7730 = vmatmul.mubr.f32.vlgmr.msra.gmra.mrb[26].mxu1 %v9146_v0 }
0x3b56   :  { %8011 = vmatpush3.bf16.msra.mxu1 %v9718_v21  ;;  %7743 = vmatprep.mubr.msk.f32.mxu1 %vm9147_vm0, %v9146_v0 }
0x3b57   :  { %8015 = vmatprep.subr.bf16.mxu1 %v9151_v24 }
0x3c24   :  { %v2909_v2 = vpop.f32.mrb[24].mxu1 }
0x3c25   :  { %v2913_v3 = vadd.f32 %v2909_v2, %v9657_v35  ;;  %v7717_v5 = vpop.f32.mrb[25].mxu1 }
0x3c27   :  { %8324 = vtanh.f32 %v2913_v3  ;;  %v7321_v6 = vmul.f32 -1.442695, %v2913_v3 }
0x3c28   :  { %v3108_v31 = vpop.f32.mrb[26].mxu1 }
0x3c29   :  { %8326 = vpow2.f32 %v7321_v6  ;;  %v7731_v32 = vpop.f32.mrb[27].mxu1 }
0x3c31   :  { %v8325_v4 = vpop.eup %8324 }
0x3c32   :  { %2923 = vrot.lane.b32.xlu1 %v8325_v4, %s9152_s4 }
0x3c33   :  { %v8327_v7 = vpop.eup %8326 }
0x3c34   :  { %v2917_v8 = vadd.f32 1.0, %v8327_v7 }
0x3c36   :  { %8328 = vrcp.f32 %v2917_v8 }
0x3c40   :  { %v8329_v9 = vpop.eup %8328 }
0x3c41   :  { %v2921_v35 = vmul.f32 %v8329_v9, %v2831_v60 }
0x3ca4   :  { %v2924_v10 = vpop.permute.xlu1 %2923 }
0x3ca5   :  { %v2926_v12 = vmul.f32 %v8329_v9, %v2924_v10 }
0x3ca7   :  { %2928 = vrot.lane.b32.xlu0 %v2926_v12, %s9149_s23 }
0x3cab   :  { %2959 = vrot.lane.b32.xlu0 %v2949_v45, %s9154_s1 }
0x3d19   :  { %v2929_v14 = vpop.permute.xlu0 %2928 }
0x3d1a   :  { %v2931_v15 = vadd.f32 %v2929_v14, %v2921_v35 }
0x3d1c   :  { %8330 = vtanh.f32 %v2931_v15 }
0x3d1d   :  { %v2960_v16 = vpop.permute.xlu0 %2959 }
0x3d1e   :  { %7722 = vmatprep.mubr.msk.f32.mxu0 %vm390_vm1, %v2960_v16 }
0x3d26   :  { %v8331_v22 = vpop.eup %8330 }
0x3d27   :  { %2934 = vrot.lane.b32.xlu1 %v8331_v22, %s9153_s28 }
0x3d99   :  { %v2935_v23 = vpop.permute.xlu1 %2934 }
0x3d9a   :  { %v2937_v13 = vmul.f32 %v8329_v9, %v2935_v23 }
0x3d9c   :  { %v2945_v26 = vrot.slane %v2937_v13, 6 }
0x3d9e   :  { %v2950_v28 = vsel %vm1315_vm3, %v2837_v63, %v2945_v26 }
0x3d9f   :  { %2961 = vrot.lane.b32.xlu1 %v2950_v28, %s9154_s1 }
0x3e11   :  { %v2962_v30 = vpop.permute.xlu1 %2961 }
0x3e12   :  { %7723 = vmatmul.mubr.msk.f32.vlgmr.msra.gmra.mrb[24].mxu0 %vm390_vm1, %v2962_v30 }
0x3e13   :  { %8008 = vmatpush3.bf16.msra.mxu0 %v9718_v21  ;;  %7736 = vmatprep.mubr.msk.f32.mxu0 %vm9147_vm0, %v9146_v0 }
0x3e14   :  { %8012 = vmatprep.subr.bf16.mxu0 %v9151_v24 }
0x3ee5   :  { %v7724_v34 = vpop.f32.mrb[24].mxu0 }
0x3ee6   :  { %v9737_v36 = vadd.f32 %v7724_v34, %v7322_v33  ;;  %v3033_v37 = vpop.f32.mrb[25].mxu0 }
0x3ee7   :  { %v9739_v38 = vadd.f32 %v7322_v33, %v3033_v37 }
0x3ee9   :  { %v3112_v25 = vadd.f32 %v3108_v31, %v9739_v38 }
0x3eeb   :  { %8332 = vtanh.f32 %v3112_v25  ;;  %v7325_v39 = vmul.f32 -1.442695, %v3112_v25 }
0x3eed   :  { %8334 = vpow2.f32 %v7325_v39 }
0x3ef5   :  { %v8333_v46 = vpop.eup %8332 }
0x3ef6   :  { %3122 = vrot.lane.b32.xlu0 %v8333_v46, %s9152_s4 }
0x3ef7   :  { %v8335_v40 = vpop.eup %8334 }
0x3ef8   :  { %v3116_v41 = vadd.f32 1.0, %v8335_v40 }
0x3efa   :  { %8336 = vrcp.f32 %v3116_v41 }
0x3f04   :  { %v8337_v42 = vpop.eup %8336 }
0x3f05   :  { %v3120_v44 = vmul.f32 0.0, %v8337_v42 }
0x3f68   :  { %v3123_v11 = vpop.permute.xlu0 %3122 }
0x3f69   :  { %v3125_v43 = vmul.f32 %v8337_v42, %v3123_v11 }
0x3f6b   :  { %3127 = vrot.lane.b32.xlu1 %v3125_v43, %s9149_s23 }
0x3fdd   :  { %v3128_v45 = vpop.permute.xlu1 %3127 }
0x3fde   :  { %v3130_v29 = vadd.f32 %v3128_v45, %v3120_v44 }
0x3fe0   :  { %8338 = vtanh.f32 %v3130_v29  ;;  %v3224_v63 = vrot.slane %v3130_v29, 6 }
0x3fea   :  { %v8339_v47 = vpop.eup %8338 }
0x3feb   :  { %3133 = vrot.lane.b32.xlu0 %v8339_v47, %s9153_s28 }
0x405d   :  { %v3134_v48 = vpop.permute.xlu0 %3133 }
0x405e   :  { %v9745_v49 = vmul.f32 %v8337_v42, %v3134_v48 }
0x4060   :  { %3138 = vrot.lane.b32.xlu1 %v9745_v49, %s9154_s1 }
0x40d2   :  { %v3139_v50 = vpop.permute.xlu1 %3138 }
0x40d3   :  { %7737 = vmatmul.mubr.msk.f32.vlgmr.msra.gmra.mrb[26].mxu0 %vm390_vm1, %v3139_v50 }
0x40d4   :  { %8014 = vmatpush3.bf16.msra.mxu0 %v9718_v21  ;;  %7750 = vmatprep.mubr.msk.f32.mxu0 %vm9147_vm0, %v9146_v0 }
0x40d5   :  { %8018 = vmatprep.subr.bf16.mxu0 %v9151_v24 }
0x41a6   :  { %v3208_v51 = vpop.f32.mrb[26].mxu0 }
0x41a7   :  { %v3213_v52 = vrot.slane %v3208_v51, 6  ;;  %v7738_v53 = vpop.f32.mrb[27].mxu0 }
0x41a9   :  { %v3215_v54 = vadd.f32 %v3213_v52, %v9739_v38 }
0x41ab   :  { %8340 = vtanh.f32 %v3215_v54  ;;  %v7327_v57 = vmul.f32 -1.442695, %v3215_v54 }
0x41ad   :  { %8342 = vpow2.f32 %v7327_v57 }
0x41b5   :  { %v8341_v56 = vpop.eup %8340 }
0x41b6   :  { %3228 = vrot.lane.b32.xlu0 %v8341_v56, %s9152_s4 }
0x41b7   :  { %v8343_v58 = vpop.eup %8342 }
0x41b8   :  { %v3219_v59 = vadd.f32 1.0, %v8343_v58 }
0x41ba   :  { %8344 = vrcp.f32 %v3219_v59 }
0x41c4   :  { %v8345_v60 = vpop.eup %8344 }
0x41c5   :  { %v3226_v1 = vmul.f32 %v8345_v60, %v3224_v63 }
0x4228   :  { %v3229_v61 = vpop.permute.xlu0 %3228 }
0x4229   :  { %v3231_v62 = vmul.f32 %v8345_v60, %v3229_v61 }
0x422b   :  { %3233 = vrot.lane.b32.xlu1 %v3231_v62, %s9149_s23 }
0x429d   :  { %v3234_v2 = vpop.permute.xlu1 %3233 }
0x429e   :  { %v3236_v3 = vadd.f32 %v3234_v2, %v3226_v1 }
0x42a0   :  { %8346 = vtanh.f32 %v3236_v3  ;;  %v3331_v20 = vrot.slane %v3236_v3, 6 }
0x42aa   :  { %v8347_v5 = vpop.eup %8346 }
0x42ab   :  { %3239 = vrot.lane.b32.xlu0 %v8347_v5, %s9153_s28 }
0x431d   :  { %v3240_v4 = vpop.permute.xlu0 %3239 }
0x431e   :  { %v3242_v6 = vmul.f32 %v8345_v60, %v3240_v4 }
0x4320   :  { %v3244_v7 = vrot.slane %v3242_v6, 2  ;;  %v3667_v31 = vsel %vm1315_vm3, %v9745_v49, %v3242_v6 }
0x4322   :  { %3245 = vrot.lane.b32.xlu1 %v3244_v7, %s9154_s1 }
0x4394   :  { %v3246_v8 = vpop.permute.xlu1 %3245 }
0x4395   :  { %7744 = vmatmul.mubr.msk.f32.vlgmr.msra.gmra.mrb[28].mxu1 %vm390_vm1, %v3246_v8 }
0x4396   :  { %8017 = vmatpush3.bf16.msra.mxu1 %v9718_v21  ;;  %7757 = vmatprep.mubr.msk.f32.mxu1 %vm9147_vm0, %v9146_v0 }
0x4468   :  { %v3315_v9 = vpop.f32.mrb[28].mxu1 }
0x4469   :  { %v3320_v10 = vrot.slane %v3315_v9, 4  ;;  %v7745_v12 = vpop.f32.mrb[29].mxu1 }
0x446b   :  { %v3322_v35 = vadd.f32 %v3320_v10, %v9739_v38 }
0x446d   :  { %8348 = vtanh.f32 %v3322_v35  ;;  %v7329_v15 = vmul.f32 -1.442695, %v3322_v35 }
0x446f   :  { %8350 = vpow2.f32 %v7329_v15 }
0x4477   :  { %v8349_v14 = vpop.eup %8348 }
0x4478   :  { %3335 = vrot.lane.b32.xlu0 %v8349_v14, %s9152_s4 }
0x4479   :  { %v8351_v16 = vpop.eup %8350 }
0x447a   :  { %v3326_v17 = vadd.f32 1.0, %v8351_v16 }
0x447c   :  { %8352 = vrcp.f32 %v3326_v17 }
0x4486   :  { %v8353_v18 = vpop.eup %8352 }
0x4487   :  { %v3333_v22 = vmul.f32 %v8353_v18, %v3331_v20 }
0x44ea   :  { %v3336_v19 = vpop.permute.xlu0 %3335 }
0x44eb   :  { %v3338_v55 = vmul.f32 %v8353_v18, %v3336_v19 }
0x44ed   :  { %3340 = vrot.lane.b32.xlu1 %v3338_v55, %s9149_s23 }
0x455f   :  { %v3341_v23 = vpop.permute.xlu1 %3340 }
0x4560   :  { %v3343_v13 = vadd.f32 %v3341_v23, %v3333_v22 }
0x4562   :  { %8354 = vtanh.f32 %v3343_v13  ;;  %v3438_v45 = vrot.slane %v3343_v13, 6 }
0x456c   :  { %v8355_v26 = vpop.eup %8354 }
0x456d   :  { %3346 = vrot.lane.b32.xlu0 %v8355_v26, %s9153_s28 }
0x45df   :  { %v3347_v28 = vpop.permute.xlu0 %3346 }
0x45e0   :  { %v3349_v30 = vmul.f32 %v8353_v18, %v3347_v28  ;;  %v358_v28 = vld [vmem:[%s10241_s7] sm:$0xff] }
0x45e2   :  { %v3351_v32 = vrot.slane %v3349_v30, 4  ;;  %v3668_v33 = vsel %vm1317_vm4, %v3667_v31, %v3349_v30  ;;  %v359_v30 = vld [vmem:[%s10241_s7 + $0x8] sm:$0xff]  ;;  %v361_v31 = vld [vmem:[%s10242_s20] sm:$0xff] }
0x45e4   :  { %3352 = vrot.lane.b32.xlu1 %v3351_v32, %s9154_s1  ;;  %v8021_v32 = vpack.c.bf16 %v359_v30, %v358_v28 }
0x45e6   :  { %8022 = vmatprep.subr.bf16.mxu1 %v8021_v32 }
0x4656   :  { %v3353_v34 = vpop.permute.xlu1 %3352 }
0x4657   :  { %7751 = vmatmul.mubr.msk.f32.vlgmr.msra.gmra.mrb[28].mxu0 %vm390_vm1, %v3353_v34  ;;  %v382_v34 = vld [vmem:[%s10243_s10] sm:$0xff] }
0x4658   :  { %8020 = vmatpush3.bf16.msra.mxu0 %v9718_v21  ;;  %7764 = vmatprep.mubr.msk.f32.mxu0 %vm9147_vm0, %v9146_v0 }
0x472a   :  { %v3422_v37 = vpop.f32.mrb[28].mxu0 }
0x472b   :  { %v3427_v25 = vrot.slane %v3422_v37, 2  ;;  %v7752_v46 = vpop.f32.mrb[29].mxu0 }
0x472c   :  { %v383_v46 = vld [vmem:[%s10243_s10 + $0x8] sm:$0xf] }
0x472d   :  { %v3429_v39 = vadd.f32 %v3427_v25, %v9739_v38 }
0x472f   :  { %8356 = vtanh.f32 %v3429_v39  ;;  %v7331_v41 = vmul.f32 -1.442695, %v3429_v39  ;;  %v9804_v39 = vld [vmem:[#allocation11] sm:$0xff] }
0x4731   :  { %8358 = vpow2.f32 %v7331_v41 }
0x4739   :  { %v8357_v40 = vpop.eup %8356 }
0x473a   :  { %3442 = vrot.lane.b32.xlu0 %v8357_v40, %s9152_s4 }
0x473b   :  { %v8359_v42 = vpop.eup %8358 }
0x473c   :  { %v3433_v11 = vadd.f32 1.0, %v8359_v42 }
0x473e   :  { %8360 = vrcp.f32 %v3433_v11 }
0x4748   :  { %v8361_v43 = vpop.eup %8360 }
0x4749   :  { %v3440_v29 = vmul.f32 %v8361_v43, %v3438_v45 }
0x47ac   :  { %v3443_v44 = vpop.permute.xlu0 %3442 }
0x47ad   :  { %v3445_v21 = vmul.f32 %v8361_v43, %v3443_v44  ;;  %v7339_v44 = vld [vmem:[#allocation13] ss:$0 sm:$0xff] }
0x47af   :  { %3447 = vrot.lane.b32.xlu1 %v3445_v21, %s9149_s23 }
0x4821   :  { %v3448_v47 = vpop.permute.xlu1 %3447 }
0x4822   :  { %v3450_v48 = vadd.f32 %v3448_v47, %v3440_v29  ;;  %v7336_v29 = vld [vmem:[%s10244_s6] ss:$0 sm:$0xff] }
0x4824   :  { %8362 = vtanh.f32 %v3450_v48  ;;  %v3542_v2 = vrot.slane %v3450_v48, 6 }
0x482e   :  { %v8363_v38 = vpop.eup %8362 }
0x482f   :  { %3453 = vrot.lane.b32.xlu0 %v8363_v38, %s9153_s28 }
0x48a1   :  { %v3454_v49 = vpop.permute.xlu0 %3453 }
0x48a2   :  { %v3456_v50 = vmul.f32 %v8361_v43, %v3454_v49 }
0x48a4   :  { %v3458_v51 = vrot.slane %v3456_v50, 6  ;;  %v3669_v52 = vsel %vm1319_vm5, %v3668_v33, %v3456_v50  ;;  %v362_v33 = vld [vmem:[%s10242_s20 + $0x8] sm:$0xff] }
0x48a5   :  { %v8025_v37 = vpack.c.bf16 %v362_v33, %v361_v31 }
0x48a6   :  { %3459 = vrot.lane.b32.xlu1 %v3458_v51, %s9154_s1 }
0x48a7   :  { %8026 = vmatprep.subr.bf16.mxu0 %v8025_v37 }
0x4918   :  { %v3460_v53 = vpop.permute.xlu1 %3459 }
0x4919   :  { %7758 = vmatmul.mubr.msk.f32.vlgmr.msra.gmra.mrb[30].mxu1 %vm390_vm1, %v3460_v53 }
0x491a   :  { %8024 = vmatpush3.bf16.msra.mxu1 %v8021_v32 }
0x491b   :  { %7781 = vmatprep.subr.mxu1 %v9146_v0 }
0x49ec   :  { %v3529_v54 = vpop.f32.mrb[30].mxu1 }
0x49ed   :  { %v3533_v56 = vadd.f32 %v3529_v54, %v9737_v36  ;;  %v7759_v57 = vpop.f32.mrb[31].mxu1 }
0x49ef   :  { %8364 = vtanh.f32 %v3533_v56  ;;  %v7333_v59 = vmul.f32 -1.442695, %v3533_v56 }
0x49f1   :  { %8366 = vpow2.f32 %v7333_v59 }
0x49f9   :  { %v8365_v58 = vpop.eup %8364 }
0x49fa   :  { %3546 = vrot.lane.b32.xlu0 %v8365_v58, %s9152_s4 }
0x49fb   :  { %v8367_v60 = vpop.eup %8366 }
0x49fc   :  { %v3537_v61 = vadd.f32 1.0, %v8367_v60 }
0x49fe   :  { %8368 = vrcp.f32 %v3537_v61 }
0x4a08   :  { %v8369_v62 = vpop.eup %8368 }
0x4a09   :  { %v3544_v3 = vmul.f32 %v8369_v62, %v3542_v2 }
0x4a6c   :  { %v3547_v63 = vpop.permute.xlu0 %3546 }
0x4a6d   :  { %v3549_v1 = vmul.f32 %v8369_v62, %v3547_v63 }
0x4a6f   :  { %3551 = vrot.lane.b32.xlu1 %v3549_v1, %s9149_s23 }
0x4ae1   :  { %v3552_v5 = vpop.permute.xlu1 %3551 }
0x4ae2   :  { %v3554_v4 = vadd.f32 %v3552_v5, %v3544_v3 }
0x4ae4   :  { %8370 = vtanh.f32 %v3554_v4 }
0x4aee   :  { %v8371_v6 = vpop.eup %8370 }
0x4aef   :  { %3557 = vrot.lane.b32.xlu0 %v8371_v6, %s9153_s28 }
0x4b61   :  { %v3558_v7 = vpop.permute.xlu0 %3557 }
0x4b62   :  { %v3560_v8 = vmul.f32 %v8369_v62, %v3558_v7 }
0x4b64   :  { %3562 = vrot.lane.b32.xlu1 %v3560_v8, %s9154_s1 }
0x4bd6   :  { %v3563_v9 = vpop.permute.xlu1 %3562 }
0x4bd7   :  { %7765 = vmatmul.mubr.msk.f32.vlgmr.msra.gmra.mrb[30].mxu0 %vm390_vm1, %v3563_v9 }
0x4bd8   :  { %7778 = vmatprep.mubr.msk.f32.mxu0 %vm390_vm1, %v382_v34  ;;  %8028 = vmatpush3.bf16.msra.mxu0 %v8025_v37 }
0x4bd9   :  { %7786 = vmatprep.subr.mxu0 %v9146_v0 }
0x4bdb   :  { %7779 = vmatmul.mubr.msk.f32.vlgmr.msra.gmra.mrb[32].mxu0 %vm390_vm1, %v383_v46 }
0x4bdc   :  { %7787 = vmatpush3.msra.mxu0 %v9804_v39  ;;  %7788 = vmatprep.mubr.msk.f32.mxu0 %vm9147_vm0, %v9146_v0 }
0x4bdd   :  { %7796 = vmatprep.subr.mxu0 %v9146_v0 }
0x4caa   :  { %v3632_v10 = vpop.f32.mrb[30].mxu0 }
0x4cab   :  { %v3637_v12 = vrot.slane %v3632_v10, 6  ;;  %v7766_v35 = vpop.f32.mrb[31].mxu0 }
0x4cad   :  { %v3639_v14 = vadd.f32 %v3637_v12, %v9737_v36  ;;  %v3648_v36 = vrot.slane %v3554_v4, 6 }
0x4cae   :  { %v7780_v43 = vpop.f32.mrb[32].mxu0 }
0x4caf   :  { %8372 = vtanh.f32 %v3639_v14  ;;  %v7335_v16 = vmul.f32 -1.442695, %v3639_v14  ;;  %v3863_v21 = vpop.f32.mrb[33].mxu0  ;;  %v9822_v45 = vadd.f32 %v7780_v43, %v7339_v44 }
0x4cb0   :  { %v9825_v49 = vadd.f32 %v7339_v44, %v3863_v21 }
0x4cb1   :  { %8374 = vpow2.f32 %v7335_v16 }
0x4cb9   :  { %v8373_v15 = vpop.eup %8372 }
0x4cba   :  { %3652 = vrot.lane.b32.xlu0 %v8373_v15, %s9152_s4 }
0x4cbb   :  { %v8375_v17 = vpop.eup %8374 }
0x4cbc   :  { %v3643_v18 = vadd.f32 1.0, %v8375_v17 }
0x4cbe   :  { %8376 = vrcp.f32 %v3643_v18 }
0x4cc8   :  { %v8377_v19 = vpop.eup %8376 }
0x4cc9   :  { %v3650_v22 = vmul.f32 %v8377_v19, %v3648_v36 }
0x4d2c   :  { %v3653_v55 = vpop.permute.xlu0 %3652 }
0x4d2d   :  { %v3655_v20 = vmul.f32 %v8377_v19, %v3653_v55 }
0x4d2f   :  { %3657 = vrot.lane.b32.xlu1 %v3655_v20, %s9149_s23 }
0x4d33   :  { %3679 = vrot.lane.b32.xlu1 %v3669_v52, %s9154_s1 }
0x4da1   :  { %v3658_v23 = vpop.permute.xlu1 %3657 }
0x4da2   :  { %v3660_v13 = vadd.f32 %v3658_v23, %v3650_v22 }
0x4da4   :  { %8378 = vtanh.f32 %v3660_v13 }
0x4da5   :  { %v3680_v26 = vpop.permute.xlu1 %3679 }
0x4da6   :  { %7771 = vmatprep.mubr.msk.f32.mxu1 %vm390_vm1, %v3680_v26 }
0x4dae   :  { %v8379_v25 = vpop.eup %8378 }
0x4daf   :  { %3663 = vrot.lane.b32.xlu0 %v8379_v25, %s9153_s28 }
0x4e21   :  { %v3664_v40 = vpop.permute.xlu0 %3663 }
0x4e22   :  { %v3666_v41 = vmul.f32 %v8377_v19, %v3664_v40 }
0x4e24   :  { %v3670_v42 = vsel %vm1315_vm3, %v3560_v8, %v3666_v41 }
0x4e25   :  { %3681 = vrot.lane.b32.xlu0 %v3670_v42, %s9154_s1 }
0x4e97   :  { %v3682_v11 = vpop.permute.xlu0 %3681 }
0x4e98   :  { %7772 = vmatmul.mubr.msk.f32.vlgmr.msra.gmra.mrb[32].mxu1 %vm390_vm1, %v3682_v11 }
0x4e99   :  { %7782 = vmatpush3.msra.mxu1 %v9804_v39  ;;  %7783 = vmatprep.mubr.msk.f32.mxu1 %vm9147_vm0, %v9146_v0 }
0x4e9a   :  { %7791 = vmatprep.subr.mxu1 %v9146_v0 }
0x4e9c   :  { %7784 = vmatmul.mubr.f32.vlgmr.msra.gmra.mrb[34].mxu1 %v9146_v0 }
0x4e9d   :  { %7792 = vmatpush3.msra.mxu1 %v9804_v39  ;;  %7793 = vmatprep.mubr.msk.f32.mxu1 %vm9147_vm0, %v9146_v0 }
0x4e9e   :  { %7801 = vmatprep.subr.mxu1 %v9146_v0 }
0x4f6b   :  { %v7773_v47 = vpop.f32.mrb[32].mxu1 }
0x4f6c   :  { %v3759_v48 = vadd.f32 %v7773_v47, %v7336_v29  ;;  %v3753_v38 = vpop.f32.mrb[33].mxu1 }
0x4f6d   :  { %v3754_v50 = vadd.f32 %v7336_v29, %v3753_v38 }
0x4f6e   :  { %3764 = vst.msk [vmem:[%s10245_s17 + $0x8] sm:$0xf] %vm3763_vm6, %v3759_v48  ;;  %v3766_v51 = vsub.f32 %v3759_v48, %v383_v46 }
0x4f6f   :  { %3762 = vst.msk [vmem:[%s10245_s17] sm:$0xff] %vm390_vm1, %v3754_v50  ;;  %v3765_v52 = vsub.f32 %v3754_v50, %v382_v34  ;;  %v3938_v53 = vpop.f32.mrb[34].mxu1 }
0x4f70   :  { %v3768_v54 = vmul.f32 %v3766_v51, %v3766_v51  ;;  %v3942_v56 = vadd.f32 %v3938_v53, %v9825_v49  ;;  %v7785_v57 = vpop.f32.mrb[35].mxu1 }
0x4f71   :  { %v3767_v58 = vmul.f32 %v3765_v52, %v3765_v52 }
0x4f72   :  { %8380 = vtanh.f32 %v3942_v56  ;;  %v3770_v59 = vsel %vm3763_vm6, %v3768_v54, 0.0  ;;  %v7342_v63 = vmul.f32 -1.442695, %v3942_v56 }
0x4f73   :  { %v3769_v60 = vsel %vm390_vm1, %v3767_v58, 0.0 }
0x4f74   :  { %v9832_v61 = vadd.f32 %v3770_v59, %v3769_v60  ;;  %8382 = vpow2.f32 %v7342_v63 }
0x4f7c   :  { %v8381_v62 = vpop.eup %8380 }
0x4f7d   :  { %3952 = vrot.lane.b32.xlu1 %v8381_v62, %s9148_s3 }
0x4f7e   :  { %v8383_v1 = vpop.eup %8382 }
0x4f7f   :  { %v3946_v2 = vadd.f32 1.0, %v8383_v1 }
0x4f81   :  { %8384 = vrcp.f32 %v3946_v2 }
0x4f8b   :  { %v8385_v3 = vpop.eup %8384 }
0x4f8c   :  { %v3950_v6 = vmul.f32 0.0, %v8385_v3 }
0x4fef   :  { %v3953_v5 = vpop.permute.xlu1 %3952 }
0x4ff0   :  { %v3955_v4 = vmul.f32 %v8385_v3, %v3953_v5 }
0x4ff2   :  { %3957 = vrot.lane.b32.xlu0 %v3955_v4, %s9134_s12 }
0x5064   :  { %v3958_v7 = vpop.permute.xlu0 %3957 }
0x5065   :  { %v3960_v8 = vadd.f32 %v3958_v7, %v3950_v6 }
0x5067   :  { %8386 = vtanh.f32 %v3960_v8  ;;  %v4054_v13 = vrot.slane %v3960_v8, 6 }
0x5071   :  { %v8387_v9 = vpop.eup %8386 }
0x5072   :  { %3963 = vrot.lane.b32.xlu1 %v8387_v9, %s9149_s23 }
0x50e4   :  { %v3964_v10 = vpop.permute.xlu1 %3963 }
0x50e5   :  { %v9837_v12 = vmul.f32 %v8385_v3, %v3964_v10 }
0x50e7   :  { %3968 = vrot.lane.b32.xlu0 %v9837_v12, %s9150_s26 }
0x5159   :  { %v3969_v35 = vpop.permute.xlu0 %3968 }
0x515a   :  { %7789 = vmatmul.mubr.msk.f32.vlgmr.msra.gmra.mrb[34].mxu0 %vm472_vm2, %v3969_v35 }
0x515b   :  { %7797 = vmatpush3.msra.mxu0 %v9804_v39  ;;  %7798 = vmatprep.mubr.msk.f32.mxu0 %vm9147_vm0, %v9146_v0 }
0x515c   :  { %7806 = vmatprep.subr.mxu0 %v9146_v0 }
0x522d   :  { %v4038_v14 = vpop.f32.mrb[34].mxu0 }
0x522e   :  { %v4043_v15 = vrot.slane %v4038_v14, 6  ;;  %v7790_v16 = vpop.f32.mrb[35].mxu0 }
0x5230   :  { %v4045_v17 = vadd.f32 %v4043_v15, %v9825_v49 }
0x5232   :  { %8388 = vtanh.f32 %v4045_v17  ;;  %v7344_v19 = vmul.f32 -1.442695, %v4045_v17 }
0x5234   :  { %8390 = vpow2.f32 %v7344_v19 }
0x523c   :  { %v8389_v18 = vpop.eup %8388 }
0x523d   :  { %4058 = vrot.lane.b32.xlu1 %v8389_v18, %s9148_s3 }
0x523e   :  { %v8391_v55 = vpop.eup %8390 }
0x523f   :  { %v4049_v20 = vadd.f32 1.0, %v8391_v55 }
0x5241   :  { %8392 = vrcp.f32 %v4049_v20 }
0x524b   :  { %v8393_v36 = vpop.eup %8392 }
0x524c   :  { %v4056_v26 = vmul.f32 %v8393_v36, %v4054_v13 }
0x52af   :  { %v4059_v22 = vpop.permute.xlu1 %4058 }
0x52b0   :  { %v4061_v23 = vmul.f32 %v8393_v36, %v4059_v22 }
0x52b2   :  { %4063 = vrot.lane.b32.xlu0 %v4061_v23, %s9134_s12 }
0x5324   :  { %v4064_v28 = vpop.permute.xlu0 %4063 }
0x5325   :  { %v4066_v30 = vadd.f32 %v4064_v28, %v4056_v26 }
0x5327   :  { %8394 = vtanh.f32 %v4066_v30  ;;  %v4161_v48 = vrot.slane %v4066_v30, 6 }
0x5331   :  { %v8395_v31 = vpop.eup %8394 }
0x5332   :  { %4069 = vrot.lane.b32.xlu1 %v8395_v31, %s9149_s23 }
0x53a4   :  { %v4070_v32 = vpop.permute.xlu1 %4069 }
0x53a5   :  { %v4072_v33 = vmul.f32 %v8393_v36, %v4070_v32 }
0x53a7   :  { %v4074_v34 = vrot.slane %v4072_v33, 2  ;;  %v4497_v56 = vsel %vm1315_vm3, %v9837_v12, %v4072_v33 }
0x53a9   :  { %4075 = vrot.lane.b32.xlu0 %v4074_v34, %s9150_s26 }
0x541b   :  { %v4076_v37 = vpop.permute.xlu0 %4075 }
0x541c   :  { %7794 = vmatmul.mubr.msk.f32.vlgmr.msra.gmra.mrb[36].mxu1 %vm472_vm2, %v4076_v37 }
0x541d   :  { %7802 = vmatpush3.msra.mxu1 %v9804_v39  ;;  %7803 = vmatprep.mubr.msk.f32.mxu1 %vm9147_vm0, %v9146_v0 }
0x54ef   :  { %v4145_v25 = vpop.f32.mrb[36].mxu1 }
0x54f0   :  { %v4150_v46 = vrot.slane %v4145_v25, 4  ;;  %v7795_v40 = vpop.f32.mrb[37].mxu1 }
0x54f2   :  { %v4152_v41 = vadd.f32 %v4150_v46, %v9825_v49 }
0x54f4   :  { %8396 = vtanh.f32 %v4152_v41  ;;  %v7346_v11 = vmul.f32 -1.442695, %v4152_v41 }
0x54f6   :  { %8398 = vpow2.f32 %v7346_v11 }
0x54fe   :  { %v8397_v42 = vpop.eup %8396 }
0x54ff   :  { %4165 = vrot.lane.b32.xlu1 %v8397_v42, %s9148_s3 }
0x5500   :  { %v8399_v43 = vpop.eup %8398 }
0x5501   :  { %v4156_v44 = vadd.f32 1.0, %v8399_v43 }
0x5503   :  { %8400 = vrcp.f32 %v4156_v44 }
0x550d   :  { %v8401_v21 = vpop.eup %8400 }
0x550e   :  { %v4163_v38 = vmul.f32 %v8401_v21, %v4161_v48 }
0x5571   :  { %v4166_v29 = vpop.permute.xlu1 %4165 }
0x5572   :  { %v4168_v47 = vmul.f32 %v8401_v21, %v4166_v29 }
0x5574   :  { %4170 = vrot.lane.b32.xlu0 %v4168_v47, %s9134_s12 }
0x55e6   :  { %v4171_v50 = vpop.permute.xlu0 %4170 }
0x55e7   :  { %v4173_v51 = vadd.f32 %v4171_v50, %v4163_v38 }
0x55e9   :  { %8402 = vtanh.f32 %v4173_v51  ;;  %v4268_v8 = vrot.slane %v4173_v51, 6 }
0x55f3   :  { %v8403_v52 = vpop.eup %8402 }
0x55f4   :  { %4176 = vrot.lane.b32.xlu1 %v8403_v52, %s9149_s23 }
0x5666   :  { %v4177_v53 = vpop.permute.xlu1 %4176 }
0x5667   :  { %v4179_v54 = vmul.f32 %v8401_v21, %v4177_v53 }
0x5669   :  { %v4181_v57 = vrot.slane %v4179_v54, 4  ;;  %v4498_v58 = vsel %vm1317_vm4, %v4497_v56, %v4179_v54  ;;  %v365_v54 = vld [vmem:[#allocation14] sm:$0xff]  ;;  %v9887_v56 = vld [vmem:[#allocation16] sm:$0xff] }
0x566a   :  { %7811 = vmatprep.subr.mxu1 %v365_v54 }
0x566b   :  { %4182 = vrot.lane.b32.xlu0 %v4181_v57, %s9150_s26 }
0x56dd   :  { %v4183_v59 = vpop.permute.xlu0 %4182 }
0x56de   :  { %7799 = vmatmul.mubr.msk.f32.vlgmr.msra.gmra.mrb[36].mxu0 %vm472_vm2, %v4183_v59 }
0x56df   :  { %7807 = vmatpush3.msra.mxu0 %v9804_v39  ;;  %7808 = vmatprep.mubr.msk.f32.mxu0 %vm9147_vm0, %v9146_v0 }
0x56e0   :  { %7816 = vmatprep.subr.mxu0 %v9146_v0 }
0x57b1   :  { %v4252_v60 = vpop.f32.mrb[36].mxu0 }
0x57b2   :  { %v4257_v62 = vrot.slane %v4252_v60, 2  ;;  %v7800_v63 = vpop.f32.mrb[37].mxu0 }
0x57b4   :  { %v4259_v1 = vadd.f32 %v4257_v62, %v9825_v49 }
0x57b6   :  { %8404 = vtanh.f32 %v4259_v1  ;;  %v7348_v3 = vmul.f32 -1.442695, %v4259_v1 }
0x57b8   :  { %8406 = vpow2.f32 %v7348_v3 }
0x57c0   :  { %v8405_v2 = vpop.eup %8404 }
0x57c1   :  { %4272 = vrot.lane.b32.xlu1 %v8405_v2, %s9148_s3  ;;  %v7353_v2 = vld [vmem:[#allocation17] ss:$0 sm:$0xff] }
0x57c2   :  { %v8407_v5 = vpop.eup %8406 }
0x57c3   :  { %v4263_v4 = vadd.f32 1.0, %v8407_v5 }
0x57c5   :  { %8408 = vrcp.f32 %v4263_v4 }
0x57cf   :  { %v8409_v39 = vpop.eup %8408 }
0x57d0   :  { %v4270_v9 = vmul.f32 %v8409_v39, %v4268_v8 }
0x5833   :  { %v4273_v6 = vpop.permute.xlu1 %4272 }
0x5834   :  { %v4275_v7 = vmul.f32 %v8409_v39, %v4273_v6 }
0x5836   :  { %4277 = vrot.lane.b32.xlu0 %v4275_v7, %s9134_s12 }
0x58a8   :  { %v4278_v10 = vpop.permute.xlu0 %4277 }
0x58a9   :  { %v4280_v12 = vadd.f32 %v4278_v10, %v4270_v9 }
0x58ab   :  { %8410 = vtanh.f32 %v4280_v12  ;;  %v4372_v30 = vrot.slane %v4280_v12, 6 }
0x58b5   :  { %v8411_v49 = vpop.eup %8410 }
0x58b6   :  { %4283 = vrot.lane.b32.xlu1 %v8411_v49, %s9149_s23 }
0x5928   :  { %v4284_v35 = vpop.permute.xlu1 %4283 }
0x5929   :  { %v4286_v14 = vmul.f32 %v8409_v39, %v4284_v35 }
0x592b   :  { %v4288_v15 = vrot.slane %v4286_v14, 6  ;;  %v4499_v16 = vsel %vm1319_vm5, %v4498_v58, %v4286_v14 }
0x592d   :  { %4289 = vrot.lane.b32.xlu0 %v4288_v15, %s9150_s26 }
0x599f   :  { %v4290_v17 = vpop.permute.xlu0 %4289 }
0x59a0   :  { %7804 = vmatmul.mubr.msk.f32.vlgmr.msra.gmra.mrb[38].mxu1 %vm472_vm2, %v4290_v17 }
0x59a1   :  { %7812 = vmatpush3.msra.mxu1 %v365_v54 }
0x59a2   :  { %7821 = vmatprep.subr.mxu1 %v9146_v0 }
0x5a73   :  { %v4359_v18 = vpop.f32.mrb[38].mxu1 }
0x5a74   :  { %v4363_v19 = vadd.f32 %v4359_v18, %v9822_v45  ;;  %v7805_v55 = vpop.f32.mrb[39].mxu1 }
0x5a76   :  { %8412 = vtanh.f32 %v4363_v19  ;;  %v7350_v36 = vmul.f32 -1.442695, %v4363_v19 }
0x5a78   :  { %8414 = vpow2.f32 %v7350_v36 }
0x5a80   :  { %v8413_v20 = vpop.eup %8412 }
0x5a81   :  { %4376 = vrot.lane.b32.xlu1 %v8413_v20, %s9148_s3 }
0x5a82   :  { %v8415_v22 = vpop.eup %8414 }
0x5a83   :  { %v4367_v23 = vadd.f32 1.0, %v8415_v22 }
0x5a85   :  { %8416 = vrcp.f32 %v4367_v23 }
0x5a8f   :  { %v8417_v13 = vpop.eup %8416 }
0x5a90   :  { %v4374_v31 = vmul.f32 %v8417_v13, %v4372_v30 }
0x5af3   :  { %v4377_v26 = vpop.permute.xlu1 %4376 }
0x5af4   :  { %v4379_v28 = vmul.f32 %v8417_v13, %v4377_v26 }
0x5af6   :  { %4381 = vrot.lane.b32.xlu0 %v4379_v28, %s9134_s12 }
0x5b68   :  { %v4382_v32 = vpop.permute.xlu0 %4381 }
0x5b69   :  { %v4384_v33 = vadd.f32 %v4382_v32, %v4374_v31 }
0x5b6b   :  { %8418 = vtanh.f32 %v4384_v33  ;;  %v4478_v50 = vrot.slane %v4384_v33, 6 }
0x5b75   :  { %v8419_v34 = vpop.eup %8418 }
0x5b76   :  { %4387 = vrot.lane.b32.xlu1 %v8419_v34, %s9149_s23 }
0x5be8   :  { %v4388_v37 = vpop.permute.xlu1 %4387 }
0x5be9   :  { %v4390_v25 = vmul.f32 %v8417_v13, %v4388_v37 }
0x5beb   :  { %4392 = vrot.lane.b32.xlu0 %v4390_v25, %s9150_s26 }
0x5c5d   :  { %v4393_v46 = vpop.permute.xlu0 %4392 }
0x5c5e   :  { %7809 = vmatmul.mubr.msk.f32.vlgmr.msra.gmra.mrb[38].mxu0 %vm472_vm2, %v4393_v46 }
0x5c5f   :  { %7818 = vmatprep.mubr.msk.f32.mxu0 %vm9147_vm0, %v9146_v0  ;;  %7817 = vmatpush3.msra.mxu0 %v9887_v56 }
0x5c60   :  { %7826 = vmatprep.subr.mxu0 %v9146_v0 }
0x5c62   :  { %7819 = vmatmul.mubr.f32.vlgmr.msra.gmra.mrb[40].mxu0 %v9146_v0 }
0x5c63   :  { %7828 = vmatprep.mubr.msk.f32.mxu0 %vm9147_vm0, %v9146_v0  ;;  %7827 = vmatpush3.msra.mxu0 %v9887_v56 }
0x5c64   :  { %7836 = vmatprep.subr.mxu0 %v9146_v0 }
0x5d31   :  { %v4462_v40 = vpop.f32.mrb[38].mxu0 }
0x5d32   :  { %v4467_v41 = vrot.slane %v4462_v40, 6  ;;  %v7810_v42 = vpop.f32.mrb[39].mxu0 }
0x5d34   :  { %v4469_v11 = vadd.f32 %v4467_v41, %v9822_v45 }
0x5d35   :  { %v4658_v63 = vpop.f32.mrb[40].mxu0 }
0x5d36   :  { %8420 = vtanh.f32 %v4469_v11  ;;  %v7352_v44 = vmul.f32 -1.442695, %v4469_v11  ;;  %v7820_v1 = vpop.f32.mrb[41].mxu0 }
0x5d38   :  { %8422 = vpow2.f32 %v7352_v44 }
0x5d40   :  { %v8421_v43 = vpop.eup %8420 }
0x5d41   :  { %4482 = vrot.lane.b32.xlu1 %v8421_v43, %s9148_s3 }
0x5d42   :  { %v8423_v21 = vpop.eup %8422 }
0x5d43   :  { %v4473_v29 = vadd.f32 1.0, %v8423_v21 }
0x5d45   :  { %8424 = vrcp.f32 %v4473_v29 }
0x5d4f   :  { %v8425_v47 = vpop.eup %8424 }
0x5d50   :  { %v4480_v51 = vmul.f32 %v8425_v47, %v4478_v50 }
0x5db3   :  { %v4483_v48 = vpop.permute.xlu1 %4482 }
0x5db4   :  { %v4485_v38 = vmul.f32 %v8425_v47, %v4483_v48 }
0x5db6   :  { %4487 = vrot.lane.b32.xlu0 %v4485_v38, %s9134_s12 }
0x5dba   :  { %4509 = vrot.lane.b32.xlu0 %v4499_v16, %s9150_s26 }
0x5e28   :  { %v4488_v52 = vpop.permute.xlu0 %4487 }
0x5e29   :  { %v4490_v45 = vadd.f32 %v4488_v52, %v4480_v51 }
0x5e2b   :  { %8426 = vtanh.f32 %v4490_v45 }
0x5e2c   :  { %v4510_v53 = vpop.permute.xlu0 %4509 }
0x5e2d   :  { %7813 = vmatprep.mubr.msk.f32.mxu1 %vm472_vm2, %v4510_v53 }
0x5e35   :  { %v8427_v57 = vpop.eup %8426 }
0x5e36   :  { %4493 = vrot.lane.b32.xlu1 %v8427_v57, %s9149_s23 }
0x5ea8   :  { %v4494_v58 = vpop.permute.xlu1 %4493 }
0x5ea9   :  { %v4496_v59 = vmul.f32 %v8425_v47, %v4494_v58 }
0x5eab   :  { %v4500_v60 = vsel %vm1315_vm3, %v4390_v25, %v4496_v59 }
0x5eac   :  { %4511 = vrot.lane.b32.xlu1 %v4500_v60, %s9150_s26 }
0x5f1e   :  { %v4512_v62 = vpop.permute.xlu1 %4511 }
0x5f1f   :  { %7814 = vmatmul.mubr.msk.f32.vlgmr.msra.gmra.mrb[40].mxu1 %vm472_vm2, %v4512_v62 }
0x5f20   :  { %7822 = vmatpush3.msra.mxu1 %v9887_v56  ;;  %7823 = vmatprep.mubr.msk.f32.mxu1 %vm9147_vm0, %v9146_v0 }
0x5f21   :  { %7831 = vmatprep.subr.mxu1 %v9146_v0 }
0x5ff2   :  { %v7815_v3 = vpop.f32.mrb[40].mxu1 }
0x5ff3   :  { %v9906_v5 = vadd.f32 %v7815_v3, %v7353_v2  ;;  %v4583_v4 = vpop.f32.mrb[41].mxu1 }
0x5ff4   :  { %v9908_v39 = vadd.f32 %v7353_v2, %v4583_v4 }
0x5ff6   :  { %v4662_v6 = vadd.f32 %v4658_v63, %v9908_v39 }
0x5ff8   :  { %8428 = vtanh.f32 %v4662_v6  ;;  %v7356_v8 = vmul.f32 -1.442695, %v4662_v6 }
0x5ffa   :  { %8430 = vpow2.f32 %v7356_v8 }
0x6002   :  { %v8429_v7 = vpop.eup %8428 }
0x6003   :  { %4672 = vrot.lane.b32.xlu0 %v8429_v7, %s9148_s3 }
0x6004   :  { %v8431_v9 = vpop.eup %8430 }
0x6005   :  { %v4666_v10 = vadd.f32 1.0, %v8431_v9 }
0x6007   :  { %8432 = vrcp.f32 %v4666_v10 }
0x6011   :  { %v8433_v12 = vpop.eup %8432 }
0x6012   :  { %v4670_v14 = vmul.f32 0.0, %v8433_v12 }
0x6075   :  { %v4673_v49 = vpop.permute.xlu0 %4672 }
0x6076   :  { %v4675_v35 = vmul.f32 %v8433_v12, %v4673_v49 }
0x6078   :  { %4677 = vrot.lane.b32.xlu1 %v4675_v35, %s9134_s12 }
0x60ea   :  { %v4678_v15 = vpop.permute.xlu1 %4677 }
0x60eb   :  { %v4680_v16 = vadd.f32 %v4678_v15, %v4670_v14 }
0x60ed   :  { %8434 = vtanh.f32 %v4680_v16  ;;  %v4774_v34 = vrot.slane %v4680_v16, 6 }
0x60f7   :  { %v8435_v17 = vpop.eup %8434 }
0x60f8   :  { %4683 = vrot.lane.b32.xlu0 %v8435_v17, %s9149_s23 }
0x616a   :  { %v4684_v18 = vpop.permute.xlu0 %4683 }
0x616b   :  { %v4686_v19 = vmul.f32 %v8433_v12, %v4684_v18 }
0x616d   :  { %4688 = vrot.lane.b32.xlu1 %v4686_v19, %s9150_s26 }
0x61df   :  { %v4689_v55 = vpop.permute.xlu1 %4688 }
0x61e0   :  { %7824 = vmatmul.mubr.msk.f32.vlgmr.msra.gmra.mrb[42].mxu1 %vm472_vm2, %v4689_v55 }
0x61e1   :  { %7832 = vmatpush3.msra.mxu1 %v9887_v56  ;;  %7833 = vmatprep.mubr.msk.f32.mxu1 %vm9147_vm0, %v9146_v0 }
0x61e2   :  { %7841 = vmatprep.subr.mxu1 %v9146_v0 }
0x62b3   :  { %v4758_v20 = vpop.f32.mrb[42].mxu1 }
0x62b4   :  { %v4763_v36 = vrot.slane %v4758_v20, 6  ;;  %v7825_v22 = vpop.f32.mrb[43].mxu1 }
0x62b6   :  { %v4765_v23 = vadd.f32 %v4763_v36, %v9908_v39 }
0x62b8   :  { %8436 = vtanh.f32 %v4765_v23  ;;  %v7358_v26 = vmul.f32 -1.442695, %v4765_v23 }
0x62ba   :  { %8438 = vpow2.f32 %v7358_v26 }
0x62c2   :  { %v8437_v13 = vpop.eup %8436 }
0x62c3   :  { %4778 = vrot.lane.b32.xlu0 %v8437_v13, %s9148_s3 }
0x62c4   :  { %v8439_v28 = vpop.eup %8438 }
0x62c5   :  { %v4769_v30 = vadd.f32 1.0, %v8439_v28 }
0x62c7   :  { %8440 = vrcp.f32 %v4769_v30 }
0x62d1   :  { %v8441_v31 = vpop.eup %8440 }
0x62d2   :  { %v4776_v37 = vmul.f32 %v8441_v31, %v4774_v34 }
0x6335   :  { %v4779_v32 = vpop.permute.xlu0 %4778 }
0x6336   :  { %v4781_v33 = vmul.f32 %v8441_v31, %v4779_v32 }
0x6338   :  { %4783 = vrot.lane.b32.xlu1 %v4781_v33, %s9134_s12 }
0x63aa   :  { %v4784_v25 = vpop.permute.xlu1 %4783 }
0x63ab   :  { %v4786_v46 = vadd.f32 %v4784_v25, %v4776_v37 }
0x63ad   :  { %8442 = vtanh.f32 %v4786_v46  ;;  %v4881_v54 = vrot.slane %v4786_v46, 6 }
0x63b7   :  { %v8443_v40 = vpop.eup %8442 }
0x63b8   :  { %4789 = vrot.lane.b32.xlu0 %v8443_v40, %s9149_s23 }
0x642a   :  { %v4790_v41 = vpop.permute.xlu0 %4789 }
0x642b   :  { %v4792_v42 = vmul.f32 %v8441_v31, %v4790_v41 }
0x642d   :  { %v4794_v11 = vrot.slane %v4792_v42, 2 }
0x642f   :  { %4795 = vrot.lane.b32.xlu1 %v4794_v11, %s9150_s26 }
0x64a1   :  { %v4796_v43 = vpop.permute.xlu1 %4795 }
0x64a2   :  { %7829 = vmatmul.mubr.msk.f32.vlgmr.msra.gmra.mrb[42].mxu0 %vm472_vm2, %v4796_v43 }
0x64a3   :  { %7837 = vmatpush3.msra.mxu0 %v9887_v56  ;;  %7838 = vmatprep.mubr.msk.f32.mxu0 %vm9147_vm0, %v9146_v0 }
0x64a4   :  { %7846 = vmatprep.subr.mxu0 %v9146_v0 }
0x6575   :  { %v4865_v44 = vpop.f32.mrb[42].mxu0 }
0x6576   :  { %v4870_v21 = vrot.slane %v4865_v44, 4  ;;  %v7830_v29 = vpop.f32.mrb[43].mxu0 }
0x6578   :  { %v4872_v47 = vadd.f32 %v4870_v21, %v9908_v39 }
0x657a   :  { %8444 = vtanh.f32 %v4872_v47  ;;  %v7360_v38 = vmul.f32 -1.442695, %v4872_v47 }
0x657c   :  { %8446 = vpow2.f32 %v7360_v38 }
0x6584   :  { %v8445_v48 = vpop.eup %8444 }
0x6585   :  { %4885 = vrot.lane.b32.xlu0 %v8445_v48, %s9148_s3 }
0x6586   :  { %v8447_v50 = vpop.eup %8446 }
0x6587   :  { %v4876_v51 = vadd.f32 1.0, %v8447_v50 }
0x6589   :  { %8448 = vrcp.f32 %v4876_v51 }
0x6593   :  { %v8449_v52 = vpop.eup %8448 }
0x6594   :  { %v4883_v57 = vmul.f32 %v8449_v52, %v4881_v54 }
0x65f7   :  { %v4886_v45 = vpop.permute.xlu0 %4885 }
0x65f8   :  { %v4888_v53 = vmul.f32 %v8449_v52, %v4886_v45 }
0x65fa   :  { %4890 = vrot.lane.b32.xlu1 %v4888_v53, %s9134_s12 }
0x666c   :  { %v4891_v58 = vpop.permute.xlu1 %4890 }
0x666d   :  { %v4893_v59 = vadd.f32 %v4891_v58, %v4883_v57 }
0x666f   :  { %8450 = vtanh.f32 %v4893_v59  ;;  %v4988_v14 = vrot.slane %v4893_v59, 6  ;;  %v369_v59 = vld [vmem:[#allocation20] sm:$0xff] }
0x6679   :  { %v8451_v60 = vpop.eup %8450 }
0x667a   :  { %4896 = vrot.lane.b32.xlu0 %v8451_v60, %s9149_s23  ;;  %v370_v60 = vld [vmem:[#allocation20 + $0x8] sm:$0xff] }
0x66ec   :  { %v4897_v62 = vpop.permute.xlu0 %4896 }
0x66ed   :  { %v4899_v63 = vmul.f32 %v8449_v52, %v4897_v62  ;;  %v9959_v62 = vpack.c.bf16 %v370_v60, %v369_v59 }
0x66ef   :  { %v4901_v1 = vrot.slane %v4899_v63, 4 }
0x66f1   :  { %4902 = vrot.lane.b32.xlu1 %v4901_v1, %s9150_s26 }
0x6763   :  { %v4903_v2 = vpop.permute.xlu1 %4902 }
0x6764   :  { %7834 = vmatmul.mubr.msk.f32.vlgmr.msra.gmra.mrb[44].mxu1 %vm472_vm2, %v4903_v2 }
0x6765   :  { %7842 = vmatpush3.msra.mxu1 %v9887_v56  ;;  %7843 = vmatprep.mubr.msk.f32.mxu1 %vm9147_vm0, %v9146_v0 }
0x6766   :  { %8029 = vmatprep.subr.bf16.mxu1 %v9151_v24 }
0x6837   :  { %v4972_v3 = vpop.f32.mrb[44].mxu1 }
0x6838   :  { %v4977_v4 = vrot.slane %v4972_v3, 2  ;;  %v7835_v6 = vpop.f32.mrb[45].mxu1 }
0x683a   :  { %v4979_v7 = vadd.f32 %v4977_v4, %v9908_v39 }
0x683c   :  { %8452 = vtanh.f32 %v4979_v7  ;;  %v7362_v9 = vmul.f32 -1.442695, %v4979_v7 }
0x683e   :  { %8454 = vpow2.f32 %v7362_v9 }
0x6846   :  { %v8453_v8 = vpop.eup %8452 }
0x6847   :  { %4992 = vrot.lane.b32.xlu0 %v8453_v8, %s9148_s3  ;;  %v7367_v8 = vld [vmem:[#allocation22] ss:$0 sm:$0xff] }
0x6848   :  { %v8455_v10 = vpop.eup %8454 }
0x6849   :  { %v4983_v12 = vadd.f32 1.0, %v8455_v10 }
0x684b   :  { %8456 = vrcp.f32 %v4983_v12 }
0x6855   :  { %v8457_v56 = vpop.eup %8456 }
0x6856   :  { %v4990_v15 = vmul.f32 %v8457_v56, %v4988_v14 }
0x68b9   :  { %v4993_v49 = vpop.permute.xlu0 %4992 }
0x68ba   :  { %v4995_v35 = vmul.f32 %v8457_v56, %v4993_v49 }
0x68bc   :  { %4997 = vrot.lane.b32.xlu1 %v4995_v35, %s9134_s12 }
0x692e   :  { %v4998_v16 = vpop.permute.xlu1 %4997 }
0x692f   :  { %v5000_v17 = vadd.f32 %v4998_v16, %v4990_v15 }
0x6931   :  { %8458 = vtanh.f32 %v5000_v17  ;;  %v5092_v34 = vrot.slane %v5000_v17, 6 }
0x693b   :  { %v8459_v39 = vpop.eup %8458 }
0x693c   :  { %5003 = vrot.lane.b32.xlu0 %v8459_v39, %s9149_s23 }
0x69ae   :  { %v5004_v18 = vpop.permute.xlu0 %5003 }
0x69af   :  { %v5006_v19 = vmul.f32 %v8457_v56, %v5004_v18 }
0x69b1   :  { %v5008_v55 = vrot.slane %v5006_v19, 6 }
0x69b3   :  { %5009 = vrot.lane.b32.xlu1 %v5008_v55, %s9150_s26 }
0x6a25   :  { %v5010_v20 = vpop.permute.xlu1 %5009 }
0x6a26   :  { %7839 = vmatmul.mubr.msk.f32.vlgmr.msra.gmra.mrb[44].mxu0 %vm472_vm2, %v5010_v20 }
0x6a27   :  { %7848 = vmatprep.mubr.msk.f32.mxu0 %vm9147_vm0, %v9146_v0 }
0x6af9   :  { %v5079_v36 = vpop.f32.mrb[44].mxu0 }
0x6afa   :  { %v5083_v22 = vadd.f32 %v5079_v36, %v9906_v5  ;;  %v7840_v23 = vpop.f32.mrb[45].mxu0 }
0x6afc   :  { %8460 = vtanh.f32 %v5083_v22  ;;  %v7364_v26 = vmul.f32 -1.442695, %v5083_v22 }
0x6afe   :  { %8462 = vpow2.f32 %v7364_v26 }
0x6b06   :  { %v8461_v13 = vpop.eup %8460 }
0x6b07   :  { %5096 = vrot.lane.b32.xlu0 %v8461_v13, %s9148_s3 }
0x6b08   :  { %v8463_v28 = vpop.eup %8462 }
0x6b09   :  { %v5087_v30 = vadd.f32 1.0, %v8463_v28 }
0x6b0b   :  { %8464 = vrcp.f32 %v5087_v30 }
0x6b15   :  { %v8465_v31 = vpop.eup %8464 }
0x6b16   :  { %v5094_v37 = vmul.f32 %v8465_v31, %v5092_v34 }
0x6b79   :  { %v5097_v32 = vpop.permute.xlu0 %5096 }
0x6b7a   :  { %v5099_v33 = vmul.f32 %v8465_v31, %v5097_v32 }
0x6b7c   :  { %5101 = vrot.lane.b32.xlu1 %v5099_v33, %s9134_s12 }
0x6bee   :  { %v5102_v25 = vpop.permute.xlu1 %5101 }
0x6bef   :  { %v5104_v46 = vadd.f32 %v5102_v25, %v5094_v37 }
0x6bf1   :  { %8466 = vtanh.f32 %v5104_v46  ;;  %v5198_v53 = vrot.slane %v5104_v46, 6 }
0x6bfb   :  { %v8467_v40 = vpop.eup %8466 }
0x6bfc   :  { %5107 = vrot.lane.b32.xlu0 %v8467_v40, %s9149_s23 }
0x6c6e   :  { %v5108_v41 = vpop.permute.xlu0 %5107 }
0x6c6f   :  { %v5110_v42 = vmul.f32 %v8465_v31, %v5108_v41 }
0x6c71   :  { %5112 = vrot.lane.b32.xlu1 %v5110_v42, %s9150_s26 }
0x6ce3   :  { %v5113_v11 = vpop.permute.xlu1 %5112 }
0x6ce4   :  { %7844 = vmatmul.mubr.msk.f32.vlgmr.msra.gmra.mrb[46].mxu1 %vm472_vm2, %v5113_v11 }
0x6ce5   :  { %7855 = vmatprep.mubr.msk.f32.mxu1 %vm9147_vm0, %v9146_v0  ;;  %8031 = vmatpush3.bf16.msra.mxu1 %v9959_v62 }
0x6ce6   :  { %8035 = vmatprep.subr.bf16.mxu1 %v9151_v24 }
0x6ce8   :  { %7856 = vmatmul.mubr.f32.vlgmr.msra.gmra.mrb[48].mxu1 %v9146_v0 }
0x6ce9   :  { %8037 = vmatpush3.bf16.msra.mxu1 %v9959_v62  ;;  %7869 = vmatprep.mubr.msk.f32.mxu1 %vm9147_vm0, %v9146_v0 }
0x6cea   :  { %8041 = vmatprep.subr.bf16.mxu1 %v9151_v24 }
0x6db7   :  { %v5182_v43 = vpop.f32.mrb[46].mxu1 }
0x6db8   :  { %v5187_v44 = vrot.slane %v5182_v43, 6  ;;  %v7845_v21 = vpop.f32.mrb[47].mxu1 }
0x6dba   :  { %v5189_v29 = vadd.f32 %v5187_v44, %v9906_v5  ;;  %v368_v5 = vld [vmem:[#allocation19] sm:$0xff] }
0x6dbb   :  { %7847 = vmatpush3.msra.mxu0 %v368_v5  ;;  %v5370_v6 = vpop.f32.mrb[48].mxu1 }
0x6dbc   :  { %8468 = vtanh.f32 %v5189_v29  ;;  %v7366_v48 = vmul.f32 -1.442695, %v5189_v29  ;;  %8032 = vmatprep.subr.bf16.mxu0 %v9151_v24  ;;  %v7857_v7 = vpop.f32.mrb[49].mxu1 }
0x6dbe   :  { %8470 = vpow2.f32 %v7366_v48 }
0x6dc6   :  { %v8469_v47 = vpop.eup %8468 }
0x6dc7   :  { %5202 = vrot.lane.b32.xlu0 %v8469_v47, %s9148_s3 }
0x6dc8   :  { %v8471_v38 = vpop.eup %8470 }
0x6dc9   :  { %v5193_v50 = vadd.f32 1.0, %v8471_v38 }
0x6dcb   :  { %8472 = vrcp.f32 %v5193_v50 }
0x6dd5   :  { %v8473_v51 = vpop.eup %8472 }
0x6dd6   :  { %v5200_v54 = vmul.f32 %v8473_v51, %v5198_v53 }
0x6e39   :  { %v5203_v52 = vpop.permute.xlu0 %5202 }
0x6e3a   :  { %v5205_v45 = vmul.f32 %v8473_v51, %v5203_v52 }
0x6e3c   :  { %5207 = vrot.lane.b32.xlu1 %v5205_v45, %s9134_s12  ;;  %s10246_s12 = sld [smem:[#allocation61_spill]] }
0x6eae   :  { %v5208_v57 = vpop.permute.xlu1 %5207 }
0x6eaf   :  { %v5210_v58 = vadd.f32 %v5208_v57, %v5200_v54 }
0x6eb1   :  { %8474 = vtanh.f32 %v5210_v58 }
0x6ebb   :  { %v8475_v63 = vpop.eup %8474 }
0x6ebc   :  { %5213 = vrot.lane.b32.xlu0 %v8475_v63, %s9149_s23 }
0x6f2e   :  { %v5214_v1 = vpop.permute.xlu0 %5213 }
0x6f2f   :  { %v9970_v2 = vmul.f32 %v8473_v51, %v5214_v1 }
0x6f31   :  { %v5229_v3 = vrot.slane %v9970_v2, 2 }
0x6f33   :  { %5230 = vrot.lane.b32.xlu1 %v5229_v3, %s9150_s26 }
0x6fa5   :  { %v5231_v4 = vpop.permute.xlu1 %5230 }
0x6fa6   :  { %7849 = vmatmul.mubr.msk.f32.vlgmr.msra.gmra.mrb[46].mxu0 %vm472_vm2, %v5231_v4 }
0x6fa7   :  { %8034 = vmatpush3.bf16.msra.mxu0 %v9959_v62  ;;  %7862 = vmatprep.mubr.msk.f32.mxu0 %vm9147_vm0, %v9146_v0 }
0x6fa8   :  { %8038 = vmatprep.subr.bf16.mxu0 %v9151_v24 }
0x7079   :  { %v5300_v9 = vpop.f32.mrb[46].mxu0 }
0x707a   :  { %v9979_v10 = vadd.f32 %v7367_v8, %v5300_v9  ;;  %v7850_v12 = vpop.f32.mrb[47].mxu0 }
0x707c   :  { %v5374_v56 = vadd.f32 %v5370_v6, %v9979_v10 }
0x707e   :  { %8476 = vtanh.f32 %v5374_v56  ;;  %v7369_v35 = vmul.f32 -1.442695, %v5374_v56 }
0x7080   :  { %8478 = vpow2.f32 %v7369_v35 }
0x7088   :  { %v8477_v49 = vpop.eup %8476 }
0x7089   :  { %5384 = vrot.lane.b32.xlu0 %v8477_v49, %s9152_s4 }
0x708a   :  { %v8479_v14 = vpop.eup %8478 }
0x708b   :  { %v5378_v15 = vadd.f32 1.0, %v8479_v14 }
0x708d   :  { %8480 = vrcp.f32 %v5378_v15 }
0x7097   :  { %v8481_v16 = vpop.eup %8480 }
0x7098   :  { %v5382_v18 = vmul.f32 0.0, %v8481_v16 }
0x70fb   :  { %v5385_v17 = vpop.permute.xlu0 %5384 }
0x70fc   :  { %v5387_v39 = vmul.f32 %v8481_v16, %v5385_v17 }
0x70fe   :  { %5389 = vrot.lane.b32.xlu1 %v5387_v39, %s9149_s23 }
0x7170   :  { %v5390_v19 = vpop.permute.xlu1 %5389 }
0x7171   :  { %v5392_v55 = vadd.f32 %v5390_v19, %v5382_v18 }
0x7173   :  { %8482 = vtanh.f32 %v5392_v55 }
0x717d   :  { %v8483_v20 = vpop.eup %8482 }
0x717e   :  { %5395 = vrot.lane.b32.xlu0 %v8483_v20, %s9153_s28 }
0x71f0   :  { %v5396_v36 = vpop.permute.xlu0 %5395 }
0x71f1   :  { %v9985_v22 = vmul.f32 %v8481_v16, %v5396_v36 }
0x71f3   :  { %5400 = vrot.lane.b32.xlu1 %v9985_v22, %s9154_s1 }
0x7265   :  { %v5401_v23 = vpop.permute.xlu1 %5400 }
0x7266   :  { %7863 = vmatmul.mubr.msk.f32.vlgmr.msra.gmra.mrb[48].mxu0 %vm390_vm1, %v5401_v23 }
0x7267   :  { %8040 = vmatpush3.bf16.msra.mxu0 %v9959_v62  ;;  %7876 = vmatprep.mubr.msk.f32.mxu0 %vm9147_vm0, %v9146_v0 }
0x7268   :  { %8044 = vmatprep.subr.bf16.mxu0 %v9151_v24 }
0x7339   :  { %v5470_v13 = vpop.f32.mrb[48].mxu0 }
0x733a   :  { %v5474_v26 = vadd.f32 %v5470_v13, %v9979_v10  ;;  %v7864_v28 = vpop.f32.mrb[49].mxu0 }
0x733c   :  { %8484 = vtanh.f32 %v5474_v26  ;;  %v7371_v31 = vmul.f32 -1.442695, %v5474_v26 }
0x733e   :  { %8486 = vpow2.f32 %v7371_v31 }
0x7346   :  { %v8485_v30 = vpop.eup %8484 }
0x7347   :  { %5484 = vrot.lane.b32.xlu0 %v8485_v30, %s9152_s4 }
0x7348   :  { %v8487_v32 = vpop.eup %8486 }
0x7349   :  { %v5478_v33 = vadd.f32 1.0, %v8487_v32 }
0x734b   :  { %8488 = vrcp.f32 %v5478_v33 }
0x7355   :  { %v8489_v34 = vpop.eup %8488 }
0x7356   :  { %v5482_v46 = vmul.f32 %v8489_v34, %v5392_v55 }
0x73b9   :  { %v5485_v37 = vpop.permute.xlu0 %5484 }
0x73ba   :  { %v5487_v25 = vmul.f32 %v8489_v34, %v5485_v37 }
0x73bc   :  { %5489 = vrot.lane.b32.xlu1 %v5487_v25, %s9149_s23 }
0x742e   :  { %v5490_v40 = vpop.permute.xlu1 %5489 }
0x742f   :  { %v5492_v41 = vadd.f32 %v5490_v40, %v5482_v46 }
0x7431   :  { %8490 = vtanh.f32 %v5492_v41 }
0x743b   :  { %v8491_v42 = vpop.eup %8490 }
0x743c   :  { %5495 = vrot.lane.b32.xlu0 %v8491_v42, %s9153_s28 }
0x74ae   :  { %v5496_v11 = vpop.permute.xlu0 %5495 }
0x74af   :  { %v5498_v43 = vmul.f32 %v8489_v34, %v5496_v11 }
0x74b1   :  { %5500 = vrot.lane.b32.xlu1 %v5498_v43, %s9154_s1  ;;  %v6099_v59 = vrot.slane %v5498_v43, 6 }
0x74b3   :  { %v6112_v3 = vsel %vm1315_vm3, %v9985_v22, %v6099_v59 }
0x7523   :  { %v5501_v44 = vpop.permute.xlu1 %5500 }
0x7524   :  { %7870 = vmatmul.mubr.msk.f32.vlgmr.msra.gmra.mrb[50].mxu1 %vm390_vm1, %v5501_v44 }
0x7525   :  { %8043 = vmatpush3.bf16.msra.mxu1 %v9959_v62  ;;  %7883 = vmatprep.mubr.msk.f32.mxu1 %vm9147_vm0, %v9146_v0 }
0x7526   :  { %8047 = vmatprep.subr.bf16.mxu1 %v9151_v24 }
0x75f7   :  { %v5570_v21 = vpop.f32.mrb[50].mxu1 }
0x75f8   :  { %v5574_v29 = vadd.f32 %v5570_v21, %v9979_v10  ;;  %v7871_v47 = vpop.f32.mrb[51].mxu1 }
0x75fa   :  { %8492 = vtanh.f32 %v5574_v29  ;;  %v7373_v38 = vmul.f32 -1.442695, %v5574_v29 }
0x75fc   :  { %8494 = vpow2.f32 %v7373_v38 }
0x7604   :  { %v8493_v48 = vpop.eup %8492 }
0x7605   :  { %5584 = vrot.lane.b32.xlu0 %v8493_v48, %s9152_s4 }
0x7606   :  { %v8495_v50 = vpop.eup %8494 }
0x7607   :  { %v5578_v51 = vadd.f32 1.0, %v8495_v50 }
0x7609   :  { %8496 = vrcp.f32 %v5578_v51 }
0x7613   :  { %v8497_v52 = vpop.eup %8496 }
0x7614   :  { %v5582_v54 = vmul.f32 %v8497_v52, %v5492_v41 }
0x7677   :  { %v5585_v45 = vpop.permute.xlu0 %5584 }
0x7678   :  { %v5587_v53 = vmul.f32 %v8497_v52, %v5585_v45 }
0x767a   :  { %5589 = vrot.lane.b32.xlu1 %v5587_v53, %s9149_s23 }
0x76ec   :  { %v5590_v57 = vpop.permute.xlu1 %5589 }
0x76ed   :  { %v5592_v58 = vadd.f32 %v5590_v57, %v5582_v54 }
0x76ef   :  { %8498 = vtanh.f32 %v5592_v58 }
0x76f9   :  { %v8499_v5 = vpop.eup %8498 }
0x76fa   :  { %5595 = vrot.lane.b32.xlu0 %v8499_v5, %s9153_s28 }
0x776c   :  { %v5596_v60 = vpop.permute.xlu0 %5595 }
0x776d   :  { %v5598_v63 = vmul.f32 %v8497_v52, %v5596_v60 }
0x776f   :  { %v6101_v1 = vrot.slane %v5598_v63, 4  ;;  %5600 = vrot.lane.b32.xlu1 %v5598_v63, %s9154_s1 }
0x7771   :  { %v6113_v4 = vsel %vm1317_vm4, %v6112_v3, %v6101_v1 }
0x77e1   :  { %v5601_v6 = vpop.permute.xlu1 %5600 }
0x77e2   :  { %7877 = vmatmul.mubr.msk.f32.vlgmr.msra.gmra.mrb[50].mxu0 %vm390_vm1, %v5601_v6 }
0x77e3   :  { %8046 = vmatpush3.bf16.msra.mxu0 %v9959_v62  ;;  %7890 = vmatprep.mubr.msk.f32.mxu0 %vm9147_vm0, %v9146_v0 }
0x77e4   :  { %8050 = vmatprep.subr.bf16.mxu0 %v9151_v24 }
0x78b5   :  { %v5670_v7 = vpop.f32.mrb[50].mxu0 }
0x78b6   :  { %v5674_v8 = vadd.f32 %v5670_v7, %v9979_v10  ;;  %v7878_v9 = vpop.f32.mrb[51].mxu0 }
0x78b8   :  { %8500 = vtanh.f32 %v5674_v8  ;;  %v7375_v56 = vmul.f32 -1.442695, %v5674_v8 }
0x78ba   :  { %8502 = vpow2.f32 %v7375_v56 }
0x78c2   :  { %v8501_v12 = vpop.eup %8500 }
0x78c3   :  { %5684 = vrot.lane.b32.xlu0 %v8501_v12, %s9152_s4 }
0x78c4   :  { %v8503_v49 = vpop.eup %8502 }
0x78c5   :  { %v5678_v35 = vadd.f32 1.0, %v8503_v49 }
0x78c7   :  { %8504 = vrcp.f32 %v5678_v35 }
0x78d1   :  { %v8505_v14 = vpop.eup %8504 }
0x78d2   :  { %v5682_v17 = vmul.f32 %v8505_v14, %v5592_v58 }
0x7935   :  { %v5685_v15 = vpop.permute.xlu0 %5684 }
0x7936   :  { %v5687_v16 = vmul.f32 %v8505_v14, %v5685_v15 }
0x7938   :  { %5689 = vrot.lane.b32.xlu1 %v5687_v16, %s9149_s23 }
0x79aa   :  { %v5690_v39 = vpop.permute.xlu1 %5689 }
0x79ab   :  { %v5692_v18 = vadd.f32 %v5690_v39, %v5682_v17 }
0x79ad   :  { %8506 = vtanh.f32 %v5692_v18 }
0x79b7   :  { %v8507_v19 = vpop.eup %8506 }
0x79b8   :  { %5695 = vrot.lane.b32.xlu0 %v8507_v19, %s9153_s28 }
0x7a2a   :  { %v5696_v55 = vpop.permute.xlu0 %5695 }
0x7a2b   :  { %v5698_v20 = vmul.f32 %v8505_v14, %v5696_v55 }
0x7a2d   :  { %v6103_v36 = vrot.slane %v5698_v20, 2  ;;  %5700 = vrot.lane.b32.xlu1 %v5698_v20, %s9154_s1 }
0x7a2f   :  { %v10023_v22 = vsel %vm1319_vm5, %v6113_v4, %v6103_v36 }
0x7a9f   :  { %v5701_v23 = vpop.permute.xlu1 %5700 }
0x7aa0   :  { %7884 = vmatmul.mubr.msk.f32.vlgmr.msra.gmra.mrb[52].mxu1 %vm390_vm1, %v5701_v23 }
0x7aa1   :  { %8049 = vmatpush3.bf16.msra.mxu1 %v9959_v62  ;;  %7897 = vmatprep.mubr.msk.f32.mxu1 %vm9147_vm0, %v9146_v0 }
0x7b73   :  { %v5770_v13 = vpop.f32.mrb[52].mxu1 }
0x7b74   :  { %v5774_v26 = vadd.f32 %v5770_v13, %v9979_v10  ;;  %v7885_v28 = vpop.f32.mrb[53].mxu1 }
0x7b76   :  { %8508 = vtanh.f32 %v5774_v26  ;;  %v7377_v31 = vmul.f32 -1.442695, %v5774_v26 }
0x7b78   :  { %8510 = vpow2.f32 %v7377_v31 }
0x7b80   :  { %v8509_v30 = vpop.eup %8508 }
0x7b81   :  { %5784 = vrot.lane.b32.xlu0 %v8509_v30, %s9152_s4 }
0x7b82   :  { %v8511_v32 = vpop.eup %8510 }
0x7b83   :  { %v5778_v33 = vadd.f32 1.0, %v8511_v32 }
0x7b85   :  { %8512 = vrcp.f32 %v5778_v33 }
0x7b8f   :  { %v8513_v34 = vpop.eup %8512 }
0x7b90   :  { %v5782_v46 = vmul.f32 %v8513_v34, %v5692_v18 }
0x7bf3   :  { %v5785_v37 = vpop.permute.xlu0 %5784 }
0x7bf4   :  { %v5787_v25 = vmul.f32 %v8513_v34, %v5785_v37 }
0x7bf6   :  { %5789 = vrot.lane.b32.xlu1 %v5787_v25, %s9149_s23 }
0x7c68   :  { %v5790_v40 = vpop.permute.xlu1 %5789 }
0x7c69   :  { %v5792_v41 = vadd.f32 %v5790_v40, %v5782_v46  ;;  %v372_v40 = vld [vmem:[#allocation23] sm:$0xff] }
0x7c6b   :  { %8514 = vtanh.f32 %v5792_v41 }
0x7c75   :  { %v8515_v42 = vpop.eup %8514 }
0x7c76   :  { %5795 = vrot.lane.b32.xlu0 %v8515_v42, %s9153_s28  ;;  %v374_v42 = vld [vmem:[#allocation25] sm:$0xff] }
0x7ce8   :  { %v5796_v11 = vpop.permute.xlu0 %5795 }
0x7ce9   :  { %v5798_v43 = vmul.f32 %v8513_v34, %v5796_v11 }
0x7ceb   :  { %5800 = vrot.lane.b32.xlu1 %v5798_v43, %s9154_s1 }
0x7d5d   :  { %v5801_v44 = vpop.permute.xlu1 %5800 }
0x7d5e   :  { %7891 = vmatmul.mubr.msk.f32.vlgmr.msra.gmra.mrb[52].mxu0 %vm390_vm1, %v5801_v44 }
0x7d5f   :  { %8052 = vmatpush3.bf16.msra.mxu0 %v9959_v62  ;;  %7904 = vmatprep.mubr.msk.f32.mxu0 %vm9147_vm0, %v9146_v0 }
0x7d60   :  { %8057 = vmatprep.subr.bf16.mxu0 %v9151_v24 }
0x7e31   :  { %v5870_v21 = vpop.f32.mrb[52].mxu0 }
0x7e32   :  { %v5874_v29 = vadd.f32 %v5870_v21, %v9979_v10  ;;  %v7892_v47 = vpop.f32.mrb[53].mxu0 }
0x7e34   :  { %8516 = vtanh.f32 %v5874_v29  ;;  %v7379_v38 = vmul.f32 -1.442695, %v5874_v29 }
0x7e36   :  { %8518 = vpow2.f32 %v7379_v38 }
0x7e3e   :  { %v8517_v48 = vpop.eup %8516 }
0x7e3f   :  { %5884 = vrot.lane.b32.xlu0 %v8517_v48, %s9152_s4 }
0x7e40   :  { %v8519_v50 = vpop.eup %8518 }
0x7e41   :  { %v5878_v51 = vadd.f32 1.0, %v8519_v50 }
0x7e43   :  { %8520 = vrcp.f32 %v5878_v51 }
0x7e4d   :  { %v8521_v52 = vpop.eup %8520 }
0x7e4e   :  { %v5882_v53 = vmul.f32 %v8521_v52, %v5792_v41  ;;  %v373_v41 = vld [vmem:[#allocation23 + $0x8] sm:$0xff] }
0x7e4f   :  { %v8053_v11 = vpack.c.bf16 %v373_v41, %v372_v40 }
0x7e51   :  { %8054 = vmatprep.subr.bf16.mxu1 %v8053_v11 }
0x7eb1   :  { %v5885_v62 = vpop.permute.xlu0 %5884 }
0x7eb2   :  { %v5887_v45 = vmul.f32 %v8521_v52, %v5885_v62 }
0x7eb4   :  { %5889 = vrot.lane.b32.xlu1 %v5887_v45, %s9149_s23 }
0x7f26   :  { %v5890_v54 = vpop.permute.xlu1 %5889 }
0x7f27   :  { %v5892_v57 = vadd.f32 %v5890_v54, %v5882_v53 }
0x7f29   :  { %8522 = vtanh.f32 %v5892_v57 }
0x7f33   :  { %v8523_v58 = vpop.eup %8522 }
0x7f34   :  { %5895 = vrot.lane.b32.xlu0 %v8523_v58, %s9153_s28 }
0x7fa6   :  { %v5896_v5 = vpop.permute.xlu0 %5895 }
0x7fa7   :  { %v5898_v59 = vmul.f32 %v8521_v52, %v5896_v5  ;;  %v7384_v52 = vld [vmem:[#allocation26] ss:$0 sm:$0xff] }
0x7fa9   :  { %5900 = vrot.lane.b32.xlu1 %v5898_v59, %s9154_s1  ;;  %v6105_v16 = vrot.slane %v5898_v59, 6 }
0x7fab   :  { %v6115_v19 = vsel %vm1315_vm3, %v5798_v43, %v6105_v16  ;;  %v375_v43 = vld [vmem:[#allocation25 + $0x8] sm:$0xff] }
0x7fac   :  { %v10061_v44 = vpack.c.bf16 %v375_v43, %v374_v42 }
0x801b   :  { %v5901_v60 = vpop.permute.xlu1 %5900 }
0x801c   :  { %7898 = vmatmul.mubr.msk.f32.vlgmr.msra.gmra.mrb[54].mxu1 %vm390_vm1, %v5901_v60 }
0x801d   :  { %8056 = vmatpush3.bf16.msra.mxu1 %v8053_v11 }
0x801e   :  { %8060 = vmatprep.subr.bf16.mxu1 %v9151_v24 }
0x80ef   :  { %v5970_v63 = vpop.f32.mrb[54].mxu1 }
0x80f0   :  { %v5974_v1 = vadd.f32 %v5970_v63, %v9979_v10  ;;  %v7899_v3 = vpop.f32.mrb[55].mxu1 }
0x80f2   :  { %8524 = vtanh.f32 %v5974_v1  ;;  %v7381_v6 = vmul.f32 -1.442695, %v5974_v1 }
0x80f4   :  { %8526 = vpow2.f32 %v7381_v6 }
0x80fc   :  { %v8525_v4 = vpop.eup %8524 }
0x80fd   :  { %5984 = vrot.lane.b32.xlu0 %v8525_v4, %s9152_s4 }
0x80fe   :  { %v8527_v7 = vpop.eup %8526 }
0x80ff   :  { %v5978_v8 = vadd.f32 1.0, %v8527_v7 }
0x8101   :  { %8528 = vrcp.f32 %v5978_v8 }
0x810b   :  { %v8529_v9 = vpop.eup %8528 }
0x810c   :  { %v5982_v49 = vmul.f32 %v8529_v9, %v5892_v57 }
0x816f   :  { %v5985_v12 = vpop.permute.xlu0 %5984 }
0x8170   :  { %v5987_v56 = vmul.f32 %v8529_v9, %v5985_v12 }
0x8172   :  { %5989 = vrot.lane.b32.xlu1 %v5987_v56, %s9149_s23 }
0x81e4   :  { %v5990_v35 = vpop.permute.xlu1 %5989 }
0x81e5   :  { %v5992_v14 = vadd.f32 %v5990_v35, %v5982_v49 }
0x81e7   :  { %8530 = vtanh.f32 %v5992_v14 }
0x81f1   :  { %v8531_v15 = vpop.eup %8530 }
0x81f2   :  { %5995 = vrot.lane.b32.xlu0 %v8531_v15, %s9153_s28 }
0x8264   :  { %v5996_v17 = vpop.permute.xlu0 %5995 }
0x8265   :  { %v5998_v39 = vmul.f32 %v8529_v9, %v5996_v17 }
0x8267   :  { %v6107_v18 = vrot.slane %v5998_v39, 4  ;;  %6000 = vrot.lane.b32.xlu1 %v5998_v39, %s9154_s1 }
0x8269   :  { %v6116_v55 = vsel %vm1317_vm4, %v6115_v19, %v6107_v18 }
0x82d9   :  { %v6001_v20 = vpop.permute.xlu1 %6000 }
0x82da   :  { %7905 = vmatmul.mubr.msk.f32.vlgmr.msra.gmra.mrb[54].mxu0 %vm390_vm1, %v6001_v20 }
0x82db   :  { %7918 = vmatprep.mubr.msk.f32.mxu0 %vm9147_vm0, %v9146_v0  ;;  %8059 = vmatpush3.bf16.msra.mxu0 %v10061_v44 }
0x82dc   :  { %8063 = vmatprep.subr.bf16.mxu0 %v9151_v24 }
0x82de   :  { %7919 = vmatmul.mubr.f32.vlgmr.msra.gmra.mrb[56].mxu0 %v9146_v0 }
0x82df   :  { %8065 = vmatpush3.bf16.msra.mxu0 %v10061_v44  ;;  %7932 = vmatprep.mubr.msk.f32.mxu0 %vm9147_vm0, %v9146_v0 }
0x82e0   :  { %8069 = vmatprep.subr.bf16.mxu0 %v9151_v24 }
0x83ad   :  { %v6070_v36 = vpop.f32.mrb[54].mxu0 }
0x83ae   :  { %v6074_v23 = vadd.f32 %v6070_v36, %v9979_v10  ;;  %v7906_v13 = vpop.f32.mrb[55].mxu0 }
0x83b0   :  { %8532 = vtanh.f32 %v6074_v23  ;;  %v7383_v28 = vmul.f32 -1.442695, %v6074_v23 }
0x83b1   :  { %v6275_v50 = vpop.f32.mrb[56].mxu0 }
0x83b2   :  { %8534 = vpow2.f32 %v7383_v28  ;;  %v7920_v51 = vpop.f32.mrb[57].mxu0 }
0x83ba   :  { %v8533_v26 = vpop.eup %8532 }
0x83bb   :  { %6084 = vrot.lane.b32.xlu0 %v8533_v26, %s9152_s4 }
0x83bc   :  { %v8535_v30 = vpop.eup %8534 }
0x83bd   :  { %v6078_v31 = vadd.f32 1.0, %v8535_v30 }
0x83bf   :  { %8536 = vrcp.f32 %v6078_v31 }
0x83c9   :  { %v8537_v32 = vpop.eup %8536 }
0x83ca   :  { %v6082_v37 = vmul.f32 %v8537_v32, %v5992_v14 }
0x842d   :  { %v6085_v33 = vpop.permute.xlu0 %6084 }
0x842e   :  { %v6087_v34 = vmul.f32 %v8537_v32, %v6085_v33 }
0x8430   :  { %6089 = vrot.lane.b32.xlu1 %v6087_v34, %s9149_s23 }
0x8434   :  { %6126 = vrot.lane.b32.xlu1 %v10023_v22, %s9154_s1 }
0x84a2   :  { %v6090_v10 = vpop.permute.xlu1 %6089 }
0x84a3   :  { %v6092_v25 = vadd.f32 %v6090_v10, %v6082_v37 }
0x84a5   :  { %8538 = vtanh.f32 %v6092_v25 }
0x84a6   :  { %v6127_v46 = vpop.permute.xlu1 %6126 }
0x84a7   :  { %7911 = vmatprep.mubr.msk.f32.mxu1 %vm390_vm1, %v6127_v46 }
0x84af   :  { %v8539_v22 = vpop.eup %8538 }
0x84b0   :  { %6095 = vrot.lane.b32.xlu0 %v8539_v22, %s9153_s28 }
0x8522   :  { %v6096_v21 = vpop.permute.xlu0 %6095 }
0x8523   :  { %v6098_v29 = vmul.f32 %v8537_v32, %v6096_v21 }
0x8525   :  { %v6110_v47 = vrot.slane %v6098_v29, 2 }
0x8527   :  { %v6117_v48 = vsel %vm1319_vm5, %v6116_v55, %v6110_v47 }
0x8528   :  { %6128 = vrot.lane.b32.xlu0 %v6117_v48, %s9154_s1 }
0x859a   :  { %v6129_v38 = vpop.permute.xlu0 %6128 }
0x859b   :  { %7912 = vmatmul.mubr.msk.f32.vlgmr.msra.gmra.mrb[56].mxu1 %vm390_vm1, %v6129_v38 }
0x859c   :  { %8062 = vmatpush3.bf16.msra.mxu1 %v10061_v44  ;;  %7925 = vmatprep.mubr.msk.f32.mxu1 %vm9147_vm0, %v9146_v0 }
0x859d   :  { %8066 = vmatprep.subr.bf16.mxu1 %v9151_v24 }
0x866e   :  { %v7913_v62 = vpop.f32.mrb[56].mxu1 }
0x866f   :  { %v10079_v45 = vadd.f32 %v7913_v62, %v7384_v52  ;;  %v6200_v53 = vpop.f32.mrb[57].mxu1 }
0x8670   :  { %v10081_v54 = vadd.f32 %v7384_v52, %v6200_v53 }
0x8672   :  { %v6279_v57 = vadd.f32 %v6275_v50, %v10081_v54 }
0x8674   :  { %8540 = vtanh.f32 %v6279_v57  ;;  %v7387_v5 = vmul.f32 -1.442695, %v6279_v57 }
0x8676   :  { %8542 = vpow2.f32 %v7387_v5 }
0x867e   :  { %v8541_v58 = vpop.eup %8540 }
0x867f   :  { %6289 = vrot.lane.b32.xlu1 %v8541_v58, %s9152_s4 }
0x8680   :  { %v8543_v59 = vpop.eup %8542 }
0x8681   :  { %v6283_v60 = vadd.f32 1.0, %v8543_v59 }
0x8683   :  { %8544 = vrcp.f32 %v6283_v60 }
0x868d   :  { %v8545_v63 = vpop.eup %8544 }
0x868e   :  { %v6287_v4 = vmul.f32 0.0, %v8545_v63 }
0x86f1   :  { %v6290_v1 = vpop.permute.xlu1 %6289 }
0x86f2   :  { %v6292_v3 = vmul.f32 %v8545_v63, %v6290_v1 }
0x86f4   :  { %6294 = vrot.lane.b32.xlu0 %v6292_v3, %s9149_s23 }
0x8766   :  { %v6295_v6 = vpop.permute.xlu0 %6294 }
0x8767   :  { %v6297_v7 = vadd.f32 %v6295_v6, %v6287_v4 }
0x8769   :  { %8546 = vtanh.f32 %v6297_v7  ;;  %v6391_v36 = vrot.slane %v6297_v7, 6 }
0x8773   :  { %v8547_v8 = vpop.eup %8546 }
0x8774   :  { %6300 = vrot.lane.b32.xlu1 %v8547_v8, %s9153_s28 }
0x87e6   :  { %v6301_v9 = vpop.permute.xlu1 %6300 }
0x87e7   :  { %v10087_v12 = vmul.f32 %v8545_v63, %v6301_v9 }
0x87e9   :  { %6305 = vrot.lane.b32.xlu0 %v10087_v12, %s9154_s1 }
0x885b   :  { %v6306_v56 = vpop.permute.xlu0 %6305 }
0x885c   :  { %7926 = vmatmul.mubr.msk.f32.vlgmr.msra.gmra.mrb[58].mxu1 %vm390_vm1, %v6306_v56 }
0x885d   :  { %8068 = vmatpush3.bf16.msra.mxu1 %v10061_v44  ;;  %7939 = vmatprep.mubr.msk.f32.mxu1 %vm9147_vm0, %v9146_v0 }
0x885e   :  { %8072 = vmatprep.subr.bf16.mxu1 %v9151_v24 }
0x892f   :  { %v6375_v49 = vpop.f32.mrb[58].mxu1 }
0x8930   :  { %v6380_v35 = vrot.slane %v6375_v49, 6  ;;  %v7927_v14 = vpop.f32.mrb[59].mxu1 }
0x8932   :  { %v6382_v15 = vadd.f32 %v6380_v35, %v10081_v54 }
0x8934   :  { %8548 = vtanh.f32 %v6382_v15  ;;  %v7389_v17 = vmul.f32 -1.442695, %v6382_v15 }
0x8936   :  { %8550 = vpow2.f32 %v7389_v17 }
0x893e   :  { %v8549_v16 = vpop.eup %8548 }
0x893f   :  { %6395 = vrot.lane.b32.xlu1 %v8549_v16, %s9152_s4 }
0x8940   :  { %v8551_v39 = vpop.eup %8550 }
0x8941   :  { %v6386_v18 = vadd.f32 1.0, %v8551_v39 }
0x8943   :  { %8552 = vrcp.f32 %v6386_v18 }
0x894d   :  { %v8553_v19 = vpop.eup %8552 }
0x894e   :  { %v6393_v23 = vmul.f32 %v8553_v19, %v6391_v36 }
0x89b1   :  { %v6396_v55 = vpop.permute.xlu1 %6395 }
0x89b2   :  { %v6398_v20 = vmul.f32 %v8553_v19, %v6396_v55 }
0x89b4   :  { %6400 = vrot.lane.b32.xlu0 %v6398_v20, %s9149_s23 }
0x8a26   :  { %v6401_v13 = vpop.permute.xlu0 %6400 }
0x8a27   :  { %v6403_v26 = vadd.f32 %v6401_v13, %v6393_v23 }
0x8a29   :  { %8554 = vtanh.f32 %v6403_v26  ;;  %v6498_v21 = vrot.slane %v6403_v26, 6 }
0x8a33   :  { %v8555_v28 = vpop.eup %8554 }
0x8a34   :  { %6406 = vrot.lane.b32.xlu1 %v8555_v28, %s9153_s28 }
0x8aa6   :  { %v6407_v30 = vpop.permute.xlu1 %6406 }
0x8aa7   :  { %v6409_v31 = vmul.f32 %v8553_v19, %v6407_v30 }
0x8aa9   :  { %v6411_v32 = vrot.slane %v6409_v31, 2  ;;  %v7048_v52 = vsel %vm1315_vm3, %v10087_v12, %v6409_v31 }
0x8aab   :  { %6412 = vrot.lane.b32.xlu0 %v6411_v32, %s9154_s1 }
0x8b1d   :  { %v6413_v33 = vpop.permute.xlu0 %6412 }
0x8b1e   :  { %7933 = vmatmul.mubr.msk.f32.vlgmr.msra.gmra.mrb[58].mxu0 %vm390_vm1, %v6413_v33 }
0x8b1f   :  { %8071 = vmatpush3.bf16.msra.mxu0 %v10061_v44  ;;  %7946 = vmatprep.mubr.msk.f32.mxu0 %vm9147_vm0, %v9146_v0 }
0x8b20   :  { %8075 = vmatprep.subr.bf16.mxu0 %v9151_v24 }
0x8bf1   :  { %v6482_v34 = vpop.f32.mrb[58].mxu0 }
0x8bf2   :  { %v6487_v37 = vrot.slane %v6482_v34, 4  ;;  %v7934_v10 = vpop.f32.mrb[59].mxu0 }
0x8bf4   :  { %v6489_v25 = vadd.f32 %v6487_v37, %v10081_v54 }
0x8bf6   :  { %8556 = vtanh.f32 %v6489_v25  ;;  %v7391_v40 = vmul.f32 -1.442695, %v6489_v25 }
0x8bf8   :  { %8558 = vpow2.f32 %v7391_v40 }
0x8c00   :  { %v8557_v46 = vpop.eup %8556 }
0x8c01   :  { %6502 = vrot.lane.b32.xlu1 %v8557_v46, %s9152_s4 }
0x8c02   :  { %v8559_v41 = vpop.eup %8558 }
0x8c03   :  { %v6493_v42 = vadd.f32 1.0, %v8559_v41 }
0x8c05   :  { %8560 = vrcp.f32 %v6493_v42 }
0x8c0f   :  { %v8561_v11 = vpop.eup %8560 }
0x8c10   :  { %v6500_v29 = vmul.f32 %v8561_v11, %v6498_v21 }
0x8c73   :  { %v6503_v43 = vpop.permute.xlu1 %6502 }
0x8c74   :  { %v6505_v22 = vmul.f32 %v8561_v11, %v6503_v43 }
0x8c76   :  { %6507 = vrot.lane.b32.xlu0 %v6505_v22, %s9149_s23 }
0x8ce8   :  { %v6508_v47 = vpop.permute.xlu0 %6507 }
0x8ce9   :  { %v6510_v48 = vadd.f32 %v6508_v47, %v6500_v29 }
0x8ceb   :  { %8562 = vtanh.f32 %v6510_v48 }
0x8cf5   :  { %v8563_v38 = vpop.eup %8562 }
0x8cf6   :  { %6513 = vrot.lane.b32.xlu1 %v8563_v38, %s9153_s28 }
0x8d68   :  { %v6514_v50 = vpop.permute.xlu1 %6513 }
0x8d69   :  { %v6516_v51 = vmul.f32 %v8561_v11, %v6514_v50 }
0x8d6b   :  { %v6518_v62 = vrot.slane %v6516_v51, 4  ;;  %v7049_v53 = vsel %vm1317_vm4, %v7048_v52, %v6516_v51 }
0x8d6d   :  { %6519 = vrot.lane.b32.xlu0 %v6518_v62, %s9154_s1 }
0x8ddf   :  { %v6520_v57 = vpop.permute.xlu0 %6519 }
0x8de0   :  { %7940 = vmatmul.mubr.msk.f32.vlgmr.msra.gmra.mrb[60].mxu1 %vm390_vm1, %v6520_v57 }
0x8de1   :  { %8074 = vmatpush3.bf16.msra.mxu1 %v10061_v44  ;;  %7953 = vmatprep.mubr.msk.f32.mxu1 %vm9147_vm0, %v9146_v0 }
0x8de2   :  { %8078 = vmatprep.subr.bf16.mxu1 %v9151_v24  ;;  %v6605_v24 = vrot.slane %v6510_v48, 6 }
0x8eb3   :  { %v6589_v58 = vpop.f32.mrb[60].mxu1 }
0x8eb4   :  { %v6594_v5 = vrot.slane %v6589_v58, 2  ;;  %v7941_v59 = vpop.f32.mrb[61].mxu1 }
0x8eb6   :  { %v6596_v60 = vadd.f32 %v6594_v5, %v10081_v54 }
0x8eb8   :  { %8564 = vtanh.f32 %v6596_v60  ;;  %v7393_v1 = vmul.f32 -1.442695, %v6596_v60 }
0x8eba   :  { %8566 = vpow2.f32 %v7393_v1 }
0x8ec2   :  { %v8565_v63 = vpop.eup %8564 }
0x8ec3   :  { %6609 = vrot.lane.b32.xlu1 %v8565_v63, %s9152_s4 }
0x8ec4   :  { %v8567_v3 = vpop.eup %8566 }
0x8ec5   :  { %v6600_v4 = vadd.f32 1.0, %v8567_v3 }
0x8ec7   :  { %8568 = vrcp.f32 %v6600_v4 }
0x8ed1   :  { %v8569_v6 = vpop.eup %8568 }
0x8ed2   :  { %v6607_v9 = vmul.f32 %v8569_v6, %v6605_v24 }
0x8f35   :  { %v6610_v7 = vpop.permute.xlu1 %6609 }
0x8f36   :  { %v6612_v8 = vmul.f32 %v8569_v6, %v6610_v7 }
0x8f38   :  { %6614 = vrot.lane.b32.xlu0 %v6612_v8, %s9149_s23 }
0x8faa   :  { %v6615_v12 = vpop.permute.xlu0 %6614 }
0x8fab   :  { %v6617_v56 = vadd.f32 %v6615_v12, %v6607_v9 }
0x8fad   :  { %8570 = vtanh.f32 %v6617_v56  ;;  %v6709_v28 = vrot.slane %v6617_v56, 6 }
0x8fb7   :  { %v8571_v54 = vpop.eup %8570 }
0x8fb8   :  { %6620 = vrot.lane.b32.xlu1 %v8571_v54, %s9153_s28 }
0x902a   :  { %v6621_v49 = vpop.permute.xlu1 %6620 }
0x902b   :  { %v6623_v35 = vmul.f32 %v8569_v6, %v6621_v49 }
0x902d   :  { %v6625_v14 = vrot.slane %v6623_v35, 6  ;;  %v10124_v15 = vsel %vm1319_vm5, %v7049_v53, %v6623_v35 }
0x902f   :  { %6626 = vrot.lane.b32.xlu0 %v6625_v14, %s9154_s1 }
0x90a1   :  { %v6627_v16 = vpop.permute.xlu0 %6626 }
0x90a2   :  { %7947 = vmatmul.mubr.msk.f32.vlgmr.msra.gmra.mrb[60].mxu0 %vm390_vm1, %v6627_v16 }
0x90a3   :  { %8077 = vmatpush3.bf16.msra.mxu0 %v10061_v44  ;;  %7960 = vmatprep.mubr.msk.f32.mxu0 %vm9147_vm0, %v9146_v0 }
0x9175   :  { %v6696_v17 = vpop.f32.mrb[60].mxu0 }
0x9176   :  { %v6700_v39 = vadd.f32 %v6696_v17, %v10079_v45  ;;  %v7948_v18 = vpop.f32.mrb[61].mxu0 }
0x9178   :  { %8572 = vtanh.f32 %v6700_v39  ;;  %v7395_v55 = vmul.f32 -1.442695, %v6700_v39 }
0x917a   :  { %8574 = vpow2.f32 %v7395_v55 }
0x9182   :  { %v8573_v19 = vpop.eup %8572 }
0x9183   :  { %6713 = vrot.lane.b32.xlu1 %v8573_v19, %s9152_s4 }
0x9184   :  { %v8575_v20 = vpop.eup %8574 }
0x9185   :  { %v6704_v36 = vadd.f32 1.0, %v8575_v20 }
0x9187   :  { %8576 = vrcp.f32 %v6704_v36 }
0x9191   :  { %v8577_v23 = vpop.eup %8576 }
0x9192   :  { %v6711_v30 = vmul.f32 %v8577_v23, %v6709_v28 }
0x91f5   :  { %v6714_v13 = vpop.permute.xlu1 %6713 }
0x91f6   :  { %v6716_v26 = vmul.f32 %v8577_v23, %v6714_v13 }
0x91f8   :  { %6718 = vrot.lane.b32.xlu0 %v6716_v26, %s9149_s23 }
0x926a   :  { %v6719_v31 = vpop.permute.xlu0 %6718 }
0x926b   :  { %v6721_v32 = vadd.f32 %v6719_v31, %v6711_v30 }
0x926d   :  { %8578 = vtanh.f32 %v6721_v32 }
0x9277   :  { %v8579_v33 = vpop.eup %8578 }
0x9278   :  { %6724 = vrot.lane.b32.xlu1 %v8579_v33, %s9153_s28 }
0x92ea   :  { %v6725_v34 = vpop.permute.xlu1 %6724 }
0x92eb   :  { %v6727_v37 = vmul.f32 %v8577_v23, %v6725_v34 }
0x92ed   :  { %6729 = vrot.lane.b32.xlu0 %v6727_v37, %s9154_s1 }
0x935f   :  { %v6730_v10 = vpop.permute.xlu0 %6729 }
0x9360   :  { %7954 = vmatmul.mubr.msk.f32.vlgmr.msra.gmra.mrb[62].mxu1 %vm390_vm1, %v6730_v10  ;;  %v378_v10 = vld [vmem:[%s10246_s12 + $0x8] sm:$0xff] }
0x9361   :  { %8080 = vmatpush3.bf16.msra.mxu1 %v10061_v44  ;;  %7967 = vmatprep.mubr.msk.f32.mxu1 %vm9147_vm0, %v9146_v0  ;;  %v6815_v0 = vrot.slane %v6721_v32, 6 }
0x9433   :  { %v6799_v25 = vpop.f32.mrb[62].mxu1 }
0x9434   :  { %v6804_v46 = vrot.slane %v6799_v25, 6  ;;  %v7955_v40 = vpop.f32.mrb[63].mxu1 }
0x9436   :  { %v6806_v41 = vadd.f32 %v6804_v46, %v10079_v45 }
0x9438   :  { %8580 = vtanh.f32 %v6806_v41  ;;  %v7397_v11 = vmul.f32 -1.442695, %v6806_v41 }
0x943a   :  { %8582 = vpow2.f32 %v7397_v11 }
0x9442   :  { %v8581_v42 = vpop.eup %8580 }
0x9443   :  { %6819 = vrot.lane.b32.xlu1 %v8581_v42, %s9152_s4 }
0x9444   :  { %v8583_v43 = vpop.eup %8582 }
0x9445   :  { %v6810_v22 = vadd.f32 1.0, %v8583_v43 }
0x9447   :  { %8584 = vrcp.f32 %v6810_v22 }
0x9451   :  { %v8585_v21 = vpop.eup %8584 }
0x9452   :  { %v6817_v47 = vmul.f32 %v8585_v21, %v6815_v0 }
0x94b5   :  { %v6820_v29 = vpop.permute.xlu1 %6819 }
0x94b6   :  { %v6822_v44 = vmul.f32 %v8585_v21, %v6820_v29 }
0x94b8   :  { %6824 = vrot.lane.b32.xlu0 %v6822_v44, %s9149_s23 }
0x952a   :  { %v6825_v48 = vpop.permute.xlu0 %6824 }
0x952b   :  { %v6827_v38 = vadd.f32 %v6825_v48, %v6817_v47  ;;  %v7402_v48 = vld [vmem:[#allocation28] ss:$0 sm:$0xff] }
0x952d   :  { %8586 = vtanh.f32 %v6827_v38  ;;  %v6922_v8 = vrot.slane %v6827_v38, 6 }
0x9537   :  { %v8587_v50 = vpop.eup %8586 }
0x9538   :  { %6830 = vrot.lane.b32.xlu1 %v8587_v50, %s9153_s28 }
0x95aa   :  { %v6831_v51 = vpop.permute.xlu1 %6830 }
0x95ab   :  { %v6833_v52 = vmul.f32 %v8585_v21, %v6831_v51 }
0x95ad   :  { %v6835_v62 = vrot.slane %v6833_v52, 2  ;;  %v7051_v35 = vsel %vm1315_vm3, %v6727_v37, %v6833_v52  ;;  %v377_v37 = vld [vmem:[%s10246_s12] sm:$0xff] }
0x95ae   :  { %v8081_v25 = vpack.c.bf16 %v378_v10, %v377_v37 }
0x95af   :  { %6836 = vrot.lane.b32.xlu0 %v6835_v62, %s9154_s1  ;;  %v8604_v62 = vld [vmem:[%s10234_s30 + $0x8] sm:$0xff] }
0x95b0   :  { %8082 = vmatprep.subr.bf16.mxu0 %v8081_v25 }
0x9621   :  { %v6837_v53 = vpop.permute.xlu0 %6836 }
0x9622   :  { %7961 = vmatmul.mubr.msk.f32.vlgmr.msra.gmra.mrb[62].mxu0 %vm390_vm1, %v6837_v53 }
0x9623   :  { %8084 = vmatpush3.bf16.msra.mxu0 %v8081_v25 }
0x96f5   :  { %v6906_v57 = vpop.f32.mrb[62].mxu0 }
0x96f6   :  { %v6911_v58 = vrot.slane %v6906_v57, 4  ;;  %v7962_v5 = vpop.f32.mrb[63].mxu0  ;;  %v8605_v57 = vld [vmem:[%s10234_s30] sm:$0xff] }
0x96f8   :  { %v6913_v59 = vadd.f32 %v6911_v58, %v10079_v45 }
0x96fa   :  { %8588 = vtanh.f32 %v6913_v59  ;;  %v7399_v63 = vmul.f32 -1.442695, %v6913_v59 }
0x96fc   :  { %8590 = vpow2.f32 %v7399_v63 }
0x9704   :  { %v8589_v60 = vpop.eup %8588 }
0x9705   :  { %6926 = vrot.lane.b32.xlu1 %v8589_v60, %s9152_s4 }
0x9706   :  { %v8591_v1 = vpop.eup %8590 }
0x9707   :  { %v6917_v3 = vadd.f32 1.0, %v8591_v1 }
0x9709   :  { %8592 = vrcp.f32 %v6917_v3 }
0x9713   :  { %v8593_v4 = vpop.eup %8592 }
0x9714   :  { %v6924_v24 = vmul.f32 %v8593_v4, %v6922_v8 }
0x9777   :  { %v6927_v6 = vpop.permute.xlu1 %6926 }
0x9778   :  { %v6929_v7 = vmul.f32 %v8593_v4, %v6927_v6 }
0x977a   :  { %6931 = vrot.lane.b32.xlu0 %v6929_v7, %s9149_s23 }
0x97ec   :  { %v6932_v9 = vpop.permute.xlu0 %6931 }
0x97ed   :  { %v6934_v12 = vadd.f32 %v6932_v9, %v6924_v24 }
0x97ef   :  { %8594 = vtanh.f32 %v6934_v12 }
0x97f9   :  { %v8595_v56 = vpop.eup %8594 }
0x97fa   :  { %6937 = vrot.lane.b32.xlu1 %v8595_v56, %s9153_s28 }
0x986c   :  { %v6938_v54 = vpop.permute.xlu1 %6937 }
0x986d   :  { %v6940_v49 = vmul.f32 %v8593_v4, %v6938_v54 }
0x986f   :  { %v6942_v14 = vrot.slane %v6940_v49, 4  ;;  %v7052_v16 = vsel %vm1317_vm4, %v7051_v35, %v6940_v49 }
0x9871   :  { %6943 = vrot.lane.b32.xlu0 %v6942_v14, %s9154_s1 }
0x98e3   :  { %v6944_v17 = vpop.permute.xlu0 %6943 }
0x98e4   :  { %7968 = vmatmul.mubr.msk.f32.vlgmr.msra.gmra.mrb[64].mxu1 %vm390_vm1, %v6944_v17 }
0x99b7   :  { %v7013_v39 = vpop.f32.mrb[64].mxu1 }
0x99b8   :  { %v7018_v18 = vrot.slane %v7013_v39, 2  ;;  %v7969_v19 = vpop.f32.mrb[65].mxu1 }
0x99ba   :  { %v7020_v55 = vadd.f32 %v7018_v18, %v10079_v45  ;;  %v7029_v45 = vrot.slane %v6934_v12, 6 }
0x99bc   :  { %8596 = vtanh.f32 %v7020_v55  ;;  %v7401_v36 = vmul.f32 -1.442695, %v7020_v55 }
0x99be   :  { %8598 = vpow2.f32 %v7401_v36 }
0x99c6   :  { %v8597_v20 = vpop.eup %8596 }
0x99c7   :  { %7033 = vrot.lane.b32.xlu1 %v8597_v20, %s9152_s4 }
0x99c8   :  { %v8599_v23 = vpop.eup %8598 }
0x99c9   :  { %v7024_v13 = vadd.f32 1.0, %v8599_v23 }
0x99cb   :  { %8600 = vrcp.f32 %v7024_v13 }
0x99d5   :  { %v8601_v26 = vpop.eup %8600 }
0x99d6   :  { %v7031_v31 = vmul.f32 %v8601_v26, %v7029_v45 }
0x9a39   :  { %v7034_v28 = vpop.permute.xlu1 %7033 }
0x9a3a   :  { %v7036_v30 = vmul.f32 %v8601_v26, %v7034_v28 }
0x9a3c   :  { %7038 = vrot.lane.b32.xlu0 %v7036_v30, %s9149_s23 }
0x9a40   :  { %7062 = vrot.lane.b32.xlu0 %v10124_v15, %s9154_s1 }
0x9a5f   :  { %3772 = vadd.xlane.f32.xlu0 %v9832_v61 }
0x9a75   :  { %2255 = vrot.lane.b32.xlu0 %v9647_v27, %s9150_s26 }
0x9aae   :  { %v7039_v32 = vpop.permute.xlu0 %7038 }
0x9aaf   :  { %v7041_v33 = vadd.f32 %v7039_v32, %v7031_v31 }
0x9ab1   :  { %8602 = vtanh.f32 %v7041_v33 }
0x9ab2   :  { %v7063_v34 = vpop.permute.xlu0 %7062 }
0x9ab3   :  { %7974 = vmatprep.mubr.msk.f32.mxu0 %vm390_vm1, %v7063_v34 }
0x9abb   :  { %v8603_v46 = vpop.eup %8602 }
0x9abc   :  { %7044 = vrot.lane.b32.xlu1 %v8603_v46, %s9153_s28 }
0x9aec   :  { %v3773_v61 = vpop.xlane.xlu0 %3772 }
0x9aed   :  { %v3774_v15 = vrot.slane %v3773_v61, 4 }
0x9aef   :  { %v3775_v27 = vadd.f32 %v3774_v15, %v3773_v61 }
0x9af0   :  { %v2256_v40 = vpop.permute.xlu0 %2255 }
0x9af1   :  { %v3776_v41 = vrot.slane %v3775_v27, 2  ;;  %2259 = vst.msk [vmem:[#allocation29 - $0x6] sm:$0xc0] %vm2258_vm7, %v2256_v40 }
0x9af3   :  { %v3777_v42 = vadd.f32 %v3776_v41, %v3775_v27 }
0x9af5   :  { %v3778_v11 = vrot.slane %v3777_v42, 1 }
0x9af7   :  { %v3779_v43 = vadd.f32 %v3778_v11, %v3777_v42 }
0x9af9   :  { %8085 = vpush %v3779_v43 }
0x9b2a   :  { %s8086_s15 = spop %8085 }
0x9b2b   :  { %v3781_v22 = vstv %s8086_s15 }
0x9b2c   :  { %v3782_v21 = vmul.f32 0.0052083335, %v3781_v22 }
0x9b2e   :  { %v7045_v29 = vpop.permute.xlu1 %7044  ;;  %3784 = vst.msk [vmem:[#allocation30] sm:$0x1] %vm3783_vm8, %v3782_v21 }
0x9b2f   :  { %v7047_v44 = vmul.f32 %v8601_v26, %v7045_v29 }
0x9b31   :  { %v7053_v0 = vsel %vm1319_vm5, %v7052_v16, %v7047_v44 }
0x9b32   :  { %7064 = vrot.lane.b32.xlu1 %v7053_v0, %s9154_s1 }
0x9ba4   :  { %v7065_v47 = vpop.permute.xlu1 %7064 }
0x9ba5   :  { %7975 = vmatmul.mubr.msk.f32.vlgmr.msra.gmra.mrb[64].mxu0 %vm390_vm1, %v7065_v47 }
0x9c78   :  { %v7976_v38 = vpop.f32.mrb[64].mxu0 }
0x9c79   :  { %v7142_v50 = vadd.f32 %v7976_v38, %v7402_v48  ;;  %v7136_v51 = vpop.f32.mrb[65].mxu0 }
0x9c7a   :  { %v7137_v52 = vadd.f32 %v7402_v48, %v7136_v51 }
0x9c7b   :  { %7146 = vst.msk [vmem:[%s9337_s14 + $0x8] sm:$0xff] %vm390_vm1, %v7142_v50  ;;  %v7148_v53 = vsub.f32 %v7142_v50, %v8604_v62 }
0x9c7c   :  { %7145 = vst.msk [vmem:[%s9337_s14] sm:$0xff] %vm390_vm1, %v7137_v52  ;;  %v7147_v58 = vsub.f32 %v7137_v52, %v8605_v57  ;;  %s8984_s14 = scalar_lea.vmem %s7185_s16, 32 }
0x9c7d   :  { %v7150_v5 = vmul.f32 %v7148_v53, %v7148_v53  ;;  %p8986_p12 = scmp.lt.s32.totalorder %s8984_s14, %s8980_s22 }
0x9c7e   :  { %v7149_v59 = vmul.f32 %v7147_v58, %v7147_v58 }
0x9c7f   :  { %v7152_v60 = vsel %vm390_vm1, %v7150_v5, 0.0  ;;  %p8987_p13 = por %p8986_p12, %p8985_p11 }
0x9c80   :  { %v7151_v63 = vsel %vm390_vm1, %v7149_v59, 0.0 }
0x9c81   :  { %v7153_v1 = vadd.f32 %v7152_v60, %v7151_v63  ;;  %p8988_p0 = pnand %p8987_p13, %p8981_p10 }
0x9c83   :  { %7154 = vadd.xlane.f32.xlu1 %v7153_v1 }
0x9c94   :  { %5218 = vrot.lane.b32.xlu1 %v9970_v2, %s9150_s26 }
0x9c95   :  { %8991 = shalt.err (!%p8988_p0)
}
0x9c96   :  { %s8992_s29 = scalar_lea.hbm %s9327_s5, 16 }
0x9c97   :  { %p8993_p1 = scmp.ne.s32.totalorder %s9327_s5, %s8992_s29  ;;  %p8996_p2 = scmp.lt.u32.totalorder %s8992_s29, %s9327_s5 }
0x9c99   :  { %p8998_p3 = pnand %p8996_p2, %p8993_p1 }
0x9c9b   :  { %9001 = shalt.err (!%p8998_p3)
}
0x9c9c   :  { %7187 = dma.vmem_to_hbm [thread:$0]  %s7185_s16, 16, %s9327_s5, [#allocation31]  }
0x9c9d   :  { %s9002_s11 = scalar_lea.vmem %s7173_s25, 32  ;;  %p9007_p5 = scmp.lt.s32.totalorder %s7173_s25, %s7173_s25 }
0x9c9e   :  { %p9003_p4 = scmp.ne.s32.totalorder %s7173_s25, %s9002_s11  ;;  %p9008_p6 = scmp.lt.s32.totalorder %s9002_s11, %s9002_s11 }
0x9ca0   :  { %p9009_p7 = por %p9008_p6, %p9007_p5 }
0x9ca2   :  { %p9010_p8 = pnand %p9009_p7, %p9003_p4 }
0x9ca4   :  { %9013 = shalt.err (!%p9010_p8)
}
0x9ca5   :  { %s10247_s30 = sld [smem:[#allocation63_spill]] }
0x9cab   :  { %s9014_s3 = scalar_lea.hbm %s10247_s30, 32 }
0x9cac   :  { %p9015_p9 = scmp.ne.s32.totalorder %s10247_s30, %s9014_s3  ;;  %p9018_p10 = scmp.lt.u32.totalorder %s9014_s3, %s10247_s30 }
0x9cae   :  { %p9020_p11 = pnand %p9018_p10, %p9015_p9 }
0x9cb0   :  { %9023 = shalt.err (!%p9020_p11)
}
0x9cb1   :  { %7175 = dma.vmem_to_hbm [thread:$0]  %s7173_s25, 32, %s10247_s30, [#allocation4]   ;;  %vm5221_vm9 = vcmask 60418  }
0x9cb2   :  { %s9157_s5 = smov [#allocation32]  }
0x9cb3   :  { %s7194_s23 = sshll.u32 %s9157_s5, 4  ;;  %s7195_s23 = int_to_ptr.vmem [resolvable:$true] %s7194_s23 }
0x9cb4   :  { %s9024_s26 = scalar_lea.vmem %s7195_s23, 32  ;;  %p9029_p13 = scmp.lt.s32.totalorder %s7195_s23, %s7195_s23 }
0x9cb5   :  { %p9025_p12 = scmp.ne.s32.totalorder %s7195_s23, %s9024_s26  ;;  %p9030_p0 = scmp.lt.s32.totalorder %s9024_s26, %s9024_s26 }
0x9cb7   :  { %p9031_p1 = por %p9030_p0, %p9029_p13 }
0x9cb9   :  { %p9032_p2 = pnand %p9031_p1, %p9025_p12 }
0x9d10   :  { %v7155_v2 = vpop.xlane.xlu1 %7154 }
0x9d11   :  { %v7156_v3 = vrot.slane %v7155_v2, 4 }
0x9d13   :  { %v7157_v4 = vadd.f32 %v7156_v3, %v7155_v2 }
0x9d14   :  { %v5219_v6 = vpop.permute.xlu1 %5218 }
0x9d15   :  { %v7158_v7 = vrot.slane %v7157_v4, 2  ;;  %5222 = vst.msk [vmem:[#allocation32 - $0x2] sm:$0xc] %vm5221_vm9, %v5219_v6 }
0x9d16   :  { %9035 = shalt.err (!%p9032_p2)
}
0x9d17   :  { %s9036_s0 = scalar_lea.hbm %s9332_s13, 32 }
0x9d18   :  { %p9037_p3 = scmp.ne.s32.totalorder %s9332_s13, %s9036_s0  ;;  %p9040_p4 = scmp.lt.u32.totalorder %s9036_s0, %s9332_s13 }
0x9d1a   :  { %p9042_p5 = pnand %p9040_p4, %p9037_p3 }
0x9d1c   :  { %9045 = shalt.err (!%p9042_p5)
}
0x9d1d   :  { %7197 = dma.vmem_to_hbm [thread:$0]  %s7195_s23, 32, %s9332_s13, [#allocation31]   ;;  %v7159_v8 = vadd.f32 %v7158_v7, %v7157_v4 }
0x9d1e   :  { %s9158_s19 = smov [#allocation33]  }
0x9d1f   :  { %v7160_v24 = vrot.slane %v7159_v8, 1  ;;  %s7206_s9 = sshll.u32 %s9158_s19, 4  ;;  %s7207_s9 = int_to_ptr.vmem [resolvable:$true] %s7206_s9 }
0x9d20   :  { %s9046_s28 = scalar_lea.vmem %s7207_s9, 16  ;;  %s9050_s1 = scalar_lea.vmem %s7207_s9, 32 }
0x9d21   :  { %v7161_v9 = vadd.f32 %v7160_v24, %v7159_v8  ;;  %p9047_p6 = scmp.ne.s32.totalorder %s7207_s9, %s9046_s28  ;;  %p9051_p7 = scmp.lt.s32.totalorder %s7207_s9, %s7207_s9 }
0x9d22   :  { %p9052_p8 = scmp.lt.s32.totalorder %s9050_s1, %s9046_s28 }
0x9d23   :  { %8087 = vpush %v7161_v9 }
0x9d24   :  { %p9053_p9 = por %p9052_p8, %p9051_p7 }
0x9d26   :  { %p9054_p10 = pnand %p9053_p9, %p9047_p6 }
0x9d54   :  { %s8088_s4 = spop %8087 }
0x9d55   :  { %v7163_v12 = vstv %s8088_s4 }
0x9d56   :  { %v7164_v56 = vmul.f32 0.00390625, %v7163_v12 }
0x9d58   :  { %7165 = vst.msk [vmem:[#allocation33] sm:$0x1] %vm3783_vm8, %v7164_v56 }
0x9d59   :  { %9057 = shalt.err (!%p9054_p10)
}
0x9d5a   :  { %s9058_s13 = scalar_lea.hbm %s9342_s24, 16 }
0x9d5b   :  { %p9059_p11 = scmp.ne.s32.totalorder %s9342_s24, %s9058_s13  ;;  %p9062_p12 = scmp.lt.u32.totalorder %s9058_s13, %s9342_s24 }
0x9d5d   :  { %p9064_p13 = pnand %p9062_p12, %p9059_p11 }
0x9d5f   :  { %9067 = shalt.err (!%p9064_p13)
}
0x9d60   :  { %7209 = dma.vmem_to_hbm [thread:$0]  %s7207_s9, 16, %s9342_s24, [#allocation34]  }
0x9d61   :  { %9086 = dma.done.wait [#allocation4], 32  }
0x9d62   :  { %9087 = vsyncadd [#allocation4], 4294967264 }
0x9d63   :  { %9088 = dma.done.wait [#allocation31], 48  }
0x9d64   :  { %9089 = vsyncadd [#allocation31], 4294967248 }
0x9d65   :  { %9090 = dma.done.wait [#allocation34], 16  }
0x9d66   :  { %9091 = vsyncadd [#allocation34], 4294967280 }
0x9d67   :  { %7226 = vsyncpa [#allocation3], 1 }
0x9d68   :  { %7227 = vsyncpa [#allocation6], 1 }
0x9d69   :  { %7228 = vsyncpa [#allocation9], 1 }
0x9d6a   :  { %7229 = vsyncpa [#allocation12], 1 }
0x9d6b   :  { %7230 = vsyncpa [#allocation15], 1 }
0x9d6c   :  { %7231 = vsyncpa [#allocation18], 1 }
0x9d6d   :  { %7232 = vsyncpa [#allocation21], 1 }
0x9d6e   :  { %7233 = vsyncpa [#allocation24], 1 }
0x9d6f   :  { %7234 = vsyncpa [#allocation27], 1 }
0x9d70   :  { %7235 = vsyncpa [#allocation4], 1 }
0x9d71   :  { %7236 = vsyncpa [#allocation31], 1 }
0x9d72   :  { %7237 = vsyncpa [#allocation34], 1 }

</bundles_post_ra>
